<compile_context>
chip_gen: v7x
topology: tpu7x:2x2x1
jax: 0.10.0
libtpu: 0.0.40
codegen_flags: <defaults>
</compile_context>

<pallas_src>
import jax
import jax.numpy as jnp
from jax import lax
from jax.experimental import pallas as pl
from jax.experimental.pallas import tpu as pltpu


_NEG_BIG = -1e30  # finite "-inf": exp underflows to exactly 0, no NaN from inf-inf


def _roll_lanes(x, shift):
    """Static roll along the last axis (jnp.roll semantics: out[i] = x[i-s]).

    Built from two static slices + one concat (layout-safe lowering for any
    lane width).  pltpu.roll would push this to the XLU; swap it in once the
    rotation direction is pinned down for the target toolchain.
    """
    n = x.shape[-1]
    s = shift % n
    if s == 0:
        return x
    return jnp.concatenate([x[..., n - s:], x[..., :n - s]], axis=-1)


def mha_kernel(xq_ref, xkv_ref, wq_ref, wk_ref, wv_ref, wp_ref, bp_ref,
               rope_q_ref, rope_k_ref, o_ref,
               q_scr, acc_scr, m_scr, l_scr):
    qi = pl.program_id(0)          # q-tile            (parallel)
    g = pl.program_id(1)           # head group        (reduction into o_ref)
    kv = pl.program_id(2)          # kv-tile           (online-softmax reduction)
    n_kv = pl.num_programs(2)

    B, tq, Ghs = q_scr.shape
    tkv = xkv_ref.shape[1]
    G = m_scr.shape[0]
    hs = Ghs // G
    half = hs // 2

    # ---- once per q-tile: seed the output block with the projection bias ----
    @pl.when((g == 0) & (kv == 0))
    def _init_out():
        o_ref[...] = jnp.broadcast_to(bp_ref[...][None], o_ref.shape).astype(o_ref.dtype)

    # ---- once per (q-tile, head-group): reset state, project + rotate q -----
    @pl.when(kv == 0)
    def _init_group():
        m_scr[...] = jnp.full_like(m_scr, _NEG_BIG)
        l_scr[...] = jnp.zeros_like(l_scr)
        acc_scr[...] = jnp.zeros_like(acc_scr)
        # 1/sqrt(hs) is pre-folded into Wq (rotary is linear, so it commutes).
        q = jnp.einsum('btc,cd->btd', xq_ref[...], wq_ref[...],
                       preferred_element_type=jnp.float32)
        cos = rope_q_ref[0][None]
        sin_a = rope_q_ref[1][None]     # sign-folded, nonzero on first halves
        sin_b = rope_q_ref[2][None]     # sign-folded, nonzero on second halves
        q_scr[...] = (q * cos
                      + _roll_lanes(q, Ghs - half) * sin_a
                      + _roll_lanes(q, half) * sin_b)

    q_start = qi * tq
    k_start = kv * tkv

    # ---- causal block skip: kv tile entirely above the diagonal -------------
    @pl.when(k_start <= q_start + tq - 1)
    def _attend():
        xkv = xkv_ref[...]
        k = jnp.einsum('btc,cd->btd', xkv, wk_ref[...],
                       preferred_element_type=jnp.float32)
        v = jnp.einsum('btc,cd->btd', xkv, wv_ref[...],
                       preferred_element_type=jnp.float32)
        cos = rope_k_ref[0][None]
        sin_a = rope_k_ref[1][None]
        sin_b = rope_k_ref[2][None]
        k = (k * cos
             + _roll_lanes(k, Ghs - half) * sin_a
             + _roll_lanes(k, half) * sin_b)

        # Causal bias for this (q-tile, kv-tile) -- shared by every head.
        rows = q_start + lax.broadcasted_iota(jnp.int32, (tq, tkv), 0)
        cols = k_start + lax.broadcasted_iota(jnp.int32, (tq, tkv), 1)
        bias = jnp.where(cols <= rows, 0.0, _NEG_BIG).astype(jnp.float32)[None]

        q_all = q_scr[...]
        for h in range(G):                                    # static unroll
            lo, hi = h * hs, (h + 1) * hs
            s = jnp.einsum('bqd,bkd->bqk', q_all[:, :, lo:hi], k[:, :, lo:hi],
                           preferred_element_type=jnp.float32) + bias
            m_prev = m_scr[h]                                 # (B, tq, 1)
            m_new = jnp.maximum(m_prev, jnp.max(s, axis=-1, keepdims=True))
            alpha = jnp.exp(m_prev - m_new)
            p = jnp.exp(s - m_new)
            l_scr[h] = alpha * l_scr[h] + jnp.sum(p, axis=-1, keepdims=True)
            m_scr[h] = m_new
            acc_scr[:, :, lo:hi] = (
                alpha * acc_scr[:, :, lo:hi]
                + jnp.einsum('bqk,bkd->bqd', p, v[:, :, lo:hi],
                             preferred_element_type=jnp.float32))

    # ---- last kv step: normalize + fuse this group's slice of the proj ------
    @pl.when(kv == n_kv - 1)
    def _finalize_group():
        acc = acc_scr[...]
        parts = []
        for h in range(G):
            lo, hi = h * hs, (h + 1) * hs
            inv = pl.reciprocal(l_scr[h], approx=False)       # EUP reciprocal
            parts.append(acc[:, :, lo:hi] * inv)
        ctx = jnp.concatenate(parts, axis=-1)                 # (B, tq, G*hs)
        o_ref[...] += jnp.einsum('bte,ec->btc', ctx, wp_ref[...],
                                 preferred_element_type=jnp.float32).astype(o_ref.dtype)


def mha_pallas(x, wq, wk, wv, wp, bp, *, theta=10000.0, tq=None, tkv=None, group=None):
    """x: (B,T,C); wq/wk/wv: (H,C,hs); wp: (C,C) (applied as concat @ wp); bp: (C,)."""
    B, T, C = x.shape
    H, _, hs = wq.shape
    assert H * hs == C, "proj is Linear(num_embed, num_embed) -> H*hs must equal C"
    assert hs % 2 == 0

    # Head grouping so the q/k/v projection N-dim fills the MXU / vreg lanes.
    # (128 is the safe default; pass group explicitly for 256-wide on v6e/v7x.)
    if group is None:
        group = min(H, max(1, 128 // hs))
        while H % group != 0:
            group -= 1
    G = group
    NG = H // G
    Ghs = G * hs

    # Flash-style sequence tiling.
    if tq is None:
        tq = min(T, 128)
    if tkv is None:
        tkv = min(T, 128)
    assert T % tq == 0 and T % tkv == 0
    assert tq == T or tq % 8 == 0
    assert tkv == T or tkv % 8 == 0
    # tq | tkv => no fully-masked row in any processed tile, so the finite
    # -1e30 mask can never leak probability mass into the online softmax.
    assert tkv % tq == 0

    # Interleaved -> half-split rotary via a per-head even/odd column permute
    # of Wq/Wk (q.k is invariant under the shared permutation; v/Wp untouched).
    perm = jnp.concatenate([jnp.arange(0, hs, 2), jnp.arange(1, hs, 2)])
    scale = 1.0 / float(hs) ** 0.5
    wq_p = wq[:, :, perm] * scale          # fold the softmax scale into Wq
    wk_p = wk[:, :, perm]

    def group_heads(w):                    # (H, C, hs) -> (NG, C, G*hs), heads contiguous
        return w.reshape(NG, G, C, hs).transpose(0, 2, 1, 3).reshape(NG, C, Ghs)

    wq_g = group_heads(wq_p)
    wk_g = group_heads(wk_p)
    wv_g = group_heads(wv)
    wp_g = wp.reshape(NG, Ghs, C)          # Wp rows belonging to each head group
    bp2 = bp.reshape(1, C)

    # Rotary tables, sign-folded and tiled to the grouped head layout.
    half = hs // 2
    inv_freq = 1.0 / (theta ** (jnp.arange(0, hs, 2, dtype=jnp.float32) / hs))
    ang = jnp.arange(T, dtype=jnp.float32)[:, None] * inv_freq[None, :]   # (T, hs/2)
    cos_h, sin_h = jnp.cos(ang), jnp.sin(ang)
    zeros = jnp.zeros_like(sin_h)
    cos_t = jnp.tile(jnp.concatenate([cos_h, cos_h], axis=-1), (1, G))    # (T, G*hs)
    sin_a = jnp.tile(jnp.concatenate([-sin_h, zeros], axis=-1), (1, G))
    sin_b = jnp.tile(jnp.concatenate([zeros, sin_h], axis=-1), (1, G))
    rope = jnp.stack([cos_t, sin_a, sin_b], axis=0).astype(jnp.float32)   # (3, T, G*hs)

    n_q, n_kv = T // tq, T // tkv
    cost = pl.CostEstimate(
        flops=int(6 * B * T * C * C + 2 * B * T * T * C + 2 * B * T * C * C),
        transcendentals=int(B * H * T * T // 2),
        bytes_accessed=int(4 * (2 * x.size + 3 * wq.size + wp.size)),
    )

    grid_spec = pltpu.PrefetchScalarGridSpec(
        num_scalar_prefetch=0,
        grid=(n_q, NG, n_kv),
        in_specs=[
            pl.BlockSpec((B, tq, C), lambda qi, g, kv: (0, qi, 0)),      # x  (q rows)
            pl.BlockSpec((B, tkv, C), lambda qi, g, kv: (0, kv, 0)),     # x  (kv rows)
            pl.BlockSpec((None, C, Ghs), lambda qi, g, kv: (g, 0, 0)),   # Wq group
            pl.BlockSpec((None, C, Ghs), lambda qi, g, kv: (g, 0, 0)),   # Wk group
            pl.BlockSpec((None, C, Ghs), lambda qi, g, kv: (g, 0, 0)),   # Wv group
            pl.BlockSpec((None, Ghs, C), lambda qi, g, kv: (g, 0, 0)),   # Wp rows
            pl.BlockSpec((1, C), lambda qi, g, kv: (0, 0)),              # proj bias
            pl.BlockSpec((3, tq, Ghs), lambda qi, g, kv: (0, qi, 0)),    # rope (q rows)
            pl.BlockSpec((3, tkv, Ghs), lambda qi, g, kv: (0, kv, 0)),   # rope (kv rows)
        ],
        out_specs=pl.BlockSpec((B, tq, C), lambda qi, g, kv: (0, qi, 0)),
        scratch_shapes=[
            pltpu.VMEM((B, tq, Ghs), jnp.float32),    # rotated, pre-scaled q
            pltpu.VMEM((B, tq, Ghs), jnp.float32),    # un-normalized attention output
            pltpu.VMEM((G, B, tq, 1), jnp.float32),   # per-head running max
            pltpu.VMEM((G, B, tq, 1), jnp.float32),   # per-head running denom
        ],
    )
    return pl.pallas_call(
        mha_kernel,
        out_shape=jax.ShapeDtypeStruct((B, T, C), x.dtype),
        grid_spec=grid_spec,
        compiler_params=pltpu.CompilerParams(
            dimension_semantics=("parallel", "arbitrary", "arbitrary")),
        cost_estimate=cost,
    )(x, x, wq_g, wk_g, wv_g, wp_g, bp2, rope, rope)


# ---------------- pure-JAX reference (interleaved rotary, per-head loop) -----
def _rotary_interleaved_ref(t, angles):
    cos = jnp.repeat(jnp.cos(angles), 2, axis=-1)
    sin = jnp.repeat(jnp.sin(angles), 2, axis=-1)
    x = t.reshape(t.shape[:-1] + (t.shape[-1] // 2, 2))
    x1, x2 = x[..., 0], x[..., 1]
    rot = jnp.stack([-x2, x1], axis=-1).reshape(t.shape)
    return t * cos + rot * sin


def mha_ref(x, wq, wk, wv, wp, bp, theta=10000.0):
    B, T, C = x.shape
    H, _, hs = wq.shape
    inv_freq = 1.0 / (theta ** (jnp.arange(0, hs, 2, dtype=jnp.float32) / hs))
    angles = jnp.arange(T, dtype=jnp.float32)[:, None] * inv_freq[None, :]
    mask = jnp.tril(jnp.ones((T, T), dtype=bool))
    outs = []
    for h in range(H):
        q = _rotary_interleaved_ref(x @ wq[h], angles)
        k = _rotary_interleaved_ref(x @ wk[h], angles)
        v = x @ wv[h]
        s = jnp.einsum('bqd,bkd->bqk', q, k) / jnp.sqrt(jnp.float32(hs))
        s = jnp.where(mask[None], s, -jnp.inf)
        p = jax.nn.softmax(s, axis=-1)
        outs.append(jnp.einsum('bqk,bkd->bqd', p, v))
    return jnp.concatenate(outs, axis=-1) @ wp + bp


if __name__ == "__main__":
    # num_heads=8, head_size=32 (== rotary dim), num_embed=256, block_size=T=128
    B, T, C, H, HS = 2, 128, 256, 8, 32

    key = jax.random.PRNGKey(0)
    kx, kq, kk, kv, kp, kb = jax.random.split(key, 6)
    x = jax.random.normal(kx, (B, T, C), dtype=jnp.float32)
    wq = jax.random.normal(kq, (H, C, HS), dtype=jnp.float32) * (1.0 / C ** 0.5)
    wk = jax.random.normal(kk, (H, C, HS), dtype=jnp.float32) * (1.0 / C ** 0.5)
    wv = jax.random.normal(kv, (H, C, HS), dtype=jnp.float32) * (1.0 / C ** 0.5)
    wp = jax.random.normal(kp, (C, C), dtype=jnp.float32) * (1.0 / C ** 0.5)
    bp = jax.random.normal(kb, (C,), dtype=jnp.float32) * 0.01

    # tq/tkv chosen to exercise multi-tile q/kv, multi-group and causal skip.
    out = mha_pallas(x, wq, wk, wv, wp, bp, tq=64, tkv=64)
    out = jax.block_until_ready(out)

    ref = mha_ref(x, wq, wk, wv, wp, bp)
    assert out.shape == (B, T, C)
    err = float(jnp.max(jnp.abs(out - ref)))
    assert jnp.allclose(out, ref, atol=2e-3, rtol=2e-3), err
    print("KERNEL_OK")
</pallas_src>

<mosaic_0001>
module attributes {stable_mosaic.version = 11 : i64} {
  func.func @mha_kernel(%arg0: i32, %arg1: i32, %arg2: i32, %arg3: memref<2x64x256xf32, #tpu.memory_space<vmem>>, %arg4: memref<2x64x256xf32, #tpu.memory_space<vmem>>, %arg5: memref<1x256x128xf32, #tpu.memory_space<vmem>>, %arg6: memref<1x256x128xf32, #tpu.memory_space<vmem>>, %arg7: memref<1x256x128xf32, #tpu.memory_space<vmem>>, %arg8: memref<1x128x256xf32, #tpu.memory_space<vmem>>, %arg9: memref<1x256xf32, #tpu.memory_space<vmem>>, %arg10: memref<3x64x128xf32, #tpu.memory_space<vmem>>, %arg11: memref<3x64x128xf32, #tpu.memory_space<vmem>>, %arg12: memref<2x64x256xf32, #tpu.memory_space<vmem>>, %arg13: memref<2x64x128xf32, #tpu.memory_space<vmem>>, %arg14: memref<2x64x128xf32, #tpu.memory_space<vmem>>, %arg15: memref<4x2x64x1xf32, #tpu.memory_space<vmem>>, %arg16: memref<4x2x64x1xf32, #tpu.memory_space<vmem>>) attributes {dimension_semantics = [#tpu.dimension_semantics<parallel>, #tpu.dimension_semantics<arbitrary>, #tpu.dimension_semantics<arbitrary>], iteration_bounds = array<i64: 2, 2, 2>, scalar_prefetch = 0 : i64, scratch_operands = 4 : i64, tpu.core_type = #tpu.core_type<tc>, window_params = [{transform_indices = @transform_0, window_bounds = array<i64: 2, 64, 256>}, {transform_indices = @transform_1, window_bounds = array<i64: 2, 64, 256>}, {transform_indices = @transform_2, window_bounds = array<i64: 1, 256, 128>}, {transform_indices = @transform_3, window_bounds = array<i64: 1, 256, 128>}, {transform_indices = @transform_4, window_bounds = array<i64: 1, 256, 128>}, {transform_indices = @transform_5, window_bounds = array<i64: 1, 128, 256>}, {pipeline_mode = #tpu.pipeline_mode<synchronous>, transform_indices = @transform_6, window_bounds = array<i64: 1, 256>}, {transform_indices = @transform_7, window_bounds = array<i64: 3, 64, 128>}, {transform_indices = @transform_8, window_bounds = array<i64: 3, 64, 128>}, {transform_indices = @transform_9, window_bounds = array<i64: 2, 64, 256>}]} {
    %c0_i32 = arith.constant 0 : i32
    %0 = arith.cmpi eq, %arg1, %c0_i32 : i32
    %c0_i32_0 = arith.constant 0 : i32
    %1 = arith.cmpi eq, %arg2, %c0_i32_0 : i32
    %2 = arith.andi %0, %1 : i1
    %3 = arith.extui %2 : i1 to i32
    %c0_i32_1 = arith.constant 0 : i32
    %4 = arith.cmpi ne, %3, %c0_i32_1 : i32
    scf.if %4 {
      %c0 = arith.constant 0 : index
      %c0_9 = arith.constant 0 : index
      %18 = vector.load %arg9[%c0, %c0_9] : memref<1x256xf32, #tpu.memory_space<vmem>>, vector<1x256xf32>
      %19 = vector.shape_cast %18 : vector<1x256xf32> to vector<1x1x256xf32>
      %20 = vector.shape_cast %19 : vector<1x1x256xf32> to vector<1x1x256xf32>
      %21 = vector.broadcast %20 : vector<1x1x256xf32> to vector<2x64x256xf32>
      %c0_10 = arith.constant 0 : index
      %c0_11 = arith.constant 0 : index
      %c0_12 = arith.constant 0 : index
      %22 = vector.load %arg12[%c0_10, %c0_11, %c0_12] : memref<2x64x256xf32, #tpu.memory_space<vmem>>, vector<2x64x256xf32>
      tpu.vector_store %arg12[%c0_10, %c0_11, %c0_12], %21 {strides = array<i32>} : memref<2x64x256xf32, #tpu.memory_space<vmem>>, vector<2x64x256xf32>,
    } else {
    }
    %c0_i32_2 = arith.constant 0 : i32
    %5 = arith.cmpi eq, %arg2, %c0_i32_2 : i32
    %6 = arith.extui %5 : i1 to i32
    %c0_i32_3 = arith.constant 0 : i32
    %7 = arith.cmpi ne, %6, %c0_i32_3 : i32
    scf.if %7 {
      %cst = arith.constant -1.000000e+30 : f32
      %18 = vector.broadcast %cst : f32 to vector<4x2x64x1xf32>
      %c0 = arith.constant 0 : index
      %c0_9 = arith.constant 0 : index
      %c0_10 = arith.constant 0 : index
      %c0_11 = arith.constant 0 : index
      %19 = vector.load %arg15[%c0, %c0_9, %c0_10, %c0_11] : memref<4x2x64x1xf32, #tpu.memory_space<vmem>>, vector<4x2x64x1xf32>
      tpu.vector_store %arg15[%c0, %c0_9, %c0_10, %c0_11], %18 {strides = array<i32>} : memref<4x2x64x1xf32, #tpu.memory_space<vmem>>, vector<4x2x64x1xf32>,
      %cst_12 = arith.constant 0.000000e+00 : f32
      %20 = vector.broadcast %cst_12 : f32 to vector<4x2x64x1xf32>
      %c0_13 = arith.constant 0 : index
      %c0_14 = arith.constant 0 : index
      %c0_15 = arith.constant 0 : index
      %c0_16 = arith.constant 0 : index
      %21 = vector.load %arg16[%c0_13, %c0_14, %c0_15, %c0_16] : memref<4x2x64x1xf32, #tpu.memory_space<vmem>>, vector<4x2x64x1xf32>
      tpu.vector_store %arg16[%c0_13, %c0_14, %c0_15, %c0_16], %20 {strides = array<i32>} : memref<4x2x64x1xf32, #tpu.memory_space<vmem>>, vector<4x2x64x1xf32>,
      %cst_17 = arith.constant 0.000000e+00 : f32
      %22 = vector.broadcast %cst_17 : f32 to vector<2x64x128xf32>
      %c0_18 = arith.constant 0 : index
      %c0_19 = arith.constant 0 : index
      %c0_20 = arith.constant 0 : index
      %23 = vector.load %arg14[%c0_18, %c0_19, %c0_20] : memref<2x64x128xf32, #tpu.memory_space<vmem>>, vector<2x64x128xf32>
      tpu.vector_store %arg14[%c0_18, %c0_19, %c0_20], %22 {strides = array<i32>} : memref<2x64x128xf32, #tpu.memory_space<vmem>>, vector<2x64x128xf32>,
      %c0_21 = arith.constant 0 : index
      %c0_22 = arith.constant 0 : index
      %c0_23 = arith.constant 0 : index
      %24 = vector.load %arg3[%c0_21, %c0_22, %c0_23] : memref<2x64x256xf32, #tpu.memory_space<vmem>>, vector<2x64x256xf32>
      %c0_24 = arith.constant 0 : index
      %c0_25 = arith.constant 0 : index
      %c0_26 = arith.constant 0 : index
      %25 = vector.load %arg5[%c0_24, %c0_25, %c0_26] : memref<1x256x128xf32, #tpu.memory_space<vmem>>, vector<1x256x128xf32>
      %26 = vector.shape_cast %25 : vector<1x256x128xf32> to vector<256x128xf32>
      "tpu.trace_start"() <{level = 10 : i32, message = "btc,cd->btd"}> : () -> ()
      %cst_27 = arith.constant dense<0.000000e+00> : vector<2x64x128xf32>
      %27 = tpu.matmul %24, %26, %cst_27 {dimension_numbers = #tpu.dot_dimension_numbers<[2], [0], [0, 1], [1], [0, 0, 0, 1, 1, 1], [], []>} : vector<2x64x256xf32>, vector<256x128xf32>, vector<2x64x128xf32> -> vector<2x64x128xf32>
      "tpu.trace_stop"() : () -> ()
      %c0_28 = arith.constant 0 : index
      %c0_29 = arith.constant 0 : index
      %c0_30 = arith.constant 0 : index
      %28 = vector.load %arg10[%c0_28, %c0_29, %c0_30] : memref<3x64x128xf32, #tpu.memory_space<vmem>>, vector<1x64x128xf32>
      %29 = vector.shape_cast %28 : vector<1x64x128xf32> to vector<64x128xf32>
      %30 = vector.shape_cast %29 : vector<64x128xf32> to vector<1x64x128xf32>
      %c1 = arith.constant 1 : index
      %c0_31 = arith.constant 0 : index
      %c0_32 = arith.constant 0 : index
      %31 = vector.load %arg10[%c1, %c0_31, %c0_32] : memref<3x64x128xf32, #tpu.memory_space<vmem>>, vector<1x64x128xf32>
      %32 = vector.shape_cast %31 : vector<1x64x128xf32> to vector<64x128xf32>
      %33 = vector.shape_cast %32 : vector<64x128xf32> to vector<1x64x128xf32>
      %c2 = arith.constant 2 : index
      %c0_33 = arith.constant 0 : index
      %c0_34 = arith.constant 0 : index
      %34 = vector.load %arg10[%c2, %c0_33, %c0_34] : memref<3x64x128xf32, #tpu.memory_space<vmem>>, vector<1x64x128xf32>
      %35 = vector.shape_cast %34 : vector<1x64x128xf32> to vector<64x128xf32>
      %36 = vector.shape_cast %35 : vector<64x128xf32> to vector<1x64x128xf32>
      %37 = vector.broadcast %30 : vector<1x64x128xf32> to vector<2x64x128xf32>
      %38 = arith.mulf %27, %37 : vector<2x64x128xf32>
      %39 = vector.extract_strided_slice %27 {offsets = [0, 0, 16], sizes = [2, 64, 112], strides = [1, 1, 1]} : vector<2x64x128xf32> to vector<2x64x112xf32>
      %40 = vector.extract_strided_slice %27 {offsets = [0, 0, 0], sizes = [2, 64, 16], strides = [1, 1, 1]} : vector<2x64x128xf32> to vector<2x64x16xf32>
      %41 = tpu.concatenate %39, %40 in 2 : vector<2x64x112xf32>, vector<2x64x16xf32> -> vector<2x64x128xf32>
      %42 = vector.broadcast %33 : vector<1x64x128xf32> to vector<2x64x128xf32>
      %43 = arith.mulf %41, %42 : vector<2x64x128xf32>
      %44 = arith.addf %38, %43 : vector<2x64x128xf32>
      %45 = vector.extract_strided_slice %27 {offsets = [0, 0, 112], sizes = [2, 64, 16], strides = [1, 1, 1]} : vector<2x64x128xf32> to vector<2x64x16xf32>
      %46 = vector.extract_strided_slice %27 {offsets = [0, 0, 0], sizes = [2, 64, 112], strides = [1, 1, 1]} : vector<2x64x128xf32> to vector<2x64x112xf32>
      %47 = tpu.concatenate %45, %46 in 2 : vector<2x64x16xf32>, vector<2x64x112xf32> -> vector<2x64x128xf32>
      %48 = vector.broadcast %36 : vector<1x64x128xf32> to vector<2x64x128xf32>
      %49 = arith.mulf %47, %48 : vector<2x64x128xf32>
      %50 = arith.addf %44, %49 : vector<2x64x128xf32>
      %c0_35 = arith.constant 0 : index
      %c0_36 = arith.constant 0 : index
      %c0_37 = arith.constant 0 : index
      %51 = vector.load %arg13[%c0_35, %c0_36, %c0_37] : memref<2x64x128xf32, #tpu.memory_space<vmem>>, vector<2x64x128xf32>
      tpu.vector_store %arg13[%c0_35, %c0_36, %c0_37], %50 {strides = array<i32>} : memref<2x64x128xf32, #tpu.memory_space<vmem>>, vector<2x64x128xf32>,
    } else {
    }
    %c64_i32 = arith.constant 64 : i32
    %8 = arith.muli %arg0, %c64_i32 : i32
    %c64_i32_4 = arith.constant 64 : i32
    %9 = arith.muli %arg2, %c64_i32_4 : i32
    %c64_i32_5 = arith.constant 64 : i32
    %10 = arith.addi %8, %c64_i32_5 : i32
    %c1_i32 = arith.constant 1 : i32
    %11 = arith.subi %10, %c1_i32 : i32
    %12 = arith.cmpi sle, %9, %11 : i32
    %13 = arith.extui %12 : i1 to i32
    %c0_i32_6 = arith.constant 0 : i32
    %14 = arith.cmpi ne, %13, %c0_i32_6 : i32
    scf.if %14 {
      %c0 = arith.constant 0 : index
      %c0_9 = arith.constant 0 : index
      %c0_10 = arith.constant 0 : index
      %18 = vector.load %arg4[%c0, %c0_9, %c0_10] : memref<2x64x256xf32, #tpu.memory_space<vmem>>, vector<2x64x256xf32>
      %c0_11 = arith.constant 0 : index
      %c0_12 = arith.constant 0 : index
      %c0_13 = arith.constant 0 : index
      %19 = vector.load %arg6[%c0_11, %c0_12, %c0_13] : memref<1x256x128xf32, #tpu.memory_space<vmem>>, vector<1x256x128xf32>
      %20 = vector.shape_cast %19 : vector<1x256x128xf32> to vector<256x128xf32>
      "tpu.trace_start"() <{level = 10 : i32, message = "btc,cd->btd"}> : () -> ()
      %cst = arith.constant dense<0.000000e+00> : vector<2x64x128xf32>
      %21 = tpu.matmul %18, %20, %cst {dimension_numbers = #tpu.dot_dimension_numbers<[2], [0], [0, 1], [1], [0, 0, 0, 1, 1, 1], [], []>} : vector<2x64x256xf32>, vector<256x128xf32>, vector<2x64x128xf32> -> vector<2x64x128xf32>
      "tpu.trace_stop"() : () -> ()
      %c0_14 = arith.constant 0 : index
      %c0_15 = arith.constant 0 : index
      %c0_16 = arith.constant 0 : index
      %22 = vector.load %arg7[%c0_14, %c0_15, %c0_16] : memref<1x256x128xf32, #tpu.memory_space<vmem>>, vector<1x256x128xf32>
      %23 = vector.shape_cast %22 : vector<1x256x128xf32> to vector<256x128xf32>
      "tpu.trace_start"() <{level = 10 : i32, message = "btc,cd->btd"}> : () -> ()
      %cst_17 = arith.constant dense<0.000000e+00> : vector<2x64x128xf32>
      %24 = tpu.matmul %18, %23, %cst_17 {dimension_numbers = #tpu.dot_dimension_numbers<[2], [0], [0, 1], [1], [0, 0, 0, 1, 1, 1], [], []>} : vector<2x64x256xf32>, vector<256x128xf32>, vector<2x64x128xf32> -> vector<2x64x128xf32>
      "tpu.trace_stop"() : () -> ()
      %c0_18 = arith.constant 0 : index
      %c0_19 = arith.constant 0 : index
      %c0_20 = arith.constant 0 : index
      %25 = vector.load %arg11[%c0_18, %c0_19, %c0_20] : memref<3x64x128xf32, #tpu.memory_space<vmem>>, vector<1x64x128xf32>
      %26 = vector.shape_cast %25 : vector<1x64x128xf32> to vector<64x128xf32>
      %27 = vector.shape_cast %26 : vector<64x128xf32> to vector<1x64x128xf32>
      %c1 = arith.constant 1 : index
      %c0_21 = arith.constant 0 : index
      %c0_22 = arith.constant 0 : index
      %28 = vector.load %arg11[%c1, %c0_21, %c0_22] : memref<3x64x128xf32, #tpu.memory_space<vmem>>, vector<1x64x128xf32>
      %29 = vector.shape_cast %28 : vector<1x64x128xf32> to vector<64x128xf32>
      %30 = vector.shape_cast %29 : vector<64x128xf32> to vector<1x64x128xf32>
      %c2 = arith.constant 2 : index
      %c0_23 = arith.constant 0 : index
      %c0_24 = arith.constant 0 : index
      %31 = vector.load %arg11[%c2, %c0_23, %c0_24] : memref<3x64x128xf32, #tpu.memory_space<vmem>>, vector<1x64x128xf32>
      %32 = vector.shape_cast %31 : vector<1x64x128xf32> to vector<64x128xf32>
      %33 = vector.shape_cast %32 : vector<64x128xf32> to vector<1x64x128xf32>
      %34 = vector.broadcast %27 : vector<1x64x128xf32> to vector<2x64x128xf32>
      %35 = arith.mulf %21, %34 : vector<2x64x128xf32>
      %36 = vector.extract_strided_slice %21 {offsets = [0, 0, 16], sizes = [2, 64, 112], strides = [1, 1, 1]} : vector<2x64x128xf32> to vector<2x64x112xf32>
      %37 = vector.extract_strided_slice %21 {offsets = [0, 0, 0], sizes = [2, 64, 16], strides = [1, 1, 1]} : vector<2x64x128xf32> to vector<2x64x16xf32>
      %38 = tpu.concatenate %36, %37 in 2 : vector<2x64x112xf32>, vector<2x64x16xf32> -> vector<2x64x128xf32>
      %39 = vector.broadcast %30 : vector<1x64x128xf32> to vector<2x64x128xf32>
      %40 = arith.mulf %38, %39 : vector<2x64x128xf32>
      %41 = arith.addf %35, %40 : vector<2x64x128xf32>
      %42 = vector.extract_strided_slice %21 {offsets = [0, 0, 112], sizes = [2, 64, 16], strides = [1, 1, 1]} : vector<2x64x128xf32> to vector<2x64x16xf32>
      %43 = vector.extract_strided_slice %21 {offsets = [0, 0, 0], sizes = [2, 64, 112], strides = [1, 1, 1]} : vector<2x64x128xf32> to vector<2x64x112xf32>
      %44 = tpu.concatenate %42, %43 in 2 : vector<2x64x16xf32>, vector<2x64x112xf32> -> vector<2x64x128xf32>
      %45 = vector.broadcast %33 : vector<1x64x128xf32> to vector<2x64x128xf32>
      %46 = arith.mulf %44, %45 : vector<2x64x128xf32>
      %47 = arith.addf %41, %46 : vector<2x64x128xf32>
      %48 = tpu.iota {dimensions = array<i32: 0>} : vector<64x64xi32>
      %49 = vector.broadcast %8 : i32 to vector<64x64xi32>
      %50 = arith.addi %49, %48 : vector<64x64xi32>
      %51 = tpu.iota {dimensions = array<i32: 1>} : vector<64x64xi32>
      %52 = vector.broadcast %9 : i32 to vector<64x64xi32>
      %53 = arith.addi %52, %51 : vector<64x64xi32>
      %54 = arith.cmpi sle, %53, %50 : vector<64x64xi32>
      %cst_25 = arith.constant 0.000000e+00 : f32
      %cst_26 = arith.constant -1.000000e+30 : f32
      %55 = vector.broadcast %cst_25 : f32 to vector<64x64xf32>
      %56 = vector.broadcast %cst_26 : f32 to vector<64x64xf32>
      %57 = arith.select %54, %55, %56 : vector<64x64xi1>, vector<64x64xf32>
      %58 = vector.shape_cast %57 : vector<64x64xf32> to vector<1x64x64xf32>
      %c0_27 = arith.constant 0 : index
      %c0_28 = arith.constant 0 : index
      %c0_29 = arith.constant 0 : index
      %59 = vector.load %arg13[%c0_27, %c0_28, %c0_29] : memref<2x64x128xf32, #tpu.memory_space<vmem>>, vector<2x64x128xf32>
      %60 = vector.extract_strided_slice %59 {offsets = [0, 0, 0], sizes = [2, 64, 32], strides = [1, 1, 1]} : vector<2x64x128xf32> to vector<2x64x32xf32>
      %61 = vector.extract_strided_slice %47 {offsets = [0, 0, 0], sizes = [2, 64, 32], strides = [1, 1, 1]} : vector<2x64x128xf32> to vector<2x64x32xf32>
      "tpu.trace_start"() <{level = 10 : i32, message = "bqd,bkd->bqk"}> : () -> ()
      %cst_30 = arith.constant dense<0.000000e+00> : vector<2x64x64xf32>
      %62 = tpu.matmul %60, %61, %cst_30 {dimension_numbers = #tpu.dot_dimension_numbers<[2], [2], [1], [1], [0, 0, 0, 1, 1, 1], [0], [0]>} : vector<2x64x32xf32>, vector<2x64x32xf32>, vector<2x64x64xf32> -> vector<2x64x64xf32>
      "tpu.trace_stop"() : () -> ()
      %63 = vector.broadcast %58 : vector<1x64x64xf32> to vector<2x64x64xf32>
      %64 = arith.addf %62, %63 : vector<2x64x64xf32>
      %c0_31 = arith.constant 0 : index
      %c0_32 = arith.constant 0 : index
      %c0_33 = arith.constant 0 : index
      %c0_34 = arith.constant 0 : index
      %65 = vector.load %arg15[%c0_31, %c0_32, %c0_33, %c0_34] : memref<4x2x64x1xf32, #tpu.memory_space<vmem>>, vector<1x2x64x1xf32>
      %66 = vector.shape_cast %65 : vector<1x2x64x1xf32> to vector<2x64x1xf32>
      %cst_35 = arith.constant dense<0xFF800000> : vector<2x64xf32>
      %67 = vector.multi_reduction <maximumf>, %64, %cst_35 [2] : vector<2x64x64xf32> to vector<2x64xf32>
      %68 = vector.shape_cast %67 : vector<2x64xf32> to vector<2x64x1xf32>
      %69 = arith.maximumf %66, %68 : vector<2x64x1xf32>
      %70 = arith.subf %66, %69 : vector<2x64x1xf32>
      %71 = math.exp %70 : vector<2x64x1xf32>
      %72 = vector.broadcast %69 : vector<2x64x1xf32> to vector<2x64x64xf32>
      %73 = arith.subf %64, %72 : vector<2x64x64xf32>
      %74 = math.exp %73 : vector<2x64x64xf32>
      %c0_36 = arith.constant 0 : index
      %c0_37 = arith.constant 0 : index
      %c0_38 = arith.constant 0 : index
      %c0_39 = arith.constant 0 : index
      %75 = vector.load %arg16[%c0_36, %c0_37, %c0_38, %c0_39] : memref<4x2x64x1xf32, #tpu.memory_space<vmem>>, vector<1x2x64x1xf32>
      %76 = vector.shape_cast %75 : vector<1x2x64x1xf32> to vector<2x64x1xf32>
      %77 = arith.mulf %71, %76 : vector<2x64x1xf32>
      %cst_40 = arith.constant dense<0.000000e+00> : vector<2x64xf32>
      %78 = vector.multi_reduction <add>, %74, %cst_40 [2] : vector<2x64x64xf32> to vector<2x64xf32>
      %79 = vector.shape_cast %78 : vector<2x64xf32> to vector<2x64x1xf32>
      %80 = arith.addf %77, %79 : vector<2x64x1xf32>
      %c0_41 = arith.constant 0 : index
      %c0_42 = arith.constant 0 : index
      %c0_43 = arith.constant 0 : index
      %c0_44 = arith.constant 0 : index
      %81 = vector.load %arg16[%c0_41, %c0_42, %c0_43, %c0_44] : memref<4x2x64x1xf32, #tpu.memory_space<vmem>>, vector<1x2x64x1xf32>
      %82 = vector.shape_cast %81 : vector<1x2x64x1xf32> to vector<2x64x1xf32>
      %83 = vector.shape_cast %80 : vector<2x64x1xf32> to vector<1x2x64x1xf32>
      tpu.vector_store %arg16[%c0_41, %c0_42, %c0_43, %c0_44], %83 {strides = array<i32>} : memref<4x2x64x1xf32, #tpu.memory_space<vmem>>, vector<1x2x64x1xf32>,
      %c0_45 = arith.constant 0 : index
      %c0_46 = arith.constant 0 : index
      %c0_47 = arith.constant 0 : index
      %c0_48 = arith.constant 0 : index
      %84 = vector.load %arg15[%c0_45, %c0_46, %c0_47, %c0_48] : memref<4x2x64x1xf32, #tpu.memory_space<vmem>>, vector<1x2x64x1xf32>
      %85 = vector.shape_cast %84 : vector<1x2x64x1xf32> to vector<2x64x1xf32>
      %86 = vector.shape_cast %69 : vector<2x64x1xf32> to vector<1x2x64x1xf32>
      tpu.vector_store %arg15[%c0_45, %c0_46, %c0_47, %c0_48], %86 {strides = array<i32>} : memref<4x2x64x1xf32, #tpu.memory_space<vmem>>, vector<1x2x64x1xf32>,
      %c0_49 = arith.constant 0 : index
      %c0_50 = arith.constant 0 : index
      %c0_51 = arith.constant 0 : index
      %87 = vector.load %arg14[%c0_49, %c0_50, %c0_51] : memref<2x64x128xf32, #tpu.memory_space<vmem>>, vector<2x64x32xf32>
      %88 = vector.broadcast %71 : vector<2x64x1xf32> to vector<2x64x32xf32>
      %89 = arith.mulf %88, %87 : vector<2x64x32xf32>
      %90 = vector.extract_strided_slice %24 {offsets = [0, 0, 0], sizes = [2, 64, 32], strides = [1, 1, 1]} : vector<2x64x128xf32> to vector<2x64x32xf32>
      "tpu.trace_start"() <{level = 10 : i32, message = "bqk,bkd->bqd"}> : () -> ()
      %cst_52 = arith.constant dense<0.000000e+00> : vector<2x64x32xf32>
      %91 = tpu.matmul %74, %90, %cst_52 {dimension_numbers = #tpu.dot_dimension_numbers<[2], [1], [1], [2], [0, 0, 0, 1, 1, 2], [0], [0]>} : vector<2x64x64xf32>, vector<2x64x32xf32>, vector<2x64x32xf32> -> vector<2x64x32xf32>
      "tpu.trace_stop"() : () -> ()
      %92 = arith.addf %89, %91 : vector<2x64x32xf32>
      %c0_53 = arith.constant 0 : index
      %c0_54 = arith.constant 0 : index
      %c0_55 = arith.constant 0 : index
      %93 = vector.load %arg14[%c0_53, %c0_54, %c0_55] : memref<2x64x128xf32, #tpu.memory_space<vmem>>, vector<2x64x32xf32>
      tpu.vector_store %arg14[%c0_53, %c0_54, %c0_55], %92 {strides = array<i32>} : memref<2x64x128xf32, #tpu.memory_space<vmem>>, vector<2x64x32xf32>,
      %94 = vector.extract_strided_slice %59 {offsets = [0, 0, 32], sizes = [2, 64, 32], strides = [1, 1, 1]} : vector<2x64x128xf32> to vector<2x64x32xf32>
      %95 = vector.extract_strided_slice %47 {offsets = [0, 0, 32], sizes = [2, 64, 32], strides = [1, 1, 1]} : vector<2x64x128xf32> to vector<2x64x32xf32>
      "tpu.trace_start"() <{level = 10 : i32, message = "bqd,bkd->bqk"}> : () -> ()
      %cst_56 = arith.constant dense<0.000000e+00> : vector<2x64x64xf32>
      %96 = tpu.matmul %94, %95, %cst_56 {dimension_numbers = #tpu.dot_dimension_numbers<[2], [2], [1], [1], [0, 0, 0, 1, 1, 1], [0], [0]>} : vector<2x64x32xf32>, vector<2x64x32xf32>, vector<2x64x64xf32> -> vector<2x64x64xf32>
      "tpu.trace_stop"() : () -> ()
      %97 = vector.broadcast %58 : vector<1x64x64xf32> to vector<2x64x64xf32>
      %98 = arith.addf %96, %97 : vector<2x64x64xf32>
      %c1_57 = arith.constant 1 : index
      %c0_58 = arith.constant 0 : index
      %c0_59 = arith.constant 0 : index
      %c0_60 = arith.constant 0 : index
      %99 = vector.load %arg15[%c1_57, %c0_58, %c0_59, %c0_60] : memref<4x2x64x1xf32, #tpu.memory_space<vmem>>, vector<1x2x64x1xf32>
      %100 = vector.shape_cast %99 : vector<1x2x64x1xf32> to vector<2x64x1xf32>
      %cst_61 = arith.constant dense<0xFF800000> : vector<2x64xf32>
      %101 = vector.multi_reduction <maximumf>, %98, %cst_61 [2] : vector<2x64x64xf32> to vector<2x64xf32>
      %102 = vector.shape_cast %101 : vector<2x64xf32> to vector<2x64x1xf32>
      %103 = arith.maximumf %100, %102 : vector<2x64x1xf32>
      %104 = arith.subf %100, %103 : vector<2x64x1xf32>
      %105 = math.exp %104 : vector<2x64x1xf32>
      %106 = vector.broadcast %103 : vector<2x64x1xf32> to vector<2x64x64xf32>
      %107 = arith.subf %98, %106 : vector<2x64x64xf32>
      %108 = math.exp %107 : vector<2x64x64xf32>
      %c1_62 = arith.constant 1 : index
      %c0_63 = arith.constant 0 : index
      %c0_64 = arith.constant 0 : index
      %c0_65 = arith.constant 0 : index
      %109 = vector.load %arg16[%c1_62, %c0_63, %c0_64, %c0_65] : memref<4x2x64x1xf32, #tpu.memory_space<vmem>>, vector<1x2x64x1xf32>
      %110 = vector.shape_cast %109 : vector<1x2x64x1xf32> to vector<2x64x1xf32>
      %111 = arith.mulf %105, %110 : vector<2x64x1xf32>
      %cst_66 = arith.constant dense<0.000000e+00> : vector<2x64xf32>
      %112 = vector.multi_reduction <add>, %108, %cst_66 [2] : vector<2x64x64xf32> to vector<2x64xf32>
      %113 = vector.shape_cast %112 : vector<2x64xf32> to vector<2x64x1xf32>
      %114 = arith.addf %111, %113 : vector<2x64x1xf32>
      %c1_67 = arith.constant 1 : index
      %c0_68 = arith.constant 0 : index
      %c0_69 = arith.constant 0 : index
      %c0_70 = arith.constant 0 : index
      %115 = vector.load %arg16[%c1_67, %c0_68, %c0_69, %c0_70] : memref<4x2x64x1xf32, #tpu.memory_space<vmem>>, vector<1x2x64x1xf32>
      %116 = vector.shape_cast %115 : vector<1x2x64x1xf32> to vector<2x64x1xf32>
      %117 = vector.shape_cast %114 : vector<2x64x1xf32> to vector<1x2x64x1xf32>
      tpu.vector_store %arg16[%c1_67, %c0_68, %c0_69, %c0_70], %117 {strides = array<i32>} : memref<4x2x64x1xf32, #tpu.memory_space<vmem>>, vector<1x2x64x1xf32>,
      %c1_71 = arith.constant 1 : index
      %c0_72 = arith.constant 0 : index
      %c0_73 = arith.constant 0 : index
      %c0_74 = arith.constant 0 : index
      %118 = vector.load %arg15[%c1_71, %c0_72, %c0_73, %c0_74] : memref<4x2x64x1xf32, #tpu.memory_space<vmem>>, vector<1x2x64x1xf32>
      %119 = vector.shape_cast %118 : vector<1x2x64x1xf32> to vector<2x64x1xf32>
      %120 = vector.shape_cast %103 : vector<2x64x1xf32> to vector<1x2x64x1xf32>
      tpu.vector_store %arg15[%c1_71, %c0_72, %c0_73, %c0_74], %120 {strides = array<i32>} : memref<4x2x64x1xf32, #tpu.memory_space<vmem>>, vector<1x2x64x1xf32>,
      %c0_75 = arith.constant 0 : index
      %c0_76 = arith.constant 0 : index
      %c32 = arith.constant 32 : index
      %121 = vector.load %arg14[%c0_75, %c0_76, %c32] : memref<2x64x128xf32, #tpu.memory_space<vmem>>, vector<2x64x32xf32>
      %122 = vector.broadcast %105 : vector<2x64x1xf32> to vector<2x64x32xf32>
      %123 = arith.mulf %122, %121 : vector<2x64x32xf32>
      %124 = vector.extract_strided_slice %24 {offsets = [0, 0, 32], sizes = [2, 64, 32], strides = [1, 1, 1]} : vector<2x64x128xf32> to vector<2x64x32xf32>
      "tpu.trace_start"() <{level = 10 : i32, message = "bqk,bkd->bqd"}> : () -> ()
      %cst_77 = arith.constant dense<0.000000e+00> : vector<2x64x32xf32>
      %125 = tpu.matmul %108, %124, %cst_77 {dimension_numbers = #tpu.dot_dimension_numbers<[2], [1], [1], [2], [0, 0, 0, 1, 1, 2], [0], [0]>} : vector<2x64x64xf32>, vector<2x64x32xf32>, vector<2x64x32xf32> -> vector<2x64x32xf32>
      "tpu.trace_stop"() : () -> ()
      %126 = arith.addf %123, %125 : vector<2x64x32xf32>
      %c0_78 = arith.constant 0 : index
      %c0_79 = arith.constant 0 : index
      %c32_80 = arith.constant 32 : index
      %127 = vector.load %arg14[%c0_78, %c0_79, %c32_80] : memref<2x64x128xf32, #tpu.memory_space<vmem>>, vector<2x64x32xf32>
      tpu.vector_store %arg14[%c0_78, %c0_79, %c32_80], %126 {strides = array<i32>} : memref<2x64x128xf32, #tpu.memory_space<vmem>>, vector<2x64x32xf32>,
      %128 = vector.extract_strided_slice %59 {offsets = [0, 0, 64], sizes = [2, 64, 32], strides = [1, 1, 1]} : vector<2x64x128xf32> to vector<2x64x32xf32>
      %129 = vector.extract_strided_slice %47 {offsets = [0, 0, 64], sizes = [2, 64, 32], strides = [1, 1, 1]} : vector<2x64x128xf32> to vector<2x64x32xf32>
      "tpu.trace_start"() <{level = 10 : i32, message = "bqd,bkd->bqk"}> : () -> ()
      %cst_81 = arith.constant dense<0.000000e+00> : vector<2x64x64xf32>
      %130 = tpu.matmul %128, %129, %cst_81 {dimension_numbers = #tpu.dot_dimension_numbers<[2], [2], [1], [1], [0, 0, 0, 1, 1, 1], [0], [0]>} : vector<2x64x32xf32>, vector<2x64x32xf32>, vector<2x64x64xf32> -> vector<2x64x64xf32>
      "tpu.trace_stop"() : () -> ()
      %131 = vector.broadcast %58 : vector<1x64x64xf32> to vector<2x64x64xf32>
      %132 = arith.addf %130, %131 : vector<2x64x64xf32>
      %c2_82 = arith.constant 2 : index
      %c0_83 = arith.constant 0 : index
      %c0_84 = arith.constant 0 : index
      %c0_85 = arith.constant 0 : index
      %133 = vector.load %arg15[%c2_82, %c0_83, %c0_84, %c0_85] : memref<4x2x64x1xf32, #tpu.memory_space<vmem>>, vector<1x2x64x1xf32>
      %134 = vector.shape_cast %133 : vector<1x2x64x1xf32> to vector<2x64x1xf32>
      %cst_86 = arith.constant dense<0xFF800000> : vector<2x64xf32>
      %135 = vector.multi_reduction <maximumf>, %132, %cst_86 [2] : vector<2x64x64xf32> to vector<2x64xf32>
      %136 = vector.shape_cast %135 : vector<2x64xf32> to vector<2x64x1xf32>
      %137 = arith.maximumf %134, %136 : vector<2x64x1xf32>
      %138 = arith.subf %134, %137 : vector<2x64x1xf32>
      %139 = math.exp %138 : vector<2x64x1xf32>
      %140 = vector.broadcast %137 : vector<2x64x1xf32> to vector<2x64x64xf32>
      %141 = arith.subf %132, %140 : vector<2x64x64xf32>
      %142 = math.exp %141 : vector<2x64x64xf32>
      %c2_87 = arith.constant 2 : index
      %c0_88 = arith.constant 0 : index
      %c0_89 = arith.constant 0 : index
      %c0_90 = arith.constant 0 : index
      %143 = vector.load %arg16[%c2_87, %c0_88, %c0_89, %c0_90] : memref<4x2x64x1xf32, #tpu.memory_space<vmem>>, vector<1x2x64x1xf32>
      %144 = vector.shape_cast %143 : vector<1x2x64x1xf32> to vector<2x64x1xf32>
      %145 = arith.mulf %139, %144 : vector<2x64x1xf32>
      %cst_91 = arith.constant dense<0.000000e+00> : vector<2x64xf32>
      %146 = vector.multi_reduction <add>, %142, %cst_91 [2] : vector<2x64x64xf32> to vector<2x64xf32>
      %147 = vector.shape_cast %146 : vector<2x64xf32> to vector<2x64x1xf32>
      %148 = arith.addf %145, %147 : vector<2x64x1xf32>
      %c2_92 = arith.constant 2 : index
      %c0_93 = arith.constant 0 : index
      %c0_94 = arith.constant 0 : index
      %c0_95 = arith.constant 0 : index
      %149 = vector.load %arg16[%c2_92, %c0_93, %c0_94, %c0_95] : memref<4x2x64x1xf32, #tpu.memory_space<vmem>>, vector<1x2x64x1xf32>
      %150 = vector.shape_cast %149 : vector<1x2x64x1xf32> to vector<2x64x1xf32>
      %151 = vector.shape_cast %148 : vector<2x64x1xf32> to vector<1x2x64x1xf32>
      tpu.vector_store %arg16[%c2_92, %c0_93, %c0_94, %c0_95], %151 {strides = array<i32>} : memref<4x2x64x1xf32, #tpu.memory_space<vmem>>, vector<1x2x64x1xf32>,
      %c2_96 = arith.constant 2 : index
      %c0_97 = arith.constant 0 : index
      %c0_98 = arith.constant 0 : index
      %c0_99 = arith.constant 0 : index
      %152 = vector.load %arg15[%c2_96, %c0_97, %c0_98, %c0_99] : memref<4x2x64x1xf32, #tpu.memory_space<vmem>>, vector<1x2x64x1xf32>
      %153 = vector.shape_cast %152 : vector<1x2x64x1xf32> to vector<2x64x1xf32>
      %154 = vector.shape_cast %137 : vector<2x64x1xf32> to vector<1x2x64x1xf32>
      tpu.vector_store %arg15[%c2_96, %c0_97, %c0_98, %c0_99], %154 {strides = array<i32>} : memref<4x2x64x1xf32, #tpu.memory_space<vmem>>, vector<1x2x64x1xf32>,
      %c0_100 = arith.constant 0 : index
      %c0_101 = arith.constant 0 : index
      %c64 = arith.constant 64 : index
      %155 = vector.load %arg14[%c0_100, %c0_101, %c64] : memref<2x64x128xf32, #tpu.memory_space<vmem>>, vector<2x64x32xf32>
      %156 = vector.broadcast %139 : vector<2x64x1xf32> to vector<2x64x32xf32>
      %157 = arith.mulf %156, %155 : vector<2x64x32xf32>
      %158 = vector.extract_strided_slice %24 {offsets = [0, 0, 64], sizes = [2, 64, 32], strides = [1, 1, 1]} : vector<2x64x128xf32> to vector<2x64x32xf32>
      "tpu.trace_start"() <{level = 10 : i32, message = "bqk,bkd->bqd"}> : () -> ()
      %cst_102 = arith.constant dense<0.000000e+00> : vector<2x64x32xf32>
      %159 = tpu.matmul %142, %158, %cst_102 {dimension_numbers = #tpu.dot_dimension_numbers<[2], [1], [1], [2], [0, 0, 0, 1, 1, 2], [0], [0]>} : vector<2x64x64xf32>, vector<2x64x32xf32>, vector<2x64x32xf32> -> vector<2x64x32xf32>
      "tpu.trace_stop"() : () -> ()
      %160 = arith.addf %157, %159 : vector<2x64x32xf32>
      %c0_103 = arith.constant 0 : index
      %c0_104 = arith.constant 0 : index
      %c64_105 = arith.constant 64 : index
      %161 = vector.load %arg14[%c0_103, %c0_104, %c64_105] : memref<2x64x128xf32, #tpu.memory_space<vmem>>, vector<2x64x32xf32>
      tpu.vector_store %arg14[%c0_103, %c0_104, %c64_105], %160 {strides = array<i32>} : memref<2x64x128xf32, #tpu.memory_space<vmem>>, vector<2x64x32xf32>,
      %162 = vector.extract_strided_slice %59 {offsets = [0, 0, 96], sizes = [2, 64, 32], strides = [1, 1, 1]} : vector<2x64x128xf32> to vector<2x64x32xf32>
      %163 = vector.extract_strided_slice %47 {offsets = [0, 0, 96], sizes = [2, 64, 32], strides = [1, 1, 1]} : vector<2x64x128xf32> to vector<2x64x32xf32>
      "tpu.trace_start"() <{level = 10 : i32, message = "bqd,bkd->bqk"}> : () -> ()
      %cst_106 = arith.constant dense<0.000000e+00> : vector<2x64x64xf32>
      %164 = tpu.matmul %162, %163, %cst_106 {dimension_numbers = #tpu.dot_dimension_numbers<[2], [2], [1], [1], [0, 0, 0, 1, 1, 1], [0], [0]>} : vector<2x64x32xf32>, vector<2x64x32xf32>, vector<2x64x64xf32> -> vector<2x64x64xf32>
      "tpu.trace_stop"() : () -> ()
      %165 = vector.broadcast %58 : vector<1x64x64xf32> to vector<2x64x64xf32>
      %166 = arith.addf %164, %165 : vector<2x64x64xf32>
      %c3 = arith.constant 3 : index
      %c0_107 = arith.constant 0 : index
      %c0_108 = arith.constant 0 : index
      %c0_109 = arith.constant 0 : index
      %167 = vector.load %arg15[%c3, %c0_107, %c0_108, %c0_109] : memref<4x2x64x1xf32, #tpu.memory_space<vmem>>, vector<1x2x64x1xf32>
      %168 = vector.shape_cast %167 : vector<1x2x64x1xf32> to vector<2x64x1xf32>
      %cst_110 = arith.constant dense<0xFF800000> : vector<2x64xf32>
      %169 = vector.multi_reduction <maximumf>, %166, %cst_110 [2] : vector<2x64x64xf32> to vector<2x64xf32>
      %170 = vector.shape_cast %169 : vector<2x64xf32> to vector<2x64x1xf32>
      %171 = arith.maximumf %168, %170 : vector<2x64x1xf32>
      %172 = arith.subf %168, %171 : vector<2x64x1xf32>
      %173 = math.exp %172 : vector<2x64x1xf32>
      %174 = vector.broadcast %171 : vector<2x64x1xf32> to vector<2x64x64xf32>
      %175 = arith.subf %166, %174 : vector<2x64x64xf32>
      %176 = math.exp %175 : vector<2x64x64xf32>
      %c3_111 = arith.constant 3 : index
      %c0_112 = arith.constant 0 : index
      %c0_113 = arith.constant 0 : index
      %c0_114 = arith.constant 0 : index
      %177 = vector.load %arg16[%c3_111, %c0_112, %c0_113, %c0_114] : memref<4x2x64x1xf32, #tpu.memory_space<vmem>>, vector<1x2x64x1xf32>
      %178 = vector.shape_cast %177 : vector<1x2x64x1xf32> to vector<2x64x1xf32>
      %179 = arith.mulf %173, %178 : vector<2x64x1xf32>
      %cst_115 = arith.constant dense<0.000000e+00> : vector<2x64xf32>
      %180 = vector.multi_reduction <add>, %176, %cst_115 [2] : vector<2x64x64xf32> to vector<2x64xf32>
      %181 = vector.shape_cast %180 : vector<2x64xf32> to vector<2x64x1xf32>
      %182 = arith.addf %179, %181 : vector<2x64x1xf32>
      %c3_116 = arith.constant 3 : index
      %c0_117 = arith.constant 0 : index
      %c0_118 = arith.constant 0 : index
      %c0_119 = arith.constant 0 : index
      %183 = vector.load %arg16[%c3_116, %c0_117, %c0_118, %c0_119] : memref<4x2x64x1xf32, #tpu.memory_space<vmem>>, vector<1x2x64x1xf32>
      %184 = vector.shape_cast %183 : vector<1x2x64x1xf32> to vector<2x64x1xf32>
      %185 = vector.shape_cast %182 : vector<2x64x1xf32> to vector<1x2x64x1xf32>
      tpu.vector_store %arg16[%c3_116, %c0_117, %c0_118, %c0_119], %185 {strides = array<i32>} : memref<4x2x64x1xf32, #tpu.memory_space<vmem>>, vector<1x2x64x1xf32>,
      %c3_120 = arith.constant 3 : index
      %c0_121 = arith.constant 0 : index
      %c0_122 = arith.constant 0 : index
      %c0_123 = arith.constant 0 : index
      %186 = vector.load %arg15[%c3_120, %c0_121, %c0_122, %c0_123] : memref<4x2x64x1xf32, #tpu.memory_space<vmem>>, vector<1x2x64x1xf32>
      %187 = vector.shape_cast %186 : vector<1x2x64x1xf32> to vector<2x64x1xf32>
      %188 = vector.shape_cast %171 : vector<2x64x1xf32> to vector<1x2x64x1xf32>
      tpu.vector_store %arg15[%c3_120, %c0_121, %c0_122, %c0_123], %188 {strides = array<i32>} : memref<4x2x64x1xf32, #tpu.memory_space<vmem>>, vector<1x2x64x1xf32>,
      %c0_124 = arith.constant 0 : index
      %c0_125 = arith.constant 0 : index
      %c96 = arith.constant 96 : index
      %189 = vector.load %arg14[%c0_124, %c0_125, %c96] : memref<2x64x128xf32, #tpu.memory_space<vmem>>, vector<2x64x32xf32>
      %190 = vector.broadcast %173 : vector<2x64x1xf32> to vector<2x64x32xf32>
      %191 = arith.mulf %190, %189 : vector<2x64x32xf32>
      %192 = vector.extract_strided_slice %24 {offsets = [0, 0, 96], sizes = [2, 64, 32], strides = [1, 1, 1]} : vector<2x64x128xf32> to vector<2x64x32xf32>
      "tpu.trace_start"() <{level = 10 : i32, message = "bqk,bkd->bqd"}> : () -> ()
      %cst_126 = arith.constant dense<0.000000e+00> : vector<2x64x32xf32>
      %193 = tpu.matmul %176, %192, %cst_126 {dimension_numbers = #tpu.dot_dimension_numbers<[2], [1], [1], [2], [0, 0, 0, 1, 1, 2], [0], [0]>} : vector<2x64x64xf32>, vector<2x64x32xf32>, vector<2x64x32xf32> -> vector<2x64x32xf32>
      "tpu.trace_stop"() : () -> ()
      %194 = arith.addf %191, %193 : vector<2x64x32xf32>
      %c0_127 = arith.constant 0 : index
      %c0_128 = arith.constant 0 : index
      %c96_129 = arith.constant 96 : index
      %195 = vector.load %arg14[%c0_127, %c0_128, %c96_129] : memref<2x64x128xf32, #tpu.memory_space<vmem>>, vector<2x64x32xf32>
      tpu.vector_store %arg14[%c0_127, %c0_128, %c96_129], %194 {strides = array<i32>} : memref<2x64x128xf32, #tpu.memory_space<vmem>>, vector<2x64x32xf32>,
    } else {
    }
    %c1_i32_7 = arith.constant 1 : i32
    %15 = arith.cmpi eq, %arg2, %c1_i32_7 : i32
    %16 = arith.extui %15 : i1 to i32
    %c0_i32_8 = arith.constant 0 : i32
    %17 = arith.cmpi ne, %16, %c0_i32_8 : i32
    scf.if %17 {
      %c0 = arith.constant 0 : index
      %c0_9 = arith.constant 0 : index
      %c0_10 = arith.constant 0 : index
      %18 = vector.load %arg14[%c0, %c0_9, %c0_10] : memref<2x64x128xf32, #tpu.memory_space<vmem>>, vector<2x64x128xf32>
      %c0_11 = arith.constant 0 : index
      %c0_12 = arith.constant 0 : index
      %c0_13 = arith.constant 0 : index
      %c0_14 = arith.constant 0 : index
      %19 = vector.load %arg16[%c0_11, %c0_12, %c0_13, %c0_14] : memref<4x2x64x1xf32, #tpu.memory_space<vmem>>, vector<1x2x64x1xf32>
      %20 = vector.shape_cast %19 : vector<1x2x64x1xf32> to vector<2x64x1xf32>
      %21 = tpu.reciprocal %20 : vector<2x64x1xf32> -> vector<2x64x1xf32>
      %22 = vector.extract_strided_slice %18 {offsets = [0, 0, 0], sizes = [2, 64, 32], strides = [1, 1, 1]} : vector<2x64x128xf32> to vector<2x64x32xf32>
      %23 = vector.broadcast %21 : vector<2x64x1xf32> to vector<2x64x32xf32>
      %24 = arith.mulf %22, %23 : vector<2x64x32xf32>
      %c1 = arith.constant 1 : index
      %c0_15 = arith.constant 0 : index
      %c0_16 = arith.constant 0 : index
      %c0_17 = arith.constant 0 : index
      %25 = vector.load %arg16[%c1, %c0_15, %c0_16, %c0_17] : memref<4x2x64x1xf32, #tpu.memory_space<vmem>>, vector<1x2x64x1xf32>
      %26 = vector.shape_cast %25 : vector<1x2x64x1xf32> to vector<2x64x1xf32>
      %27 = tpu.reciprocal %26 : vector<2x64x1xf32> -> vector<2x64x1xf32>
      %28 = vector.extract_strided_slice %18 {offsets = [0, 0, 32], sizes = [2, 64, 32], strides = [1, 1, 1]} : vector<2x64x128xf32> to vector<2x64x32xf32>
      %29 = vector.broadcast %27 : vector<2x64x1xf32> to vector<2x64x32xf32>
      %30 = arith.mulf %28, %29 : vector<2x64x32xf32>
      %c2 = arith.constant 2 : index
      %c0_18 = arith.constant 0 : index
      %c0_19 = arith.constant 0 : index
      %c0_20 = arith.constant 0 : index
      %31 = vector.load %arg16[%c2, %c0_18, %c0_19, %c0_20] : memref<4x2x64x1xf32, #tpu.memory_space<vmem>>, vector<1x2x64x1xf32>
      %32 = vector.shape_cast %31 : vector<1x2x64x1xf32> to vector<2x64x1xf32>
      %33 = tpu.reciprocal %32 : vector<2x64x1xf32> -> vector<2x64x1xf32>
      %34 = vector.extract_strided_slice %18 {offsets = [0, 0, 64], sizes = [2, 64, 32], strides = [1, 1, 1]} : vector<2x64x128xf32> to vector<2x64x32xf32>
      %35 = vector.broadcast %33 : vector<2x64x1xf32> to vector<2x64x32xf32>
      %36 = arith.mulf %34, %35 : vector<2x64x32xf32>
      %c3 = arith.constant 3 : index
      %c0_21 = arith.constant 0 : index
      %c0_22 = arith.constant 0 : index
      %c0_23 = arith.constant 0 : index
      %37 = vector.load %arg16[%c3, %c0_21, %c0_22, %c0_23] : memref<4x2x64x1xf32, #tpu.memory_space<vmem>>, vector<1x2x64x1xf32>
      %38 = vector.shape_cast %37 : vector<1x2x64x1xf32> to vector<2x64x1xf32>
      %39 = tpu.reciprocal %38 : vector<2x64x1xf32> -> vector<2x64x1xf32>
      %40 = vector.extract_strided_slice %18 {offsets = [0, 0, 96], sizes = [2, 64, 32], strides = [1, 1, 1]} : vector<2x64x128xf32> to vector<2x64x32xf32>
      %41 = vector.broadcast %39 : vector<2x64x1xf32> to vector<2x64x32xf32>
      %42 = arith.mulf %40, %41 : vector<2x64x32xf32>
      %43 = tpu.concatenate %24, %30, %36, %42 in 2 : vector<2x64x32xf32>, vector<2x64x32xf32>, vector<2x64x32xf32>, vector<2x64x32xf32> -> vector<2x64x128xf32>
      %c0_24 = arith.constant 0 : index
      %c0_25 = arith.constant 0 : index
      %c0_26 = arith.constant 0 : index
      %44 = vector.load %arg12[%c0_24, %c0_25, %c0_26] : memref<2x64x256xf32, #tpu.memory_space<vmem>>, vector<2x64x256xf32>
      %c0_27 = arith.constant 0 : index
      %c0_28 = arith.constant 0 : index
      %c0_29 = arith.constant 0 : index
      %45 = vector.load %arg8[%c0_27, %c0_28, %c0_29] : memref<1x128x256xf32, #tpu.memory_space<vmem>>, vector<1x128x256xf32>
      %46 = vector.shape_cast %45 : vector<1x128x256xf32> to vector<128x256xf32>
      "tpu.trace_start"() <{level = 10 : i32, message = "bte,ec->btc"}> : () -> ()
      %cst = arith.constant dense<0.000000e+00> : vector<2x64x256xf32>
      %47 = tpu.matmul %43, %46, %cst {dimension_numbers = #tpu.dot_dimension_numbers<[2], [0], [0, 1], [1], [0, 0, 0, 1, 1, 1], [], []>} : vector<2x64x128xf32>, vector<128x256xf32>, vector<2x64x256xf32> -> vector<2x64x256xf32>
      "tpu.trace_stop"() : () -> ()
      %48 = arith.addf %44, %47 : vector<2x64x256xf32>
      %c0_30 = arith.constant 0 : index
      %c0_31 = arith.constant 0 : index
      %c0_32 = arith.constant 0 : index
      %49 = vector.load %arg12[%c0_30, %c0_31, %c0_32] : memref<2x64x256xf32, #tpu.memory_space<vmem>>, vector<2x64x256xf32>
      tpu.vector_store %arg12[%c0_30, %c0_31, %c0_32], %48 {strides = array<i32>} : memref<2x64x256xf32, #tpu.memory_space<vmem>>, vector<2x64x256xf32>,
    } else {
    }
    return
  }
  func.func @transform_0(%arg0: i32, %arg1: i32, %arg2: i32) -> (i32, i32, i32) {
    %c0_i32 = arith.constant 0 : i32
    %c0_i32_0 = arith.constant 0 : i32
    %c0_i32_1 = arith.constant 0 : i32
    return %c0_i32, %arg0, %c0_i32_0 : i32, i32, i32
  }
  func.func @transform_1(%arg0: i32, %arg1: i32, %arg2: i32) -> (i32, i32, i32) {
    %c0_i32 = arith.constant 0 : i32
    %c0_i32_0 = arith.constant 0 : i32
    %c0_i32_1 = arith.constant 0 : i32
    return %c0_i32, %arg2, %c0_i32_0 : i32, i32, i32
  }
  func.func @transform_2(%arg0: i32, %arg1: i32, %arg2: i32) -> (i32, i32, i32) {
    %c0_i32 = arith.constant 0 : i32
    %c0_i32_0 = arith.constant 0 : i32
    %c0_i32_1 = arith.constant 0 : i32
    return %arg1, %c0_i32, %c0_i32_0 : i32, i32, i32
  }
  func.func @transform_3(%arg0: i32, %arg1: i32, %arg2: i32) -> (i32, i32, i32) {
    %c0_i32 = arith.constant 0 : i32
    %c0_i32_0 = arith.constant 0 : i32
    %c0_i32_1 = arith.constant 0 : i32
    return %arg1, %c0_i32, %c0_i32_0 : i32, i32, i32
  }
  func.func @transform_4(%arg0: i32, %arg1: i32, %arg2: i32) -> (i32, i32, i32) {
    %c0_i32 = arith.constant 0 : i32
    %c0_i32_0 = arith.constant 0 : i32
    %c0_i32_1 = arith.constant 0 : i32
    return %arg1, %c0_i32, %c0_i32_0 : i32, i32, i32
  }
  func.func @transform_5(%arg0: i32, %arg1: i32, %arg2: i32) -> (i32, i32, i32) {
    %c0_i32 = arith.constant 0 : i32
    %c0_i32_0 = arith.constant 0 : i32
    %c0_i32_1 = arith.constant 0 : i32
    return %arg1, %c0_i32, %c0_i32_0 : i32, i32, i32
  }
  func.func @transform_6(%arg0: i32, %arg1: i32, %arg2: i32) -> (i32, i32) {
    %c0_i32 = arith.constant 0 : i32
    %c0_i32_0 = arith.constant 0 : i32
    %c0_i32_1 = arith.constant 0 : i32
    return %c0_i32, %c0_i32_0 : i32, i32
  }
  func.func @transform_7(%arg0: i32, %arg1: i32, %arg2: i32) -> (i32, i32, i32) {
    %c0_i32 = arith.constant 0 : i32
    %c0_i32_0 = arith.constant 0 : i32
    %c0_i32_1 = arith.constant 0 : i32
    return %c0_i32, %arg0, %c0_i32_0 : i32, i32, i32
  }
  func.func @transform_8(%arg0: i32, %arg1: i32, %arg2: i32) -> (i32, i32, i32) {
    %c0_i32 = arith.constant 0 : i32
    %c0_i32_0 = arith.constant 0 : i32
    %c0_i32_1 = arith.constant 0 : i32
    return %c0_i32, %arg2, %c0_i32_0 : i32, i32, i32
  }
  func.func @transform_9(%arg0: i32, %arg1: i32, %arg2: i32) -> (i32, i32, i32) {
    %c0_i32 = arith.constant 0 : i32
    %c0_i32_0 = arith.constant 0 : i32
    %c0_i32_1 = arith.constant 0 : i32
    return %c0_i32, %arg0, %c0_i32_0 : i32, i32, i32
  }
}

</mosaic_0001>

<bundles_post_ra>
// kernel: tpu_custom_call.1
= control target key start
LH: loop header
LB: loop body
LE: loop exit
PB: predicated region body
PF: predicated region fallthrough
CT: control target
= control target key end

     0   :  { %s15307_s0 = inlined_call_operand.hbm [shape: f32[2,128,256], index: 0, kind: input, shape index: {}]   ;;  %s15308_s1 = inlined_call_operand.hbm [shape: f32[2,128,256], index: 1, kind: input, shape index: {}]   ;;  %s15309_s2 = inlined_call_operand.hbm [shape: f32[2,256,128], index: 2, kind: input, shape index: {}]   ;;  %s15310_s3 = inlined_call_operand.hbm [shape: f32[2,256,128], index: 3, kind: input, shape index: {}]   ;;  %s15311_s4 = inlined_call_operand.hbm [shape: f32[2,256,128], index: 4, kind: input, shape index: {}]   ;;  %s15312_s5 = inlined_call_operand.hbm [shape: f32[2,128,256], index: 5, kind: input, shape index: {}]   ;;  %s15313_s6 = inlined_call_operand.vmem [shape: f32[1,256], index: 6, kind: input, shape index: {}]   ;;  %s15314_s7 = inlined_call_operand.hbm [shape: f32[3,128,128], index: 7, kind: input, shape index: {}]   ;;  %s15315_s8 = inlined_call_operand.hbm [shape: f32[3,128,128], index: 8, kind: input, shape index: {}]   ;;  %s15316_s9 = inlined_call_operand.hbm [shape: f32[2,128,256], index: 9, kind: output, shape index: {}]  }
   0x1   :  { %15467 = sst [smem:[#allocation154_spill]] %s15307_s0 }
   0x2   :  { %15468 = sst [smem:[#allocation155_spill]] %s15308_s1 }
   0x3   :  { %15469 = sst [smem:[#allocation156_spill]] %s15310_s3 }
   0x4   :  { %15470 = sst [smem:[#allocation157_spill]] %s15313_s6 }
   0x5   :  { %15471 = sst [smem:[#allocation158_spill]] %s15316_s9 }
   0x6   :  { %14 = vsyncpa [#allocation7], 0 }
   0x7   :  { %16 = vsyncpa [#allocation7 + $0x1], 0 }
   0x8   :  { %17 = vsyncpa [#allocation10], 0 }
   0x9   :  { %19 = vsyncpa [#allocation10 + $0x1], 0 }
   0xa   :  { %20 = vsyncpa [#allocation13], 0 }
   0xb   :  { %22 = vsyncpa [#allocation13 + $0x1], 0 }
   0xc   :  { %23 = vsyncpa [#allocation16], 0 }
   0xd   :  { %25 = vsyncpa [#allocation16 + $0x1], 0 }
   0xe   :  { %26 = vsyncpa [#allocation19], 0 }
   0xf   :  { %28 = vsyncpa [#allocation19 + $0x1], 0 }
  0x10   :  { %29 = vsyncpa [#allocation8], 0 }
  0x11   :  { %31 = vsyncpa [#allocation8 + $0x1], 0  ;;  %s11025_s30 = smov 0   ;;  %s11027_s10 = smov 0  }
  0x12   :  { %s11029_s11 = smov 0   ;;  %s11031_s12 = smov 0  }
  0x13   :  { %s11033_s13 = smov 0   ;;  %s11035_s14 = smov 0  }
  0x14   :  { %s11037_s15 = smov 0   ;;  %s11039_s16 = smov 0  }
  0x15   :  { %s11041_s17 = smov 0   ;;  %s11043_s18 = smov 0  }
  0x16   :  { %s11045_s19 = smov 0   ;;  %s11047_s20 = smov 0  }
  0x17   :  { %s11049_s21 = smov 0   ;;  %s11051_s22 = smov 0  }
  0x18   :  { %s11053_s23 = smov 0   ;;  %s11055_s24 = smov 0  }
  0x19 LB: > { %15472 = sst [smem:[#allocation43_spill]] %s10867_s10  ;;  %s11106_s25 = sadd.s32 4294967295, %s10923_s24   ;;  %s10923_s24 = sphi %s11055_s24, %s37_s24   ;;  %s10919_s23 = sphi %s11053_s23, %s15869_s23   ;;  %s10915_s22 = sphi %s11051_s22, %s15864_s22   ;;  %s10911_s21 = sphi %s11049_s21, %s15868_s21   ;;  %s10907_s20 = sphi %s11047_s20, %s15867_s20   ;;  %s10903_s19 = sphi %s11045_s19, %s15862_s19   ;;  %s10899_s18 = sphi %s11043_s18, %s15866_s18   ;;  %s10895_s17 = sphi %s11041_s17, %s15861_s17   ;;  %s10891_s16 = sphi %s11039_s16, %s15860_s16   ;;  %s10887_s15 = sphi %s11037_s15, %s15859_s15   ;;  %s10883_s14 = sphi %s11035_s14, %s15858_s14   ;;  %s10879_s13 = sphi %s11033_s13, %s15857_s13   ;;  %s10875_s12 = sphi %s11031_s12, %s15856_s12   ;;  %s10871_s11 = sphi %s11029_s11, %s15855_s11   ;;  %s10867_s10 = sphi %s11027_s10, %s15854_s10   ;;  %s10863_s30 = sphi %s11025_s30, %s15853_s30  }
  0x1a   : > { %15473 = sst [smem:[#allocation44_spill]] %s10871_s11  ;;  %s49_s27 = sadd.s32 1, %s10911_s21 }
  0x1b   : > { %15474 = sst [smem:[#allocation45_spill]] %s10879_s13  ;;  %s52_s28 = sadd.s32 1, %s10915_s22 }
  0x1c   : > { %15475 = sst [smem:[#allocation46_spill]] %s10883_s14  ;;  %p50_p0 = scmp.ge.s32.totalorder %s49_s27, 2 }
  0x1d   : > { %15476 = sst [smem:[#allocation47_spill]] %s10887_s15  ;;  %s56_s29 = sadd.s32 1, %s10919_s23 }
  0x1e   : > { %15477 = sst [smem:[#allocation48_spill]] %s10891_s16  ;;  %s63_s9 = sadd.s32 1, %s10895_s17 }
  0x1f   : > { %15478 = sst [smem:[#allocation49_spill]] %s10895_s17  ;;  %p15325_p1 = scmp.ne.s32.totalorder %s10895_s17, %s10891_s16 }
  0x20   : > { %15479 = sst [smem:[#allocation50_spill]] %s10899_s18  ;;  %s15871_s27 = smov (%p50_p0, %s49_s27), 0 }
  0x21   : > { %15480 = sst [smem:[#allocation51_spill]] %s10903_s19  ;;  %s15873_s28 = smov (!%p50_p0, %s52_s28), %s10915_s22 }
  0x22   : > { %15481 = sst [smem:[#allocation52_spill]] %s10907_s20  ;;  %p71_p2 = scmp.eq.s32.totalorder %s10923_s24, 0 }
  0x23   : > { %15482 = sst [smem:[#allocation53_spill]] %s10915_s22  ;;  %p15323_p3 = scmp.ne.s32.totalorder %s10891_s16, %s10887_s15 }
  0x24   : > { %15483 = sst [smem:[#allocation54_spill]] %s10923_s24  ;;  %p54_p4 = scmp.ge.s32.totalorder %s15873_s28, 2 }
  0x25   : > { %15484 = sst [smem:[#allocation55_spill]] %s11106_s25  ;;  %p77_p5 = scmp.eq.s32.totalorder %s11106_s25, 0 }
  0x26   : > { %15485 = sst [smem:[#allocation56_spill]] %s15871_s27  ;;  %p11127_p6 = por %p71_p2, %p15325_p1 }
  0x27   : > { %s86_s20 = ssub.s32 %s10911_s21, %s15871_s27  ;;  %s15875_s28 = smov (%p54_p4, %s15873_s28), 0 }
  0x28   : > { %15487 = sst [smem:[#allocation57_spill]] %s15875_s28  ;;  %s15877_s29 = smov (!%p54_p4, %s56_s29), %s10919_s23 }
  0x29   : > { %p11141_p7 = por %p77_p5, %p15323_p3  ;;  %p87_p8 = scmp.eq.s32.totalorder %s86_s20, 0 }
  0x2a   : > { %p58_p9 = scmp.ge.s32.totalorder %s15877_s29, 2  ;;  %s89_s18 = sadd.s32 1, %s10883_s14 }
  0x2b   : > { %s15488_s6 = scalar_select %p11141_p7, 1, 0 }
  0x2c   : > { %s11147_s27 = scalar_select %p87_p8, %s10883_s14, %s89_s18  }
  0x2d   : > { %15489 = sst [smem:[#allocation58_spill]] %s15488_s6  ;;  %s15879_s29 = smov (%p58_p9, %s15877_s29), 0 }
  0x2e   : > { %15490 = sst [smem:[#allocation59_spill]] %s11147_s27  ;;  %p96_p10 = scmp.ne.s32.totalorder %s10883_s14, %s10879_s13 }
  0x2f   : > { %15491 = sst [smem:[#allocation60_spill]] %s15879_s29  ;;  %p102_p11 = scmp.ne.s32.totalorder %s10879_s13, %s10875_s12 }
  0x30   : > { %s60_s19 = ssub.s32 %s10919_s23, %s15879_s29  ;;  %s112_s20 = ssub.s32 %s10915_s22, %s15875_s28 }
  0x31   : > { %p61_p12 = scmp.eq.s32.totalorder %s60_s19, 0  ;;  %p11161_p13 = por %p96_p10, %p71_p2 }
  0x32   : > { %p11167_p0 = por %p102_p11, %p77_p5  ;;  %p113_p4 = scmp.eq.s32.totalorder %s112_s20, 0 }
  0x33   : > { %s15492_s6 = scalar_select %p11161_p13, 1, 0 }
  0x34   : > { %s15493_s18 = scalar_select %p11167_p0, 1, 0 }
  0x35   : > { %s11172_s27 = scalar_select %p61_p12, %s10895_s17, %s63_s9  }
  0x36   : > { %15494 = sst [smem:[#allocation61_spill]] %s15493_s18  ;;  %s115_s12 = sadd.s32 1, %s10871_s11 }
  0x37   : > { %15495 = sst [smem:[#allocation62_spill]] %s11172_s27  ;;  %p122_p8 = scmp.ne.s32.totalorder %s10871_s11, %s10867_s10 }
  0x38   : > { %s11178_s29 = scalar_select %p113_p4, %s10871_s11, %s115_s12  }
  0x39   : > { %p11182_p9 = por %p122_p8, %p71_p2  ;;  %p128_p10 = scmp.ne.s32.totalorder %s10867_s10, %s10863_s30 }
  0x3a   : > { %15496 = sst [smem:[#allocation63_spill]] %s11178_s29  ;;  %p303_p3 = scmp.eq.s32.totalorder %s11106_s25, 7 }
  0x3b   : > { %s15498_s28 = sadd.s32 4294967294, %s10923_s24   ;;  %p11193_p11 = por %p128_p10, %p77_p5 }
  0x3c   : > { %p309_p1 = scmp.eq.s32.totalorder %s15498_s28, 7  ;;  %p15501_p12 = scmp.ne.s32.totalorder %s10895_s17, %s10891_s16 }
  0x3d   : > { %s15499_s13 = scalar_select %p11193_p11, 1, 0 }
  0x3e   : > { %p11200_p0 = por %p303_p3, %p15501_p12  ;;  %p15504_p4 = scmp.ne.s32.totalorder %s10891_s16, %s10887_s15 }
  0x3f   : > { %15500 = sst [smem:[#allocation64_spill]] %s15499_s13  ;;  %p8046_p2 = scmp.ge.s32.totalorder %s10923_s24, 8 }
  0x40   : > { %s15502_s9 = scalar_select %p11200_p0, 1, 0 }
  0x41   : > { %p11207_p7 = por %p309_p1, %p15504_p4  ;;  %328 = sbr.rel (%p8046_p2) target bundleno = 227 (0xe3), region = 20 }
  0x42   : > { %15503 = sst [smem:[#allocation65_spill]] %s15502_s9 }
  0x43   : > { %s15505_s20 = scalar_select %p11207_p7, 1, 0 }
  0x45   : > { %15506 = sst [smem:[#allocation66_spill]] %s15505_s20 }
  0x48   : > { %s11213_s30 = sand.u32 1, %s10895_s17   ;;  %s8323_s28 = sshll.u32 %s10919_s23, 11 }
  0x49   : > { %s8047_s12 = sshll.u32 %s11213_s30, 8  ;;  %s15507_s0 = sld [smem:[#allocation154_spill]] }
  0x4a   : > { %s9762_s15 = scalar_select %p11127_p6, [#allocation0], [#allocation31] }
  0x4b   : > { %s336_s9 = scalar_lea.vmem [#allocation6], %s8047_s12  ;;  %s10925_s17 = smov 4096  }
  0x4c   : > { %s356_s13 = sshll.u32 %s336_s9, 4  ;;  %s348_s10 = sld [smem:[%s9762_s15]]   ;;  %s357_s13 = int_to_ptr.vmem [resolvable:$true] %s356_s13 }
  0x4d   : > { %9763 = sst [smem:[#allocation22]] (%p11127_p6), %s10925_s17  ;;  %s10926_s18 = smov 2048  }
  0x4e   : > { %9764 = sst [smem:[#allocation22 + $0x1]] (%p11127_p6), %s10926_s18  ;;  %s10927_s25 = smov 8  }
  0x4f   : > { %s343_s20 = scalar_lea.hbm %s15507_s0, %s8323_s28  ;;  %9765 = sst [smem:[#allocation22 + $0x2]] (%p11127_p6), %s10927_s25 }
  0x50   : > { %s10928_s27 = smov 256   ;;  %s10929_s9 = smov 16  }
  0x51   : > { %9766 = sst [smem:[#allocation22 + $0x3]] (%p11127_p6), %s10928_s27  ;;  %s333_s28 = scalar_lea.sflag [#allocation7], %s11213_s30 }
  0x52   : > { %9767 = sst [smem:[#allocation22 + $0x4]] (%p11127_p6), %s10928_s27  ;;  %s8051_s29 = sshll.u32 %s348_s10, 26 }
  0x53   : > { %9768 = sst [smem:[#allocation22 + $0x5]] (%p11127_p6), %s10929_s9  ;;  %s8052_s15 = sadd.s32 134217728, %s8051_s29 }
  0x54   : > { %s10930_s12 = smov [#allocation21]  }
  0x55   : > { %9769 = dma.general (%p11127_p6), %s343_s20, 4096, %s357_s13, %s333_s28, %s10930_s12, [#allocation22], %s8052_s15, 0  }
  0x56   : > { %s11238_s17 = sand.u32 1, %s10923_s24   ;;  %s11241_s25 = sand.u32 1, %s10883_s14  }
  0x57   : > { %s8053_s10 = sshll.u32 %s11241_s25, 8  ;;  %s8325_s18 = sshll.u32 %s10911_s21, 11 }
  0x58   : > { %s15508_s1 = sld [smem:[#allocation155_spill]]  ;;  %s383_s9 = scalar_lea.vmem [#allocation9], %s8053_s10 }
  0x59   : > { %s9770_s20 = scalar_select %p11161_p13, [#allocation0], [#allocation32] }
  0x5a   : > { %s403_s15 = sshll.u32 %s383_s9, 4  ;;  %s10931_s12 = smov 4096   ;;  %s404_s15 = int_to_ptr.vmem [resolvable:$true] %s403_s15 }
  0x5b   : > { %s395_s28 = sld [smem:[%s9770_s20]]   ;;  %s10932_s0 = smov 2048  }
  0x5c   : > { %9771 = sst [smem:[#allocation24]] (%p11161_p13), %s10931_s12  ;;  %s10933_s14 = smov 8  }
  0x5d   : > { %9772 = sst [smem:[#allocation24 + $0x1]] (%p11161_p13), %s10932_s0  ;;  %s10935_s27 = smov 16  }
  0x5e   : > { %s390_s13 = scalar_lea.hbm %s15508_s1, %s8325_s18  ;;  %9773 = sst [smem:[#allocation24 + $0x2]] (%p11161_p13), %s10933_s14 }
  0x5f   : > { %s10934_s18 = smov 256   ;;  %9776 = sst [smem:[#allocation24 + $0x5]] (%p11161_p13), %s10935_s27 }
  0x60   : > { %9774 = sst [smem:[#allocation24 + $0x3]] (%p11161_p13), %s10934_s18  ;;  %s15341_s20 = scalar_lea.sflag [#allocation10], %s11238_s17 }
  0x61   : > { %9775 = sst [smem:[#allocation24 + $0x4]] (%p11161_p13), %s10934_s18  ;;  %s8057_s10 = sshll.u32 %s395_s28, 26 }
  0x62   : > { %s8058_s29 = sadd.s32 134217728, %s8057_s10  ;;  %s10936_s9 = smov [#allocation23]  }
  0x63   : > { %9777 = dma.general (%p11161_p13), %s390_s13, 4096, %s404_s15, %s15341_s20, %s10936_s9, [#allocation24], %s8058_s29, 0  }
  0x64   : > { %s428_s0 = sand.u32 1, %s10871_s11   ;;  %s11269_s14 = sshll.u32 %s10915_s22, 12 }
  0x65   : > { %s11271_s12 = sshll.u32 %s428_s0, 8  ;;  %s15509_s3 = sld [smem:[#allocation156_spill]] }
  0x66   : > { %s451_s13 = scalar_lea.vmem [#allocation12], %s11271_s12  ;;  %s11286_s9 = scalar_lea.hbm %s15309_s2, %s11269_s14 }
  0x67   : > { %s458_s15 = sshll.u32 %s451_s13, 4  ;;  %s448_s0 = scalar_lea.sflag [#allocation13], %s11238_s17  ;;  %s11280_s15 = int_to_ptr.vmem [resolvable:$true] %s458_s15 }
  0x6b   : > { %s11277_s10 = scalar_lea.hbm %s15509_s3, %s11269_s14  ;;  %s10657_s1 = scalar_lea.hbm %s15509_s3, 8192 }
  0x6c   : > { %s10653_s20 = scalar_lea.hbm %s11277_s10, 4096  ;;  %p10658_p8 = scmp.lt.u32.totalorder %s11277_s10, %s15509_s3 }
  0x6d   : > { %p10654_p1 = scmp.ne.s32.totalorder %s11277_s10, %s10653_s20  ;;  %p10659_p10 = scmp.lt.u32.totalorder %s10657_s1, %s10653_s20 }
  0x6e   : > { %p10661_p4 = scmp.lt.u32.totalorder %s10653_s20, %s11277_s10 }
  0x6f   : > { %p10655_p3 = pnand %p10654_p1, %p11182_p9  ;;  %p10660_p12 = por %p10659_p10, %p10658_p8 }
  0x71   : > { %p10656_p5 = pneg %p10655_p3  ;;  %p10662_p2 = por %p10661_p4, %p10660_p12 }
  0x73   : > { %p10663_p7 = pnand %p10662_p2, %p10656_p5 }
  0x75   : > { %10666 = shalt.err (!%p10663_p7)
}
  0x76   : > { %s10667_s13 = scalar_lea.vmem %s11280_s15, 4096  ;;  %s10937_s27 = smov [#allocation12]  }
  0x77   : > { %p10668_p1 = scmp.ne.s32.totalorder %s11280_s15, %s10667_s13  ;;  %s10671_s29 = sshll.u32 %s10937_s27, 4  ;;  %s10672_s29 = int_to_ptr.vmem [resolvable:$false] %s10671_s29 }
  0x78   : > { %s10673_s11 = scalar_lea.vmem %s10672_s29, 8192  ;;  %p10674_p11 = scmp.lt.s32.totalorder %s11280_s15, %s10672_s29 }
  0x79   : > { %p10669_p3 = pnand %p10668_p1, %p11182_p9  ;;  %p10675_p13 = scmp.lt.s32.totalorder %s10673_s11, %s10667_s13 }
  0x7b   : > { %p10670_p0 = pneg %p10669_p3  ;;  %p10676_p8 = por %p10675_p13, %p10674_p11 }
  0x7d   : > { %p10677_p10 = pnand %p10676_p8, %p10670_p0 }
  0x7f   : > { %10680 = shalt.err (!%p10677_p10)
}
  0x80   : > { %s10938_s1 = smov 128   ;;  %s10939_s22 = smov 8  }
  0x81   : > { %9779 = dma.hbm_to_vmem [thread:$0]  (%p11182_p9), %s11277_s10, 4096, %s11280_s15, %s448_s0, %s10938_s1, %s10938_s1, %s10939_s22  }
  0x82   : > { %s430_s20 = scalar_lea.vmem [#allocation11], %s11271_s12  ;;  %s11322_s27 = scalar_lea.hbm %s15311_s4, %s11269_s14 }
  0x83   : > { %s437_s28 = sshll.u32 %s430_s20, 4  ;;  %s10681_s29 = scalar_lea.hbm %s11286_s9, 4096  ;;  %s11316_s28 = int_to_ptr.vmem [resolvable:$true] %s437_s28 }
  0x84   : > { %p10682_p7 = scmp.ne.s32.totalorder %s11286_s9, %s10681_s29  ;;  %s10685_s16 = scalar_lea.hbm %s15309_s2, 8192 }
  0x85   : > { %p10686_p11 = scmp.lt.u32.totalorder %s11286_s9, %s15309_s2  ;;  %p10687_p5 = scmp.lt.u32.totalorder %s10685_s16, %s10681_s29 }
  0x86   : > { %p10683_p13 = pnand %p10682_p7, %p11182_p9  ;;  %p10689_p4 = scmp.lt.u32.totalorder %s10681_s29, %s11286_s9 }
  0x87   : > { %p10688_p12 = por %p10687_p5, %p10686_p11 }
  0x88   : > { %p10684_p0 = pneg %p10683_p13 }
  0x89   : > { %p10690_p2 = por %p10689_p4, %p10688_p12 }
  0x8b   : > { %p10691_p1 = pnand %p10690_p2, %p10684_p0 }
  0x8d   : > { %10694 = shalt.err (!%p10691_p1)
}
  0x8e   : > { %s10695_s15 = scalar_lea.vmem %s11316_s28, 4096  ;;  %s10940_s3 = smov [#allocation11]  }
  0x8f   : > { %p10696_p3 = scmp.ne.s32.totalorder %s11316_s28, %s10695_s15  ;;  %s10699_s20 = sshll.u32 %s10940_s3, 4  ;;  %s10700_s20 = int_to_ptr.vmem [resolvable:$false] %s10699_s20 }
  0x90   : > { %s10701_s24 = scalar_lea.vmem %s10700_s20, 8192  ;;  %p10702_p7 = scmp.lt.s32.totalorder %s11316_s28, %s10700_s20 }
  0x91   : > { %p10697_p8 = pnand %p10696_p3, %p11182_p9  ;;  %p10703_p13 = scmp.lt.s32.totalorder %s10701_s24, %s10695_s15 }
  0x93   : > { %p10698_p10 = pneg %p10697_p8  ;;  %p10704_p11 = por %p10703_p13, %p10702_p7 }
  0x95   : > { %p10705_p5 = pnand %p10704_p11, %p10698_p10 }
  0x97   : > { %10708 = shalt.err (!%p10705_p5)
}
  0x98   : > { %s15510_s16 = scalar_lea.sflag [#allocation10], %s11238_s17  ;;  %s472_s18 = scalar_lea.vmem [#allocation14], %s11271_s12 }
  0x99   : > { %9778 = dma.hbm_to_vmem [thread:$0]  (%p11182_p9), %s11286_s9, 4096, %s11316_s28, %s15510_s16, %s10938_s1, %s10938_s1, %s10939_s22  }
  0x9a   : > { %s479_s13 = sshll.u32 %s472_s18, 4  ;;  %s10709_s29 = scalar_lea.hbm %s11322_s27, 4096  ;;  %s11351_s13 = int_to_ptr.vmem [resolvable:$true] %s479_s13 }
  0x9b   : > { %p10710_p0 = scmp.ne.s32.totalorder %s11322_s27, %s10709_s29  ;;  %s10713_s15 = scalar_lea.hbm %s15311_s4, 8192 }
  0x9c   : > { %p10714_p2 = scmp.lt.u32.totalorder %s11322_s27, %s15311_s4  ;;  %p10715_p1 = scmp.lt.u32.totalorder %s10713_s15, %s10709_s29 }
  0x9d   : > { %p10711_p12 = pnand %p10710_p0, %p11182_p9  ;;  %p10717_p8 = scmp.lt.u32.totalorder %s10709_s29, %s11322_s27 }
  0x9e   : > { %p10716_p3 = por %p10715_p1, %p10714_p2 }
  0x9f   : > { %p10712_p4 = pneg %p10711_p12 }
  0xa0   : > { %p10718_p10 = por %p10717_p8, %p10716_p3 }
  0xa2   : > { %p10719_p7 = pnand %p10718_p10, %p10712_p4 }
  0xa4   : > { %10722 = shalt.err (!%p10719_p7)
}
  0xa5   : > { %s10723_s9 = scalar_lea.vmem %s11351_s13, 4096  ;;  %s10941_s28 = smov [#allocation14]  }
  0xa6   : > { %p10724_p13 = scmp.ne.s32.totalorder %s11351_s13, %s10723_s9  ;;  %s10727_s24 = sshll.u32 %s10941_s28, 4  ;;  %s10728_s24 = int_to_ptr.vmem [resolvable:$false] %s10727_s24 }
  0xa7   : > { %s10729_s16 = scalar_lea.vmem %s10728_s24, 8192  ;;  %p10730_p0 = scmp.lt.s32.totalorder %s11351_s13, %s10728_s24 }
  0xa8   : > { %p10725_p11 = pnand %p10724_p13, %p11182_p9  ;;  %p10731_p12 = scmp.lt.s32.totalorder %s10729_s16, %s10723_s9 }
  0xaa   : > { %p10726_p5 = pneg %p10725_p11  ;;  %p10732_p2 = por %p10731_p12, %p10730_p0 }
  0xac   : > { %p10733_p1 = pnand %p10732_p2, %p10726_p5 }
  0xae   : > { %10736 = shalt.err (!%p10733_p1)
}
  0xaf   : > { %9780 = dma.hbm_to_vmem [thread:$0]  (%p11182_p9), %s11322_s27, 4096, %s11351_s13, %s448_s0, %s10938_s1, %s10938_s1, %s10939_s22  }
  0xb0   : > { %s11383_s11 = scalar_lea.hbm %s15312_s5, %s11269_s14  ;;  %s493_s10 = scalar_lea.vmem [#allocation15], %s11271_s12 }
  0xb1   : > { %s500_s15 = sshll.u32 %s493_s10, 4  ;;  %s490_s3 = scalar_lea.sflag [#allocation16], %s11238_s17  ;;  %s11386_s15 = int_to_ptr.vmem [resolvable:$true] %s500_s15 }
  0xb2   : > { %s10737_s20 = scalar_lea.hbm %s11383_s11, 4096  ;;  %s10741_s22 = scalar_lea.hbm %s15312_s5, 8192 }
  0xb3   : > { %p10738_p4 = scmp.ne.s32.totalorder %s11383_s11, %s10737_s20  ;;  %p10742_p10 = scmp.lt.u32.totalorder %s11383_s11, %s15312_s5 }
  0xb4   : > { %p10743_p7 = scmp.lt.u32.totalorder %s10741_s22, %s10737_s20  ;;  %p10745_p11 = scmp.lt.u32.totalorder %s10737_s20, %s11383_s11 }
  0xb5   : > { %p10739_p3 = pnand %p10738_p4, %p11182_p9 }
  0xb6   : > { %p10744_p13 = por %p10743_p7, %p10742_p10 }
  0xb7   : > { %p10740_p8 = pneg %p10739_p3 }
  0xb8   : > { %p10746_p5 = por %p10745_p11, %p10744_p13 }
  0xba   : > { %p10747_p0 = pnand %p10746_p5, %p10740_p8 }
  0xbc   : > { %10750 = shalt.err (!%p10747_p0)
}
  0xbd   : > { %s10751_s12 = scalar_lea.vmem %s11386_s15, 4096  ;;  %s10942_s13 = smov [#allocation15]  }
  0xbe   : > { %p10752_p12 = scmp.ne.s32.totalorder %s11386_s15, %s10751_s12  ;;  %s10755_s9 = sshll.u32 %s10942_s13, 4  ;;  %s10756_s9 = int_to_ptr.vmem [resolvable:$false] %s10755_s9 }
  0xbf   : > { %s10757_s28 = scalar_lea.vmem %s10756_s9, 8192  ;;  %p10758_p4 = scmp.lt.s32.totalorder %s11386_s15, %s10756_s9 }
  0xc0   : > { %p10753_p2 = pnand %p10752_p12, %p11182_p9  ;;  %p10759_p3 = scmp.lt.s32.totalorder %s10757_s28, %s10751_s12 }
  0xc2   : > { %p10754_p1 = pneg %p10753_p2  ;;  %p10760_p10 = por %p10759_p3, %p10758_p4 }
  0xc4   : > { %p10761_p7 = pnand %p10760_p10, %p10754_p1 }
  0xc6   : > { %10764 = shalt.err (!%p10761_p7)
}
  0xc7   : > { %s10943_s24 = smov 256   ;;  %s10944_s16 = smov 16  }
  0xc8   : > { %9781 = dma.hbm_to_vmem [thread:$0]  (%p11182_p9), %s11383_s11, 4096, %s11386_s15, %s490_s3, %s10943_s24, %s10943_s24, %s10944_s16  }
  0xc9   : > { %s9758_s18 = smul.u32 192, %s11213_s30  ;;  %s10945_s29 = smov 2048  }
  0xca   : > { %9783 = sst [smem:[#allocation26]] (%p11127_p6), %s10945_s29  ;;  %s8330_s20 = sshll.u32 %s10919_s23, 10 }
  0xcb   : > { %s9782_s10 = scalar_select %p11127_p6, [#allocation0], [#allocation33] }
  0xcc   : > { %s514_s19 = scalar_lea.vmem [#allocation17], %s9758_s18  ;;  %s10946_s15 = smov 1024  }
  0xcd   : > { %s525_s0 = sld [smem:[%s9782_s10]]   ;;  %s533_s11 = sshll.u32 %s514_s19, 4  ;;  %s534_s11 = int_to_ptr.vmem [resolvable:$true] %s533_s11 }
  0xce   : > { %9784 = sst [smem:[#allocation26 + $0x1]] (%p11127_p6), %s10946_s15  ;;  %s10947_s1 = smov 8  }
  0xcf   : > { %9785 = sst [smem:[#allocation26 + $0x2]] (%p11127_p6), %s10947_s1  ;;  %s520_s14 = scalar_lea.hbm %s15314_s7, %s8330_s20 }
  0xd0   : > { %s10948_s27 = smov 128   ;;  %9788 = sst [smem:[#allocation26 + $0x5]] (%p11127_p6), %s10947_s1 }
  0xd1   : > { %9786 = sst [smem:[#allocation26 + $0x3]] (%p11127_p6), %s10948_s27  ;;  %s10949_s9 = smov [#allocation25]  }
  0xd2   : > { %9787 = sst [smem:[#allocation26 + $0x4]] (%p11127_p6), %s10948_s27 }
  0xd3   : > { %s8073_s12 = sshll.u32 %s525_s0, 26 }
  0xd4   : > { %s8074_s13 = sadd.s32 134217728, %s8073_s12 }
  0xd5   : > { %9789 = dma.general (%p11127_p6), %s520_s14, 3072, %s534_s11, %s490_s3, %s10949_s9, [#allocation26], %s8074_s13, 0  }
  0xd6   : > { %s9759_s28 = smul.u32 192, %s11241_s25  ;;  %p15511_p9 = scmp.ne.s32.totalorder %s15492_s6, 0 }
  0xd7   : > { %s8331_s16 = sshll.u32 %s10911_s21, 10  ;;  %s10950_s18 = smov 2048  }
  0xd8   : > { %s9790_s24 = scalar_select %p15511_p9, [#allocation0], [#allocation34] }
  0xd9   : > { %9791 = sst [smem:[#allocation28]] (%p15511_p9), %s10950_s18  ;;  %s560_s17 = scalar_lea.vmem [#allocation18], %s9759_s28 }
  0xda   : > { %s571_s26 = sld [smem:[%s9790_s24]]   ;;  %s579_s3 = sshll.u32 %s560_s17, 4  ;;  %s580_s3 = int_to_ptr.vmem [resolvable:$true] %s579_s3 }
  0xdb   : > { %s10951_s29 = smov 1024   ;;  %s566_s0 = scalar_lea.hbm %s15315_s8, %s8331_s16 }
  0xdc   : > { %9792 = sst [smem:[#allocation28 + $0x1]] (%p15511_p9), %s10951_s29  ;;  %s10952_s19 = smov 8  }
  0xdd   : > { %9793 = sst [smem:[#allocation28 + $0x2]] (%p15511_p9), %s10952_s19  ;;  %s10953_s11 = smov 128  }
  0xde   : > { %9794 = sst [smem:[#allocation28 + $0x3]] (%p15511_p9), %s10953_s11  ;;  %s557_s30 = scalar_lea.sflag [#allocation19], %s11241_s25 }
  0xdf   : > { %9795 = sst [smem:[#allocation28 + $0x4]] (%p15511_p9), %s10953_s11  ;;  %s10954_s22 = smov [#allocation27]  }
  0xe0   : > { %s8077_s15 = sshll.u32 %s571_s26, 26  ;;  %9796 = sst [smem:[#allocation28 + $0x5]] (%p15511_p9), %s10952_s19 }
  0xe1   : > { %s8078_s1 = sadd.s32 134217728, %s8077_s15 }
  0xe2   : > { %9797 = dma.general (%p15511_p9), %s566_s0, 3072, %s580_s3, %s557_s30, %s10954_s22, [#allocation28], %s8078_s1, 0  }
  0xe3 PF: > { %s15512_s14 = sld [smem:[#allocation54_spill]] }
  0xe9   : > { %p8079_p6 = scmp.ge.s32.totalorder %s15512_s14, 1  ;;  %p600_p8 = scmp.lt.s32.totalorder %s15512_s14, 9 }
  0xeb   : > { %p601_p13 = pnand %p8079_p6, %p600_p8 }
  0xec   : > { %s15513_s27 = sld [smem:[#allocation48_spill]] (!%p601_p13)  ;;  %s15514_s12 = sld [smem:[#allocation58_spill]] (!%p601_p13) }
  0xed   : > { %604 = sbr.rel (%p601_p13) target bundleno = 4368 (0x1110), region = 56 }
  0xf2   : > { %s11460_s13 = sand.u32 (!%p601_p13), 1, %s15513_s27   ;;  %p15515_p11 = scmp.ne.s32.totalorder (!%p601_p13), %s15514_s12, 0 }
  0xf3   : > { %s8080_s9 = sshll.u32 (!%p601_p13), %s11460_s13, 8  ;;  %s607_s28 = scalar_lea.sflag (!%p601_p13), [#allocation7], %s11460_s13 }
  0xf4   : > { %s11466_s25 = scalar_lea.vmem [#allocation6], %s8080_s9 }
  0xf5   : > { %10830 = dma.done.wait (%p15515_p11), %s607_s28, 4096  }
  0xf6   : > { %10832 = vsyncadd (%p15515_p11), %s607_s28, 4294963200  ;;  %s15516_s6 = sld [smem:[#allocation55_spill]]  ;;  %s15518_s16 = sld [smem:[#allocation61_spill]] }
  0xf7   : > { %s15517_s24 = sld [smem:[#allocation45_spill]] }
  0xfc   : > { %s615_s18 = sand.u32 1, %s15516_s6   ;;  %p15519_p5 = scmp.ne.s32.totalorder %s15518_s16, 0 }
  0xfd   : > { %s617_s26 = sand.u32 1, %s15517_s24   ;;  %s616_s3 = scalar_lea.sflag [#allocation10], %s615_s18 }
  0xfe   : > { %s8081_s17 = sshll.u32 %s617_s26, 8 }
  0xff   : > { %s11474_s29 = scalar_lea.vmem [#allocation9], %s8081_s17 }
 0x100   : > { %10834 = dma.done.wait (%p15519_p5), %s616_s3, 4096  }
 0x101   : > { %10836 = vsyncadd (%p15519_p5), %s616_s3, 4294963200  ;;  %s15520_s10 = sld [smem:[#allocation43_spill]]  ;;  %s15521_s20 = sld [smem:[#allocation64_spill]] }
 0x107   : > { %s626_s0 = sand.u32 1, %s15520_s10   ;;  %p15522_p0 = scmp.ne.s32.totalorder %s15521_s20, 0 }
 0x108   : > { %s8082_s19 = sshll.u32 %s626_s0, 8 }
 0x109   : > { %s11481_s11 = scalar_lea.vmem [#allocation11], %s8082_s19 }
 0x10a   : > { %10838 = dma.done.wait (%p15522_p0), %s616_s3, 4096  }
 0x10b   : > { %10840 = vsyncadd (%p15522_p0), %s616_s3, 4294963200  ;;  %s634_s15 = scalar_lea.sflag [#allocation13], %s615_s18  ;;  %s11487_s1 = scalar_lea.vmem [#allocation12], %s8082_s19 }
 0x10c   : > { %10842 = dma.done.wait (%p15522_p0), %s634_s15, 8192  }
 0x10d   : > { %10844 = vsyncadd (%p15522_p0), %s634_s15, 4294959104  ;;  %s11493_s30 = scalar_lea.vmem [#allocation14], %s8082_s19  ;;  %s652_s22 = scalar_lea.sflag [#allocation16], %s615_s18 }
 0x10e   : > { %s11495_s14 = scalar_lea.vmem [#allocation15], %s8082_s19 }
 0x10f   : > { %10846 = dma.done.wait (%p15522_p0), %s652_s22, 4096  }
 0x110   : > { %10848 = vsyncadd (%p15522_p0), %s652_s22, 4294963200  ;;  %s9760_s27 = smul.u32 192, %s11460_s13 }
 0x112   : > { %s11502_s28 = scalar_lea.vmem [#allocation17], %s9760_s27 }
 0x113   : > { %10850 = dma.done.wait (%p15515_p11), %s652_s22, 3072  }
 0x114   : > { %10852 = vsyncadd (%p15515_p11), %s652_s22, 4294964224  ;;  %s9761_s6 = smul.u32 192, %s617_s26  ;;  %s670_s24 = scalar_lea.sflag [#allocation19], %s617_s26 }
 0x116   : > { %s11508_s18 = scalar_lea.vmem [#allocation18], %s9761_s6 }
 0x117   : > { %10854 = dma.done.wait (%p15519_p5), %s670_s24, 3072  }
 0x118   : > { %10856 = vsyncadd (%p15519_p5), %s670_s24, 4294964224  ;;  %s15523_s17 = sld [smem:[#allocation51_spill]]  ;;  %s15524_s3 = sld [smem:[#allocation50_spill]] }
 0x119   : > { %s11518_s10 = scalar_lea.vmem [#allocation20], %s8080_s9 }
 0x11e   : > { %p748_p12 = scmp.eq.s32.totalorder %s15523_s17, 0  ;;  %p749_p2 = scmp.eq.s32.totalorder %s15524_s3, 0 }
 0x120   : > { %p750_p1 = pnand %p749_p2, %p748_p12 }
 0x121   : > { %v756_v0 = vlaneseq (!%p750_p1)  ;;  %s15525_s26 = sld [smem:[#allocation157_spill]] (!%p750_p1) }
 0x122   : > { %753 = sbr.rel (%p750_p1) target bundleno = 314 (0x13a), region = 92 }
 0x123   : > { %v757_v1 = vshrl.u32 (!%p750_p1), %v756_v0, 7 }
 0x125   : > { %v758_v3 = vsub.s32 (!%p750_p1), 0, %v757_v1  ;;  %v762_v4 = vsub.s32 (!%p750_p1), 1, %v757_v1 }
 0x127   : > { %v754_v2 = vld [vmem:[%s15525_s26] sm:$0x3] (!%p750_p1) }
 0x128   : > { %v759_v5 = vrot.slane (!%p750_p1), %v754_v2, %v758_v3  ;;  %v763_v6 = vrot.slane (!%p750_p1), %v754_v2, %v762_v4 }
 0x12a   : > { %766 = vst [vmem:[%s11518_s10] sm:$0xff] %v759_v5  ;;  %768 = vst [vmem:[%s11518_s10 + $0x10] sm:$0xff] %v759_v5 }
 0x12b   : > { %770 = vst [vmem:[%s11518_s10 + $0x20] sm:$0xff] %v759_v5  ;;  %772 = vst [vmem:[%s11518_s10 + $0x30] sm:$0xff] %v759_v5 }
 0x12c   : > { %774 = vst [vmem:[%s11518_s10 + $0x40] sm:$0xff] %v759_v5  ;;  %776 = vst [vmem:[%s11518_s10 + $0x50] sm:$0xff] %v759_v5 }
 0x12d   : > { %778 = vst [vmem:[%s11518_s10 + $0x60] sm:$0xff] %v759_v5  ;;  %780 = vst [vmem:[%s11518_s10 + $0x70] sm:$0xff] %v759_v5 }
 0x12e   : > { %782 = vst [vmem:[%s11518_s10 + $0x80] sm:$0xff] %v759_v5  ;;  %784 = vst [vmem:[%s11518_s10 + $0x90] sm:$0xff] %v759_v5 }
 0x12f   : > { %786 = vst [vmem:[%s11518_s10 + $0xa0] sm:$0xff] %v759_v5  ;;  %788 = vst [vmem:[%s11518_s10 + $0xb0] sm:$0xff] %v759_v5 }
 0x130   : > { %790 = vst [vmem:[%s11518_s10 + $0xc0] sm:$0xff] %v759_v5  ;;  %792 = vst [vmem:[%s11518_s10 + $0xd0] sm:$0xff] %v759_v5 }
 0x131   : > { %794 = vst [vmem:[%s11518_s10 + $0xe0] sm:$0xff] %v759_v5  ;;  %796 = vst [vmem:[%s11518_s10 + $0xf0] sm:$0xff] %v759_v5 }
 0x132   : > { %767 = vst [vmem:[%s11518_s10 + $0x8] sm:$0xff] %v763_v6  ;;  %769 = vst [vmem:[%s11518_s10 + $0x18] sm:$0xff] %v763_v6 }
 0x133   : > { %771 = vst [vmem:[%s11518_s10 + $0x28] sm:$0xff] %v763_v6  ;;  %773 = vst [vmem:[%s11518_s10 + $0x38] sm:$0xff] %v763_v6 }
 0x134   : > { %775 = vst [vmem:[%s11518_s10 + $0x48] sm:$0xff] %v763_v6  ;;  %777 = vst [vmem:[%s11518_s10 + $0x58] sm:$0xff] %v763_v6 }
 0x135   : > { %779 = vst [vmem:[%s11518_s10 + $0x68] sm:$0xff] %v763_v6  ;;  %781 = vst [vmem:[%s11518_s10 + $0x78] sm:$0xff] %v763_v6 }
 0x136   : > { %783 = vst [vmem:[%s11518_s10 + $0x88] sm:$0xff] %v763_v6  ;;  %785 = vst [vmem:[%s11518_s10 + $0x98] sm:$0xff] %v763_v6 }
 0x137   : > { %787 = vst [vmem:[%s11518_s10 + $0xa8] sm:$0xff] %v763_v6  ;;  %789 = vst [vmem:[%s11518_s10 + $0xb8] sm:$0xff] %v763_v6 }
 0x138   : > { %791 = vst [vmem:[%s11518_s10 + $0xc8] sm:$0xff] %v763_v6  ;;  %793 = vst [vmem:[%s11518_s10 + $0xd8] sm:$0xff] %v763_v6 }
 0x139   : > { %795 = vst [vmem:[%s11518_s10 + $0xe8] sm:$0xff] %v763_v6  ;;  %797 = vst [vmem:[%s11518_s10 + $0xf8] sm:$0xff] %v763_v6 }
 0x13a PF: > { %s15526_s9 = sld [smem:[#allocation50_spill]] }
 0x140   : > { %p8087_p4 = scmp.ne.s32.totalorder %s15526_s9, 0 }
 0x141   : > { %vm801_vm0 = vcmask (!%p8087_p4), 7168   ;;  %v11557_v7 = vld [vmem:[%s11481_s11 + $0x80] sm:$0xff] (!%p8087_p4)  ;;  %v11560_v8 = vld [vmem:[%s11481_s11 + $0x88] sm:$0xff] (!%p8087_p4)  ;;  %v10955_v9 = vmov (!%p8087_p4), -1e+30   ;;  %v10956_v10 = vmov (!%p8087_p4), 0.0  }
 0x142   : > { %800 = sbr.rel (%p8087_p4) target bundleno = 758 (0x2f6), region = 96  ;;  %802 = vst.msk [vmem:[#allocation4] sm:$0xff] (!%p8087_p4), %vm801_vm0, %v10955_v9  ;;  %803 = vst.msk [vmem:[#allocation4 + $0x8] sm:$0xff] (!%p8087_p4), %vm801_vm0, %v10955_v9  ;;  %v9278_v11 = vpack.c.bf16 (!%p8087_p4), %v11560_v8, %v11557_v7  ;;  %v978_v12 = vld [vmem:[%s11481_s11] sm:$0xff] (!%p8087_p4)  ;;  %v979_v13 = vld [vmem:[%s11481_s11 + $0x8] sm:$0xff] (!%p8087_p4)  ;;  %s10957_s20 = smov (!%p8087_p4), 112  }
 0x143   : > { %804 = vst.msk [vmem:[#allocation4 + $0x10] sm:$0xff] (!%p8087_p4), %vm801_vm0, %v10955_v9  ;;  %805 = vst.msk [vmem:[#allocation4 + $0x18] sm:$0xff] (!%p8087_p4), %vm801_vm0, %v10955_v9  ;;  %v996_v14 = vld [vmem:[%s11481_s11 + $0x90] sm:$0xff] (!%p8087_p4)  ;;  %v9280_v15 = vpack.c.bf16 (!%p8087_p4), %v979_v13, %v978_v12  ;;  %v997_v16 = vld [vmem:[%s11481_s11 + $0x98] sm:$0xff] (!%p8087_p4) }
 0x144   : > { %806 = vst.msk [vmem:[#allocation4 + $0x20] sm:$0xff] (!%p8087_p4), %vm801_vm0, %v10955_v9  ;;  %807 = vst.msk [vmem:[#allocation4 + $0x28] sm:$0xff] (!%p8087_p4), %vm801_vm0, %v10955_v9  ;;  %v980_v17 = vld [vmem:[%s11481_s11 + $0x10] sm:$0xff] (!%p8087_p4)  ;;  %v981_v18 = vld [vmem:[%s11481_s11 + $0x18] sm:$0xff] (!%p8087_p4)  ;;  %9279 = vmatprep.subr.bf16.mxu0 (!%p8087_p4), %v9278_v11  ;;  %9726 = vmatprep.subr.bf16.mxu1 (!%p8087_p4), %v9278_v11  ;;  %v9282_v19 = vpack.c.bf16 (!%p8087_p4), %v997_v16, %v996_v14 }
 0x145   : > { %808 = vst.msk [vmem:[#allocation4 + $0x30] sm:$0xff] (!%p8087_p4), %vm801_vm0, %v10955_v9  ;;  %809 = vst.msk [vmem:[#allocation4 + $0x38] sm:$0xff] (!%p8087_p4), %vm801_vm0, %v10955_v9  ;;  %v998_v20 = vld [vmem:[%s11481_s11 + $0xa0] sm:$0xff] (!%p8087_p4)  ;;  %v999_v21 = vld [vmem:[%s11481_s11 + $0xa8] sm:$0xff] (!%p8087_p4)  ;;  %9281 = vmatpush3.bf16.msra.mxu0 (!%p8087_p4), %v9280_v15  ;;  %9734 = vmatpush3.bf16.msra.mxu1 (!%p8087_p4), %v9280_v15  ;;  %v9284_v22 = vpack.c.bf16 (!%p8087_p4), %v981_v18, %v980_v17 }
 0x146   : > { %810 = vst.msk [vmem:[#allocation4 + $0x40] sm:$0xff] (!%p8087_p4), %vm801_vm0, %v10955_v9  ;;  %811 = vst.msk [vmem:[#allocation4 + $0x48] sm:$0xff] (!%p8087_p4), %vm801_vm0, %v10955_v9  ;;  %9283 = vmatprep.subr.bf16.mxu0 (!%p8087_p4), %v9282_v19  ;;  %9727 = vmatprep.subr.bf16.mxu1 (!%p8087_p4), %v9282_v19  ;;  %v9286_v23 = vpack.c.bf16 (!%p8087_p4), %v999_v21, %v998_v20  ;;  %v982_v24 = vld [vmem:[%s11481_s11 + $0x20] sm:$0xff] (!%p8087_p4)  ;;  %v983_v25 = vld [vmem:[%s11481_s11 + $0x28] sm:$0xff] (!%p8087_p4) }
 0x147   : > { %812 = vst.msk [vmem:[#allocation4 + $0x50] sm:$0xff] (!%p8087_p4), %vm801_vm0, %v10955_v9  ;;  %813 = vst.msk [vmem:[#allocation4 + $0x58] sm:$0xff] (!%p8087_p4), %vm801_vm0, %v10955_v9  ;;  %v1000_v26 = vld [vmem:[%s11481_s11 + $0xb0] sm:$0xff] (!%p8087_p4)  ;;  %v1001_v27 = vld [vmem:[%s11481_s11 + $0xb8] sm:$0xff] (!%p8087_p4)  ;;  %v9288_v28 = vpack.c.bf16 (!%p8087_p4), %v983_v25, %v982_v24 }
 0x148   : > { %814 = vst.msk [vmem:[#allocation4 + $0x60] sm:$0xff] (!%p8087_p4), %vm801_vm0, %v10955_v9  ;;  %815 = vst.msk [vmem:[#allocation4 + $0x68] sm:$0xff] (!%p8087_p4), %vm801_vm0, %v10955_v9  ;;  %v9290_v29 = vpack.c.bf16 (!%p8087_p4), %v1001_v27, %v1000_v26  ;;  %v984_v30 = vld [vmem:[%s11481_s11 + $0x30] sm:$0xff] (!%p8087_p4)  ;;  %v985_v31 = vld [vmem:[%s11481_s11 + $0x38] sm:$0xff] (!%p8087_p4) }
 0x149   : > { %816 = vst.msk [vmem:[#allocation4 + $0x70] sm:$0xff] %vm801_vm0, %v10955_v9  ;;  %817 = vst.msk [vmem:[#allocation4 + $0x78] sm:$0xff] %vm801_vm0, %v10955_v9  ;;  %9285 = vmatpush3.bf16.msra.mxu0 %v9284_v22  ;;  %9735 = vmatpush3.bf16.msra.mxu1 %v9284_v22  ;;  %v1002_v32 = vld [vmem:[%s11481_s11 + $0xc0] sm:$0xff]  ;;  %v1003_v33 = vld [vmem:[%s11481_s11 + $0xc8] sm:$0xff]  ;;  %v9292_v36 = vpack.c.bf16 %v985_v31, %v984_v30 }
 0x14a   : > { %818 = vst.msk [vmem:[#allocation4 + $0x80] sm:$0xff] %vm801_vm0, %v10955_v9  ;;  %819 = vst.msk [vmem:[#allocation4 + $0x88] sm:$0xff] %vm801_vm0, %v10955_v9  ;;  %9287 = vmatprep.subr.bf16.mxu0 %v9286_v23  ;;  %9728 = vmatprep.subr.bf16.mxu1 %v9286_v23  ;;  %v947_v34 = vld [vmem:[%s11466_s25 + $0x8] sm:$0xff]  ;;  %v9294_v37 = vpack.c.bf16 %v1003_v33, %v1002_v32  ;;  %v986_v38 = vld [vmem:[%s11481_s11 + $0x40] sm:$0xff] }
 0x14b   : > { %820 = vst.msk [vmem:[#allocation4 + $0x90] sm:$0xff] %vm801_vm0, %v10955_v9  ;;  %821 = vst.msk [vmem:[#allocation4 + $0x98] sm:$0xff] %vm801_vm0, %v10955_v9  ;;  %v963_v35 = vld [vmem:[%s11466_s25 + $0x88] sm:$0xff]  ;;  %v1004_v40 = vld [vmem:[%s11481_s11 + $0xd0] sm:$0xff]  ;;  %1074 = vmatprep.mubr.f32.mxu0 %v947_v34 }
 0x14c   : > { %822 = vst.msk [vmem:[#allocation4 + $0xa0] sm:$0xff] %vm801_vm0, %v10955_v9  ;;  %823 = vst.msk [vmem:[#allocation4 + $0xa8] sm:$0xff] %vm801_vm0, %v10955_v9  ;;  %v987_v39 = vld [vmem:[%s11481_s11 + $0x48] sm:$0xff]  ;;  %v1005_v41 = vld [vmem:[%s11481_s11 + $0xd8] sm:$0xff]  ;;  %1114 = vmatprep.mubr.f32.mxu1 %v963_v35 }
 0x14d   : > { %824 = vst.msk [vmem:[#allocation4 + $0xb0] sm:$0xff] %vm801_vm0, %v10955_v9  ;;  %825 = vst.msk [vmem:[#allocation4 + $0xb8] sm:$0xff] %vm801_vm0, %v10955_v9  ;;  %9289 = vmatpush3.bf16.msra.mxu0 %v9288_v28  ;;  %9736 = vmatpush3.bf16.msra.mxu1 %v9288_v28  ;;  %v9296_v42 = vpack.c.bf16 %v987_v39, %v986_v38  ;;  %v9298_v43 = vpack.c.bf16 %v1005_v41, %v1004_v40  ;;  %v988_v44 = vld [vmem:[%s11481_s11 + $0x50] sm:$0xff]  ;;  %v989_v45 = vld [vmem:[%s11481_s11 + $0x58] sm:$0xff] }
 0x14e   : > { %826 = vst.msk [vmem:[#allocation4 + $0xc0] sm:$0xff] %vm801_vm0, %v10955_v9  ;;  %827 = vst.msk [vmem:[#allocation4 + $0xc8] sm:$0xff] %vm801_vm0, %v10955_v9  ;;  %9291 = vmatprep.subr.bf16.mxu0 %v9290_v29  ;;  %9729 = vmatprep.subr.bf16.mxu1 %v9290_v29  ;;  %v1006_v46 = vld [vmem:[%s11481_s11 + $0xe0] sm:$0xff]  ;;  %v1007_v47 = vld [vmem:[%s11481_s11 + $0xe8] sm:$0xff]  ;;  %v9300_v48 = vpack.c.bf16 %v989_v45, %v988_v44 }
 0x14f   : > { %828 = vst.msk [vmem:[#allocation4 + $0xd0] sm:$0xff] %vm801_vm0, %v10955_v9  ;;  %829 = vst.msk [vmem:[#allocation4 + $0xd8] sm:$0xff] %vm801_vm0, %v10955_v9  ;;  %v9302_v49 = vpack.c.bf16 %v1007_v47, %v1006_v46  ;;  %v990_v50 = vld [vmem:[%s11481_s11 + $0x60] sm:$0xff]  ;;  %v991_v51 = vld [vmem:[%s11481_s11 + $0x68] sm:$0xff] }
 0x150   : > { %830 = vst.msk [vmem:[#allocation4 + $0xe0] sm:$0xff] %vm801_vm0, %v10955_v9  ;;  %831 = vst.msk [vmem:[#allocation4 + $0xe8] sm:$0xff] %vm801_vm0, %v10955_v9  ;;  %v1008_v52 = vld [vmem:[%s11481_s11 + $0xf0] sm:$0xff]  ;;  %v1009_v53 = vld [vmem:[%s11481_s11 + $0xf8] sm:$0xff]  ;;  %v9304_v54 = vpack.c.bf16 %v991_v51, %v990_v50 }
 0x151   : > { %832 = vst.msk [vmem:[#allocation4 + $0xf0] sm:$0xff] %vm801_vm0, %v10955_v9  ;;  %833 = vst.msk [vmem:[#allocation4 + $0xf8] sm:$0xff] %vm801_vm0, %v10955_v9  ;;  %9293 = vmatpush3.bf16.msra.mxu0 %v9292_v36  ;;  %9737 = vmatpush3.bf16.msra.mxu1 %v9292_v36  ;;  %v9306_v55 = vpack.c.bf16 %v1009_v53, %v1008_v52  ;;  %v992_v56 = vld [vmem:[%s11481_s11 + $0x70] sm:$0xff]  ;;  %v993_v57 = vld [vmem:[%s11481_s11 + $0x78] sm:$0xff] }
 0x152   : > { %834 = vst.msk [vmem:[#allocation4 + $0x100] sm:$0xff] %vm801_vm0, %v10955_v9  ;;  %835 = vst.msk [vmem:[#allocation4 + $0x108] sm:$0xff] %vm801_vm0, %v10955_v9  ;;  %9295 = vmatprep.subr.bf16.mxu0 %v9294_v37  ;;  %9730 = vmatprep.subr.bf16.mxu1 %v9294_v37  ;;  %v9308_v58 = vpack.c.bf16 %v993_v57, %v992_v56  ;;  %v946_v59 = vld [vmem:[%s11466_s25] sm:$0xff]  ;;  %v965_v61 = vld [vmem:[%s11466_s25 + $0x98] sm:$0xff] }
 0x153   : > { %836 = vst.msk [vmem:[#allocation4 + $0x110] sm:$0xff] %vm801_vm0, %v10955_v9  ;;  %837 = vst.msk [vmem:[#allocation4 + $0x118] sm:$0xff] %vm801_vm0, %v10955_v9  ;;  %v962_v60 = vld [vmem:[%s11466_s25 + $0x80] sm:$0xff]  ;;  %v949_v62 = vld [vmem:[%s11466_s25 + $0x18] sm:$0xff] }
 0x154   : > { %838 = vst.msk [vmem:[#allocation4 + $0x120] sm:$0xff] %vm801_vm0, %v10955_v9  ;;  %839 = vst.msk [vmem:[#allocation4 + $0x128] sm:$0xff] %vm801_vm0, %v10955_v9  ;;  %v964_v63 = vld [vmem:[%s11466_s25 + $0x90] sm:$0xff]  ;;  %v951_v1 = vld [vmem:[%s11466_s25 + $0x28] sm:$0xff] }
 0x155   : > { %840 = vst.msk [vmem:[#allocation4 + $0x130] sm:$0xff] %vm801_vm0, %v10955_v9  ;;  %841 = vst.msk [vmem:[#allocation4 + $0x138] sm:$0xff] %vm801_vm0, %v10955_v9  ;;  %9297 = vmatpush3.bf16.msra.mxu0 %v9296_v42  ;;  %9738 = vmatpush3.bf16.msra.mxu1 %v9296_v42  ;;  %v948_v0 = vld [vmem:[%s11466_s25 + $0x10] sm:$0xff]  ;;  %v967_v2 = vld [vmem:[%s11466_s25 + $0xa8] sm:$0xff] }
 0x156   : > { %842 = vst.msk [vmem:[#allocation4 + $0x140] sm:$0xff] %vm801_vm0, %v10955_v9  ;;  %843 = vst.msk [vmem:[#allocation4 + $0x148] sm:$0xff] %vm801_vm0, %v10955_v9  ;;  %9299 = vmatprep.subr.bf16.mxu0 %v9298_v43  ;;  %9731 = vmatprep.subr.bf16.mxu1 %v9298_v43  ;;  %v950_v3 = vld [vmem:[%s11466_s25 + $0x20] sm:$0xff]  ;;  %v953_v5 = vld [vmem:[%s11466_s25 + $0x38] sm:$0xff] }
 0x157   : > { %844 = vst.msk [vmem:[#allocation4 + $0x150] sm:$0xff] %vm801_vm0, %v10955_v9  ;;  %845 = vst.msk [vmem:[#allocation4 + $0x158] sm:$0xff] %vm801_vm0, %v10955_v9  ;;  %v966_v4 = vld [vmem:[%s11466_s25 + $0xa0] sm:$0xff]  ;;  %v969_v6 = vld [vmem:[%s11466_s25 + $0xb8] sm:$0xff] }
 0x158   : > { %846 = vst.msk [vmem:[#allocation4 + $0x160] sm:$0xff] %vm801_vm0, %v10955_v9  ;;  %847 = vst.msk [vmem:[#allocation4 + $0x168] sm:$0xff] %vm801_vm0, %v10955_v9  ;;  %v952_v7 = vld [vmem:[%s11466_s25 + $0x30] sm:$0xff]  ;;  %v954_v11 = vld [vmem:[%s11466_s25 + $0x40] sm:$0xff] }
 0x159   : > { %848 = vst.msk [vmem:[#allocation4 + $0x170] sm:$0xff] %vm801_vm0, %v10955_v9  ;;  %849 = vst.msk [vmem:[#allocation4 + $0x178] sm:$0xff] %vm801_vm0, %v10955_v9  ;;  %9301 = vmatpush3.bf16.msra.mxu0 %v9300_v48  ;;  %9739 = vmatpush3.bf16.msra.mxu1 %v9300_v48  ;;  %v968_v8 = vld [vmem:[%s11466_s25 + $0xb0] sm:$0xff]  ;;  %v970_v12 = vld [vmem:[%s11466_s25 + $0xc0] sm:$0xff] }
 0x15a   : > { %850 = vst.msk [vmem:[#allocation4 + $0x180] sm:$0xff] %vm801_vm0, %v10955_v9  ;;  %851 = vst.msk [vmem:[#allocation4 + $0x188] sm:$0xff] %vm801_vm0, %v10955_v9  ;;  %9303 = vmatprep.subr.bf16.mxu0 %v9302_v49  ;;  %9732 = vmatprep.subr.bf16.mxu1 %v9302_v49  ;;  %v957_v13 = vld [vmem:[%s11466_s25 + $0x58] sm:$0xff]  ;;  %v956_v15 = vld [vmem:[%s11466_s25 + $0x50] sm:$0xff] }
 0x15b   : > { %852 = vst.msk [vmem:[#allocation4 + $0x190] sm:$0xff] %vm801_vm0, %v10955_v9  ;;  %853 = vst.msk [vmem:[#allocation4 + $0x198] sm:$0xff] %vm801_vm0, %v10955_v9  ;;  %v973_v14 = vld [vmem:[%s11466_s25 + $0xd8] sm:$0xff]  ;;  %v972_v16 = vld [vmem:[%s11466_s25 + $0xd0] sm:$0xff] }
 0x15c   : > { %854 = vst.msk [vmem:[#allocation4 + $0x1a0] sm:$0xff] %vm801_vm0, %v10955_v9  ;;  %855 = vst.msk [vmem:[#allocation4 + $0x1a8] sm:$0xff] %vm801_vm0, %v10955_v9  ;;  %v959_v17 = vld [vmem:[%s11466_s25 + $0x68] sm:$0xff]  ;;  %v958_v19 = vld [vmem:[%s11466_s25 + $0x60] sm:$0xff] }
 0x15d   : > { %856 = vst.msk [vmem:[#allocation4 + $0x1b0] sm:$0xff] %vm801_vm0, %v10955_v9  ;;  %857 = vst.msk [vmem:[#allocation4 + $0x1b8] sm:$0xff] %vm801_vm0, %v10955_v9  ;;  %9305 = vmatpush3.bf16.msra.mxu0 %v9304_v54  ;;  %9740 = vmatpush3.bf16.msra.mxu1 %v9304_v54  ;;  %v975_v18 = vld [vmem:[%s11466_s25 + $0xe8] sm:$0xff]  ;;  %v974_v20 = vld [vmem:[%s11466_s25 + $0xe0] sm:$0xff] }
 0x15e   : > { %858 = vst.msk [vmem:[#allocation4 + $0x1c0] sm:$0xff] %vm801_vm0, %v10955_v9  ;;  %859 = vst.msk [vmem:[#allocation4 + $0x1c8] sm:$0xff] %vm801_vm0, %v10955_v9  ;;  %9307 = vmatprep.subr.bf16.mxu0 %v9306_v55  ;;  %9733 = vmatprep.subr.bf16.mxu1 %v9306_v55  ;;  %v961_v21 = vld [vmem:[%s11466_s25 + $0x78] sm:$0xff]  ;;  %v960_v23 = vld [vmem:[%s11466_s25 + $0x70] sm:$0xff] }
 0x15f   : > { %860 = vst.msk [vmem:[#allocation4 + $0x1d0] sm:$0xff] %vm801_vm0, %v10955_v9  ;;  %861 = vst.msk [vmem:[#allocation4 + $0x1d8] sm:$0xff] %vm801_vm0, %v10955_v9  ;;  %v977_v22 = vld [vmem:[%s11466_s25 + $0xf8] sm:$0xff]  ;;  %v976_v24 = vld [vmem:[%s11466_s25 + $0xf0] sm:$0xff] }
 0x160   : > { %862 = vst.msk [vmem:[#allocation4 + $0x1e0] sm:$0xff] %vm801_vm0, %v10955_v9  ;;  %863 = vst.msk [vmem:[#allocation4 + $0x1e8] sm:$0xff] %vm801_vm0, %v10955_v9 }
 0x161   : > { %864 = vst.msk [vmem:[#allocation4 + $0x1f0] sm:$0xff] %vm801_vm0, %v10955_v9  ;;  %865 = vst.msk [vmem:[#allocation4 + $0x1f8] sm:$0xff] %vm801_vm0, %v10955_v9  ;;  %9309 = vmatpush3.bf16.msra.mxu0 %v9308_v58  ;;  %9741 = vmatpush3.bf16.msra.mxu1 %v9308_v58  ;;  %v955_v9 = vld [vmem:[%s11466_s25 + $0x48] sm:$0xff] }
 0x162   : > { %866 = vst.msk [vmem:[#allocation5] sm:$0xff] %vm801_vm0, %v10956_v10  ;;  %867 = vst.msk [vmem:[#allocation5 + $0x8] sm:$0xff] %vm801_vm0, %v10956_v10 }
 0x163   : > { %868 = vst.msk [vmem:[#allocation5 + $0x10] sm:$0xff] %vm801_vm0, %v10956_v10  ;;  %869 = vst.msk [vmem:[#allocation5 + $0x18] sm:$0xff] %vm801_vm0, %v10956_v10 }
 0x164   : > { %870 = vst.msk [vmem:[#allocation5 + $0x20] sm:$0xff] %vm801_vm0, %v10956_v10  ;;  %871 = vst.msk [vmem:[#allocation5 + $0x28] sm:$0xff] %vm801_vm0, %v10956_v10  ;;  %1075 = vmatmul.mubr.f32.vlgmr.msra.gmra.mrb[0].mxu0 %v946_v59  ;;  %1115 = vmatmul.mubr.f32.vlgmr.msra.gmra.mrb[0].mxu1 %v962_v60 }
 0x165   : > { %872 = vst.msk [vmem:[#allocation5 + $0x30] sm:$0xff] %vm801_vm0, %v10956_v10  ;;  %873 = vst.msk [vmem:[#allocation5 + $0x38] sm:$0xff] %vm801_vm0, %v10956_v10  ;;  %1119 = vmatprep.mubr.f32.mxu1 %v965_v61  ;;  %1079 = vmatprep.mubr.f32.mxu0 %v949_v62 }
 0x166   : > { %874 = vst.msk [vmem:[#allocation5 + $0x40] sm:$0xff] %vm801_vm0, %v10956_v10  ;;  %875 = vst.msk [vmem:[#allocation5 + $0x48] sm:$0xff] %vm801_vm0, %v10956_v10 }
 0x167   : > { %876 = vst.msk [vmem:[#allocation5 + $0x50] sm:$0xff] %vm801_vm0, %v10956_v10  ;;  %877 = vst.msk [vmem:[#allocation5 + $0x58] sm:$0xff] %vm801_vm0, %v10956_v10 }
 0x168   : > { %878 = vst.msk [vmem:[#allocation5 + $0x60] sm:$0xff] %vm801_vm0, %v10956_v10  ;;  %879 = vst.msk [vmem:[#allocation5 + $0x68] sm:$0xff] %vm801_vm0, %v10956_v10  ;;  %1120 = vmatmul.mubr.f32.gmra.mrb[2].mxu1 %v964_v63  ;;  %1080 = vmatmul.mubr.f32.gmra.mrb[2].mxu0 %v948_v0 }
 0x169   : > { %880 = vst.msk [vmem:[#allocation5 + $0x70] sm:$0xff] %vm801_vm0, %v10956_v10  ;;  %881 = vst.msk [vmem:[#allocation5 + $0x78] sm:$0xff] %vm801_vm0, %v10956_v10  ;;  %1084 = vmatprep.mubr.f32.mxu0 %v951_v1  ;;  %1124 = vmatprep.mubr.f32.mxu1 %v967_v2 }
 0x16a   : > { %882 = vst.msk [vmem:[#allocation5 + $0x80] sm:$0xff] %vm801_vm0, %v10956_v10  ;;  %883 = vst.msk [vmem:[#allocation5 + $0x88] sm:$0xff] %vm801_vm0, %v10956_v10 }
 0x16b   : > { %884 = vst.msk [vmem:[#allocation5 + $0x90] sm:$0xff] %vm801_vm0, %v10956_v10  ;;  %885 = vst.msk [vmem:[#allocation5 + $0x98] sm:$0xff] %vm801_vm0, %v10956_v10 }
 0x16c   : > { %886 = vst.msk [vmem:[#allocation5 + $0xa0] sm:$0xff] %vm801_vm0, %v10956_v10  ;;  %887 = vst.msk [vmem:[#allocation5 + $0xa8] sm:$0xff] %vm801_vm0, %v10956_v10  ;;  %1085 = vmatmul.mubr.f32.gmra.mrb[4].mxu0 %v950_v3  ;;  %1125 = vmatmul.mubr.f32.gmra.mrb[4].mxu1 %v966_v4 }
 0x16d   : > { %888 = vst.msk [vmem:[#allocation5 + $0xb0] sm:$0xff] %vm801_vm0, %v10956_v10  ;;  %889 = vst.msk [vmem:[#allocation5 + $0xb8] sm:$0xff] %vm801_vm0, %v10956_v10  ;;  %1089 = vmatprep.mubr.f32.mxu0 %v953_v5  ;;  %1129 = vmatprep.mubr.f32.mxu1 %v969_v6 }
 0x16e   : > { %890 = vst.msk [vmem:[#allocation5 + $0xc0] sm:$0xff] %vm801_vm0, %v10956_v10  ;;  %891 = vst.msk [vmem:[#allocation5 + $0xc8] sm:$0xff] %vm801_vm0, %v10956_v10 }
 0x16f   : > { %892 = vst.msk [vmem:[#allocation5 + $0xd0] sm:$0xff] %vm801_vm0, %v10956_v10  ;;  %893 = vst.msk [vmem:[#allocation5 + $0xd8] sm:$0xff] %vm801_vm0, %v10956_v10 }
 0x170   : > { %894 = vst.msk [vmem:[#allocation5 + $0xe0] sm:$0xff] %vm801_vm0, %v10956_v10  ;;  %895 = vst.msk [vmem:[#allocation5 + $0xe8] sm:$0xff] %vm801_vm0, %v10956_v10  ;;  %1090 = vmatmul.mubr.f32.gmra.mrb[6].mxu0 %v952_v7  ;;  %1130 = vmatmul.mubr.f32.gmra.mrb[6].mxu1 %v968_v8 }
 0x171   : > { %896 = vst.msk [vmem:[#allocation5 + $0xf0] sm:$0xff] %vm801_vm0, %v10956_v10  ;;  %897 = vst.msk [vmem:[#allocation5 + $0xf8] sm:$0xff] %vm801_vm0, %v10956_v10  ;;  %1094 = vmatprep.mubr.f32.mxu0 %v955_v9 }
 0x172   : > { %898 = vst.msk [vmem:[#allocation5 + $0x100] sm:$0xff] %vm801_vm0, %v10956_v10  ;;  %899 = vst.msk [vmem:[#allocation5 + $0x108] sm:$0xff] %vm801_vm0, %v10956_v10 }
 0x173   : > { %900 = vst.msk [vmem:[#allocation5 + $0x110] sm:$0xff] %vm801_vm0, %v10956_v10  ;;  %901 = vst.msk [vmem:[#allocation5 + $0x118] sm:$0xff] %vm801_vm0, %v10956_v10 }
 0x174   : > { %902 = vst.msk [vmem:[#allocation5 + $0x120] sm:$0xff] %vm801_vm0, %v10956_v10  ;;  %903 = vst.msk [vmem:[#allocation5 + $0x128] sm:$0xff] %vm801_vm0, %v10956_v10  ;;  %1095 = vmatmul.mubr.f32.gmra.mrb[8].mxu0 %v954_v11 }
 0x175   : > { %904 = vst.msk [vmem:[#allocation5 + $0x130] sm:$0xff] %vm801_vm0, %v10956_v10  ;;  %905 = vst.msk [vmem:[#allocation5 + $0x138] sm:$0xff] %vm801_vm0, %v10956_v10  ;;  %1099 = vmatprep.mubr.f32.mxu0 %v957_v13 }
 0x176   : > { %906 = vst.msk [vmem:[#allocation5 + $0x140] sm:$0xff] %vm801_vm0, %v10956_v10  ;;  %907 = vst.msk [vmem:[#allocation5 + $0x148] sm:$0xff] %vm801_vm0, %v10956_v10 }
 0x177   : > { %908 = vst.msk [vmem:[#allocation5 + $0x150] sm:$0xff] %vm801_vm0, %v10956_v10  ;;  %909 = vst.msk [vmem:[#allocation5 + $0x158] sm:$0xff] %vm801_vm0, %v10956_v10 }
 0x178   : > { %910 = vst.msk [vmem:[#allocation5 + $0x160] sm:$0xff] %vm801_vm0, %v10956_v10  ;;  %911 = vst.msk [vmem:[#allocation5 + $0x168] sm:$0xff] %vm801_vm0, %v10956_v10  ;;  %1100 = vmatmul.mubr.f32.gmra.mrb[10].mxu0 %v956_v15  ;;  %v8089_v15 = vld [vmem:[%s11502_s28 + $0x48] sm:$0xff] }
 0x179   : > { %912 = vst.msk [vmem:[#allocation5 + $0x170] sm:$0xff] %vm801_vm0, %v10956_v10  ;;  %913 = vst.msk [vmem:[#allocation5 + $0x178] sm:$0xff] %vm801_vm0, %v10956_v10  ;;  %1104 = vmatprep.mubr.f32.mxu0 %v959_v17 }
 0x17a   : > { %914 = vst.msk [vmem:[#allocation5 + $0x180] sm:$0xff] %vm801_vm0, %v10956_v10  ;;  %915 = vst.msk [vmem:[#allocation5 + $0x188] sm:$0xff] %vm801_vm0, %v10956_v10 }
 0x17b   : > { %916 = vst.msk [vmem:[#allocation5 + $0x190] sm:$0xff] %vm801_vm0, %v10956_v10  ;;  %917 = vst.msk [vmem:[#allocation5 + $0x198] sm:$0xff] %vm801_vm0, %v10956_v10 }
 0x17c   : > { %918 = vst.msk [vmem:[#allocation5 + $0x1a0] sm:$0xff] %vm801_vm0, %v10956_v10  ;;  %919 = vst.msk [vmem:[#allocation5 + $0x1a8] sm:$0xff] %vm801_vm0, %v10956_v10  ;;  %1105 = vmatmul.mubr.f32.gmra.mrb[12].mxu0 %v958_v19 }
 0x17d   : > { %920 = vst.msk [vmem:[#allocation5 + $0x1b0] sm:$0xff] %vm801_vm0, %v10956_v10  ;;  %921 = vst.msk [vmem:[#allocation5 + $0x1b8] sm:$0xff] %vm801_vm0, %v10956_v10  ;;  %1109 = vmatprep.mubr.f32.mxu0 %v961_v21 }
 0x17e   : > { %922 = vst.msk [vmem:[#allocation5 + $0x1c0] sm:$0xff] %vm801_vm0, %v10956_v10  ;;  %923 = vst.msk [vmem:[#allocation5 + $0x1c8] sm:$0xff] %vm801_vm0, %v10956_v10 }
 0x17f   : > { %924 = vst.msk [vmem:[#allocation5 + $0x1d0] sm:$0xff] %vm801_vm0, %v10956_v10  ;;  %925 = vst.msk [vmem:[#allocation5 + $0x1d8] sm:$0xff] %vm801_vm0, %v10956_v10 }
 0x180   : > { %926 = vst.msk [vmem:[#allocation5 + $0x1e0] sm:$0xff] %vm801_vm0, %v10956_v10  ;;  %927 = vst.msk [vmem:[#allocation5 + $0x1e8] sm:$0xff] %vm801_vm0, %v10956_v10  ;;  %1110 = vmatmul.mubr.f32.gmra.mrb[14].mxu0 %v960_v23 }
 0x181   : > { %928 = vst.msk [vmem:[#allocation5 + $0x1f0] sm:$0xff] %vm801_vm0, %v10956_v10  ;;  %929 = vst.msk [vmem:[#allocation5 + $0x1f8] sm:$0xff] %vm801_vm0, %v10956_v10 }
 0x182   : > { %930 = vst [vmem:[#allocation3] sm:$0xff] %v10956_v10  ;;  %931 = vst [vmem:[#allocation3 + $0x8] sm:$0xff] %v10956_v10 }
 0x183   : > { %932 = vst [vmem:[#allocation3 + $0x10] sm:$0xff] %v10956_v10  ;;  %933 = vst [vmem:[#allocation3 + $0x18] sm:$0xff] %v10956_v10 }
 0x184   : > { %934 = vst [vmem:[#allocation3 + $0x20] sm:$0xff] %v10956_v10  ;;  %935 = vst [vmem:[#allocation3 + $0x28] sm:$0xff] %v10956_v10 }
 0x185   : > { %936 = vst [vmem:[#allocation3 + $0x30] sm:$0xff] %v10956_v10  ;;  %937 = vst [vmem:[#allocation3 + $0x38] sm:$0xff] %v10956_v10 }
 0x186   : > { %938 = vst [vmem:[#allocation3 + $0x40] sm:$0xff] %v10956_v10  ;;  %939 = vst [vmem:[#allocation3 + $0x48] sm:$0xff] %v10956_v10 }
 0x187   : > { %940 = vst [vmem:[#allocation3 + $0x50] sm:$0xff] %v10956_v10  ;;  %941 = vst [vmem:[#allocation3 + $0x58] sm:$0xff] %v10956_v10 }
 0x188   : > { %942 = vst [vmem:[#allocation3 + $0x60] sm:$0xff] %v10956_v10  ;;  %943 = vst [vmem:[#allocation3 + $0x68] sm:$0xff] %v10956_v10 }
 0x189   : > { %944 = vst [vmem:[#allocation3 + $0x70] sm:$0xff] %v10956_v10  ;;  %945 = vst [vmem:[#allocation3 + $0x78] sm:$0xff] %v10956_v10  ;;  %v971_v10 = vld [vmem:[%s11466_s25 + $0xc8] sm:$0xff]  ;;  %s10958_s25 = smov 16  }
 0x18a   : > { %1134 = vmatprep.mubr.f32.mxu1 %v971_v10  ;;  %v8088_v10 = vld [vmem:[%s11502_s28 + $0x40] sm:$0xff] }
 0x18b   : > { %1135 = vmatmul.mubr.f32.gmra.mrb[8].mxu1 %v970_v12 }
 0x18c   : > { %1139 = vmatprep.mubr.f32.mxu1 %v973_v14  ;;  %v1155_v14 = vld [vmem:[%s11502_s28] sm:$0xff] }
 0x18f   : > { %1140 = vmatmul.mubr.f32.gmra.mrb[10].mxu1 %v972_v16  ;;  %v8096_v16 = vld [vmem:[%s11502_s28 + $0x80] sm:$0xff] }
 0x190   : > { %1144 = vmatprep.mubr.f32.mxu1 %v975_v18  ;;  %v1156_v18 = vld [vmem:[%s11502_s28 + $0x8] sm:$0xff] }
 0x193   : > { %1145 = vmatmul.mubr.f32.gmra.mrb[12].mxu1 %v974_v20 }
 0x194   : > { %1149 = vmatprep.mubr.f32.mxu1 %v977_v22 }
 0x197   : > { %1150 = vmatmul.mubr.f32.gmra.mrb[14].mxu1 %v976_v24 }
 0x237   : > { %v8366_v25 = vpop.f32.mrb[0].mxu0  ;;  %v8390_v26 = vpop.f32.mrb[0].mxu1 }
 0x238   : > { %v8367_v27 = vpop.f32.mrb[1].mxu0  ;;  %v8391_v28 = vpop.f32.mrb[1].mxu1 }
 0x239   : > { %v11898_v29 = vadd.f32 %v8367_v27, %v8366_v25  ;;  %v11900_v30 = vadd.f32 %v8391_v28, %v8390_v26  ;;  %v8097_v28 = vld [vmem:[%s11502_s28 + $0x88] sm:$0xff] }
 0x23b   : > { %v8393_v31 = vpop.f32.mrb[2].mxu1  ;;  %1213 = vrot.lane.b32.xlu0 %v11898_v29, %s10957_s20  ;;  %v8369_v32 = vpop.f32.mrb[2].mxu0  ;;  %v1181_v17 = vmul.f32 %v11898_v29, %v1155_v14  ;;  %v1189_v26 = vmul.f32 %v11900_v30, %v1155_v14 }
 0x23c   : > { %v8394_v33 = vpop.f32.mrb[3].mxu1  ;;  %v8370_v34 = vpop.f32.mrb[3].mxu0 }
 0x23d   : > { %v11904_v35 = vadd.f32 %v8394_v33, %v8393_v31  ;;  %v11906_v36 = vadd.f32 %v8370_v34, %v8369_v32 }
 0x23f   : > { %1231 = vrot.lane.b32.xlu1 %v11904_v35, %s10957_s20  ;;  %1229 = vrot.lane.b32.xlu0 %v11900_v30, %s10957_s20  ;;  %v8372_v37 = vpop.f32.mrb[4].mxu0  ;;  %v8396_v38 = vpop.f32.mrb[4].mxu1  ;;  %v1190_v25 = vmul.f32 %v11904_v35, %v1156_v18 }
 0x240   : > { %v8373_v39 = vpop.f32.mrb[5].mxu0  ;;  %v8397_v40 = vpop.f32.mrb[5].mxu1 }
 0x241   : > { %v11912_v41 = vadd.f32 %v8373_v39, %v8372_v37  ;;  %v11914_v42 = vadd.f32 %v8397_v40, %v8396_v38 }
 0x243   : > { %1295 = vrot.lane.b32.xlu1 %v11906_v36, %s10958_s25  ;;  %1293 = vrot.lane.b32.xlu0 %v11898_v29, %s10958_s25  ;;  %v8375_v43 = vpop.f32.mrb[6].mxu0  ;;  %v8399_v44 = vpop.f32.mrb[6].mxu1 }
 0x244   : > { %v8376_v45 = vpop.f32.mrb[7].mxu0  ;;  %v8400_v46 = vpop.f32.mrb[7].mxu1 }
 0x245   : > { %v11920_v47 = vadd.f32 %v8376_v45, %v8375_v43  ;;  %v11922_v48 = vadd.f32 %v8400_v46, %v8399_v44  ;;  %v8090_v44 = vld [vmem:[%s11502_s28 + $0x50] sm:$0xff] }
 0x247   : > { %1311 = vrot.lane.b32.xlu1 %v11904_v35, %s10958_s25  ;;  %1309 = vrot.lane.b32.xlu0 %v11900_v30, %s10958_s25  ;;  %v8378_v49 = vpop.f32.mrb[8].mxu0  ;;  %v1182_v30 = vmul.f32 %v11906_v36, %v1156_v18 }
 0x248   : > { %v8379_v51 = vpop.f32.mrb[9].mxu0 }
 0x249   : > { %v11928_v53 = vadd.f32 %v8379_v51, %v8378_v49  ;;  %v1157_v49 = vld [vmem:[%s11502_s28 + $0x10] sm:$0xff] }
 0x24b   : > { %1217 = vrot.lane.b32.xlu1 %v11912_v41, %s10957_s20  ;;  %1215 = vrot.lane.b32.xlu0 %v11906_v36, %s10957_s20  ;;  %v8381_v55 = vpop.f32.mrb[10].mxu0 }
 0x24c   : > { %v8382_v57 = vpop.f32.mrb[11].mxu0 }
 0x24d   : > { %v11936_v59 = vadd.f32 %v8382_v57, %v8381_v55  ;;  %v8098_v57 = vld [vmem:[%s11502_s28 + $0x90] sm:$0xff] }
 0x24f   : > { %1219 = vrot.lane.b32.xlu1 %v11920_v47, %s10957_s20  ;;  %1233 = vrot.lane.b32.xlu0 %v11914_v42, %s10957_s20  ;;  %v8384_v61 = vpop.f32.mrb[12].mxu0 }
 0x250   : > { %v8385_v63 = vpop.f32.mrb[13].mxu0 }
 0x251   : > { %v11944_v1 = vadd.f32 %v8385_v63, %v8384_v61  ;;  %v1158_v61 = vld [vmem:[%s11502_s28 + $0x18] sm:$0xff] }
 0x253   : > { %1235 = vrot.lane.b32.xlu1 %v11922_v48, %s10957_s20  ;;  %1297 = vrot.lane.b32.xlu0 %v11912_v41, %s10958_s25  ;;  %v8387_v3 = vpop.f32.mrb[14].mxu0 }
 0x254   : > { %v8388_v5 = vpop.f32.mrb[15].mxu0 }
 0x255   : > { %v11952_v7 = vadd.f32 %v8388_v5, %v8387_v3  ;;  %v1184_v5 = vmul.f32 %v11920_v47, %v1158_v61 }
 0x257   : > { %1299 = vrot.lane.b32.xlu1 %v11920_v47, %s10958_s25  ;;  %1313 = vrot.lane.b32.xlu0 %v11914_v42, %s10958_s25 }
 0x25b   : > { %1315 = vrot.lane.b32.xlu1 %v11922_v48, %s10958_s25  ;;  %1221 = vrot.lane.b32.xlu0 %v11928_v53, %s10957_s20 }
 0x25e   : > { %v8402_v50 = vpop.f32.mrb[8].mxu1 }
 0x25f   : > { %v8403_v52 = vpop.f32.mrb[9].mxu1  ;;  %1223 = vrot.lane.b32.xlu1 %v11936_v59, %s10957_s20 }
 0x260   : > { %v11930_v54 = vadd.f32 %v8403_v52, %v8402_v50 }
 0x262   : > { %v8405_v56 = vpop.f32.mrb[10].mxu1  ;;  %1237 = vrot.lane.b32.xlu0 %v11930_v54, %s10957_s20 }
 0x263   : > { %v8406_v58 = vpop.f32.mrb[11].mxu1 }
 0x264   : > { %v11938_v60 = vadd.f32 %v8406_v58, %v8405_v56  ;;  %v8091_v56 = vld [vmem:[%s11502_s28 + $0x58] sm:$0xff]  ;;  %v1183_v58 = vmul.f32 %v11912_v41, %v1157_v49 }
 0x266   : > { %v8408_v62 = vpop.f32.mrb[12].mxu1  ;;  %1239 = vrot.lane.b32.xlu1 %v11938_v60, %s10957_s20  ;;  %1301 = vrot.lane.b32.xlu0 %v11928_v53, %s10958_s25 }
 0x267   : > { %v8409_v0 = vpop.f32.mrb[13].mxu1 }
 0x268   : > { %v11946_v2 = vadd.f32 %v8409_v0, %v8408_v62 }
 0x26a   : > { %v8411_v4 = vpop.f32.mrb[14].mxu1  ;;  %1303 = vrot.lane.b32.xlu1 %v11936_v59, %s10958_s25  ;;  %1317 = vrot.lane.b32.xlu0 %v11930_v54, %s10958_s25 }
 0x26b   : > { %v8412_v6 = vpop.f32.mrb[15].mxu1 }
 0x26c   : > { %v11954_v8 = vadd.f32 %v8412_v6, %v8411_v4  ;;  %v8099_v6 = vld [vmem:[%s11502_s28 + $0x98] sm:$0xff] }
 0x26e   : > { %1319 = vrot.lane.b32.xlu1 %v11938_v60, %s10958_s25  ;;  %1225 = vrot.lane.b32.xlu0 %v11944_v1, %s10957_s20 }
 0x272   : > { %1227 = vrot.lane.b32.xlu1 %v11952_v7, %s10957_s20  ;;  %1241 = vrot.lane.b32.xlu0 %v11946_v2, %s10957_s20 }
 0x276   : > { %1243 = vrot.lane.b32.xlu1 %v11954_v8, %s10957_s20  ;;  %1305 = vrot.lane.b32.xlu0 %v11944_v1, %s10958_s25 }
 0x27a   : > { %1307 = vrot.lane.b32.xlu1 %v11952_v7, %s10958_s25  ;;  %1321 = vrot.lane.b32.xlu0 %v11946_v2, %s10958_s25 }
 0x27e   : > { %1323 = vrot.lane.b32.xlu1 %v11954_v8, %s10958_s25 }
 0x2ad   : > { %v1214_v9 = vpop.permute.xlu0 %1213 }
 0x2ae   : > { %v1261_v13 = vmul.f32 %v8088_v10, %v1214_v9  ;;  %v1191_v9 = vmul.f32 %v11914_v42, %v1157_v49 }
 0x2b0   : > { %v1277_v21 = vadd.f32 %v1261_v13, %v1181_v17  ;;  %v1192_v17 = vmul.f32 %v11922_v48, %v1158_v61  ;;  %v8093_v48 = vld [vmem:[%s11502_s28 + $0x68] sm:$0xff]  ;;  %v8094_v61 = vld [vmem:[%s11502_s28 + $0x70] sm:$0xff] }
 0x2b1   : > { %v1232_v11 = vpop.permute.xlu1 %1231  ;;  %v1230_v12 = vpop.permute.xlu0 %1229 }
 0x2b2   : > { %v1270_v22 = vmul.f32 %v8089_v15, %v1232_v11  ;;  %v1269_v23 = vmul.f32 %v8088_v10, %v1230_v12 }
 0x2b4   : > { %v1286_v33 = vadd.f32 %v1270_v22, %v1190_v25  ;;  %v1285_v34 = vadd.f32 %v1269_v23, %v1189_v26  ;;  %v8092_v22 = vld [vmem:[%s11502_s28 + $0x60] sm:$0xff] }
 0x2b5   : > { %v1296_v19 = vpop.permute.xlu1 %1295  ;;  %v1294_v20 = vpop.permute.xlu0 %1293 }
 0x2b6   : > { %v1341_v24 = vmul.f32 %v8096_v16, %v1294_v20  ;;  %v1342_v45 = vmul.f32 %v8097_v28, %v1296_v19 }
 0x2b8   : > { %v1357_v27 = vadd.f32 %v1341_v24, %v1277_v21  ;;  %v1159_v24 = vld [vmem:[%s11502_s28 + $0x20] sm:$0xff] }
 0x2b9   : > { %v1312_v31 = vpop.permute.xlu1 %1311  ;;  %v1310_v32 = vpop.permute.xlu0 %1309 }
 0x2ba   : > { %1373 = vst [vmem:[#allocation2] sm:$0xff] %v1357_v27  ;;  %v1350_v29 = vmul.f32 %v8097_v28, %v1312_v31  ;;  %v1349_v37 = vmul.f32 %v8096_v16, %v1310_v32  ;;  %v8100_v28 = vld [vmem:[%s11502_s28 + $0xa0] sm:$0xff]  ;;  %v1185_v31 = vmul.f32 %v11928_v53, %v1159_v24  ;;  %v1160_v32 = vld [vmem:[%s11502_s28 + $0x28] sm:$0xff] }
 0x2bc   : > { %v1366_v38 = vadd.f32 %v1350_v29, %v1286_v33  ;;  %v1365_v39 = vadd.f32 %v1349_v37, %v1285_v34 }
 0x2bd   : > { %v1218_v40 = vpop.permute.xlu1 %1217  ;;  %v1216_v43 = vpop.permute.xlu0 %1215 }
 0x2be   : > { %1382 = vst [vmem:[#allocation2 + $0x48] sm:$0xff] %v1366_v38  ;;  %1381 = vst [vmem:[#allocation2 + $0x40] sm:$0xff] %v1365_v39  ;;  %v1262_v35 = vmul.f32 %v8089_v15, %v1216_v43  ;;  %v1263_v52 = vmul.f32 %v8090_v44, %v1218_v40  ;;  %v1186_v40 = vmul.f32 %v11936_v59, %v1160_v32  ;;  %v8101_v43 = vld [vmem:[%s11502_s28 + $0xa8] sm:$0xff] }
 0x2c0   : > { %v1278_v46 = vadd.f32 %v1262_v35, %v1182_v30  ;;  %v1279_v36 = vadd.f32 %v1263_v52, %v1183_v58  ;;  %v1193_v30 = vmul.f32 %v11930_v54, %v1159_v24  ;;  %v1194_v52 = vmul.f32 %v11938_v60, %v1160_v32  ;;  %v8095_v60 = vld [vmem:[%s11502_s28 + $0x78] sm:$0xff] }
 0x2c1   : > { %v1220_v50 = vpop.permute.xlu1 %1219  ;;  %v1234_v51 = vpop.permute.xlu0 %1233 }
 0x2c2   : > { %v1358_v55 = vadd.f32 %v1342_v45, %v1278_v46  ;;  %v1264_v62 = vmul.f32 %v8091_v56, %v1220_v50  ;;  %v1271_v3 = vmul.f32 %v8090_v44, %v1234_v51 }
 0x2c4   : > { %1374 = vst [vmem:[#allocation2 + $0x8] sm:$0xff] %v1358_v55  ;;  %v1280_v11 = vadd.f32 %v1264_v62, %v1184_v5  ;;  %v1287_v14 = vadd.f32 %v1271_v3, %v1191_v9 }
 0x2c5   : > { %v1236_v63 = vpop.permute.xlu1 %1235  ;;  %v1298_v0 = vpop.permute.xlu0 %1297 }
 0x2c6   : > { %v1343_v4 = vmul.f32 %v8098_v57, %v1298_v0  ;;  %v1272_v41 = vmul.f32 %v8091_v56, %v1236_v63  ;;  %v1161_v63 = vld [vmem:[%s11502_s28 + $0x30] sm:$0xff] }
 0x2c7   : > { %v1187_v5 = vmul.f32 %v11944_v1, %v1161_v63 }
 0x2c8   : > { %v1359_v10 = vadd.f32 %v1343_v4, %v1279_v36  ;;  %v1288_v20 = vadd.f32 %v1272_v41, %v1192_v17  ;;  %v8102_v4 = vld [vmem:[%s11502_s28 + $0xb0] sm:$0xff] }
 0x2c9   : > { %v1300_v12 = vpop.permute.xlu1 %1299  ;;  %v1314_v13 = vpop.permute.xlu0 %1313 }
 0x2ca   : > { %1375 = vst [vmem:[#allocation2 + $0x10] sm:$0xff] %v1359_v10  ;;  %v1344_v15 = vmul.f32 %v8099_v6, %v1300_v12  ;;  %v1351_v16 = vmul.f32 %v8098_v57, %v1314_v13 }
 0x2cc   : > { %v1360_v18 = vadd.f32 %v1344_v15, %v1280_v11  ;;  %v1367_v47 = vadd.f32 %v1351_v16, %v1287_v14  ;;  %v8103_v15 = vld [vmem:[%s11502_s28 + $0xb8] sm:$0xff]  ;;  %v1195_v16 = vmul.f32 %v11946_v2, %v1161_v63 }
 0x2cd   : > { %v1316_v19 = vpop.permute.xlu1 %1315  ;;  %v1222_v42 = vpop.permute.xlu0 %1221 }
 0x2ce   : > { %1376 = vst [vmem:[#allocation2 + $0x18] sm:$0xff] %v1360_v18  ;;  %1383 = vst [vmem:[#allocation2 + $0x50] sm:$0xff] %v1367_v47  ;;  %v1352_v21 = vmul.f32 %v8099_v6, %v1316_v19  ;;  %v1265_v27 = vmul.f32 %v8092_v22, %v1222_v42  ;;  %v1162_v6 = vld [vmem:[%s11502_s28 + $0x38] sm:$0xff] }
 0x2cf   : > { %v1188_v41 = vmul.f32 %v11952_v7, %v1162_v6 }
 0x2d0   : > { %v1368_v23 = vadd.f32 %v1352_v21, %v1288_v20  ;;  %v1281_v37 = vadd.f32 %v1265_v27, %v1185_v31 }
 0x2d1   : > { %v1224_v25 = vpop.permute.xlu1 %1223 }
 0x2d2   : > { %1384 = vst [vmem:[#allocation2 + $0x58] sm:$0xff] %v1368_v23  ;;  %v1266_v33 = vmul.f32 %v8093_v48, %v1224_v25 }
 0x2d4   : > { %v1238_v26 = vpop.permute.xlu0 %1237  ;;  %v1282_v44 = vadd.f32 %v1266_v33, %v1186_v40 }
 0x2d5   : > { %v1273_v38 = vmul.f32 %v8092_v22, %v1238_v26  ;;  %v1196_v22 = vmul.f32 %v11954_v8, %v1162_v6 }
 0x2d7   : > { %v1289_v49 = vadd.f32 %v1273_v38, %v1193_v30 }
 0x2d8   : > { %v1240_v34 = vpop.permute.xlu1 %1239  ;;  %v1302_v29 = vpop.permute.xlu0 %1301 }
 0x2d9   : > { %v1345_v39 = vmul.f32 %v8100_v28, %v1302_v29  ;;  %v1274_v53 = vmul.f32 %v8093_v48, %v1240_v34 }
 0x2db   : > { %v1361_v35 = vadd.f32 %v1345_v39, %v1281_v37  ;;  %v1290_v57 = vadd.f32 %v1274_v53, %v1194_v52 }
 0x2dc   : > { %v1304_v45 = vpop.permute.xlu1 %1303  ;;  %v1318_v46 = vpop.permute.xlu0 %1317 }
 0x2dd   : > { %1377 = vst [vmem:[#allocation2 + $0x20] sm:$0xff] %v1361_v35  ;;  %v1346_v50 = vmul.f32 %v8101_v43, %v1304_v45  ;;  %v1353_v51 = vmul.f32 %v8100_v28, %v1318_v46 }
 0x2df   : > { %v1362_v55 = vadd.f32 %v1346_v50, %v1282_v44  ;;  %v1369_v59 = vadd.f32 %v1353_v51, %v1289_v49 }
 0x2e0   : > { %v1320_v56 = vpop.permute.xlu1 %1319  ;;  %v1226_v54 = vpop.permute.xlu0 %1225 }
 0x2e1   : > { %1378 = vst [vmem:[#allocation2 + $0x28] sm:$0xff] %v1362_v55  ;;  %1385 = vst [vmem:[#allocation2 + $0x60] sm:$0xff] %v1369_v59  ;;  %v1354_v58 = vmul.f32 %v8101_v43, %v1320_v56  ;;  %v1267_v3 = vmul.f32 %v8094_v61, %v1226_v54 }
 0x2e3   : > { %v1370_v62 = vadd.f32 %v1354_v58, %v1290_v57  ;;  %v1283_v12 = vadd.f32 %v1267_v3, %v1187_v5 }
 0x2e4   : > { %v1228_v0 = vpop.permute.xlu1 %1227  ;;  %v1242_v36 = vpop.permute.xlu0 %1241 }
 0x2e5   : > { %1386 = vst [vmem:[#allocation2 + $0x68] sm:$0xff] %v1370_v62  ;;  %v1268_v9 = vmul.f32 %v8095_v60, %v1228_v0  ;;  %v1275_v13 = vmul.f32 %v8094_v61, %v1242_v36 }
 0x2e7   : > { %v1284_v18 = vadd.f32 %v1268_v9, %v1188_v41  ;;  %v1291_v42 = vadd.f32 %v1275_v13, %v1195_v16 }
 0x2e8   : > { %v1244_v10 = vpop.permute.xlu1 %1243  ;;  %v1306_v11 = vpop.permute.xlu0 %1305 }
 0x2e9   : > { %v1347_v14 = vmul.f32 %v8102_v4, %v1306_v11  ;;  %v1276_v20 = vmul.f32 %v8095_v60, %v1244_v10 }
 0x2eb   : > { %v1363_v17 = vadd.f32 %v1347_v14, %v1283_v12  ;;  %v1292_v26 = vadd.f32 %v1276_v20, %v1196_v22 }
 0x2ec   : > { %v1308_v47 = vpop.permute.xlu1 %1307  ;;  %v1322_v19 = vpop.permute.xlu0 %1321 }
 0x2ed   : > { %1379 = vst [vmem:[#allocation2 + $0x30] sm:$0xff] %v1363_v17  ;;  %v1348_v1 = vmul.f32 %v8103_v15, %v1308_v47  ;;  %v1355_v21 = vmul.f32 %v8102_v4, %v1322_v19 }
 0x2ef   : > { %v1364_v23 = vadd.f32 %v1348_v1, %v1284_v18  ;;  %v1371_v24 = vadd.f32 %v1355_v21, %v1291_v42 }
 0x2f0   : > { %v1324_v25 = vpop.permute.xlu1 %1323 }
 0x2f1   : > { %1380 = vst [vmem:[#allocation2 + $0x38] sm:$0xff] %v1364_v23  ;;  %1387 = vst [vmem:[#allocation2 + $0x70] sm:$0xff] %v1371_v24  ;;  %v1356_v7 = vmul.f32 %v8103_v15, %v1324_v25 }
 0x2f3   : > { %v1372_v27 = vadd.f32 %v1356_v7, %v1292_v26 }
 0x2f5   : > { %1388 = vst [vmem:[#allocation2 + $0x78] sm:$0xff] %v1372_v27 }
 0x2f6 PF: > { %s15527_s0 = sld [smem:[#allocation52_spill]]  ;;  %s15528_s19 = sld [smem:[#allocation50_spill]] }
 0x2fc   : > { %s8104_s11 = sshll.u32 %s15527_s0, 6  ;;  %s8105_s15 = sshll.u32 %s15528_s19, 6 }
 0x2fd   : > { %s1391_s22 = sadd.s32 63, %s8104_s11 }
 0x2fe   : > { %p8106_p3 = scmp.gt.s32.totalorder %s8105_s15, %s1391_s22 }
 0x300   : > { %1395 = sbr.rel (%p8106_p3) target bundleno = 3861 (0xf15), region = 100 }
 0x307   : > { %v1444_v2 = vld [vmem:[%s11487_s1 + $0x80] sm:$0xff]  ;;  %v1445_v8 = vld [vmem:[%s11487_s1 + $0x88] sm:$0xff]  ;;  %v1446_v32 = vld [vmem:[%s11487_s1 + $0x90] sm:$0xff]  ;;  %vm2054_vm1 = vcmask 261120   ;;  %vm2377_vm5 = vcmask 523264   ;;  %vm2714_vm12 = vcmask 7168  }
 0x308   : > { %v1428_v48 = vld [vmem:[%s11487_s1] sm:$0xff]  ;;  %v9310_v28 = vpack.c.bf16 %v1445_v8, %v1444_v2  ;;  %v1429_v31 = vld [vmem:[%s11487_s1 + $0x8] sm:$0xff]  ;;  %v1447_v33 = vld [vmem:[%s11487_s1 + $0x98] sm:$0xff]  ;;  %s10963_s28 = smov 96   ;;  %s10964_s6 = smov 64   ;;  %vm4387_vm13 = vcmask 523520  }
 0x309   : > { %v9312_v34 = vpack.c.bf16 %v1429_v31, %v1428_v48  ;;  %v9314_v29 = vpack.c.bf16 %v1447_v33, %v1446_v32  ;;  %v1430_v37 = vld [vmem:[%s11487_s1 + $0x10] sm:$0xff]  ;;  %v1431_v38 = vld [vmem:[%s11487_s1 + $0x18] sm:$0xff]  ;;  %v1448_v39 = vld [vmem:[%s11487_s1 + $0xa0] sm:$0xff]  ;;  %s10965_s24 = smov 32   ;;  %vm5626_vm14 = vcmask 785920   ;;  %vm6865_vm15 = vcmask 1048320  }
 0x30a   : > { %9311 = vmatprep.subr.bf16.mxu0 %v9310_v28  ;;  %v1449_v40 = vld [vmem:[%s11487_s1 + $0xa8] sm:$0xff]  ;;  %v9316_v43 = vpack.c.bf16 %v1431_v38, %v1430_v37  ;;  %v1432_v35 = vld [vmem:[%s11487_s1 + $0x20] sm:$0xff]  ;;  %v1450_v45 = vld [vmem:[%s11487_s1 + $0xb0] sm:$0xff] }
 0x30b   : > { %9313 = vmatpush3.bf16.msra.mxu0 %v9312_v34  ;;  %v9318_v30 = vpack.c.bf16 %v1449_v40, %v1448_v39  ;;  %v1433_v44 = vld [vmem:[%s11487_s1 + $0x28] sm:$0xff]  ;;  %v1451_v46 = vld [vmem:[%s11487_s1 + $0xb8] sm:$0xff]  ;;  %v1434_v50 = vld [vmem:[%s11487_s1 + $0x30] sm:$0xff] }
 0x30c   : > { %9315 = vmatprep.subr.bf16.mxu0 %v9314_v29  ;;  %v9320_v49 = vpack.c.bf16 %v1433_v44, %v1432_v35  ;;  %v9322_v53 = vpack.c.bf16 %v1451_v46, %v1450_v45  ;;  %v1435_v51 = vld [vmem:[%s11487_s1 + $0x38] sm:$0xff]  ;;  %v1452_v52 = vld [vmem:[%s11487_s1 + $0xc0] sm:$0xff]  ;;  %v1453_v55 = vld [vmem:[%s11487_s1 + $0xc8] sm:$0xff] }
 0x30d   : > { %v1397_v59 = vld [vmem:[%s11474_s29 + $0x8] sm:$0xff]  ;;  %v9324_v56 = vpack.c.bf16 %v1435_v51, %v1434_v50  ;;  %v9326_v54 = vpack.c.bf16 %v1453_v55, %v1452_v52  ;;  %v1436_v57 = vld [vmem:[%s11487_s1 + $0x40] sm:$0xff]  ;;  %v1454_v61 = vld [vmem:[%s11487_s1 + $0xd0] sm:$0xff] }
 0x30e   : > { %1524 = vmatprep.mubr.f32.mxu0 %v1397_v59  ;;  %1701 = vmatprep.mubr.f32.mxu1 %v1397_v59  ;;  %v1437_v58 = vld [vmem:[%s11487_s1 + $0x48] sm:$0xff]  ;;  %v1455_v62 = vld [vmem:[%s11487_s1 + $0xd8] sm:$0xff]  ;;  %v1438_v36 = vld [vmem:[%s11487_s1 + $0x50] sm:$0xff] }
 0x30f   : > { %9317 = vmatpush3.bf16.msra.mxu0 %v9316_v43  ;;  %v9328_v63 = vpack.c.bf16 %v1437_v58, %v1436_v57  ;;  %v9330_v0 = vpack.c.bf16 %v1455_v62, %v1454_v61  ;;  %v1439_v3 = vld [vmem:[%s11487_s1 + $0x58] sm:$0xff]  ;;  %v1456_v60 = vld [vmem:[%s11487_s1 + $0xe0] sm:$0xff]  ;;  %v1457_v4 = vld [vmem:[%s11487_s1 + $0xe8] sm:$0xff] }
 0x310   : > { %9319 = vmatprep.subr.bf16.mxu0 %v9318_v30  ;;  %v9332_v5 = vpack.c.bf16 %v1439_v3, %v1438_v36  ;;  %v9334_v6 = vpack.c.bf16 %v1457_v4, %v1456_v60  ;;  %v1440_v9 = vld [vmem:[%s11487_s1 + $0x60] sm:$0xff]  ;;  %v1441_v10 = vld [vmem:[%s11487_s1 + $0x68] sm:$0xff]  ;;  %v1458_v11 = vld [vmem:[%s11487_s1 + $0xf0] sm:$0xff] }
 0x311   : > { %v1459_v12 = vld [vmem:[%s11487_s1 + $0xf8] sm:$0xff]  ;;  %v9336_v13 = vpack.c.bf16 %v1441_v10, %v1440_v9  ;;  %v1442_v41 = vld [vmem:[%s11487_s1 + $0x70] sm:$0xff]  ;;  %v12074_v17 = vld [vmem:[%s11474_s29] sm:$0xff] }
 0x312   : > { %v9338_v14 = vpack.c.bf16 %v1459_v12, %v1458_v11  ;;  %v1443_v15 = vld [vmem:[%s11487_s1 + $0x78] sm:$0xff]  ;;  %v12082_v47 = vld [vmem:[%s11474_s29 + $0x10] sm:$0xff]  ;;  %v12085_v19 = vld [vmem:[%s11474_s29 + $0x28] sm:$0xff]  ;;  %s10960_s1 = smov 16  }
 0x313   : > { %9321 = vmatpush3.bf16.msra.mxu0 %v9320_v49  ;;  %v9340_v16 = vpack.c.bf16 %v1443_v15, %v1442_v41  ;;  %v12077_v18 = vld [vmem:[%s11474_s29 + $0x18] sm:$0xff]  ;;  %v12090_v42 = vld [vmem:[%s11474_s29 + $0x20] sm:$0xff]  ;;  %v12098_v1 = vld [vmem:[%s11474_s29 + $0x30] sm:$0xff] }
 0x314   : > { %9323 = vmatprep.subr.bf16.mxu0 %v9322_v53  ;;  %v12093_v20 = vld [vmem:[%s11474_s29 + $0x38] sm:$0xff]  ;;  %v12101_v21 = vld [vmem:[%s11474_s29 + $0x48] sm:$0xff]  ;;  %v12106_v22 = vld [vmem:[%s11474_s29 + $0x40] sm:$0xff] }
 0x315   : > { %v12109_v23 = vld [vmem:[%s11474_s29 + $0x58] sm:$0xff]  ;;  %v12114_v24 = vld [vmem:[%s11474_s29 + $0x50] sm:$0xff]  ;;  %v12117_v25 = vld [vmem:[%s11474_s29 + $0x68] sm:$0xff] }
 0x316   : > { %v12122_v26 = vld [vmem:[%s11474_s29 + $0x60] sm:$0xff]  ;;  %v12125_v7 = vld [vmem:[%s11474_s29 + $0x78] sm:$0xff]  ;;  %v12130_v27 = vld [vmem:[%s11474_s29 + $0x70] sm:$0xff] }
 0x317   : > { %9325 = vmatpush3.bf16.msra.mxu0 %v9324_v56  ;;  %v12133_v2 = vld [vmem:[%s11474_s29 + $0x88] sm:$0xff]  ;;  %v12138_v8 = vld [vmem:[%s11474_s29 + $0x80] sm:$0xff]  ;;  %v12141_v48 = vld [vmem:[%s11474_s29 + $0x98] sm:$0xff] }
 0x318   : > { %9327 = vmatprep.subr.bf16.mxu0 %v9326_v54  ;;  %v12146_v28 = vld [vmem:[%s11474_s29 + $0x90] sm:$0xff]  ;;  %v12149_v31 = vld [vmem:[%s11474_s29 + $0xa8] sm:$0xff]  ;;  %v12154_v32 = vld [vmem:[%s11474_s29 + $0xa0] sm:$0xff] }
 0x319   : > { %v12157_v33 = vld [vmem:[%s11474_s29 + $0xb8] sm:$0xff]  ;;  %v12162_v34 = vld [vmem:[%s11474_s29 + $0xb0] sm:$0xff]  ;;  %v12165_v29 = vld [vmem:[%s11474_s29 + $0xc8] sm:$0xff] }
 0x31a   : > { %v12170_v37 = vld [vmem:[%s11474_s29 + $0xc0] sm:$0xff]  ;;  %v12173_v38 = vld [vmem:[%s11474_s29 + $0xd8] sm:$0xff]  ;;  %v12178_v39 = vld [vmem:[%s11474_s29 + $0xd0] sm:$0xff] }
 0x31b   : > { %9329 = vmatpush3.bf16.msra.mxu0 %v9328_v63  ;;  %v12181_v40 = vld [vmem:[%s11474_s29 + $0xe8] sm:$0xff]  ;;  %v12186_v43 = vld [vmem:[%s11474_s29 + $0xe0] sm:$0xff]  ;;  %v12189_v30 = vld [vmem:[%s11474_s29 + $0xf8] sm:$0xff] }
 0x31c   : > { %9331 = vmatprep.subr.bf16.mxu0 %v9330_v0  ;;  %v12194_v35 = vld [vmem:[%s11474_s29 + $0xf0] sm:$0xff]  ;;  %v1621_v44 = vld [vmem:[%s11493_s30 + $0x80] sm:$0xff]  ;;  %v1622_v45 = vld [vmem:[%s11493_s30 + $0x88] sm:$0xff]  ;;  %s10959_s29 = smov 112  }
 0x31d   : > { %v1605_v46 = vld [vmem:[%s11493_s30] sm:$0xff]  ;;  %v9342_v49 = vpack.c.bf16 %v1622_v45, %v1621_v44  ;;  %v1606_v53 = vld [vmem:[%s11493_s30 + $0x8] sm:$0xff]  ;;  %v1623_v50 = vld [vmem:[%s11493_s30 + $0x90] sm:$0xff] }
 0x31e   : > { %v1624_v51 = vld [vmem:[%s11493_s30 + $0x98] sm:$0xff]  ;;  %v9344_v52 = vpack.c.bf16 %v1606_v53, %v1605_v46  ;;  %v1607_v59 = vld [vmem:[%s11493_s30 + $0x10] sm:$0xff]  ;;  %v1625_v54 = vld [vmem:[%s11493_s30 + $0xa0] sm:$0xff] }
 0x31f   : > { %9333 = vmatpush3.bf16.msra.mxu0 %v9332_v5  ;;  %v9346_v55 = vpack.c.bf16 %v1624_v51, %v1623_v50  ;;  %v1608_v56 = vld [vmem:[%s11493_s30 + $0x18] sm:$0xff]  ;;  %9343 = vmatprep.subr.bf16.mxu1 %v9342_v49  ;;  %v1626_v57 = vld [vmem:[%s11493_s30 + $0xa8] sm:$0xff]  ;;  %v1609_v62 = vld [vmem:[%s11493_s30 + $0x20] sm:$0xff] }
 0x320   : > { %9335 = vmatprep.subr.bf16.mxu0 %v9334_v6  ;;  %9345 = vmatpush3.bf16.msra.mxu1 %v9344_v52  ;;  %v9348_v58 = vpack.c.bf16 %v1608_v56, %v1607_v59  ;;  %v9350_v61 = vpack.c.bf16 %v1626_v57, %v1625_v54  ;;  %v1610_v63 = vld [vmem:[%s11493_s30 + $0x28] sm:$0xff]  ;;  %v1627_v0 = vld [vmem:[%s11493_s30 + $0xb0] sm:$0xff]  ;;  %v1628_v36 = vld [vmem:[%s11493_s30 + $0xb8] sm:$0xff] }
 0x321   : > { %9347 = vmatprep.subr.bf16.mxu1 %v9346_v55  ;;  %v9352_v3 = vpack.c.bf16 %v1610_v63, %v1609_v62  ;;  %v9354_v60 = vpack.c.bf16 %v1628_v36, %v1627_v0  ;;  %v1611_v4 = vld [vmem:[%s11493_s30 + $0x30] sm:$0xff]  ;;  %v1612_v5 = vld [vmem:[%s11493_s30 + $0x38] sm:$0xff]  ;;  %v1629_v9 = vld [vmem:[%s11493_s30 + $0xc0] sm:$0xff] }
 0x322   : > { %v9356_v6 = vpack.c.bf16 %v1612_v5, %v1611_v4  ;;  %v1630_v10 = vld [vmem:[%s11493_s30 + $0xc8] sm:$0xff]  ;;  %v1613_v12 = vld [vmem:[%s11493_s30 + $0x40] sm:$0xff]  ;;  %v1631_v41 = vld [vmem:[%s11493_s30 + $0xd0] sm:$0xff] }
 0x323   : > { %9337 = vmatpush3.bf16.msra.mxu0 %v9336_v13  ;;  %v9358_v11 = vpack.c.bf16 %v1630_v10, %v1629_v9  ;;  %v1614_v13 = vld [vmem:[%s11493_s30 + $0x48] sm:$0xff]  ;;  %v1632_v15 = vld [vmem:[%s11493_s30 + $0xd8] sm:$0xff]  ;;  %v1615_v44 = vld [vmem:[%s11493_s30 + $0x50] sm:$0xff] }
 0x324   : > { %9339 = vmatprep.subr.bf16.mxu0 %v9338_v14  ;;  %9349 = vmatpush3.bf16.msra.mxu1 %v9348_v58  ;;  %v9360_v14 = vpack.c.bf16 %v1614_v13, %v1613_v12  ;;  %v1616_v45 = vld [vmem:[%s11493_s30 + $0x58] sm:$0xff]  ;;  %v1633_v49 = vld [vmem:[%s11493_s30 + $0xe0] sm:$0xff]  ;;  %v1634_v53 = vld [vmem:[%s11493_s30 + $0xe8] sm:$0xff] }
 0x325   : > { %9351 = vmatprep.subr.bf16.mxu1 %v9350_v61  ;;  %v9364_v46 = vpack.c.bf16 %v1616_v45, %v1615_v44  ;;  %v9366_v50 = vpack.c.bf16 %v1634_v53, %v1633_v49  ;;  %v1617_v51 = vld [vmem:[%s11493_s30 + $0x60] sm:$0xff]  ;;  %v1618_v52 = vld [vmem:[%s11493_s30 + $0x68] sm:$0xff]  ;;  %v1635_v59 = vld [vmem:[%s11493_s30 + $0xf0] sm:$0xff] }
 0x326   : > { %v9368_v55 = vpack.c.bf16 %v1618_v52, %v1617_v51  ;;  %v1636_v56 = vld [vmem:[%s11493_s30 + $0xf8] sm:$0xff]  ;;  %v1619_v57 = vld [vmem:[%s11493_s30 + $0x70] sm:$0xff]  ;;  %v12359_v49 = vld [vmem:[%s11508_s18 + $0x40] sm:$0xff] }
 0x327   : > { %9341 = vmatpush3.bf16.msra.mxu0 %v9340_v16  ;;  %v9362_v16 = vpack.c.bf16 %v1632_v15, %v1631_v41  ;;  %v9370_v54 = vpack.c.bf16 %v1636_v56, %v1635_v59  ;;  %v1620_v58 = vld [vmem:[%s11493_s30 + $0x78] sm:$0xff]  ;;  %v12362_v53 = vld [vmem:[%s11508_s18] sm:$0xff]  ;;  %v12371_v52 = vld [vmem:[%s11508_s18 + $0x48] sm:$0xff] }
 0x328   : > { %9353 = vmatpush3.bf16.msra.mxu1 %v9352_v3  ;;  %v9372_v61 = vpack.c.bf16 %v1620_v58, %v1619_v57  ;;  %v12368_v51 = vld [vmem:[%s11508_s18 + $0x80] sm:$0xff]  ;;  %v12375_v59 = vld [vmem:[%s11508_s18 + $0x88] sm:$0xff]  ;;  %vm12406_vm2 = vmpackc.low %vm2054_vm1, %vm2054_vm1 }
 0x329   : > { %9355 = vmatprep.subr.bf16.mxu1 %v9354_v60 }
 0x32a   : > { %1525 = vmatmul.mubr.f32.vlgmr.msra.gmra.mrb[0].mxu0 %v12074_v17 }
 0x32b   : > { %1529 = vmatprep.mubr.f32.mxu0 %v12077_v18 }
 0x32c   : > { %9357 = vmatpush3.bf16.msra.mxu1 %v9356_v6 }
 0x32d   : > { %9359 = vmatprep.subr.bf16.mxu1 %v9358_v11 }
 0x32e   : > { %1530 = vmatmul.mubr.f32.gmra.mrb[2].mxu0 %v12082_v47 }
 0x32f   : > { %1534 = vmatprep.mubr.f32.mxu0 %v12085_v19 }
 0x330   : > { %9361 = vmatpush3.bf16.msra.mxu1 %v9360_v14  ;;  %v2038_v14 = vld [vmem:[#allocation2] sm:$0xff] }
 0x331   : > { %9363 = vmatprep.subr.bf16.mxu1 %v9362_v16 }
 0x332   : > { %1535 = vmatmul.mubr.f32.gmra.mrb[4].mxu0 %v12090_v42 }
 0x333   : > { %1539 = vmatprep.mubr.f32.mxu0 %v12093_v20 }
 0x334   : > { %9365 = vmatpush3.bf16.msra.mxu1 %v9364_v46 }
 0x335   : > { %9367 = vmatprep.subr.bf16.mxu1 %v9366_v50  ;;  %v12365_v50 = vld [vmem:[%s11508_s18 + $0x8] sm:$0xff] }
 0x336   : > { %1540 = vmatmul.mubr.f32.gmra.mrb[6].mxu0 %v12098_v1 }
 0x337   : > { %1544 = vmatprep.mubr.f32.mxu0 %v12101_v21 }
 0x338   : > { %9369 = vmatpush3.bf16.msra.mxu1 %v9368_v55 }
 0x339   : > { %9371 = vmatprep.subr.bf16.mxu1 %v9370_v54 }
 0x33a   : > { %1545 = vmatmul.mubr.f32.gmra.mrb[8].mxu0 %v12106_v22 }
 0x33b   : > { %1549 = vmatprep.mubr.f32.mxu0 %v12109_v23 }
 0x33c   : > { %9373 = vmatpush3.bf16.msra.mxu1 %v9372_v61 }
 0x33e   : > { %1550 = vmatmul.mubr.f32.gmra.mrb[10].mxu0 %v12114_v24 }
 0x33f   : > { %1554 = vmatprep.mubr.f32.mxu0 %v12117_v25  ;;  %1702 = vmatmul.mubr.f32.vlgmr.msra.gmra.mrb[0].mxu1 %v12074_v17 }
 0x340   : > { %1706 = vmatprep.mubr.f32.mxu1 %v12077_v18 }
 0x342   : > { %1555 = vmatmul.mubr.f32.gmra.mrb[12].mxu0 %v12122_v26 }
 0x343   : > { %1559 = vmatprep.mubr.f32.mxu0 %v12125_v7  ;;  %1707 = vmatmul.mubr.f32.gmra.mrb[2].mxu1 %v12082_v47 }
 0x344   : > { %1711 = vmatprep.mubr.f32.mxu1 %v12085_v19 }
 0x346   : > { %1560 = vmatmul.mubr.f32.gmra.mrb[14].mxu0 %v12130_v27 }
 0x347   : > { %1564 = vmatprep.mubr.f32.mxu0 %v12133_v2  ;;  %1712 = vmatmul.mubr.f32.gmra.mrb[4].mxu1 %v12090_v42 }
 0x348   : > { %1716 = vmatprep.mubr.f32.mxu1 %v12093_v20 }
 0x34a   : > { %1565 = vmatmul.mubr.f32.gmra.mrb[16].mxu0 %v12138_v8 }
 0x34b   : > { %1569 = vmatprep.mubr.f32.mxu0 %v12141_v48  ;;  %1717 = vmatmul.mubr.f32.gmra.mrb[6].mxu1 %v12098_v1 }
 0x34c   : > { %1721 = vmatprep.mubr.f32.mxu1 %v12101_v21 }
 0x34e   : > { %1570 = vmatmul.mubr.f32.gmra.mrb[18].mxu0 %v12146_v28 }
 0x34f   : > { %1574 = vmatprep.mubr.f32.mxu0 %v12149_v31  ;;  %1722 = vmatmul.mubr.f32.gmra.mrb[8].mxu1 %v12106_v22 }
 0x350   : > { %1726 = vmatprep.mubr.f32.mxu1 %v12109_v23 }
 0x352   : > { %1575 = vmatmul.mubr.f32.gmra.mrb[20].mxu0 %v12154_v32 }
 0x353   : > { %1579 = vmatprep.mubr.f32.mxu0 %v12157_v33  ;;  %1727 = vmatmul.mubr.f32.gmra.mrb[10].mxu1 %v12114_v24 }
 0x354   : > { %1731 = vmatprep.mubr.f32.mxu1 %v12117_v25 }
 0x356   : > { %1580 = vmatmul.mubr.f32.gmra.mrb[22].mxu0 %v12162_v34 }
 0x357   : > { %1584 = vmatprep.mubr.f32.mxu0 %v12165_v29  ;;  %1732 = vmatmul.mubr.f32.gmra.mrb[12].mxu1 %v12122_v26 }
 0x358   : > { %1736 = vmatprep.mubr.f32.mxu1 %v12125_v7 }
 0x35a   : > { %1585 = vmatmul.mubr.f32.gmra.mrb[24].mxu0 %v12170_v37 }
 0x35b   : > { %1589 = vmatprep.mubr.f32.mxu0 %v12173_v38  ;;  %1737 = vmatmul.mubr.f32.gmra.mrb[14].mxu1 %v12130_v27 }
 0x35c   : > { %1741 = vmatprep.mubr.f32.mxu1 %v12133_v2 }
 0x35e   : > { %1590 = vmatmul.mubr.f32.gmra.mrb[26].mxu0 %v12178_v39 }
 0x35f   : > { %1594 = vmatprep.mubr.f32.mxu0 %v12181_v40  ;;  %1742 = vmatmul.mubr.f32.gmra.mrb[16].mxu1 %v12138_v8 }
 0x360   : > { %1746 = vmatprep.mubr.f32.mxu1 %v12141_v48 }
 0x362   : > { %1595 = vmatmul.mubr.f32.gmra.mrb[28].mxu0 %v12186_v43 }
 0x363   : > { %1599 = vmatprep.mubr.f32.mxu0 %v12189_v30  ;;  %1747 = vmatmul.mubr.f32.gmra.mrb[18].mxu1 %v12146_v28 }
 0x364   : > { %1751 = vmatprep.mubr.f32.mxu1 %v12149_v31 }
 0x366   : > { %1600 = vmatmul.mubr.f32.gmra.mrb[30].mxu0 %v12194_v35 }
 0x367   : > { %8846 = vmatprep.mubr.msk.f32.mxu0 %vm2054_vm1, %v2038_v14  ;;  %1752 = vmatmul.mubr.f32.gmra.mrb[20].mxu1 %v12154_v32 }
 0x368   : > { %1756 = vmatprep.mubr.f32.mxu1 %v12157_v33 }
 0x36b   : > { %1757 = vmatmul.mubr.f32.gmra.mrb[22].mxu1 %v12162_v34 }
 0x36c   : > { %1761 = vmatprep.mubr.f32.mxu1 %v12165_v29 }
 0x36f   : > { %1762 = vmatmul.mubr.f32.gmra.mrb[24].mxu1 %v12170_v37 }
 0x370   : > { %1766 = vmatprep.mubr.f32.mxu1 %v12173_v38 }
 0x373   : > { %1767 = vmatmul.mubr.f32.gmra.mrb[26].mxu1 %v12178_v39 }
 0x374   : > { %1771 = vmatprep.mubr.f32.mxu1 %v12181_v40 }
 0x377   : > { %1772 = vmatmul.mubr.f32.gmra.mrb[28].mxu1 %v12186_v43  ;;  %v2046_v43 = vld [vmem:[#allocation2 + $0x40] sm:$0xff] }
 0x378   : > { %1776 = vmatprep.mubr.f32.mxu1 %v12189_v30 }
 0x37b   : > { %1777 = vmatmul.mubr.f32.gmra.mrb[30].mxu1 %v12194_v35 }
 0x37c   : > { %8874 = vmatprep.mubr.msk.f32.mxu1 %vm2054_vm1, %v2046_v43 }
 0x3fd   : > { %v8446_v62 = vpop.f32.mrb[0].mxu0 }
 0x3fe   : > { %v8447_v63 = vpop.f32.mrb[1].mxu0 }
 0x3ff   : > { %v12229_v0 = vadd.f32 %v8447_v63, %v8446_v62  ;;  %v12384_v63 = vld [vmem:[%s11508_s18 + $0x58] sm:$0xff] }
 0x401   : > { %v8449_v36 = vpop.f32.mrb[2].mxu0  ;;  %1840 = vrot.lane.b32.xlu0 %v12229_v0, %s10959_s29  ;;  %v1808_v57 = vmul.f32 %v12229_v0, %v12362_v53 }
 0x402   : > { %v8450_v3 = vpop.f32.mrb[3].mxu0 }
 0x403   : > { %v12235_v60 = vadd.f32 %v8450_v3, %v8449_v36  ;;  %v12387_v36 = vld [vmem:[%s11508_s18 + $0x50] sm:$0xff] }
 0x405   : > { %v8452_v4 = vpop.f32.mrb[4].mxu0  ;;  %1922 = vrot.lane.b32.xlu1 %v12235_v60, %s10960_s1  ;;  %1920 = vrot.lane.b32.xlu0 %v12229_v0, %s10960_s1  ;;  %v1809_v58 = vmul.f32 %v12235_v60, %v12365_v50  ;;  %v12394_v0 = vld [vmem:[%s11508_s18 + $0x18] sm:$0xff] }
 0x406   : > { %v8453_v17 = vpop.f32.mrb[5].mxu0 }
 0x407   : > { %v12243_v5 = vadd.f32 %v8453_v17, %v8452_v4 }
 0x409   : > { %v8455_v18 = vpop.f32.mrb[6].mxu0  ;;  %1842 = vrot.lane.b32.xlu0 %v12235_v60, %s10959_s29 }
 0x40a   : > { %v8456_v47 = vpop.f32.mrb[7].mxu0 }
 0x40b   : > { %v12249_v6 = vadd.f32 %v8456_v47, %v8455_v18  ;;  %v12391_v18 = vld [vmem:[%s11508_s18 + $0x10] sm:$0xff] }
 0x40d   : > { %v8458_v9 = vpop.f32.mrb[8].mxu0  ;;  %1846 = vrot.lane.b32.xlu1 %v12249_v6, %s10959_s29  ;;  %1844 = vrot.lane.b32.xlu0 %v12243_v5, %s10959_s29 }
 0x40e   : > { %v8459_v19 = vpop.f32.mrb[9].mxu0 }
 0x40f   : > { %v12257_v42 = vadd.f32 %v8459_v19, %v8458_v9 }
 0x411   : > { %v8461_v20 = vpop.f32.mrb[10].mxu0  ;;  %1926 = vrot.lane.b32.xlu1 %v12249_v6, %s10960_s1  ;;  %1924 = vrot.lane.b32.xlu0 %v12243_v5, %s10960_s1 }
 0x412   : > { %v8462_v1 = vpop.f32.mrb[11].mxu0 }
 0x413   : > { %v12265_v10 = vadd.f32 %v8462_v1, %v8461_v20 }
 0x415   : > { %v8464_v11 = vpop.f32.mrb[12].mxu0  ;;  %1850 = vrot.lane.b32.xlu1 %v12265_v10, %s10959_s29  ;;  %1848 = vrot.lane.b32.xlu0 %v12257_v42, %s10959_s29 }
 0x416   : > { %v8465_v21 = vpop.f32.mrb[13].mxu0 }
 0x417   : > { %v12273_v22 = vadd.f32 %v8465_v21, %v8464_v11  ;;  %v12399_v11 = vld [vmem:[%s11508_s18 + $0x98] sm:$0xff]  ;;  %v12402_v21 = vld [vmem:[%s11508_s18 + $0x90] sm:$0xff] }
 0x419   : > { %v8467_v12 = vpop.f32.mrb[14].mxu0  ;;  %1930 = vrot.lane.b32.xlu1 %v12265_v10, %s10960_s1  ;;  %1928 = vrot.lane.b32.xlu0 %v12257_v42, %s10960_s1 }
 0x41a   : > { %v8468_v23 = vpop.f32.mrb[15].mxu0 }
 0x41b   : > { %v12281_v24 = vadd.f32 %v8468_v23, %v8467_v12  ;;  %v1810_v23 = vmul.f32 %v12243_v5, %v12391_v18  ;;  %v12423_v5 = vld [vmem:[%s11508_s18 + $0x68] sm:$0xff] }
 0x41d   : > { %1854 = vrot.lane.b32.xlu1 %v12281_v24, %s10959_s29  ;;  %1852 = vrot.lane.b32.xlu0 %v12273_v22, %s10959_s29  ;;  %v8470_v25 = vpop.f32.mrb[16].mxu0 }
 0x41e   : > { %v8471_v26 = vpop.f32.mrb[17].mxu0 }
 0x41f   : > { %v12289_v13 = vadd.f32 %v8471_v26, %v8470_v25  ;;  %v1811_v25 = vmul.f32 %v12249_v6, %v12394_v0  ;;  %v12426_v6 = vld [vmem:[%s11508_s18 + $0x60] sm:$0xff] }
 0x421   : > { %1934 = vrot.lane.b32.xlu1 %v12281_v24, %s10960_s1  ;;  %1932 = vrot.lane.b32.xlu0 %v12273_v22, %s10960_s1  ;;  %v8473_v7 = vpop.f32.mrb[18].mxu0 }
 0x422   : > { %v8474_v27 = vpop.f32.mrb[19].mxu0 }
 0x423   : > { %v12297_v41 = vadd.f32 %v8474_v27, %v8473_v7 }
 0x425   : > { %v8476_v2 = vpop.f32.mrb[20].mxu0  ;;  %1856 = vrot.lane.b32.xlu1 %v12289_v13, %s10959_s29  ;;  %1936 = vrot.lane.b32.xlu0 %v12289_v13, %s10960_s1 }
 0x426   : > { %v8477_v8 = vpop.f32.mrb[21].mxu0 }
 0x427   : > { %v12306_v15 = vadd.f32 %v8477_v8, %v8476_v2 }
 0x429   : > { %1858 = vrot.lane.b32.xlu1 %v12297_v41, %s10959_s29  ;;  %1860 = vrot.lane.b32.xlu0 %v12306_v15, %s10959_s29  ;;  %v8479_v48 = vpop.f32.mrb[22].mxu0 }
 0x42a   : > { %v8480_v28 = vpop.f32.mrb[23].mxu0 }
 0x42b   : > { %v12314_v16 = vadd.f32 %v8480_v28, %v8479_v48 }
 0x42d   : > { %v8482_v44 = vpop.f32.mrb[24].mxu0  ;;  %1938 = vrot.lane.b32.xlu1 %v12297_v41, %s10960_s1  ;;  %1940 = vrot.lane.b32.xlu0 %v12306_v15, %s10960_s1 }
 0x42e   : > { %v8483_v31 = vpop.f32.mrb[25].mxu0 }
 0x42f   : > { %v12322_v32 = vadd.f32 %v8483_v31, %v8482_v44 }
 0x431   : > { %1862 = vrot.lane.b32.xlu1 %v12314_v16, %s10959_s29  ;;  %1864 = vrot.lane.b32.xlu0 %v12322_v32, %s10959_s29  ;;  %v8485_v33 = vpop.f32.mrb[26].mxu0 }
 0x432   : > { %v8486_v34 = vpop.f32.mrb[27].mxu0 }
 0x433   : > { %v12330_v45 = vadd.f32 %v8486_v34, %v8485_v33  ;;  %v12429_v33 = vld [vmem:[%s11508_s18 + $0x20] sm:$0xff]  ;;  %v12432_v34 = vld [vmem:[%s11508_s18 + $0x28] sm:$0xff] }
 0x435   : > { %v8488_v46 = vpop.f32.mrb[28].mxu0  ;;  %1942 = vrot.lane.b32.xlu1 %v12314_v16, %s10960_s1  ;;  %1944 = vrot.lane.b32.xlu0 %v12322_v32, %s10960_s1 }
 0x436   : > { %v8489_v29 = vpop.f32.mrb[29].mxu0 }
 0x437   : > { %v12338_v37 = vadd.f32 %v8489_v29, %v8488_v46 }
 0x439   : > { %1866 = vrot.lane.b32.xlu1 %v12330_v45, %s10959_s29  ;;  %1868 = vrot.lane.b32.xlu0 %v12338_v37, %s10959_s29  ;;  %v8491_v38 = vpop.f32.mrb[30].mxu0 }
 0x43a   : > { %v8492_v39 = vpop.f32.mrb[31].mxu0 }
 0x43b   : > { %v12346_v40 = vadd.f32 %v8492_v39, %v8491_v38 }
 0x43d   : > { %1946 = vrot.lane.b32.xlu1 %v12330_v45, %s10960_s1  ;;  %1948 = vrot.lane.b32.xlu0 %v12338_v37, %s10960_s1 }
 0x441   : > { %1870 = vrot.lane.b32.xlu1 %v12346_v40, %s10959_s29 }
 0x445   : > { %1950 = vrot.lane.b32.xlu1 %v12346_v40, %s10960_s1 }
 0x473   : > { %v1841_v30 = vpop.permute.xlu0 %1840 }
 0x474   : > { %v1888_v55 = vmul.f32 %v12359_v49, %v1841_v30 }
 0x476   : > { %v1904_v3 = vadd.f32 %v1888_v55, %v1808_v57  ;;  %v12442_v55 = vld [vmem:[%s11508_s18 + $0xa0] sm:$0xff] }
 0x477   : > { %v1921_v35 = vpop.permute.xlu0 %1920  ;;  %v1923_v56 = vpop.permute.xlu1 %1922 }
 0x478   : > { %v1968_v61 = vmul.f32 %v12368_v51, %v1921_v35  ;;  %v1969_v4 = vmul.f32 %v12375_v59, %v1923_v56  ;;  %v12439_v35 = vld [vmem:[%s11508_s18 + $0xa8] sm:$0xff]  ;;  %v1812_v56 = vmul.f32 %v12257_v42, %v12429_v33  ;;  %v12455_v42 = vld [vmem:[%s11508_s18 + $0x78] sm:$0xff] }
 0x47a   : > { %v1984_v9 = vadd.f32 %v1968_v61, %v1904_v3 }
 0x47b   : > { %v1843_v54 = vpop.permute.xlu0 %1842 }
 0x47c   : > { %v1889_v62 = vmul.f32 %v12371_v52, %v1843_v54  ;;  %v1813_v54 = vmul.f32 %v12265_v10, %v12432_v34 }
 0x47e   : > { %v1905_v17 = vadd.f32 %v1889_v62, %v1809_v58 }
 0x47f   : > { %v1847_v47 = vpop.permute.xlu1 %1846  ;;  %v1845_v60 = vpop.permute.xlu0 %1844 }
 0x480   : > { %v1985_v19 = vadd.f32 %v1969_v4, %v1905_v17  ;;  %v1891_v20 = vmul.f32 %v12384_v63, %v1847_v47  ;;  %v1890_v1 = vmul.f32 %v12387_v36, %v1845_v60  ;;  %v12458_v17 = vld [vmem:[%s11508_s18 + $0x70] sm:$0xff] }
 0x481   : > { %v12461_v60 = vld [vmem:[%s11508_s18 + $0x30] sm:$0xff] }
 0x482   : > { %v9374_v26 = vpack.c.bf16 %v1985_v19, %v1984_v9  ;;  %v12414_v7 = vpack.i.bf16 %v1985_v19, %v1984_v9  ;;  %v1907_v2 = vadd.f32 %v1891_v20, %v1811_v25  ;;  %v1906_v8 = vadd.f32 %v1890_v1, %v1810_v23  ;;  %v12464_v9 = vld [vmem:[%s11508_s18 + $0x38] sm:$0xff] }
 0x483   : > { %v1927_v27 = vpop.permute.xlu1 %1926  ;;  %v1925_v14 = vpop.permute.xlu0 %1924 }
 0x484   : > { %15531 = vst [vmem:[#allocation67_spill] sm:$0xff] %v12414_v7  ;;  %v1971_v48 = vmul.f32 %v12399_v11, %v1927_v27  ;;  %v1970_v28 = vmul.f32 %v12402_v21, %v1925_v14  ;;  %9376 = vmatprep.subr.msk.bf16.mxu0 %vm12406_vm2, %v9374_v26  ;;  %v12471_v27 = vld [vmem:[%s11508_s18 + $0xb8] sm:$0xff]  ;;  %v12474_v14 = vld [vmem:[%s11508_s18 + $0xb0] sm:$0xff] }
 0x485   : > { %9379 = vmatpush3.bf16.xpose.msk.msra.mxu0 %vm12406_vm2, %v9374_v26 }
 0x486   : > { %v1987_v44 = vadd.f32 %v1971_v48, %v1907_v2  ;;  %v1986_v31 = vadd.f32 %v1970_v28, %v1906_v8  ;;  %v1814_v2 = vmul.f32 %v12273_v22, %v12461_v60  ;;  %v1815_v8 = vmul.f32 %v12281_v24, %v12464_v9 }
 0x487   : > { %v1851_v46 = vpop.permute.xlu1 %1850  ;;  %v1849_v29 = vpop.permute.xlu0 %1848 }
 0x488   : > { %v1893_v38 = vmul.f32 %v12423_v5, %v1851_v46  ;;  %v1892_v39 = vmul.f32 %v12426_v6, %v1849_v29  ;;  %v9380_v43 = vpack.c.bf16 %v1987_v44, %v1986_v31  ;;  %v12436_v30 = vpack.i.bf16 %v1987_v44, %v1986_v31 }
 0x48a   : > { %15532 = vst [vmem:[#allocation68_spill] sm:$0xff] %v12436_v30  ;;  %9382 = vmatprep.subr.msk.bf16.mxu0 %vm12406_vm2, %v9380_v43  ;;  %v1909_v61 = vadd.f32 %v1893_v38, %v1813_v54  ;;  %v1908_v62 = vadd.f32 %v1892_v39, %v1812_v56 }
 0x48b   : > { %v1931_v57 = vpop.permute.xlu1 %1930  ;;  %v1929_v58 = vpop.permute.xlu0 %1928 }
 0x48c   : > { %v1973_v3 = vmul.f32 %v12439_v35, %v1931_v57  ;;  %v1972_v4 = vmul.f32 %v12442_v55, %v1929_v58 }
 0x48d   : > { %9385 = vmatpush3.bf16.xpose.msk.msra.mxu0 %vm12406_vm2, %v9380_v43 }
 0x48e   : > { %v1989_v10 = vadd.f32 %v1973_v3, %v1909_v61  ;;  %v1988_v47 = vadd.f32 %v1972_v4, %v1908_v62  ;;  %v1816_v61 = vmul.f32 %v12289_v13, %v12362_v53  ;;  %v1817_v3 = vmul.f32 %v12297_v41, %v12365_v50  ;;  %v12502_v53 = vld [vmem:[#allocation2 + $0x10] sm:$0xff] }
 0x48f   : > { %v1855_v19 = vpop.permute.xlu1 %1854  ;;  %v1853_v20 = vpop.permute.xlu0 %1852 }
 0x490   : > { %v1895_v1 = vmul.f32 %v12455_v42, %v1855_v19  ;;  %v1894_v23 = vmul.f32 %v12458_v17, %v1853_v20  ;;  %v9386_v25 = vpack.c.bf16 %v1989_v10, %v1988_v47  ;;  %v12468_v26 = vpack.i.bf16 %v1989_v10, %v1988_v47 }
 0x492   : > { %15533 = vst [vmem:[#allocation69_spill] sm:$0xff] %v12468_v26  ;;  %9388 = vmatprep.subr.msk.bf16.mxu0 %vm12406_vm2, %v9386_v25  ;;  %v1911_v44 = vadd.f32 %v1895_v1, %v1815_v8  ;;  %v1910_v31 = vadd.f32 %v1894_v23, %v1814_v2  ;;  %v12500_v1 = vld [vmem:[#allocation2 + $0x8] sm:$0xff]  ;;  %v1818_v8 = vmul.f32 %v12306_v15, %v12391_v18 }
 0x493   : > { %v1935_v48 = vpop.permute.xlu1 %1934  ;;  %v1933_v28 = vpop.permute.xlu0 %1932  ;;  %v12530_v15 = vld [vmem:[#allocation2 + $0x28] sm:$0xff] }
 0x494   : > { %v1975_v46 = vmul.f32 %v12471_v27, %v1935_v48  ;;  %v1974_v29 = vmul.f32 %v12474_v14, %v1933_v28  ;;  %v1819_v48 = vmul.f32 %v12314_v16, %v12394_v0  ;;  %v12532_v0 = vld [vmem:[#allocation2 + $0x30] sm:$0xff] }
 0x495   : > { %9391 = vmatpush3.bf16.xpose.msk.msra.mxu0 %vm12406_vm2, %v9386_v25 }
 0x496   : > { %v1991_v38 = vadd.f32 %v1975_v46, %v1911_v44  ;;  %v1990_v39 = vadd.f32 %v1974_v29, %v1910_v31 }
 0x497   : > { %v1857_v22 = vpop.permute.xlu1 %1856  ;;  %v1937_v43 = vpop.permute.xlu0 %1936 }
 0x498   : > { %v9392_v56 = vpack.c.bf16 %v1991_v38, %v1990_v39  ;;  %v12486_v24 = vpack.i.bf16 %v1991_v38, %v1990_v39  ;;  %v1896_v54 = vmul.f32 %v12359_v49, %v1857_v22  ;;  %v1976_v49 = vmul.f32 %v12368_v51, %v1937_v43 }
 0x49a   : > { %15534 = vst [vmem:[#allocation70_spill] sm:$0xff] %v12486_v24  ;;  %9394 = vmatprep.subr.msk.bf16.mxu0 %vm12406_vm2, %v9392_v56  ;;  %v1912_v4 = vadd.f32 %v1896_v54, %v1816_v61  ;;  %v1820_v54 = vmul.f32 %v12322_v32, %v12429_v33 }
 0x49b   : > { %v1859_v57 = vpop.permute.xlu1 %1858  ;;  %v1861_v58 = vpop.permute.xlu0 %1860 }
 0x49c   : > { %v1897_v62 = vmul.f32 %v12371_v52, %v1859_v57  ;;  %v1992_v23 = vadd.f32 %v1976_v49, %v1912_v4  ;;  %v1898_v2 = vmul.f32 %v12387_v36, %v1861_v58 }
 0x49d   : > { %9397 = vmatpush3.bf16.xpose.msk.msra.mxu0 %vm12406_vm2, %v9392_v56  ;;  %v12542_v56 = vld [vmem:[#allocation2 + $0x38] sm:$0xff] }
 0x49e   : > { %v1913_v19 = vadd.f32 %v1897_v62, %v1817_v3  ;;  %v1914_v31 = vadd.f32 %v1898_v2, %v1818_v8  ;;  %v12600_v2 = vld [vmem:[#allocation2 + $0x78] sm:$0xff] }
 0x49f   : > { %v1939_v10 = vpop.permute.xlu1 %1938  ;;  %v1941_v47 = vpop.permute.xlu0 %1940 }
 0x4a0   : > { %v1977_v20 = vmul.f32 %v12375_v59, %v1939_v10  ;;  %v12512_v59 = vld [vmem:[#allocation2 + $0x18] sm:$0xff]  ;;  %v1978_v36 = vmul.f32 %v12402_v21, %v1941_v47  ;;  %v1822_v47 = vmul.f32 %v12338_v37, %v12461_v60  ;;  %v12578_v60 = vld [vmem:[#allocation2 + $0x50] sm:$0xff] }
 0x4a2   : > { %v1993_v13 = vadd.f32 %v1977_v20, %v1913_v19  ;;  %v1994_v16 = vadd.f32 %v1978_v36, %v1914_v31 }
 0x4a3   : > { %v1863_v52 = vpop.permute.xlu1 %1862  ;;  %v1865_v25 = vpop.permute.xlu0 %1864 }
 0x4a4   : > { %v1899_v41 = vmul.f32 %v12384_v63, %v1863_v52  ;;  %8847 = vmatmul.mubr.msk.f32.vlgmr.msra.gmra.mrb[32].mxu0 %vm2054_vm1, %v12500_v1  ;;  %v9398_v50 = vpack.c.bf16 %v1993_v13, %v1992_v23  ;;  %v12508_v51 = vpack.i.bf16 %v1993_v13, %v1992_v23  ;;  %v12521_v63 = vld [vmem:[#allocation2 + $0x20] sm:$0xff]  ;;  %v1900_v38 = vmul.f32 %v12426_v6, %v1865_v25  ;;  %v12594_v25 = vld [vmem:[#allocation2 + $0x70] sm:$0xff] }
 0x4a5   : > { %8849 = vmatprep.mubr.msk.f32.mxu0 %vm2054_vm1, %v12502_v53  ;;  %v1821_v6 = vmul.f32 %v12330_v45, %v12432_v34 }
 0x4a6   : > { %15535 = vst [vmem:[#allocation71_spill] sm:$0xff] %v12508_v51  ;;  %9400 = vmatprep.subr.msk.bf16.mxu1 %vm12406_vm2, %v9398_v50  ;;  %v1915_v46 = vadd.f32 %v1899_v41, %v1819_v48  ;;  %v1916_v58 = vadd.f32 %v1900_v38, %v1820_v54  ;;  %v8526_v41 = vpop.f32.mrb[0].mxu1 }
 0x4a7   : > { %v1943_v28 = vpop.permute.xlu1 %1942  ;;  %9403 = vmatpush3.bf16.xpose.msk.msra.mxu1 %vm12406_vm2, %v9398_v50  ;;  %v1945_v44 = vpop.permute.xlu0 %1944 }
 0x4a8   : > { %v1979_v29 = vmul.f32 %v12399_v11, %v1943_v28  ;;  %8850 = vmatmul.mubr.msk.f32.gmra.mrb[34].mxu0 %vm2054_vm1, %v12512_v59  ;;  %v8527_v50 = vpop.f32.mrb[1].mxu1 }
 0x4a9   : > { %8852 = vmatprep.mubr.msk.f32.mxu0 %vm2054_vm1, %v12521_v63  ;;  %v8528_v8 = vadd.f32 %v8527_v50, %v8526_v41  ;;  %v8529_v48 = vpop.f32.mrb[2].mxu1 }
 0x4aa   : > { %v1995_v18 = vadd.f32 %v1979_v29, %v1915_v46  ;;  %v8530_v36 = vpop.f32.mrb[3].mxu1 }
 0x4ab   : > { %v1867_v21 = vpop.permute.xlu1 %1866  ;;  %v1869_v43 = vpop.permute.xlu0 %1868  ;;  %v8531_v28 = vadd.f32 %v8530_v36, %v8529_v48 }
 0x4ac   : > { %v1901_v39 = vmul.f32 %v12423_v5, %v1867_v21  ;;  %v9404_v22 = vpack.c.bf16 %v1995_v18, %v1994_v16  ;;  %8853 = vmatmul.mubr.msk.f32.gmra.mrb[36].mxu0 %vm2054_vm1, %v12530_v15  ;;  %v12538_v11 = vpack.i.bf16 %v1995_v18, %v1994_v16  ;;  %v1980_v5 = vmul.f32 %v12442_v55, %v1945_v44  ;;  %v8532_v46 = vpop.f32.mrb[4].mxu1 }
 0x4ad   : > { %8855 = vmatprep.mubr.msk.f32.mxu0 %vm2054_vm1, %v12532_v0  ;;  %v1902_v45 = vmul.f32 %v12458_v17, %v1869_v43  ;;  %v9422_v44 = vpack.c.bf16 %v8531_v28, %v8528_v8  ;;  %v12604_v31 = vpack.i.bf16 %v8531_v28, %v8528_v8  ;;  %v8533_v29 = vpop.f32.mrb[5].mxu1 }
 0x4ae   : > { %15536 = vst [vmem:[#allocation72_spill] sm:$0xff] %v12538_v11  ;;  %9406 = vmatprep.subr.msk.bf16.mxu1 %vm12406_vm2, %v9404_v22  ;;  %v1917_v61 = vadd.f32 %v1901_v39, %v1821_v6  ;;  %v1996_v32 = vadd.f32 %v1980_v5, %v1916_v58  ;;  %v8535_v16 = vpop.f32.mrb[6].mxu1  ;;  %v8534_v21 = vadd.f32 %v8533_v29, %v8532_v46 }
 0x4af   : > { %v1947_v57 = vpop.permute.xlu1 %1946  ;;  %9409 = vmatpush3.bf16.xpose.msk.msra.mxu1 %vm12406_vm2, %v9404_v22  ;;  %v1949_v34 = vpop.permute.xlu0 %1948  ;;  %v1918_v17 = vadd.f32 %v1902_v45, %v1822_v47  ;;  %15537 = vst [vmem:[#allocation73_spill] sm:$0xff] %v12604_v31  ;;  %9423 = vmatprep.subr.bf16.mxu0 %v9422_v44 }
 0x4b0   : > { %v1981_v62 = vmul.f32 %v12439_v35, %v1947_v57  ;;  %8856 = vmatmul.mubr.msk.f32.gmra.mrb[38].mxu0 %vm2054_vm1, %v12542_v56  ;;  %v1823_v35 = vmul.f32 %v12346_v40, %v12464_v9  ;;  %v1982_v49 = vmul.f32 %v12474_v14, %v1949_v34  ;;  %v12576_v40 = vld [vmem:[#allocation2 + $0x48] sm:$0xff]  ;;  %v12584_v9 = vld [vmem:[#allocation2 + $0x58] sm:$0xff]  ;;  %v8536_v18 = vpop.f32.mrb[7].mxu1 }
 0x4b1   : > { %v12592_v14 = vld [vmem:[#allocation2 + $0x68] sm:$0xff]  ;;  %9425 = vmatpush3.bf16.msra.mxu0 %v9422_v44  ;;  %v8537_v38 = vadd.f32 %v8536_v18, %v8535_v16  ;;  %v8538_v22 = vpop.f32.mrb[8].mxu1 }
 0x4b2   : > { %v1997_v33 = vadd.f32 %v1981_v62, %v1917_v61  ;;  %v1998_v23 = vadd.f32 %v1982_v49, %v1918_v17  ;;  %v8539_v54 = vpop.f32.mrb[9].mxu1 }
 0x4b3   : > { %v1871_v55 = vpop.permute.xlu1 %1870  ;;  %v9426_v39 = vpack.c.bf16 %v8537_v38, %v8534_v21  ;;  %v12606_v43 = vpack.i.bf16 %v8537_v38, %v8534_v21  ;;  %v8541_v6 = vpop.f32.mrb[10].mxu1  ;;  %v8540_v57 = vadd.f32 %v8539_v54, %v8538_v22 }
 0x4b4   : > { %v1903_v3 = vmul.f32 %v12455_v42, %v1871_v55  ;;  %v9410_v4 = vpack.c.bf16 %v1997_v33, %v1996_v32  ;;  %v12558_v10 = vpack.i.bf16 %v1997_v33, %v1996_v32  ;;  %v8542_v5 = vpop.f32.mrb[11].mxu1 }
 0x4b5   : > { %9427 = vmatprep.subr.bf16.mxu0 %v9426_v39  ;;  %15538 = vst [vmem:[#allocation74_spill] sm:$0xff] %v12606_v43  ;;  %v8543_v58 = vadd.f32 %v8542_v5, %v8541_v6  ;;  %v8544_v62 = vpop.f32.mrb[12].mxu1  ;;  %v12786_v43 = vld [vmem:[#allocation4 + $0x58] sm:$0xff] }
 0x4b6   : > { %9412 = vmatprep.subr.msk.bf16.mxu1 %vm12406_vm2, %v9410_v4  ;;  %v1919_v42 = vadd.f32 %v1903_v3, %v1823_v35  ;;  %9429 = vmatpush3.bf16.msra.mxu0 %v9426_v39  ;;  %v8545_v33 = vpop.f32.mrb[13].mxu1  ;;  %15567 = vst [vmem:[#allocation101_spill] sm:$0xff] %v12786_v43 }
 0x4b7   : > { %v1951_v19 = vpop.permute.xlu1 %1950  ;;  %9415 = vmatpush3.bf16.xpose.msk.msra.mxu1 %vm12406_vm2, %v9410_v4  ;;  %v9430_v61 = vpack.c.bf16 %v8543_v58, %v8540_v57  ;;  %v12608_v32 = vpack.i.bf16 %v8543_v58, %v8540_v57  ;;  %v8547_v45 = vpop.f32.mrb[14].mxu1  ;;  %v8546_v55 = vadd.f32 %v8545_v33, %v8544_v62 }
 0x4b8   : > { %v1983_v20 = vmul.f32 %v12471_v27, %v1951_v19  ;;  %v12586_v27 = vld [vmem:[#allocation2 + $0x60] sm:$0xff]  ;;  %v8548_v34 = vpop.f32.mrb[15].mxu1 }
 0x4b9   : > { %9431 = vmatprep.subr.bf16.mxu0 %v9430_v61  ;;  %15539 = vst [vmem:[#allocation75_spill] sm:$0xff] %v12608_v32  ;;  %v8549_v3 = vadd.f32 %v8548_v34, %v8547_v45  ;;  %v8550_v47 = vpop.f32.mrb[16].mxu1  ;;  %v2000_v45 = vlaneseq }
 0x4ba   : > { %v1999_v13 = vadd.f32 %v1983_v20, %v1919_v42  ;;  %9433 = vmatpush3.bf16.msra.mxu0 %v9430_v61  ;;  %v8551_v49 = vpop.f32.mrb[17].mxu1 }
 0x4bb   : > { %v9434_v4 = vpack.c.bf16 %v8549_v3, %v8546_v55  ;;  %v12610_v35 = vpack.i.bf16 %v8549_v3, %v8546_v55  ;;  %v8553_v19 = vpop.f32.mrb[18].mxu1  ;;  %v8552_v42 = vadd.f32 %v8551_v49, %v8550_v47  ;;  %v2001_v34 = vshrl.u32 %v2000_v45, 7 }
 0x4bc   : > { %v9416_v52 = vpack.c.bf16 %v1999_v13, %v1998_v23  ;;  %v12570_v37 = vpack.i.bf16 %v1999_v13, %v1998_v23  ;;  %v8554_v17 = vpop.f32.mrb[19].mxu1  ;;  %v2019_v3 = vand.u32 127, %v2000_v45  ;;  %v2020_v47 = vstv %s8105_s15 }
 0x4bd   : > { %9435 = vmatprep.subr.bf16.mxu0 %v9434_v4  ;;  %15540 = vst [vmem:[#allocation76_spill] sm:$0xff] %v12610_v35  ;;  %v8555_v20 = vadd.f32 %v8554_v17, %v8553_v19  ;;  %v2002_v55 = vadd.s32 8, %v2001_v34 }
 0x4be   : > { %9418 = vmatprep.subr.msk.bf16.mxu1 %vm12406_vm2, %v9416_v52  ;;  %9437 = vmatpush3.bf16.msra.mxu0 %v9434_v4  ;;  %v2009_v4 = vstv %s8104_s11  ;;  %v12624_v19 = vadd.s32 %v2020_v47, %v2019_v3  ;;  %v10962_v3 = vmov 0   ;;  %v2006_v47 = vadd.s32 40, %v2001_v34 }
 0x4bf   : > { %9421 = vmatpush3.bf16.xpose.msk.msra.mxu1 %vm12406_vm2, %v9416_v52  ;;  %v9438_v23 = vpack.c.bf16 %v8555_v20, %v8552_v42  ;;  %v12612_v13 = vpack.i.bf16 %v8555_v20, %v8552_v42  ;;  %v8556_v52 = vpop.f32.mrb[20].mxu1  ;;  %v2011_v49 = vadd.s32 %v2009_v4, %v2002_v55  ;;  %v2010_v17 = vadd.s32 %v2009_v4, %v2001_v34 }
 0x4c0   : > { %v8557_v41 = vpop.f32.mrb[21].mxu1  ;;  %v2004_v42 = vadd.s32 24, %v2001_v34  ;;  %v2003_v20 = vadd.s32 16, %v2001_v34  ;;  %v2005_v55 = vadd.s32 32, %v2001_v34  ;;  %9993 = vset.pattern.permute.xlu1 %v10962_v3  ;;  %9994 = vset.pattern.permute.xlu0 %v10962_v3 }
 0x4c1   : > { %15541 = vst [vmem:[#allocation77_spill] sm:$0xff] %v12612_v13  ;;  %9439 = vmatprep.subr.bf16.mxu1 %v9438_v23  ;;  %v8558_v50 = vadd.f32 %v8557_v41, %v8556_v52  ;;  %v8559_v8 = vpop.f32.mrb[22].mxu1  ;;  %vm2023_vm3 = vcmp.le.s32.totalorder %v12624_v19, %v2011_v49  ;;  %vm2022_vm4 = vcmp.le.s32.totalorder %v12624_v19, %v2010_v17  ;;  %v10961_v41 = vmov -1e+30  }
 0x4c2   : > { %v8560_v48 = vpop.f32.mrb[23].mxu1  ;;  %v2012_v52 = vadd.s32 %v2009_v4, %v2003_v20  ;;  %v2014_v49 = vadd.s32 %v2009_v4, %v2005_v55  ;;  %v2015_v17 = vadd.s32 %v2009_v4, %v2006_v47 }
 0x4c3   : > { %v8561_v36 = vadd.f32 %v8560_v48, %v8559_v8  ;;  %v8562_v28 = vpop.f32.mrb[24].mxu1  ;;  %v12632_v8 = vsel %vm2022_vm4, 0.0, %v10961_v41 }
 0x4c4   : > { %v8563_v46 = vpop.f32.mrb[25].mxu1  ;;  %15548 = vst [vmem:[#allocation82_spill] sm:$0xff] %v12632_v8  ;;  %vm2024_vm7 = vcmp.le.s32.totalorder %v12624_v19, %v2012_v52  ;;  %vm2026_vm8 = vcmp.le.s32.totalorder %v12624_v19, %v2014_v49  ;;  %vm2027_vm9 = vcmp.le.s32.totalorder %v12624_v19, %v2015_v17  ;;  %v2008_v52 = vadd.s32 56, %v2001_v34 }
 0x4c5   : > { %v9442_v44 = vpack.c.bf16 %v8561_v36, %v8558_v50  ;;  %v12614_v29 = vpack.i.bf16 %v8561_v36, %v8558_v50  ;;  %v8564_v16 = vadd.f32 %v8563_v46, %v8562_v28  ;;  %v8565_v18 = vpop.f32.mrb[26].mxu1  ;;  %v12629_v50 = vsel %vm2023_vm3, 0.0, %v10961_v41 }
 0x4c6   : > { %8875 = vmatmul.mubr.msk.f32.vlgmr.msra.gmra.mrb[32].mxu1 %vm2054_vm1, %v12576_v40  ;;  %v8566_v21 = vpop.f32.mrb[27].mxu1  ;;  %15547 = vst [vmem:[#allocation81_spill] sm:$0xff] %v12629_v50  ;;  %v12664_v20 = vsel %vm2026_vm8, 0.0, %v10961_v41 }
 0x4c7   : > { %8877 = vmatprep.mubr.msk.f32.mxu1 %vm2054_vm1, %v12578_v60  ;;  %9441 = vmatpush3.bf16.msra.mxu1 %v9438_v23  ;;  %15542 = vst [vmem:[#allocation78_spill] sm:$0xff] %v12614_v29  ;;  %v8567_v38 = vadd.f32 %v8566_v21, %v8565_v18  ;;  %v8568_v39 = vpop.f32.mrb[28].mxu1  ;;  %v2013_v23 = vadd.s32 %v2009_v4, %v2004_v42  ;;  %v12648_v18 = vsel %vm2024_vm7, 0.0, %v10961_v41  ;;  %v2007_v42 = vadd.s32 48, %v2001_v34 }
 0x4c8   : > { %9443 = vmatprep.subr.bf16.mxu1 %v9442_v44  ;;  %v8569_v54 = vpop.f32.mrb[29].mxu1  ;;  %15550 = vst [vmem:[#allocation84_spill] sm:$0xff] %v12648_v18  ;;  %15551 = vst [vmem:[#allocation85_spill] sm:$0xff] %v12664_v20 }
 0x4c9   : > { %v9446_v22 = vpack.c.bf16 %v8567_v38, %v8564_v16  ;;  %v12616_v6 = vpack.i.bf16 %v8567_v38, %v8564_v16  ;;  %v8570_v5 = vadd.f32 %v8569_v54, %v8568_v39  ;;  %v8571_v57 = vpop.f32.mrb[30].mxu1  ;;  %vm2025_vm6 = vcmp.le.s32.totalorder %v12624_v19, %v2013_v23 }
 0x4ca   : > { %8878 = vmatmul.mubr.msk.f32.gmra.mrb[34].mxu1 %vm2054_vm1, %v12584_v9  ;;  %v8572_v58 = vpop.f32.mrb[31].mxu1  ;;  %v12645_v16 = vsel %vm2025_vm6, 0.0, %v10961_v41 }
 0x4cb   : > { %8880 = vmatprep.mubr.msk.f32.mxu1 %vm2054_vm1, %v12586_v27  ;;  %9445 = vmatpush3.bf16.msra.mxu1 %v9442_v44  ;;  %15544 = vst [vmem:[#allocation79_spill] sm:$0xff] %v12616_v6  ;;  %v8573_v61 = vadd.f32 %v8572_v58, %v8571_v57  ;;  %15549 = vst [vmem:[#allocation83_spill] sm:$0xff] %v12645_v16 }
 0x4cc   : > { %9447 = vmatprep.subr.bf16.mxu1 %v9446_v22 }
 0x4cd   : > { %v9450_v62 = vpack.c.bf16 %v8573_v61, %v8570_v5  ;;  %v12618_v33 = vpack.i.bf16 %v8573_v61, %v8570_v5 }
 0x4ce   : > { %8881 = vmatmul.mubr.msk.f32.gmra.mrb[36].mxu1 %vm2054_vm1, %v12592_v14 }
 0x4cf   : > { %8883 = vmatprep.mubr.msk.f32.mxu1 %vm2054_vm1, %v12594_v25  ;;  %9449 = vmatpush3.bf16.msra.mxu1 %v9446_v22  ;;  %15546 = vst [vmem:[#allocation80_spill] sm:$0xff] %v12618_v33 }
 0x4d0   : > { %9451 = vmatprep.subr.bf16.mxu1 %v9450_v62 }
 0x4d2   : > { %8884 = vmatmul.mubr.msk.f32.gmra.mrb[38].mxu1 %vm2054_vm1, %v12600_v2 }
 0x4d3   : > { %9453 = vmatpush3.bf16.msra.mxu1 %v9450_v62 }
 0x577   : > { %v8848_v48 = vpop.f32.mrb[32].mxu0 }
 0x578   : > { %v12637_v36 = vadd.f32 %v8848_v48, %v12629_v50  ;;  %v2169_v28 = vpop.f32.mrb[33].mxu0  ;;  %v2016_v48 = vadd.s32 %v2009_v4, %v2007_v42 }
 0x579   : > { %v12640_v44 = vadd.f32 %v2169_v28, %v12632_v8 }
 0x57a   : > { %v2381_v46 = vsel %vm2377_vm5, %v12637_v36, -inf  ;;  %vm2028_vm10 = vcmp.le.s32.totalorder %v12624_v19, %v2016_v48 }
 0x57b   : > { %2382 = vmax.xlane.f32.xlu0 %v2381_v46  ;;  %v8851_v21 = vpop.f32.mrb[34].mxu0  ;;  %v2378_v38 = vsel %vm2377_vm5, %v12640_v44, -inf  ;;  %v12696_v42 = vsel %vm2028_vm10, 0.0, %v10961_v41 }
 0x57c   : > { %v2179_v39 = vpop.f32.mrb[35].mxu0  ;;  %v12653_v22 = vadd.f32 %v8851_v21, %v12645_v16  ;;  %15553 = vst [vmem:[#allocation87_spill] sm:$0xff] %v12696_v42 }
 0x57d   : > { %v12656_v54 = vadd.f32 %v2179_v39, %v12648_v18  ;;  %v12677_v39 = vsel %vm2027_vm9, 0.0, %v10961_v41 }
 0x57e   : > { %v2387_v61 = vsel %vm2377_vm5, %v12653_v22, -inf  ;;  %15552 = vst [vmem:[#allocation86_spill] sm:$0xff] %v12677_v39 }
 0x57f   : > { %2379 = vmax.xlane.f32.xlu0 %v2378_v38  ;;  %v2384_v5 = vsel %vm2377_vm5, %v12656_v54, -inf  ;;  %v8854_v57 = vpop.f32.mrb[36].mxu0 }
 0x580   : > { %2385 = vmax.xlane.f32.xlu1 %v2384_v5  ;;  %v2189_v58 = vpop.f32.mrb[37].mxu0  ;;  %v12688_v47 = vadd.f32 %v8854_v57, %v12677_v39 }
 0x581   : > { %v12674_v38 = vadd.f32 %v2189_v58, %v12664_v20 }
 0x583   : > { %v8857_v62 = vpop.f32.mrb[38].mxu0  ;;  %v2390_v49 = vsel %vm2377_vm5, %v12674_v38, -inf }
 0x584   : > { %2388 = vmax.xlane.f32.xlu1 %v2387_v61  ;;  %v2199_v45 = vpop.f32.mrb[39].mxu0  ;;  %v2017_v61 = vadd.s32 %v2009_v4, %v2008_v52 }
 0x586   : > { %vm2029_vm11 = vcmp.le.s32.totalorder %v12624_v19, %v2017_v61 }
 0x599   : > { %v8876_v23 = vpop.f32.mrb[32].mxu1 }
 0x59a   : > { %v12668_v28 = vadd.f32 %v8876_v23, %v12629_v50  ;;  %v2322_v46 = vpop.f32.mrb[33].mxu1 }
 0x59b   : > { %v12671_v21 = vadd.f32 %v2322_v46, %v12632_v8  ;;  %v12707_v46 = vadd.f32 %v2199_v45, %v12696_v42 }
 0x59c   : > { %v2405_v5 = vsel %vm2377_vm5, %v12668_v28, -inf }
 0x59d   : > { %2406 = vmax.xlane.f32.xlu0 %v2405_v5  ;;  %v2402_v34 = vsel %vm2377_vm5, %v12671_v21, -inf  ;;  %v8879_v55 = vpop.f32.mrb[34].mxu1  ;;  %v2393_v5 = vsel %vm2377_vm5, %v12688_v47, -inf  ;;  %v2396_v45 = vsel %vm2377_vm5, %v12707_v46, -inf }
 0x59e   : > { %2403 = vmax.xlane.f32.xlu1 %v2402_v34  ;;  %v12685_v3 = vadd.f32 %v8879_v55, %v12645_v16  ;;  %v2332_v58 = vpop.f32.mrb[35].mxu1  ;;  %v12712_v34 = vsel %vm2029_vm11, 0.0, %v10961_v41 }
 0x59f   : > { %v12693_v17 = vadd.f32 %v2332_v58, %v12648_v18  ;;  %15554 = vst [vmem:[#allocation88_spill] sm:$0xff] %v12712_v34 }
 0x5a0   : > { %v2411_v4 = vsel %vm2377_vm5, %v12685_v3, -inf }
 0x5a1   : > { %2412 = vmax.xlane.f32.xlu0 %v2411_v4  ;;  %v8882_v23 = vpop.f32.mrb[36].mxu1  ;;  %v2408_v52 = vsel %vm2377_vm5, %v12693_v17, -inf }
 0x5a2   : > { %2391 = vmax.xlane.f32.xlu1 %v2390_v49  ;;  %v12702_v57 = vadd.f32 %v8882_v23, %v12677_v39  ;;  %v2342_v48 = vpop.f32.mrb[37].mxu1  ;;  %v12720_v49 = vadd.f32 %v8857_v62, %v12712_v34 }
 0x5a3   : > { %v12715_v61 = vadd.f32 %v2342_v48, %v12664_v20 }
 0x5a4   : > { %v2417_v55 = vsel %vm2377_vm5, %v12702_v57, -inf  ;;  %v2399_v23 = vsel %vm2377_vm5, %v12720_v49, -inf }
 0x5a5   : > { %2409 = vmax.xlane.f32.xlu0 %v2408_v52  ;;  %v8885_v19 = vpop.f32.mrb[38].mxu1  ;;  %v2414_v4 = vsel %vm2377_vm5, %v12715_v61, -inf }
 0x5a6   : > { %2394 = vmax.xlane.f32.xlu1 %v2393_v5  ;;  %v2352_v58 = vpop.f32.mrb[39].mxu1  ;;  %v12732_v52 = vadd.f32 %v8885_v19, %v12712_v34  ;;  %v12738_v5 = vld [vmem:[#allocation4 + $0x8] sm:$0xff]  ;;  %v12762_v19 = vld [vmem:[#allocation4 + $0x18] sm:$0xff] }
 0x5a7   : > { %v12725_v41 = vadd.f32 %v2352_v58, %v12696_v42  ;;  %15555 = vst [vmem:[#allocation89_spill] sm:$0xff] %v12738_v5  ;;  %15561 = vst [vmem:[#allocation95_spill] sm:$0xff] %v12762_v19 }
 0x5a8   : > { %v2423_v48 = vsel %vm2377_vm5, %v12732_v52, -inf }
 0x5a9   : > { %2418 = vmax.xlane.f32.xlu0 %v2417_v55  ;;  %v2420_v62 = vsel %vm2377_vm5, %v12725_v41, -inf }
 0x5aa   : > { %2397 = vmax.xlane.f32.xlu1 %v2396_v45  ;;  %v12743_v45 = vld [vmem:[#allocation4] sm:$0xff] }
 0x5ab   : > { %15557 = vst [vmem:[#allocation91_spill] sm:$0xff] %v12743_v45 }
 0x5ad   : > { %2415 = vmax.xlane.f32.xlu0 %v2414_v4  ;;  %v12749_v4 = vld [vmem:[#allocation4 + $0x10] sm:$0xff] }
 0x5ae   : > { %2400 = vmax.xlane.f32.xlu1 %v2399_v23  ;;  %15558 = vst [vmem:[#allocation92_spill] sm:$0xff] %v12749_v4 }
 0x5b1   : > { %2421 = vmax.xlane.f32.xlu0 %v2420_v62 }
 0x5b5   : > { %2424 = vmax.xlane.f32.xlu0 %v2423_v48 }
 0x608   : > { %v2383_v55 = vpop.xlane.xlu0 %2382 }
 0x609   : > { %v12741_v58 = vmax.f32 %v12738_v5, %v2383_v55 }
 0x60b   : > { %15556 = vst [vmem:[#allocation90_spill] sm:$0xff] %v12741_v58  ;;  %2732 = vst.msk [vmem:[#allocation4 + $0x8] sm:$0xff] %vm2714_vm12, %v12741_v58 }
 0x60c   : > { %v2380_v23 = vpop.xlane.xlu0 %2379 }
 0x60d   : > { %v12752_v62 = vmax.f32 %v12743_v45, %v2380_v23  ;;  %v2386_v48 = vpop.xlane.xlu1 %2385  ;;  %v12778_v45 = vld [vmem:[#allocation4 + $0x40] sm:$0xff] }
 0x60e   : > { %v12755_v35 = vmax.f32 %v12749_v4, %v2386_v48  ;;  %15564 = vst [vmem:[#allocation98_spill] sm:$0xff] %v12778_v45 }
 0x60f   : > { %15559 = vst [vmem:[#allocation93_spill] sm:$0xff] %v12752_v62  ;;  %2731 = vst.msk [vmem:[#allocation4] sm:$0xff] %vm2714_vm12, %v12752_v62  ;;  %2492 = vperm.xlu1 %9993, %v12752_v62   ;;  %v12776_v62 = vld [vmem:[#allocation4 + $0x48] sm:$0xff] }
 0x610   : > { %15560 = vst [vmem:[#allocation94_spill] sm:$0xff] %v12755_v35  ;;  %2733 = vst.msk [vmem:[#allocation4 + $0x10] sm:$0xff] %vm2714_vm12, %v12755_v35 }
 0x611   : > { %v2389_v23 = vpop.xlane.xlu1 %2388  ;;  %15563 = vst [vmem:[#allocation97_spill] sm:$0xff] %v12776_v62 }
 0x612   : > { %v12769_v48 = vmax.f32 %v12762_v19, %v2389_v23 }
 0x613   : > { %2497 = vperm.xlu1 %9993, %v12741_v58   ;;  %v12793_v58 = vld [vmem:[#allocation4 + $0x20] sm:$0xff] }
 0x614   : > { %15562 = vst [vmem:[#allocation96_spill] sm:$0xff] %v12769_v48  ;;  %2734 = vst.msk [vmem:[#allocation4 + $0x18] sm:$0xff] %vm2714_vm12, %v12769_v48 }
 0x615   : > { %15568 = vst [vmem:[#allocation102_spill] sm:$0xff] %v12793_v58 }
 0x62a   : > { %v2407_v5 = vpop.xlane.xlu0 %2406 }
 0x62b   : > { %v12781_v4 = vmax.f32 %v12776_v62, %v2407_v5  ;;  %v2404_v32 = vpop.xlane.xlu1 %2403  ;;  %v12806_v62 = vld [vmem:[#allocation4 + $0x50] sm:$0xff]  ;;  %v12826_v5 = vld [vmem:[#allocation4 + $0x68] sm:$0xff] }
 0x62c   : > { %v12784_v23 = vmax.f32 %v12778_v45, %v2404_v32  ;;  %15570 = vst [vmem:[#allocation104_spill] sm:$0xff] %v12806_v62 }
 0x62d   : > { %15565 = vst [vmem:[#allocation99_spill] sm:$0xff] %v12781_v4  ;;  %2740 = vst.msk [vmem:[#allocation4 + $0x48] sm:$0xff] %vm2714_vm12, %v12781_v4  ;;  %2537 = vperm.xlu1 %9993, %v12781_v4   ;;  %v12809_v4 = vld [vmem:[#allocation4 + $0x28] sm:$0xff] }
 0x62e   : > { %15566 = vst [vmem:[#allocation100_spill] sm:$0xff] %v12784_v23  ;;  %2739 = vst.msk [vmem:[#allocation4 + $0x40] sm:$0xff] %vm2714_vm12, %v12784_v23  ;;  %2532 = vperm.xlu0 %9994, %v12784_v23   ;;  %v2413_v32 = vpop.xlane.xlu0 %2412  ;;  %v12846_v23 = vld [vmem:[#allocation4 + $0x60] sm:$0xff] }
 0x62f   : > { %v2392_v19 = vpop.xlane.xlu1 %2391  ;;  %v12801_v33 = vmax.f32 %v12786_v43, %v2413_v32  ;;  %15571 = vst [vmem:[#allocation105_spill] sm:$0xff] %v12809_v4  ;;  %v12829_v43 = vld [vmem:[#allocation4 + $0x30] sm:$0xff]  ;;  %15576 = vst [vmem:[#allocation110_spill] sm:$0xff] %v12846_v23 }
 0x630   : > { %v12804_v55 = vmax.f32 %v12793_v58, %v2392_v19  ;;  %15574 = vst [vmem:[#allocation108_spill] sm:$0xff] %v12829_v43 }
 0x631   : > { %2502 = vperm.xlu1 %9993, %v12755_v35   ;;  %2742 = vst.msk [vmem:[#allocation4 + $0x58] sm:$0xff] %vm2714_vm12, %v12801_v33 }
 0x632   : > { %15569 = vst [vmem:[#allocation103_spill] sm:$0xff] %v12804_v55  ;;  %2735 = vst.msk [vmem:[#allocation4 + $0x20] sm:$0xff] %vm2714_vm12, %v12804_v55  ;;  %2512 = vperm.xlu0 %9994, %v12804_v55   ;;  %v2410_v19 = vpop.xlane.xlu0 %2409  ;;  %v12850_v55 = vld [vmem:[#allocation4 + $0x38] sm:$0xff] }
 0x633   : > { %v2395_v32 = vpop.xlane.xlu1 %2394  ;;  %v12821_v45 = vmax.f32 %v12806_v62, %v2410_v19  ;;  %v12867_v62 = vld [vmem:[#allocation4 + $0x70] sm:$0xff] }
 0x634   : > { %v12824_v35 = vmax.f32 %v12809_v4, %v2395_v32  ;;  %15578 = vst [vmem:[#allocation112_spill] sm:$0xff] %v12867_v62 }
 0x635   : > { %15572 = vst [vmem:[#allocation106_spill] sm:$0xff] %v12821_v45  ;;  %2507 = vperm.xlu1 %9993, %v12769_v48   ;;  %2741 = vst.msk [vmem:[#allocation4 + $0x50] sm:$0xff] %vm2714_vm12, %v12821_v45 }
 0x636   : > { %15573 = vst [vmem:[#allocation107_spill] sm:$0xff] %v12824_v35  ;;  %2736 = vst.msk [vmem:[#allocation4 + $0x28] sm:$0xff] %vm2714_vm12, %v12824_v35  ;;  %2517 = vperm.xlu0 %9994, %v12824_v35   ;;  %v2419_v19 = vpop.xlane.xlu0 %2418 }
 0x637   : > { %v2398_v32 = vpop.xlane.xlu1 %2397  ;;  %v12841_v58 = vmax.f32 %v12826_v5, %v2419_v19 }
 0x638   : > { %v12844_v48 = vmax.f32 %v12829_v43, %v2398_v32  ;;  %v12883_v43 = vld [vmem:[#allocation4 + $0x78] sm:$0xff] }
 0x639   : > { %9996 = vrot.lane.b32.xlu1 %v12414_v7, %s10963_s28  ;;  %2744 = vst.msk [vmem:[#allocation4 + $0x68] sm:$0xff] %vm2714_vm12, %v12841_v58 }
 0x63a   : > { %15575 = vst [vmem:[#allocation109_spill] sm:$0xff] %v12844_v48  ;;  %2737 = vst.msk [vmem:[#allocation4 + $0x30] sm:$0xff] %vm2714_vm12, %v12844_v48  ;;  %2522 = vperm.xlu0 %9994, %v12844_v48   ;;  %v2416_v32 = vpop.xlane.xlu0 %2415 }
 0x63b   : > { %v2401_v35 = vpop.xlane.xlu1 %2400  ;;  %v12862_v4 = vmax.f32 %v12846_v23, %v2416_v32 }
 0x63c   : > { %v12865_v7 = vmax.f32 %v12850_v55, %v2401_v35 }
 0x63d   : > { %15577 = vst [vmem:[#allocation111_spill] sm:$0xff] %v12862_v4  ;;  %10001 = vrot.lane.b32.xlu1 %v12508_v51, %s10963_s28  ;;  %2743 = vst.msk [vmem:[#allocation4 + $0x60] sm:$0xff] %vm2714_vm12, %v12862_v4 }
 0x63e   : > { %2738 = vst.msk [vmem:[#allocation4 + $0x38] sm:$0xff] %vm2714_vm12, %v12865_v7  ;;  %2527 = vperm.xlu0 %9994, %v12865_v7   ;;  %v2422_v35 = vpop.xlane.xlu0 %2421 }
 0x63f   : > { %v12881_v32 = vmax.f32 %v12867_v62, %v2422_v35 }
 0x641   : > { %15579 = vst [vmem:[#allocation113_spill] sm:$0xff] %v12881_v32  ;;  %2547 = vperm.xlu1 %9993, %v12801_v33   ;;  %2745 = vst.msk [vmem:[#allocation4 + $0x70] sm:$0xff] %vm2714_vm12, %v12881_v32 }
 0x642   : > { %10006 = vrot.lane.b32.xlu0 %v12436_v30, %s10963_s28  ;;  %v2425_v48 = vpop.xlane.xlu0 %2424 }
 0x643   : > { %v12893_v23 = vmax.f32 %v12883_v43, %v2425_v48  ;;  %v12906_v48 = vld [vmem:[#allocation2] sm:$0xff] }
 0x645   : > { %2542 = vperm.xlu1 %9993, %v12821_v45   ;;  %2746 = vst.msk [vmem:[#allocation4 + $0x78] sm:$0xff] %vm2714_vm12, %v12893_v23 }
 0x646   : > { %10016 = vrot.lane.b32.xlu0 %v12468_v26, %s10963_s28 }
 0x649   : > { %2557 = vperm.xlu1 %9993, %v12841_v58  }
 0x64a   : > { %10026 = vrot.lane.b32.xlu0 %v12486_v24, %s10963_s28 }
 0x64d   : > { %2552 = vperm.xlu1 %9993, %v12862_v4  }
 0x64e   : > { %3149 = vrot.lane.b32.xlu0 %v12906_v48, %s10963_s28 }
 0x651   : > { %2567 = vperm.xlu1 %9993, %v12893_v23  }
 0x652   : > { %3151 = vrot.lane.b32.xlu0 %v12500_v1, %s10963_s28  ;;  %v12928_v1 = vld [vmem:[#allocation2 + $0x40] sm:$0xff] }
 0x655   : > { %2562 = vperm.xlu1 %9993, %v12881_v32  }
 0x656   : > { %3153 = vrot.lane.b32.xlu0 %v12502_v53, %s10963_s28 }
 0x659   : > { %10011 = vrot.lane.b32.xlu1 %v12538_v11, %s10963_s28 }
 0x65a   : > { %3155 = vrot.lane.b32.xlu0 %v12512_v59, %s10963_s28 }
 0x65d   : > { %10021 = vrot.lane.b32.xlu1 %v12558_v10, %s10963_s28 }
 0x65e   : > { %3157 = vrot.lane.b32.xlu0 %v12521_v63, %s10963_s28 }
 0x661   : > { %10031 = vrot.lane.b32.xlu1 %v12570_v37, %s10963_s28 }
 0x662   : > { %3159 = vrot.lane.b32.xlu0 %v12530_v15, %s10963_s28 }
 0x665   : > { %3318 = vrot.lane.b32.xlu1 %v12928_v1, %s10963_s28 }
 0x666   : > { %3161 = vrot.lane.b32.xlu0 %v12532_v0, %s10963_s28 }
 0x669   : > { %3320 = vrot.lane.b32.xlu1 %v12576_v40, %s10963_s28 }
 0x66a   : > { %3163 = vrot.lane.b32.xlu0 %v12542_v56, %s10963_s28 }
 0x66d   : > { %3322 = vrot.lane.b32.xlu1 %v12578_v60, %s10963_s28 }
 0x671   : > { %3324 = vrot.lane.b32.xlu1 %v12584_v9, %s10963_s28 }
 0x675   : > { %3326 = vrot.lane.b32.xlu1 %v12586_v27, %s10963_s28 }
 0x679   : > { %3328 = vrot.lane.b32.xlu1 %v12592_v14, %s10963_s28 }
 0x67d   : > { %3330 = vrot.lane.b32.xlu1 %v12594_v25, %s10963_s28 }
 0x681   : > { %3332 = vrot.lane.b32.xlu1 %v12600_v2, %s10963_s28 }
 0x68e   : > { %v2493_v53 = vpop.permute.xlu1 %2492 }
 0x68f   : > { %v2570_v59 = vsub.f32 %v12640_v44, %v2493_v53 }
 0x691   : > { %v2586_v63 = vmul.f32 1.442695, %v2570_v59 }
 0x692   : > { %v2498_v15 = vpop.permute.xlu1 %2497 }
 0x693   : > { %10235 = vpow2.f32 %v2586_v63  ;;  %v2571_v0 = vsub.f32 %v12637_v36, %v2498_v15 }
 0x695   : > { %v2588_v56 = vmul.f32 1.442695, %v2571_v0 }
 0x697   : > { %10237 = vpow2.f32 %v2588_v56 }
 0x69d   : > { %v12952_v40 = vpop.eup %10235 }
 0x69e   : > { %8902 = vmatprep.mubr.msk.f32.mxu0 %vm2377_vm5, %v12952_v40 }
 0x6a1   : > { %v12956_v60 = vpop.eup %10237 }
 0x6a2   : > { %8903 = vmatmul.mubr.msk.f32.vlgmr.msra.gmra.mrb[40].mxu0 %vm2377_vm5, %v12956_v60 }
 0x6ac   : > { %v2538_v9 = vpop.permute.xlu1 %2537 }
 0x6ad   : > { %v2579_v27 = vsub.f32 %v12668_v28, %v2538_v9  ;;  %v2533_v14 = vpop.permute.xlu0 %2532 }
 0x6ae   : > { %v2578_v25 = vsub.f32 %v12671_v21, %v2533_v14 }
 0x6af   : > { %v2604_v2 = vmul.f32 1.442695, %v2579_v27 }
 0x6b0   : > { %v2602_v36 = vmul.f32 1.442695, %v2578_v25  ;;  %v2503_v44 = vpop.permute.xlu1 %2502 }
 0x6b1   : > { %v2572_v53 = vsub.f32 %v12656_v54, %v2503_v44  ;;  %v2513_v59 = vpop.permute.xlu0 %2512 }
 0x6b2   : > { %10239 = vpow2.f32 %v2602_v36  ;;  %v2574_v63 = vsub.f32 %v12674_v38, %v2513_v59 }
 0x6b3   : > { %10241 = vpow2.f32 %v2604_v2  ;;  %v2590_v15 = vmul.f32 1.442695, %v2572_v53 }
 0x6b4   : > { %v2508_v0 = vpop.permute.xlu1 %2507  ;;  %v2594_v28 = vmul.f32 1.442695, %v2574_v63 }
 0x6b5   : > { %10243 = vpow2.f32 %v2590_v15  ;;  %v2573_v56 = vsub.f32 %v12653_v22, %v2508_v0  ;;  %v2518_v19 = vpop.permute.xlu0 %2517 }
 0x6b6   : > { %v2575_v9 = vsub.f32 %v12688_v47, %v2518_v19 }
 0x6b7   : > { %v2592_v21 = vmul.f32 1.442695, %v2573_v56 }
 0x6b8   : > { %v9997_v27 = vpop.permute.xlu1 %9996  ;;  %v2596_v14 = vmul.f32 1.442695, %v2575_v9 }
 0x6b9   : > { %10245 = vpow2.f32 %v2592_v21  ;;  %v9999_v25 = vunpack.i.h.bf16 %v9997_v27  ;;  %v9998_v54 = vunpack.i.l.bf16 %v9997_v27  ;;  %v2523_v44 = vpop.permute.xlu0 %2522 }
 0x6ba   : > { %10247 = vpow2.f32 %v2594_v28  ;;  %v2576_v38 = vsub.f32 %v12707_v46, %v2523_v44 }
 0x6bb   : > { %v9454_v2 = vpack.c.bf16 %v9999_v25, %v9998_v54  ;;  %10249 = vpow2.f32 %v2596_v14 }
 0x6bc   : > { %v12967_v36 = vpop.eup %10239  ;;  %v2598_v53 = vmul.f32 1.442695, %v2576_v38  ;;  %v10002_v59 = vpop.permute.xlu1 %10001 }
 0x6bd   : > { %v12969_v22 = vpop.eup %10241  ;;  %v10004_v63 = vunpack.i.h.bf16 %v10002_v59  ;;  %v10003_v47 = vunpack.i.l.bf16 %v10002_v59  ;;  %8930 = vmatprep.mubr.msk.f32.mxu1 %vm2377_vm5, %v12967_v36  ;;  %9456 = vmatprep.subr.msk.bf16.mxu0 %vm12406_vm2, %v9454_v2  ;;  %v2528_v19 = vpop.permute.xlu0 %2527 }
 0x6be   : > { %10251 = vpow2.f32 %v2598_v53  ;;  %v2577_v46 = vsub.f32 %v12720_v49, %v2528_v19  ;;  %8931 = vmatmul.mubr.msk.f32.vlgmr.msra.gmra.mrb[40].mxu1 %vm2377_vm5, %v12969_v22  ;;  %9459 = vmatpush3.bf16.xpose.msk.msra.mxu0 %vm12406_vm2, %v9454_v2 }
 0x6bf   : > { %v12980_v15 = vpop.eup %10243  ;;  %v9478_v0 = vpack.c.bf16 %v10004_v63, %v10003_v47 }
 0x6c0   : > { %v2600_v56 = vmul.f32 1.442695, %v2577_v46  ;;  %8905 = vmatprep.mubr.msk.f32.mxu0 %vm2377_vm5, %v12980_v15  ;;  %v2548_v28 = vpop.permute.xlu1 %2547 }
 0x6c1   : > { %9480 = vmatprep.subr.msk.bf16.mxu1 %vm12406_vm2, %v9478_v0  ;;  %v10007_v9 = vpop.permute.xlu0 %10006  ;;  %v2581_v49 = vsub.f32 %v12685_v3, %v2548_v28 }
 0x6c2   : > { %10253 = vpow2.f32 %v2600_v56  ;;  %v10009_v21 = vunpack.i.h.bf16 %v10007_v9  ;;  %v10008_v27 = vunpack.i.l.bf16 %v10007_v9  ;;  %9483 = vmatpush3.bf16.xpose.msk.msra.mxu1 %vm12406_vm2, %v9478_v0 }
 0x6c3   : > { %v12989_v14 = vpop.eup %10245  ;;  %v2608_v2 = vmul.f32 1.442695, %v2581_v49 }
 0x6c4   : > { %v12991_v25 = vpop.eup %10247  ;;  %v9460_v54 = vpack.c.bf16 %v10009_v21, %v10008_v27  ;;  %8906 = vmatmul.mubr.msk.f32.gmra.mrb[42].mxu0 %vm2377_vm5, %v12989_v14  ;;  %v2543_v44 = vpop.permute.xlu1 %2542 }
 0x6c5   : > { %v2580_v38 = vsub.f32 %v12693_v17, %v2543_v44  ;;  %8908 = vmatprep.mubr.msk.f32.mxu0 %vm2377_vm5, %v12991_v25  ;;  %v10017_v3 = vpop.permute.xlu0 %10016  ;;  %v13000_v63 = vpop.eup %10249 }
 0x6c6   : > { %v10019_v53 = vunpack.i.h.bf16 %v10017_v3  ;;  %v10018_v59 = vunpack.i.l.bf16 %v10017_v3  ;;  %9462 = vmatprep.subr.msk.bf16.mxu0 %vm12406_vm2, %v9460_v54 }
 0x6c7   : > { %v2606_v47 = vmul.f32 1.442695, %v2580_v38  ;;  %9465 = vmatpush3.bf16.xpose.msk.msra.mxu0 %vm12406_vm2, %v9460_v54 }
 0x6c8   : > { %v13004_v19 = vpop.eup %10251  ;;  %v9466_v46 = vpack.c.bf16 %v10019_v53, %v10018_v59  ;;  %v2558_v17 = vpop.permute.xlu1 %2557  ;;  %8909 = vmatmul.mubr.msk.f32.gmra.mrb[44].mxu0 %vm2377_vm5, %v13000_v63 }
 0x6c9   : > { %10255 = vpow2.f32 %v2606_v47  ;;  %8911 = vmatprep.mubr.msk.f32.mxu0 %vm2377_vm5, %v13004_v19  ;;  %v10027_v0 = vpop.permute.xlu0 %10026  ;;  %v2583_v56 = vsub.f32 %v12702_v57, %v2558_v17 }
 0x6ca   : > { %10257 = vpow2.f32 %v2608_v2  ;;  %v10029_v28 = vunpack.i.h.bf16 %v10027_v0  ;;  %v10028_v9 = vunpack.i.l.bf16 %v10027_v0  ;;  %9468 = vmatprep.subr.msk.bf16.mxu0 %vm12406_vm2, %v9466_v46 }
 0x6cb   : > { %v2612_v44 = vmul.f32 1.442695, %v2583_v56 }
 0x6cc   : > { %v13013_v49 = vpop.eup %10253  ;;  %v2553_v21 = vpop.permute.xlu1 %2552  ;;  %v9472_v38 = vpack.c.bf16 %v10029_v28, %v10028_v9 }
 0x6cd   : > { %v2582_v27 = vsub.f32 %v12715_v61, %v2553_v21  ;;  %8912 = vmatmul.mubr.msk.f32.gmra.mrb[46].mxu0 %vm2377_vm5, %v13013_v49  ;;  %v3150_v54 = vpop.permute.xlu0 %3149 }
 0x6ce   : > { %8958 = vmatprep.mubr.msk.f32.mxu0 %vm2054_vm1, %v3150_v54 }
 0x6cf   : > { %v2610_v3 = vmul.f32 1.442695, %v2582_v27  ;;  %9471 = vmatpush3.bf16.xpose.msk.msra.mxu0 %vm12406_vm2, %v9466_v46 }
 0x6d0   : > { %v2568_v57 = vpop.permute.xlu1 %2567  ;;  %9474 = vmatprep.subr.msk.bf16.mxu0 %vm12406_vm2, %v9472_v38 }
 0x6d1   : > { %10259 = vpow2.f32 %v2610_v3  ;;  %v3152_v2 = vpop.permute.xlu0 %3151  ;;  %v2585_v61 = vsub.f32 %v12732_v52, %v2568_v57 }
 0x6d2   : > { %10261 = vpow2.f32 %v2612_v44 }
 0x6d3   : > { %v13024_v53 = vpop.eup %10255  ;;  %v2616_v0 = vmul.f32 1.442695, %v2585_v61 }
 0x6d4   : > { %v13026_v59 = vpop.eup %10257  ;;  %v2563_v47 = vpop.permute.xlu1 %2562  ;;  %8933 = vmatprep.mubr.msk.f32.mxu1 %vm2377_vm5, %v13024_v53 }
 0x6d5   : > { %v2584_v17 = vsub.f32 %v12725_v41, %v2563_v47  ;;  %8934 = vmatmul.mubr.msk.f32.gmra.mrb[42].mxu1 %vm2377_vm5, %v13026_v59  ;;  %v3154_v46 = vpop.permute.xlu0 %3153 }
 0x6d7   : > { %v2614_v56 = vmul.f32 1.442695, %v2584_v17  ;;  %9477 = vmatpush3.bf16.xpose.msk.msra.mxu0 %vm12406_vm2, %v9472_v38 }
 0x6d8   : > { %v10012_v52 = vpop.permute.xlu1 %10011 }
 0x6d9   : > { %10263 = vpow2.f32 %v2614_v56  ;;  %v10014_v28 = vunpack.i.h.bf16 %v10012_v52  ;;  %v10013_v9 = vunpack.i.l.bf16 %v10012_v52  ;;  %v3156_v21 = vpop.permute.xlu0 %3155 }
 0x6da   : > { %10265 = vpow2.f32 %v2616_v0 }
 0x6db   : > { %v13035_v27 = vpop.eup %10259  ;;  %v9484_v54 = vpack.c.bf16 %v10014_v28, %v10013_v9 }
 0x6dc   : > { %v13037_v44 = vpop.eup %10261  ;;  %v10022_v41 = vpop.permute.xlu1 %10021  ;;  %8936 = vmatprep.mubr.msk.f32.mxu1 %vm2377_vm5, %v13035_v27 }
 0x6dd   : > { %v10024_v3 = vunpack.i.h.bf16 %v10022_v41  ;;  %v10023_v57 = vunpack.i.l.bf16 %v10022_v41  ;;  %8937 = vmatmul.mubr.msk.f32.gmra.mrb[44].mxu1 %vm2377_vm5, %v13037_v44  ;;  %9486 = vmatprep.subr.msk.bf16.mxu1 %vm12406_vm2, %v9484_v54  ;;  %v3158_v38 = vpop.permute.xlu0 %3157 }
 0x6de   : > { %8959 = vmatmul.mubr.msk.f32.vlgmr.msra.gmra.mrb[48].mxu0 %vm2054_vm1, %v3152_v2  ;;  %9489 = vmatpush3.bf16.xpose.msk.msra.mxu1 %vm12406_vm2, %v9484_v54 }
 0x6df   : > { %v9490_v61 = vpack.c.bf16 %v10024_v3, %v10023_v57  ;;  %8961 = vmatprep.mubr.msk.f32.mxu0 %vm2054_vm1, %v3154_v46 }
 0x6e0   : > { %v10032_v47 = vpop.permute.xlu1 %10031 }
 0x6e1   : > { %v10034_v17 = vunpack.i.h.bf16 %v10032_v47  ;;  %v10033_v0 = vunpack.i.l.bf16 %v10032_v47  ;;  %9492 = vmatprep.subr.msk.bf16.mxu1 %vm12406_vm2, %v9490_v61  ;;  %v3160_v56 = vpop.permute.xlu0 %3159 }
 0x6e2   : > { %8962 = vmatmul.mubr.msk.f32.gmra.mrb[50].mxu0 %vm2054_vm1, %v3156_v21 }
 0x6e3   : > { %v13052_v52 = vpop.eup %10263  ;;  %8964 = vmatprep.mubr.msk.f32.mxu0 %vm2054_vm1, %v3158_v38  ;;  %v9496_v46 = vpack.c.bf16 %v10034_v17, %v10033_v0 }
 0x6e4   : > { %v13055_v2 = vpop.eup %10265  ;;  %8939 = vmatprep.mubr.msk.f32.mxu1 %vm2377_vm5, %v13052_v52  ;;  %v3319_v28 = vpop.permute.xlu1 %3318 }
 0x6e5   : > { %8940 = vmatmul.mubr.msk.f32.gmra.mrb[46].mxu1 %vm2377_vm5, %v13055_v2  ;;  %v3162_v9 = vpop.permute.xlu0 %3161 }
 0x6e6   : > { %9495 = vmatpush3.bf16.xpose.msk.msra.mxu1 %vm12406_vm2, %v9490_v61  ;;  %8965 = vmatmul.mubr.msk.f32.gmra.mrb[52].mxu0 %vm2054_vm1, %v3160_v56 }
 0x6e7   : > { %9498 = vmatprep.subr.msk.bf16.mxu1 %vm12406_vm2, %v9496_v46  ;;  %8986 = vmatprep.mubr.msk.f32.mxu1 %vm2054_vm1, %v3319_v28 }
 0x6e8   : > { %v3321_v21 = vpop.permute.xlu1 %3320  ;;  %8967 = vmatprep.mubr.msk.f32.mxu0 %vm2054_vm1, %v3162_v9 }
 0x6e9   : > { %v3164_v54 = vpop.permute.xlu0 %3163 }
 0x6ea   : > { %8968 = vmatmul.mubr.msk.f32.gmra.mrb[54].mxu0 %vm2054_vm1, %v3164_v54 }
 0x6ec   : > { %v3323_v41 = vpop.permute.xlu1 %3322 }
 0x6ee   : > { %9501 = vmatpush3.bf16.xpose.msk.msra.mxu1 %vm12406_vm2, %v9496_v46 }
 0x6f0   : > { %v3325_v3 = vpop.permute.xlu1 %3324 }
 0x6f4   : > { %v3327_v57 = vpop.permute.xlu1 %3326 }
 0x6f5   : > { %8987 = vmatmul.mubr.msk.f32.vlgmr.msra.gmra.mrb[48].mxu1 %vm2054_vm1, %v3321_v21 }
 0x6f6   : > { %8989 = vmatprep.mubr.msk.f32.mxu1 %vm2054_vm1, %v3323_v41 }
 0x6f8   : > { %v3329_v38 = vpop.permute.xlu1 %3328 }
 0x6f9   : > { %8990 = vmatmul.mubr.msk.f32.gmra.mrb[50].mxu1 %vm2054_vm1, %v3325_v3 }
 0x6fa   : > { %8992 = vmatprep.mubr.msk.f32.mxu1 %vm2054_vm1, %v3327_v57 }
 0x6fc   : > { %v3331_v61 = vpop.permute.xlu1 %3330 }
 0x6fd   : > { %8993 = vmatmul.mubr.msk.f32.gmra.mrb[52].mxu1 %vm2054_vm1, %v3329_v38 }
 0x6fe   : > { %8995 = vmatprep.mubr.msk.f32.mxu1 %vm2054_vm1, %v3331_v61 }
 0x700   : > { %v3333_v47 = vpop.permute.xlu1 %3332 }
 0x701   : > { %8996 = vmatmul.mubr.msk.f32.gmra.mrb[54].mxu1 %vm2054_vm1, %v3333_v47 }
 0x775   : > { %v13078_v17 = vpop.f32.mrb[40].mxu0 }
 0x776   : > { %15580 = vst [vmem:[#allocation114_spill] sm:$0xff] %v13078_v17  ;;  %v13080_v0 = vpop.f32.mrb[41].mxu0 }
 0x777   : > { %15581 = vst [vmem:[#allocation115_spill] sm:$0xff] %v13080_v0 }
 0x791   : > { %v13082_v56 = vpop.f32.mrb[40].mxu1 }
 0x792   : > { %15582 = vst [vmem:[#allocation116_spill] sm:$0xff] %v13082_v56  ;;  %v13084_v28 = vpop.f32.mrb[41].mxu1 }
 0x793   : > { %15583 = vst [vmem:[#allocation117_spill] sm:$0xff] %v13084_v28 }
 0x797   : > { %v13086_v46 = vpop.f32.mrb[42].mxu0 }
 0x798   : > { %15584 = vst [vmem:[#allocation118_spill] sm:$0xff] %v13086_v46  ;;  %v13088_v9 = vpop.f32.mrb[43].mxu0 }
 0x799   : > { %15585 = vst [vmem:[#allocation119_spill] sm:$0xff] %v13088_v9 }
 0x79b   : > { %v13090_v21 = vpop.f32.mrb[44].mxu0 }
 0x79c   : > { %15586 = vst [vmem:[#allocation120_spill] sm:$0xff] %v13090_v21  ;;  %v13092_v54 = vpop.f32.mrb[45].mxu0 }
 0x79d   : > { %15587 = vst [vmem:[#allocation121_spill] sm:$0xff] %v13092_v54 }
 0x7a0   : > { %v13094_v41 = vpop.f32.mrb[46].mxu0 }
 0x7a1   : > { %15588 = vst [vmem:[#allocation122_spill] sm:$0xff] %v13094_v41  ;;  %v13096_v3 = vpop.f32.mrb[47].mxu0 }
 0x7a2   : > { %15589 = vst [vmem:[#allocation123_spill] sm:$0xff] %v13096_v3 }
 0x7a8   : > { %v13098_v57 = vpop.f32.mrb[42].mxu1 }
 0x7a9   : > { %15590 = vst [vmem:[#allocation124_spill] sm:$0xff] %v13098_v57  ;;  %v13100_v38 = vpop.f32.mrb[43].mxu1 }
 0x7aa   : > { %15591 = vst [vmem:[#allocation125_spill] sm:$0xff] %v13100_v38 }
 0x7b0   : > { %v13102_v61 = vpop.f32.mrb[44].mxu1 }
 0x7b1   : > { %15592 = vst [vmem:[#allocation126_spill] sm:$0xff] %v13102_v61  ;;  %v13104_v47 = vpop.f32.mrb[45].mxu1  ;;  %v8960_v35 = vpop.f32.mrb[48].mxu0 }
 0x7b2   : > { %15593 = vst [vmem:[#allocation127_spill] sm:$0xff] %v13104_v47  ;;  %v13107_v28 = vadd.f32 %v8960_v35, %v12629_v50  ;;  %v3279_v17 = vpop.f32.mrb[49].mxu0 }
 0x7b3   : > { %v13110_v56 = vadd.f32 %v3279_v17, %v12632_v8 }
 0x7b4   : > { %v3507_v54 = vsel %vm2377_vm5, %v13107_v28, -inf }
 0x7b5   : > { %3508 = vmax.xlane.f32.xlu0 %v3507_v54  ;;  %v8963_v3 = vpop.f32.mrb[50].mxu0  ;;  %v3504_v47 = vsel %vm2377_vm5, %v13110_v56, -inf }
 0x7b6   : > { %v13115_v57 = vadd.f32 %v8963_v3, %v12645_v16  ;;  %v3289_v38 = vpop.f32.mrb[51].mxu0 }
 0x7b7   : > { %v13120_v61 = vadd.f32 %v3289_v38, %v12648_v18 }
 0x7b8   : > { %v13122_v35 = vpop.f32.mrb[46].mxu1  ;;  %v3513_v17 = vsel %vm2377_vm5, %v13115_v57, -inf }
 0x7b9   : > { %15594 = vst [vmem:[#allocation128_spill] sm:$0xff] %v13122_v35  ;;  %v13126_v41 = vpop.f32.mrb[47].mxu1  ;;  %3514 = vmax.xlane.f32.xlu1 %v3513_v17  ;;  %3505 = vmax.xlane.f32.xlu0 %v3504_v47  ;;  %v8966_v54 = vpop.f32.mrb[52].mxu0  ;;  %v3510_v3 = vsel %vm2377_vm5, %v13120_v61, -inf }
 0x7ba   : > { %15595 = vst [vmem:[#allocation129_spill] sm:$0xff] %v13126_v41  ;;  %v3299_v21 = vpop.f32.mrb[53].mxu0 }
 0x7bb   : > { %v13131_v46 = vadd.f32 %v3299_v21, %v12664_v20  ;;  %v13144_v21 = vadd.f32 %v8966_v54, %v12677_v39 }
 0x7bd   : > { %3511 = vmax.xlane.f32.xlu1 %v3510_v3  ;;  %v8969_v38 = vpop.f32.mrb[54].mxu0  ;;  %v3516_v35 = vsel %vm2377_vm5, %v13131_v46, -inf }
 0x7be   : > { %v3309_v9 = vpop.f32.mrb[55].mxu0 }
 0x7c1   : > { %3517 = vmax.xlane.f32.xlu1 %v3516_v35 }
 0x7c8   : > { %v8988_v0 = vpop.f32.mrb[48].mxu1 }
 0x7c9   : > { %v13136_v41 = vadd.f32 %v8988_v0, %v12629_v50  ;;  %v3448_v47 = vpop.f32.mrb[49].mxu1  ;;  %v13149_v0 = vadd.f32 %v3309_v9, %v12696_v42  ;;  %v15596_v9 = vld [vmem:[#allocation80_spill] sm:$0xff] }
 0x7ca   : > { %v13139_v17 = vadd.f32 %v3448_v47, %v12632_v8  ;;  %v3519_v47 = vsel %vm2377_vm5, %v13144_v21, -inf }
 0x7cb   : > { %v3531_v32 = vsel %vm2377_vm5, %v13136_v41, -inf  ;;  %v3522_v54 = vsel %vm2377_vm5, %v13149_v0, -inf }
 0x7cc   : > { %3532 = vmax.xlane.f32.xlu0 %v3531_v32  ;;  %v3528_v3 = vsel %vm2377_vm5, %v13139_v17, -inf  ;;  %v8991_v62 = vpop.f32.mrb[50].mxu1  ;;  %v13156_v32 = vadd.f32 %v8969_v38, %v12712_v34 }
 0x7cd   : > { %3529 = vmax.xlane.f32.xlu1 %v3528_v3  ;;  %v3458_v35 = vpop.f32.mrb[51].mxu1  ;;  %v13173_v38 = vadd.f32 %v8991_v62, %v12645_v16 }
 0x7ce   : > { %v3525_v3 = vsel %vm2377_vm5, %v13156_v32, -inf }
 0x7d0   : > { %v8994_v8 = vpop.f32.mrb[52].mxu1 }
 0x7d1   : > { %3520 = vmax.xlane.f32.xlu1 %v3519_v47  ;;  %v3468_v50 = vpop.f32.mrb[53].mxu1  ;;  %v13176_v47 = vadd.f32 %v3458_v35, %v12648_v18  ;;  %v13261_v18 = vld [vmem:[#allocation4 + $0xc0] sm:$0xff] }
 0x7d2   : > { %15609 = vst [vmem:[#allocation138_spill] sm:$0xff] %v13261_v18 }
 0x7d4   : > { %v8997_v4 = vpop.f32.mrb[54].mxu1 }
 0x7d5   : > { %3523 = vmax.xlane.f32.xlu1 %v3522_v54  ;;  %v3478_v45 = vpop.f32.mrb[55].mxu1  ;;  %v3537_v54 = vsel %vm2377_vm5, %v13173_v38, -inf  ;;  %v13191_v35 = vadd.f32 %v8997_v4, %v12712_v34  ;;  %v15598_v4 = vld [vmem:[#allocation75_spill] sm:$0xff] }
 0x7d6   : > { %v13245_v34 = vld [vmem:[#allocation4 + $0xa0] sm:$0xff] }
 0x7d7   : > { %15606 = vst [vmem:[#allocation135_spill] sm:$0xff] %v13245_v34 }
 0x7d9   : > { %3526 = vmax.xlane.f32.xlu1 %v3525_v3  ;;  %v13181_v3 = vadd.f32 %v8994_v8, %v12677_v39  ;;  %v13196_v8 = vadd.f32 %v3478_v45, %v12696_v42  ;;  %v15600_v45 = vld [vmem:[#allocation67_spill] sm:$0xff]  ;;  %v13274_v39 = vld [vmem:[#allocation4 + $0xa8] sm:$0xff] }
 0x7da   : > { %15612 = vst [vmem:[#allocation141_spill] sm:$0xff] %v13274_v39 }
 0x7db   : > { %v3543_v62 = vsel %vm2377_vm5, %v13181_v3, -inf }
 0x7e2   : > { %10041 = vrot.lane.b32.xlu0 %v12612_v13, %s10963_s28  ;;  %v13215_v13 = vld [vmem:[#allocation4 + $0x98] sm:$0xff] }
 0x7ea   : > { %10036 = vrot.lane.b32.xlu1 %v12604_v31, %s10963_s28 }
 0x7ee   : > { %10051 = vrot.lane.b32.xlu1 %v12614_v29, %s10963_s28 }
 0x7f2   : > { %10061 = vrot.lane.b32.xlu1 %v12616_v6, %s10963_s28  ;;  %v13186_v6 = vadd.f32 %v3468_v50, %v12664_v20  ;;  %v3546_v50 = vsel %vm2377_vm5, %v13196_v8, -inf }
 0x7f6   : > { %10071 = vrot.lane.b32.xlu1 %v15596_v9, %s10963_s28  ;;  %v3534_v9 = vsel %vm2377_vm5, %v13176_v47, -inf }
 0x7fa   : > { %10081 = vrot.lane.b32.xlu1 %v12508_v51, %s10964_s6  ;;  %v15599_v51 = vld [vmem:[#allocation76_spill] sm:$0xff] }
 0x801   : > { %3538 = vmax.xlane.f32.xlu0 %v3537_v54  ;;  %v3540_v54 = vsel %vm2377_vm5, %v13186_v6, -inf }
 0x805   : > { %3535 = vmax.xlane.f32.xlu0 %v3534_v9  ;;  %v3549_v9 = vsel %vm2377_vm5, %v13191_v35, -inf }
 0x809   : > { %3544 = vmax.xlane.f32.xlu0 %v3543_v62  ;;  %v15597_v62 = vld [vmem:[#allocation74_spill] sm:$0xff] }
 0x80d   : > { %3541 = vmax.xlane.f32.xlu0 %v3540_v54  ;;  %v13210_v54 = vld [vmem:[#allocation4 + $0x88] sm:$0xff] }
 0x80e   : > { %15601 = vst [vmem:[#allocation130_spill] sm:$0xff] %v13210_v54 }
 0x811   : > { %3550 = vmax.xlane.f32.xlu0 %v3549_v9 }
 0x815   : > { %3547 = vmax.xlane.f32.xlu0 %v3546_v50  ;;  %v13217_v50 = vld [vmem:[#allocation4 + $0x80] sm:$0xff] }
 0x82b   : > { %10046 = vrot.lane.b32.xlu0 %v15597_v62, %s10963_s28  ;;  %v13230_v62 = vld [vmem:[#allocation4 + $0x90] sm:$0xff] }
 0x82c   : > { %15604 = vst [vmem:[#allocation133_spill] sm:$0xff] %v13230_v62 }
 0x82f   : > { %10056 = vrot.lane.b32.xlu0 %v15598_v4, %s10963_s28 }
 0x833   : > { %10066 = vrot.lane.b32.xlu0 %v15599_v51, %s10963_s28 }
 0x837   : > { %10076 = vrot.lane.b32.xlu0 %v15600_v45, %s10964_s6 }
 0x842   : > { %v3509_v29 = vpop.xlane.xlu0 %3508 }
 0x843   : > { %v13213_v9 = vmax.f32 %v13210_v54, %v3509_v29 }
 0x845   : > { %15602 = vst [vmem:[#allocation131_spill] sm:$0xff] %v13213_v9  ;;  %3858 = vst.msk [vmem:[#allocation4 + $0x88] sm:$0xff] %vm2714_vm12, %v13213_v9  ;;  %3623 = vperm.xlu0 %9994, %v13213_v9  }
 0x846   : > { %v3515_v51 = vpop.xlane.xlu1 %3514  ;;  %v3506_v45 = vpop.xlane.xlu0 %3505 }
 0x847   : > { %v13225_v4 = vmax.f32 %v13215_v13, %v3515_v51  ;;  %v13228_v29 = vmax.f32 %v13217_v50, %v3506_v45 }
 0x849   : > { %15603 = vst [vmem:[#allocation132_spill] sm:$0xff] %v13225_v4  ;;  %3860 = vst.msk [vmem:[#allocation4 + $0x98] sm:$0xff] %vm2714_vm12, %v13225_v4  ;;  %3633 = vperm.xlu0 %9994, %v13225_v4   ;;  %3618 = vperm.xlu1 %9993, %v13228_v29  }
 0x84a   : > { %3857 = vst.msk [vmem:[#allocation4 + $0x80] sm:$0xff] %vm2714_vm12, %v13228_v29  ;;  %v3512_v51 = vpop.xlane.xlu1 %3511 }
 0x84b   : > { %v13243_v45 = vmax.f32 %v13230_v62, %v3512_v51  ;;  %v13259_v51 = vld [vmem:[#allocation4 + $0xc8] sm:$0xff] }
 0x84c   : > { %15608 = vst [vmem:[#allocation137_spill] sm:$0xff] %v13259_v51 }
 0x84d   : > { %15605 = vst [vmem:[#allocation134_spill] sm:$0xff] %v13243_v45  ;;  %3859 = vst.msk [vmem:[#allocation4 + $0x90] sm:$0xff] %vm2714_vm12, %v13243_v45  ;;  %3628 = vperm.xlu0 %9994, %v13243_v45  }
 0x84e   : > { %v3518_v31 = vpop.xlane.xlu1 %3517 }
 0x84f   : > { %v13253_v20 = vmax.f32 %v13245_v34, %v3518_v31  ;;  %v13284_v31 = vld [vmem:[#allocation4 + $0xb0] sm:$0xff] }
 0x850   : > { %15614 = vst [vmem:[#allocation143_spill] sm:$0xff] %v13284_v31 }
 0x851   : > { %15607 = vst [vmem:[#allocation136_spill] sm:$0xff] %v13253_v20  ;;  %3861 = vst.msk [vmem:[#allocation4 + $0xa0] sm:$0xff] %vm2714_vm12, %v13253_v20 }
 0x859   : > { %v3533_v42 = vpop.xlane.xlu0 %3532 }
 0x85a   : > { %v13264_v16 = vmax.f32 %v13259_v51, %v3533_v42  ;;  %v3530_v9 = vpop.xlane.xlu1 %3529 }
 0x85b   : > { %v13267_v54 = vmax.f32 %v13261_v18, %v3530_v9 }
 0x85c   : > { %15610 = vst [vmem:[#allocation139_spill] sm:$0xff] %v13264_v16  ;;  %3866 = vst.msk [vmem:[#allocation4 + $0xc8] sm:$0xff] %vm2714_vm12, %v13264_v16  ;;  %3663 = vperm.xlu1 %9993, %v13264_v16  }
 0x85d   : > { %15611 = vst [vmem:[#allocation140_spill] sm:$0xff] %v13267_v54  ;;  %3865 = vst.msk [vmem:[#allocation4 + $0xc0] sm:$0xff] %vm2714_vm12, %v13267_v54  ;;  %v10042_v42 = vpop.permute.xlu0 %10041 }
 0x85e   : > { %v10044_v45 = vunpack.i.h.bf16 %v10042_v42  ;;  %v10043_v9 = vunpack.i.l.bf16 %v10042_v42  ;;  %v3521_v62 = vpop.xlane.xlu1 %3520 }
 0x85f   : > { %v13281_v4 = vmax.f32 %v13274_v39, %v3521_v62  ;;  %v13294_v62 = vld [vmem:[#allocation4 + $0xb8] sm:$0xff] }
 0x860   : > { %3658 = vperm.xlu1 %9993, %v13267_v54   ;;  %v9518_v16 = vpack.c.bf16 %v10044_v45, %v10043_v9  ;;  %15616 = vst [vmem:[#allocation145_spill] sm:$0xff] %v13294_v62 }
 0x861   : > { %15613 = vst [vmem:[#allocation142_spill] sm:$0xff] %v13281_v4  ;;  %3862 = vst.msk [vmem:[#allocation4 + $0xa8] sm:$0xff] %vm2714_vm12, %v13281_v4  ;;  %3643 = vperm.xlu0 %9994, %v13281_v4  }
 0x862   : > { %v3524_v34 = vpop.xlane.xlu1 %3523  ;;  %9519 = vmatprep.subr.bf16.mxu1 %v9518_v16 }
 0x863   : > { %v13292_v42 = vmax.f32 %v13284_v31, %v3524_v34  ;;  %9521 = vmatpush3.bf16.msra.mxu1 %v9518_v16 }
 0x865   : > { %15615 = vst [vmem:[#allocation144_spill] sm:$0xff] %v13292_v42  ;;  %3863 = vst.msk [vmem:[#allocation4 + $0xb0] sm:$0xff] %vm2714_vm12, %v13292_v42  ;;  %3638 = vperm.xlu0 %9994, %v13253_v20  }
 0x866   : > { %v3527_v45 = vpop.xlane.xlu1 %3526 }
 0x867   : > { %v13302_v9 = vmax.f32 %v13294_v62, %v3527_v45 }
 0x869   : > { %3864 = vst.msk [vmem:[#allocation4 + $0xb8] sm:$0xff] %vm2714_vm12, %v13302_v9  ;;  %3653 = vperm.xlu0 %9994, %v13302_v9  }
 0x86a   : > { %v10037_v16 = vpop.permute.xlu1 %10036 }
 0x86b   : > { %v10039_v34 = vunpack.i.h.bf16 %v10037_v16  ;;  %v10038_v54 = vunpack.i.l.bf16 %v10037_v16 }
 0x86d   : > { %3648 = vperm.xlu0 %9994, %v13292_v42   ;;  %v9502_v18 = vpack.c.bf16 %v10039_v34, %v10038_v54 }
 0x86e   : > { %v10052_v31 = vpop.permute.xlu1 %10051 }
 0x86f   : > { %v10054_v20 = vunpack.i.h.bf16 %v10052_v31  ;;  %v10053_v4 = vunpack.i.l.bf16 %v10052_v31  ;;  %9503 = vmatprep.subr.bf16.mxu0 %v9502_v18 }
 0x870   : > { %9505 = vmatpush3.bf16.msra.mxu0 %v9502_v18 }
 0x871   : > { %10086 = vrot.lane.b32.xlu0 %v12436_v30, %s10964_s6  ;;  %v9522_v45 = vpack.c.bf16 %v10054_v20, %v10053_v4 }
 0x872   : > { %v10062_v51 = vpop.permute.xlu1 %10061 }
 0x873   : > { %v10064_v62 = vunpack.i.h.bf16 %v10062_v51  ;;  %v10063_v39 = vunpack.i.l.bf16 %v10062_v51  ;;  %9523 = vmatprep.subr.bf16.mxu1 %v9522_v45 }
 0x874   : > { %9525 = vmatpush3.bf16.msra.mxu1 %v9522_v45  ;;  %v13326_v45 = vld [vmem:[#allocation4 + $0xd8] sm:$0xff] }
 0x875   : > { %10096 = vrot.lane.b32.xlu0 %v12468_v26, %s10964_s6  ;;  %v9526_v16 = vpack.c.bf16 %v10064_v62, %v10063_v39  ;;  %v10493_v39 = vld [vmem:[#allocation2 + $0x8] sm:$0xff]  ;;  %v10495_v62 = vld [vmem:[#allocation2 + $0x18] sm:$0xff] }
 0x876   : > { %v10072_v42 = vpop.permute.xlu1 %10071 }
 0x877   : > { %v10074_v54 = vunpack.i.h.bf16 %v10072_v42  ;;  %v10073_v34 = vunpack.i.l.bf16 %v10072_v42  ;;  %9527 = vmatprep.subr.bf16.mxu1 %v9526_v16  ;;  %v10494_v42 = vld [vmem:[#allocation2 + $0x10] sm:$0xff] }
 0x878   : > { %9529 = vmatpush3.bf16.msra.mxu1 %v9526_v16  ;;  %v10496_v16 = vld [vmem:[#allocation2 + $0x20] sm:$0xff] }
 0x879   : > { %10106 = vrot.lane.b32.xlu0 %v12486_v24, %s10964_s6  ;;  %v9530_v18 = vpack.c.bf16 %v10074_v54, %v10073_v34  ;;  %v13332_v34 = vld [vmem:[#allocation4 + $0xd0] sm:$0xff]  ;;  %v13365_v24 = vld [vmem:[#allocation4 + $0xf8] sm:$0xff] }
 0x87a   : > { %v10082_v31 = vpop.permute.xlu1 %10081  ;;  %15617 = vst [vmem:[#allocation146_spill] sm:$0xff] %v13332_v34  ;;  %15622 = vst [vmem:[#allocation151_spill] sm:$0xff] %v13365_v24 }
 0x87b   : > { %v10084_v20 = vunpack.i.h.bf16 %v10082_v31  ;;  %v10083_v4 = vunpack.i.l.bf16 %v10082_v31  ;;  %9531 = vmatprep.subr.bf16.mxu1 %v9530_v18  ;;  %v10497_v31 = vld [vmem:[#allocation2 + $0x28] sm:$0xff] }
 0x87c   : > { %9533 = vmatpush3.bf16.msra.mxu1 %v9530_v18 }
 0x87d   : > { %v13316_v51 = vpack.c.bf16 %v10084_v20, %v10083_v4  ;;  %4404 = vrot.lane.b32.xlu0 %v12906_v48, %s10964_s6 }
 0x87f   : > { %9560 = vmatprep.subr.msk.bf16.mxu1 %vm12406_vm2, %v13316_v51 }
 0x881   : > { %4406 = vrot.lane.b32.xlu0 %v10493_v39, %s10964_s6  ;;  %v13343_v39 = vld [vmem:[#allocation4 + $0xe8] sm:$0xff] }
 0x885   : > { %4408 = vrot.lane.b32.xlu0 %v10494_v42, %s10964_s6  ;;  %v10499_v42 = vld [vmem:[#allocation2 + $0x38] sm:$0xff] }
 0x889   : > { %4410 = vrot.lane.b32.xlu0 %v10495_v62, %s10964_s6  ;;  %v10498_v62 = vld [vmem:[#allocation2 + $0x30] sm:$0xff] }
 0x88d   : > { %4412 = vrot.lane.b32.xlu0 %v10496_v16, %s10964_s6 }
 0x88e   : > { %v3539_v54 = vpop.xlane.xlu0 %3538 }
 0x88f   : > { %v13330_v48 = vmax.f32 %v13326_v45, %v3539_v54 }
 0x891   : > { %3868 = vst.msk [vmem:[#allocation4 + $0xd8] sm:$0xff] %vm2714_vm12, %v13330_v48  ;;  %4414 = vrot.lane.b32.xlu0 %v10497_v31, %s10964_s6  ;;  %3673 = vperm.xlu1 %9993, %v13330_v48   ;;  %v13354_v31 = vld [vmem:[#allocation4 + $0xe0] sm:$0xff] }
 0x892   : > { %v3536_v20 = vpop.xlane.xlu0 %3535  ;;  %15620 = vst [vmem:[#allocation149_spill] sm:$0xff] %v13354_v31 }
 0x893   : > { %v13341_v4 = vmax.f32 %v13332_v34, %v3536_v20 }
 0x895   : > { %15618 = vst [vmem:[#allocation147_spill] sm:$0xff] %v13341_v4  ;;  %3867 = vst.msk [vmem:[#allocation4 + $0xd0] sm:$0xff] %vm2714_vm12, %v13341_v4  ;;  %4416 = vrot.lane.b32.xlu0 %v10498_v62, %s10964_s6  ;;  %3668 = vperm.xlu1 %9993, %v13341_v4  }
 0x896   : > { %v3545_v16 = vpop.xlane.xlu0 %3544 }
 0x897   : > { %v13352_v54 = vmax.f32 %v13343_v39, %v3545_v16 }
 0x899   : > { %15619 = vst [vmem:[#allocation148_spill] sm:$0xff] %v13352_v54  ;;  %3870 = vst.msk [vmem:[#allocation4 + $0xe8] sm:$0xff] %vm2714_vm12, %v13352_v54  ;;  %4418 = vrot.lane.b32.xlu0 %v10499_v42, %s10964_s6  ;;  %3683 = vperm.xlu1 %9993, %v13352_v54   ;;  %v13375_v42 = vld [vmem:[#allocation4 + $0xf0] sm:$0xff] }
 0x89a   : > { %v3542_v62 = vpop.xlane.xlu0 %3541  ;;  %15624 = vst [vmem:[#allocation153_spill] sm:$0xff] %v13375_v42 }
 0x89b   : > { %v13363_v18 = vmax.f32 %v13354_v31, %v3542_v62 }
 0x89d   : > { %15621 = vst [vmem:[#allocation150_spill] sm:$0xff] %v13363_v18  ;;  %3869 = vst.msk [vmem:[#allocation4 + $0xe0] sm:$0xff] %vm2714_vm12, %v13363_v18  ;;  %3678 = vperm.xlu1 %9993, %v13363_v18  }
 0x89e   : > { %v3551_v20 = vpop.xlane.xlu0 %3550 }
 0x89f   : > { %v13373_v26 = vmax.f32 %v13365_v24, %v3551_v20 }
 0x8a1   : > { %15623 = vst [vmem:[#allocation152_spill] sm:$0xff] %v13373_v26  ;;  %3872 = vst.msk [vmem:[#allocation4 + $0xf8] sm:$0xff] %vm2714_vm12, %v13373_v26  ;;  %3693 = vperm.xlu1 %9993, %v13373_v26  }
 0x8a2   : > { %v3548_v16 = vpop.xlane.xlu0 %3547 }
 0x8a3   : > { %v13383_v30 = vmax.f32 %v13375_v42, %v3548_v16 }
 0x8a5   : > { %3871 = vst.msk [vmem:[#allocation4 + $0xf0] sm:$0xff] %vm2714_vm12, %v13383_v30  ;;  %3688 = vperm.xlu1 %9993, %v13383_v30  }
 0x8a6   : > { %v10047_v20 = vpop.permute.xlu0 %10046 }
 0x8a7   : > { %v10049_v31 = vunpack.i.h.bf16 %v10047_v20  ;;  %v10048_v62 = vunpack.i.l.bf16 %v10047_v20 }
 0x8a9   : > { %10091 = vrot.lane.b32.xlu1 %v12538_v11, %s10964_s6  ;;  %v9506_v24 = vpack.c.bf16 %v10049_v31, %v10048_v62 }
 0x8aa   : > { %v10057_v26 = vpop.permute.xlu0 %10056 }
 0x8ab   : > { %v10059_v4 = vunpack.i.h.bf16 %v10057_v26  ;;  %v10058_v34 = vunpack.i.l.bf16 %v10057_v26  ;;  %9507 = vmatprep.subr.bf16.mxu0 %v9506_v24 }
 0x8ac   : > { %9509 = vmatpush3.bf16.msra.mxu0 %v9506_v24  ;;  %v2650_v24 = vsel %vm2377_vm5, %v12952_v40, 0.0  ;;  %v2665_v40 = vsel %vm2377_vm5, %v13000_v63, 0.0 }
 0x8ad   : > { %10101 = vrot.lane.b32.xlu1 %v12558_v10, %s10964_s6  ;;  %v9510_v16 = vpack.c.bf16 %v10059_v4, %v10058_v34  ;;  %v10500_v34 = vld [vmem:[#allocation2 + $0x48] sm:$0xff]  ;;  %v10502_v4 = vld [vmem:[#allocation2 + $0x58] sm:$0xff] }
 0x8ae   : > { %v10067_v18 = vpop.permute.xlu0 %10066 }
 0x8af   : > { %v10069_v42 = vunpack.i.h.bf16 %v10067_v18  ;;  %v10068_v54 = vunpack.i.l.bf16 %v10067_v18  ;;  %9511 = vmatprep.subr.bf16.mxu0 %v9510_v16  ;;  %v2656_v18 = vsel %vm2377_vm5, %v12980_v15, 0.0 }
 0x8b0   : > { %9513 = vmatpush3.bf16.msra.mxu0 %v9510_v16  ;;  %v2671_v16 = vsel %vm2377_vm5, %v13013_v49, 0.0 }
 0x8b1   : > { %10111 = vrot.lane.b32.xlu1 %v12570_v37, %s10964_s6  ;;  %v9514_v20 = vpack.c.bf16 %v10069_v42, %v10068_v54  ;;  %v10503_v42 = vld [vmem:[#allocation2 + $0x60] sm:$0xff] }
 0x8b2   : > { %v10077_v11 = vpop.permute.xlu0 %10076 }
 0x8b3   : > { %v10079_v31 = vunpack.i.h.bf16 %v10077_v11  ;;  %v10078_v62 = vunpack.i.l.bf16 %v10077_v11  ;;  %9515 = vmatprep.subr.bf16.mxu0 %v9514_v20  ;;  %v10501_v11 = vld [vmem:[#allocation2 + $0x50] sm:$0xff] }
 0x8b4   : > { %9517 = vmatpush3.bf16.msra.mxu0 %v9514_v20 }
 0x8b5   : > { %v9534_v26 = vpack.c.bf16 %v10079_v31, %v10078_v62  ;;  %4573 = vrot.lane.b32.xlu1 %v12928_v1, %s10964_s6  ;;  %v2659_v1 = vsel %vm2377_vm5, %v12989_v14, 0.0  ;;  %v10504_v62 = vld [vmem:[#allocation2 + $0x68] sm:$0xff] }
 0x8b7   : > { %9536 = vmatprep.subr.msk.bf16.mxu0 %vm12406_vm2, %v9534_v26 }
 0x8b8   : > { %2651 = vadd.xlane.f32.xlu0 %v2650_v24 }
 0x8b9   : > { %4575 = vrot.lane.b32.xlu1 %v10500_v34, %s10964_s6 }
 0x8bc   : > { %2657 = vadd.xlane.f32.xlu0 %v2656_v18  ;;  %v2677_v18 = vsel %vm2377_vm5, %v12969_v22, 0.0  ;;  %v2689_v22 = vsel %vm2377_vm5, %v13037_v44, 0.0 }
 0x8bd   : > { %4577 = vrot.lane.b32.xlu1 %v10501_v11, %s10964_s6  ;;  %v10505_v11 = vld [vmem:[#allocation2 + $0x70] sm:$0xff] }
 0x8c0   : > { %2660 = vadd.xlane.f32.xlu0 %v2659_v1 }
 0x8c1   : > { %4579 = vrot.lane.b32.xlu1 %v10502_v4, %s10964_s6  ;;  %v2683_v4 = vsel %vm2377_vm5, %v13026_v59, 0.0 }
 0x8c4   : > { %2666 = vadd.xlane.f32.xlu0 %v2665_v40  ;;  %v3624_v54 = vpop.permute.xlu0 %3623  ;;  %v2695_v40 = vsel %vm2377_vm5, %v13055_v2, 0.0 }
 0x8c5   : > { %4581 = vrot.lane.b32.xlu1 %v10503_v42, %s10964_s6  ;;  %v3697_v15 = vsub.f32 %v13107_v28, %v3624_v54 }
 0x8c7   : > { %v3714_v24 = vmul.f32 1.442695, %v3697_v15 }
 0x8c8   : > { %2672 = vadd.xlane.f32.xlu0 %v2671_v16  ;;  %v3619_v20 = vpop.permute.xlu1 %3618  ;;  %v3634_v14 = vpop.permute.xlu0 %3633 }
 0x8c9   : > { %v3696_v31 = vsub.f32 %v13110_v56, %v3619_v20  ;;  %4583 = vrot.lane.b32.xlu1 %v10504_v62, %s10964_s6  ;;  %v3699_v63 = vsub.f32 %v13115_v57, %v3634_v14  ;;  %v10506_v57 = vld [vmem:[#allocation2 + $0x78] sm:$0xff] }
 0x8cb   : > { %v3712_v34 = vmul.f32 1.442695, %v3696_v31  ;;  %v3718_v56 = vmul.f32 1.442695, %v3699_v63 }
 0x8cc   : > { %2678 = vadd.xlane.f32.xlu0 %v2677_v18  ;;  %v3629_v28 = vpop.permute.xlu0 %3628 }
 0x8cd   : > { %10267 = vpow2.f32 %v3712_v34  ;;  %v3698_v49 = vsub.f32 %v13120_v61, %v3629_v28  ;;  %4585 = vrot.lane.b32.xlu1 %v10505_v11, %s10964_s6 }
 0x8ce   : > { %10269 = vpow2.f32 %v3714_v24 }
 0x8cf   : > { %v3716_v1 = vmul.f32 1.442695, %v3698_v49 }
 0x8d0   : > { %2684 = vadd.xlane.f32.xlu0 %v2683_v4 }
 0x8d1   : > { %10271 = vpow2.f32 %v3716_v1  ;;  %4587 = vrot.lane.b32.xlu1 %v10506_v57, %s10964_s6 }
 0x8d2   : > { %10273 = vpow2.f32 %v3718_v56 }
 0x8d4   : > { %2690 = vadd.xlane.f32.xlu0 %v2689_v22 }
 0x8d7   : > { %v10268_v61 = vpop.eup %10267 }
 0x8d8   : > { %v13429_v54 = vpop.eup %10269  ;;  %2696 = vadd.xlane.f32.xlu0 %v2695_v40  ;;  %9014 = vmatprep.mubr.msk.f32.mxu0 %vm2377_vm5, %v10268_v61  ;;  %v3777_v44 = vsel %vm2377_vm5, %v10268_v61, 0.0 }
 0x8d9   : > { %9015 = vmatmul.mubr.msk.f32.vlgmr.msra.gmra.mrb[56].mxu0 %vm2377_vm5, %v13429_v54 }
 0x8da   : > { %9539 = vmatpush3.bf16.xpose.msk.msra.mxu0 %vm12406_vm2, %v9534_v26 }
 0x8db   : > { %v10272_v59 = vpop.eup %10271  ;;  %v3664_v42 = vpop.permute.xlu1 %3663 }
 0x8dc   : > { %v10274_v15 = vpop.eup %10273  ;;  %v3705_v16 = vsub.f32 %v13136_v41, %v3664_v42  ;;  %3778 = vadd.xlane.f32.xlu0 %v3777_v44  ;;  %9017 = vmatprep.mubr.msk.f32.mxu0 %vm2377_vm5, %v10272_v59  ;;  %v3783_v41 = vsel %vm2377_vm5, %v10272_v59, 0.0  ;;  %v2653_v44 = vsel %vm2377_vm5, %v12956_v60, 0.0 }
 0x8dd   : > { %9018 = vmatmul.mubr.msk.f32.gmra.mrb[58].mxu0 %vm2377_vm5, %v10274_v15  ;;  %v3786_v14 = vsel %vm2377_vm5, %v10274_v15, 0.0 }
 0x8de   : > { %v3730_v2 = vmul.f32 1.442695, %v3705_v16 }
 0x8df   : > { %v3659_v20 = vpop.permute.xlu1 %3658 }
 0x8e0   : > { %v3704_v31 = vsub.f32 %v13139_v17, %v3659_v20  ;;  %3787 = vadd.xlane.f32.xlu0 %v3786_v14  ;;  %v3644_v26 = vpop.permute.xlu0 %3643  ;;  %10275 = vpow2.f32 %v3730_v2  ;;  %v2662_v14 = vsel %vm2377_vm5, %v12991_v25, 0.0 }
 0x8e1   : > { %v3701_v62 = vsub.f32 %v13144_v21, %v3644_v26 }
 0x8e2   : > { %v3728_v24 = vmul.f32 1.442695, %v3704_v31 }
 0x8e3   : > { %v3722_v63 = vmul.f32 1.442695, %v3701_v62 }
 0x8e4   : > { %10277 = vpow2.f32 %v3728_v24  ;;  %3784 = vadd.xlane.f32.xlu0 %v3783_v41  ;;  %v3639_v34 = vpop.permute.xlu0 %3638  ;;  %v2668_v24 = vsel %vm2377_vm5, %v13004_v19, 0.0 }
 0x8e5   : > { %10279 = vpow2.f32 %v3722_v63  ;;  %v3700_v18 = vsub.f32 %v13131_v46, %v3639_v34  ;;  %v2674_v34 = vsel %vm2377_vm5, %v12967_v36, 0.0  ;;  %v15625_v36 = vld [vmem:[#allocation91_spill] sm:$0xff] }
 0x8e7   : > { %v3720_v28 = vmul.f32 1.442695, %v3700_v18  ;;  %v2680_v18 = vsel %vm2377_vm5, %v13024_v53, 0.0 }
 0x8e8   : > { %v3654_v49 = vpop.permute.xlu0 %3653 }
 0x8e9   : > { %10281 = vpow2.f32 %v3720_v28  ;;  %v3703_v17 = vsub.f32 %v13156_v32, %v3654_v49  ;;  %v2686_v49 = vsel %vm2377_vm5, %v13035_v27, 0.0  ;;  %v15628_v27 = vld [vmem:[#allocation92_spill] sm:$0xff] }
 0x8ea   : > { %v10276_v1 = vpop.eup %10275 }
 0x8eb   : > { %v3726_v11 = vmul.f32 1.442695, %v3703_v17  ;;  %v3804_v63 = vsel %vm2377_vm5, %v10276_v1, 0.0 }
 0x8ec   : > { %v3649_v56 = vpop.permute.xlu0 %3648 }
 0x8ed   : > { %10283 = vpow2.f32 %v3726_v11  ;;  %v3702_v21 = vsub.f32 %v13149_v0, %v3649_v56  ;;  %v2692_v11 = vsel %vm2377_vm5, %v13052_v52, 0.0 }
 0x8ee   : > { %v13447_v4 = vpop.eup %10277 }
 0x8ef   : > { %v10280_v57 = vpop.eup %10279  ;;  %v3724_v22 = vmul.f32 1.442695, %v3702_v21  ;;  %9042 = vmatprep.mubr.msk.f32.mxu1 %vm2377_vm5, %v13447_v4 }
 0x8f0   : > { %v10087_v61 = vpop.permute.xlu0 %10086  ;;  %9043 = vmatmul.mubr.msk.f32.vlgmr.msra.gmra.mrb[56].mxu1 %vm2377_vm5, %v10276_v1  ;;  %v3792_v46 = vsel %vm2377_vm5, %v10280_v57, 0.0  ;;  %v15626_v1 = vld [vmem:[#allocation93_spill] sm:$0xff] }
 0x8f1   : > { %10285 = vpow2.f32 %v3724_v22  ;;  %v10089_v32 = vunpack.i.h.bf16 %v10087_v61  ;;  %v10088_v40 = vunpack.i.l.bf16 %v10087_v61  ;;  %9563 = vmatpush3.bf16.xpose.msk.msra.mxu1 %vm12406_vm2, %v13316_v51  ;;  %3793 = vadd.xlane.f32.xlu0 %v3792_v46  ;;  %v15627_v53 = vsub.f32 %v15625_v36, %v15626_v1  ;;  %v15629_v46 = vld [vmem:[#allocation94_spill] sm:$0xff]  ;;  %v15638_v36 = vld [vmem:[#allocation97_spill] sm:$0xff]  ;;  %v15639_v1 = vld [vmem:[#allocation99_spill] sm:$0xff] }
 0x8f2   : > { %v15630_v52 = vsub.f32 %v15628_v27, %v15629_v46 }
 0x8f3   : > { %v13456_v0 = vpop.eup %10281  ;;  %v9540_v59 = vpack.c.bf16 %v10089_v32, %v10088_v40  ;;  %v2458_v21 = vmul.f32 1.442695, %v15627_v53  ;;  %v15640_v53 = vsub.f32 %v15638_v36, %v15639_v1  ;;  %v2620_v36 = vld [vmem:[#allocation5 + $0x10] sm:$0xff] }
 0x8f4   : > { %v10097_v42 = vpop.permute.xlu0 %10096  ;;  %9020 = vmatprep.mubr.msk.f32.mxu0 %vm2377_vm5, %v13456_v0  ;;  %v2462_v32 = vmul.f32 1.442695, %v15630_v52 }
 0x8f5   : > { %v10099_v15 = vunpack.i.h.bf16 %v10097_v42  ;;  %v10098_v16 = vunpack.i.l.bf16 %v10097_v42  ;;  %2654 = vadd.xlane.f32.xlu1 %v2653_v44  ;;  %9021 = vmatmul.mubr.msk.f32.gmra.mrb[60].mxu0 %vm2377_vm5, %v10280_v57  ;;  %10287 = vpow2.f32 %v2458_v21  ;;  %v2476_v21 = vmul.f32 1.442695, %v15640_v53 }
 0x8f6   : > { %9542 = vmatprep.subr.msk.bf16.mxu0 %vm12406_vm2, %v9540_v59 }
 0x8f7   : > { %v10284_v51 = vpop.eup %10283  ;;  %v9546_v2 = vpack.c.bf16 %v10099_v15, %v10098_v16  ;;  %9545 = vmatpush3.bf16.xpose.msk.msra.mxu0 %vm12406_vm2, %v9540_v59  ;;  %v15631_v15 = vld [vmem:[#allocation95_spill] sm:$0xff] }
 0x8f8   : > { %v10107_v20 = vpop.permute.xlu0 %10106  ;;  %v3798_v31 = vsel %vm2377_vm5, %v10284_v51, 0.0 }
 0x8f9   : > { %2663 = vadd.xlane.f32.xlu1 %v2662_v14  ;;  %3799 = vadd.xlane.f32.xlu0 %v3798_v31  ;;  %v10109_v60 = vunpack.i.h.bf16 %v10107_v20  ;;  %v10108_v26 = vunpack.i.l.bf16 %v10107_v20 }
 0x8fa   : > { %9548 = vmatprep.subr.msk.bf16.mxu0 %vm12406_vm2, %v9546_v2 }
 0x8fb   : > { %v13472_v62 = vpop.eup %10285  ;;  %v9552_v41 = vpack.c.bf16 %v10109_v60, %v10108_v26  ;;  %v15634_v60 = vld [vmem:[#allocation105_spill] sm:$0xff] }
 0x8fc   : > { %9023 = vmatprep.mubr.msk.f32.mxu0 %vm2377_vm5, %v13472_v62  ;;  %v4405_v25 = vpop.permute.xlu0 %4404 }
 0x8fd   : > { %2669 = vadd.xlane.f32.xlu1 %v2668_v24  ;;  %3805 = vadd.xlane.f32.xlu0 %v3804_v63 }
 0x8fe   : > { %9024 = vmatmul.mubr.msk.f32.gmra.mrb[62].mxu0 %vm2377_vm5, %v10284_v51 }
 0x8ff   : > { %9551 = vmatpush3.bf16.xpose.msk.msra.mxu0 %vm12406_vm2, %v9546_v2  ;;  %9070 = vmatprep.mubr.msk.f32.mxu0 %vm2054_vm1, %v4405_v25 }
 0x900   : > { %9554 = vmatprep.subr.msk.bf16.mxu0 %vm12406_vm2, %v9552_v41  ;;  %v4407_v19 = vpop.permute.xlu0 %4406 }
 0x901   : > { %2675 = vadd.xlane.f32.xlu1 %v2674_v34 }
 0x904   : > { %v4409_v28 = vpop.permute.xlu0 %4408 }
 0x905   : > { %2681 = vadd.xlane.f32.xlu1 %v2680_v18 }
 0x907   : > { %9557 = vmatpush3.bf16.xpose.msk.msra.mxu0 %vm12406_vm2, %v9552_v41  ;;  %v13517_v41 = vpop.eup %10287 }
 0x908   : > { %v4411_v17 = vpop.permute.xlu0 %4410 }
 0x909   : > { %2687 = vadd.xlane.f32.xlu1 %v2686_v49 }
 0x90c   : > { %v4413_v56 = vpop.permute.xlu0 %4412 }
 0x90d   : > { %2693 = vadd.xlane.f32.xlu1 %v2692_v11 }
 0x90e   : > { %9071 = vmatmul.mubr.msk.f32.vlgmr.msra.gmra.mrb[64].mxu0 %vm2054_vm1, %v4407_v19 }
 0x90f   : > { %9073 = vmatprep.mubr.msk.f32.mxu0 %vm2054_vm1, %v4409_v28 }
 0x910   : > { %v3674_v57 = vpop.permute.xlu1 %3673  ;;  %v4415_v22 = vpop.permute.xlu0 %4414 }
 0x911   : > { %v3707_v61 = vsub.f32 %v13173_v38, %v3674_v57  ;;  %v15632_v38 = vld [vmem:[#allocation96_spill] sm:$0xff] }
 0x912   : > { %9074 = vmatmul.mubr.msk.f32.gmra.mrb[66].mxu0 %vm2054_vm1, %v4411_v17  ;;  %v15633_v16 = vsub.f32 %v15631_v15, %v15632_v38 }
 0x913   : > { %v3734_v40 = vmul.f32 1.442695, %v3707_v61  ;;  %9076 = vmatprep.mubr.msk.f32.mxu0 %vm2054_vm1, %v4413_v56  ;;  %v15641_v61 = vld [vmem:[#allocation101_spill] sm:$0xff] }
 0x914   : > { %v3669_v59 = vpop.permute.xlu1 %3668  ;;  %v4417_v42 = vpop.permute.xlu0 %4416  ;;  %v2464_v51 = vmul.f32 1.442695, %v15633_v16  ;;  %v15642_v27 = vsub.f32 %v15641_v61, %v12801_v33  ;;  %v15643_v33 = vsub.f32 %v12826_v5, %v12841_v58 }
 0x915   : > { %10289 = vpow2.f32 %v3734_v40  ;;  %v3706_v44 = vsub.f32 %v13176_v47, %v3669_v59  ;;  %v15635_v47 = vld [vmem:[#allocation107_spill] sm:$0xff] }
 0x916   : > { %9077 = vmatmul.mubr.msk.f32.gmra.mrb[68].mxu0 %vm2054_vm1, %v4415_v22  ;;  %10291 = vpow2.f32 %v2462_v32  ;;  %v15636_v26 = vsub.f32 %v15634_v60, %v15635_v47  ;;  %v2480_v46 = vmul.f32 1.442695, %v15642_v27  ;;  %v2484_v15 = vmul.f32 1.442695, %v15643_v33  ;;  %v2623_v27 = vld [vmem:[#allocation5 + $0x28] sm:$0xff] }
 0x917   : > { %v3732_v2 = vmul.f32 1.442695, %v3706_v44  ;;  %9079 = vmatprep.mubr.msk.f32.mxu0 %vm2054_vm1, %v4417_v42 }
 0x918   : > { %v3684_v20 = vpop.permute.xlu1 %3683  ;;  %v4419_v14 = vpop.permute.xlu0 %4418  ;;  %v2468_v24 = vmul.f32 1.442695, %v15636_v26 }
 0x919   : > { %10293 = vpow2.f32 %v3732_v2  ;;  %v3709_v31 = vsub.f32 %v13181_v3, %v3684_v20  ;;  %v15637_v3 = vsub.f32 %v12850_v55, %v12865_v7 }
 0x91a   : > { %9080 = vmatmul.mubr.msk.f32.gmra.mrb[70].mxu0 %vm2054_vm1, %v4419_v14  ;;  %10295 = vpow2.f32 %v2464_v51 }
 0x91b   : > { %v3738_v63 = vmul.f32 1.442695, %v3709_v31  ;;  %v2472_v18 = vmul.f32 1.442695, %v15637_v3 }
 0x91c   : > { %v3679_v25 = vpop.permute.xlu1 %3678 }
 0x91d   : > { %10297 = vpow2.f32 %v3738_v63  ;;  %v3708_v34 = vsub.f32 %v13186_v6, %v3679_v25 }
 0x91e   : > { %2765 = vperm.xlu1 %9993, %v13517_v41   ;;  %10299 = vpow2.f32 %v2468_v24 }
 0x91f   : > { %v10290_v19 = vpop.eup %10289  ;;  %v3736_v28 = vmul.f32 1.442695, %v3708_v34 }
 0x920   : > { %v3694_v49 = vpop.permute.xlu1 %3693  ;;  %v3810_v17 = vsel %vm2377_vm5, %v10290_v19, 0.0  ;;  %v13525_v11 = vpop.eup %10291 }
 0x921   : > { %10301 = vpow2.f32 %v3736_v28  ;;  %3811 = vadd.xlane.f32.xlu0 %v3810_v17  ;;  %v3711_v56 = vsub.f32 %v13191_v35, %v3694_v49  ;;  %v2618_v28 = vld [vmem:[#allocation5] sm:$0xff]  ;;  %v2636_v53 = vmul.f32 %v13525_v11, %v2620_v36 }
 0x922   : > { %2775 = vperm.xlu1 %9993, %v13525_v11   ;;  %10303 = vpow2.f32 %v2472_v18  ;;  %v2634_v49 = vmul.f32 %v13517_v41, %v2618_v28 }
 0x923   : > { %v13529_v6 = vpop.eup %10293  ;;  %v3742_v35 = vmul.f32 1.442695, %v3711_v56  ;;  %10305 = vpow2.f32 %v2476_v21 }
 0x924   : > { %v3689_v7 = vpop.permute.xlu1 %3688  ;;  %9045 = vmatprep.mubr.msk.f32.mxu1 %vm2377_vm5, %v13529_v6  ;;  %v13536_v55 = vpop.eup %10295 }
 0x925   : > { %v3710_v57 = vsub.f32 %v13196_v8, %v3689_v7  ;;  %9046 = vmatmul.mubr.msk.f32.gmra.mrb[58].mxu1 %vm2377_vm5, %v10290_v19 }
 0x926   : > { %2780 = vperm.xlu1 %9993, %v13536_v55  }
 0x927   : > { %v10298_v22 = vpop.eup %10297  ;;  %v3740_v52 = vmul.f32 1.442695, %v3710_v57  ;;  %v2621_v57 = vld [vmem:[#allocation5 + $0x18] sm:$0xff] }
 0x928   : > { %v10092_v32 = vpop.permute.xlu1 %10091  ;;  %v3816_v40 = vsel %vm2377_vm5, %v10298_v22, 0.0  ;;  %v13545_v59 = vpop.eup %10299  ;;  %v2637_v41 = vmul.f32 %v13536_v55, %v2621_v57  ;;  %v15644_v55 = vsub.f32 %v12883_v43, %v12893_v23  ;;  %v15646_v43 = vld [vmem:[#allocation132_spill] sm:$0xff] }
 0x929   : > { %10307 = vpow2.f32 %v3740_v52  ;;  %v10094_v42 = vunpack.i.h.bf16 %v10092_v32  ;;  %v10093_v8 = vunpack.i.l.bf16 %v10092_v32  ;;  %3817 = vadd.xlane.f32.xlu0 %v3816_v40  ;;  %v2639_v11 = vmul.f32 %v13545_v59, %v2623_v27  ;;  %v2625_v40 = vld [vmem:[#allocation5 + $0x38] sm:$0xff] }
 0x92a   : > { %10309 = vpow2.f32 %v3742_v35  ;;  %2790 = vperm.xlu1 %9993, %v13545_v59   ;;  %v15645_v59 = vsub.f32 %v13217_v50, %v13228_v29  ;;  %v15647_v23 = vsub.f32 %v13215_v13, %v15646_v43  ;;  %v2631_v50 = vld [vmem:[#allocation5 + $0x68] sm:$0xff]  ;;  %v15652_v27 = vld [vmem:[#allocation142_spill] sm:$0xff] }
 0x92b   : > { %v13548_v44 = vpop.eup %10301  ;;  %10311 = vpow2.f32 %v2480_v46  ;;  %v9564_v38 = vpack.c.bf16 %v10094_v42, %v10093_v8  ;;  %v2488_v8 = vmul.f32 1.442695, %v15644_v55 }
 0x92c   : > { %v10102_v16 = vpop.permute.xlu1 %10101  ;;  %9048 = vmatprep.mubr.msk.f32.mxu1 %vm2377_vm5, %v13548_v44  ;;  %v13555_v51 = vpop.eup %10303  ;;  %10313 = vpow2.f32 %v2484_v15 }
 0x92d   : > { %v10104_v2 = vunpack.i.h.bf16 %v10102_v16  ;;  %v10103_v20 = vunpack.i.l.bf16 %v10102_v16  ;;  %9049 = vmatmul.mubr.msk.f32.gmra.mrb[60].mxu1 %vm2377_vm5, %v10298_v22  ;;  %9566 = vmatprep.subr.msk.bf16.mxu1 %vm12406_vm2, %v9564_v38  ;;  %v10306_v14 = vpop.eup %10305  ;;  %v2641_v33 = vmul.f32 %v13555_v51, %v2625_v40  ;;  %10315 = vpow2.f32 %v2488_v8  ;;  %v15655_v8 = vld [vmem:[#allocation90_spill] sm:$0xff] }
 0x92e   : > { %2800 = vperm.xlu1 %9993, %v13555_v51   ;;  %9569 = vmatpush3.bf16.xpose.msk.msra.mxu1 %vm12406_vm2, %v9564_v38  ;;  %v2627_v38 = vld [vmem:[#allocation5 + $0x48] sm:$0xff]  ;;  %v3807_v40 = vsel %vm2377_vm5, %v13529_v6, 0.0  ;;  %v15658_v6 = vld [vmem:[#allocation103_spill] sm:$0xff] }
 0x92f   : > { %v9570_v58 = vpack.c.bf16 %v10104_v2, %v10103_v20  ;;  %v3584_v2 = vmul.f32 1.442695, %v15645_v59  ;;  %v2643_v20 = vmul.f32 %v10306_v14, %v2627_v38  ;;  %v3813_v59 = vsel %vm2377_vm5, %v13548_v44, 0.0  ;;  %v15663_v44 = vld [vmem:[#allocation109_spill] sm:$0xff] }
 0x930   : > { %v10112_v5 = vpop.permute.xlu1 %10111 }
 0x931   : > { %v10114_v31 = vunpack.i.h.bf16 %v10112_v5  ;;  %v10113_v60 = vunpack.i.l.bf16 %v10112_v5  ;;  %9572 = vmatprep.subr.msk.bf16.mxu1 %vm12406_vm2, %v9570_v58  ;;  %v2629_v5 = vld [vmem:[#allocation5 + $0x58] sm:$0xff]  ;;  %10317 = vpow2.f32 %v3584_v2 }
 0x932   : > { %2810 = vperm.xlu1 %9993, %v10306_v14   ;;  %v15648_v14 = vld [vmem:[#allocation133_spill] sm:$0xff] }
 0x933   : > { %v13565_v47 = vpop.eup %10307  ;;  %v9576_v25 = vpack.c.bf16 %v10114_v31, %v10113_v60  ;;  %v3590_v60 = vmul.f32 1.442695, %v15647_v23 }
 0x934   : > { %v13567_v26 = vpop.eup %10309  ;;  %9051 = vmatprep.mubr.msk.f32.mxu1 %vm2377_vm5, %v13565_v47  ;;  %v4574_v24 = vpop.permute.xlu1 %4573 }
 0x935   : > { %v10312_v63 = vpop.eup %10311  ;;  %9052 = vmatmul.mubr.msk.f32.gmra.mrb[62].mxu1 %vm2377_vm5, %v13567_v26  ;;  %10319 = vpow2.f32 %v3590_v60  ;;  %v3819_v60 = vsel %vm2377_vm5, %v13565_v47, 0.0 }
 0x936   : > { %2820 = vperm.xlu1 %9993, %v10312_v63   ;;  %9575 = vmatpush3.bf16.xpose.msk.msra.mxu1 %vm12406_vm2, %v9570_v58  ;;  %v10314_v19 = vpop.eup %10313  ;;  %v2645_v51 = vmul.f32 %v10312_v63, %v2629_v5  ;;  %v3789_v63 = vsel %vm2377_vm5, %v13456_v0, 0.0 }
 0x937   : > { %9578 = vmatprep.subr.msk.bf16.mxu1 %vm12406_vm2, %v9576_v25  ;;  %9098 = vmatprep.mubr.msk.f32.mxu1 %vm2054_vm1, %v4574_v24  ;;  %v2647_v13 = vmul.f32 %v10314_v19, %v2631_v50  ;;  %v13613_v28 = vpop.eup %10315  ;;  %v15665_v50 = vld [vmem:[#allocation137_spill] sm:$0xff] }
 0x938   : > { %v4576_v34 = vpop.permute.xlu1 %4575 }
 0x93a   : > { %2830 = vperm.xlu1 %9993, %v10314_v19   ;;  %v3795_v19 = vsel %vm2377_vm5, %v13472_v62, 0.0 }
 0x93b   : > { %v13619_v36 = vpop.eup %10317 }
 0x93c   : > { %v4578_v3 = vpop.permute.xlu1 %4577 }
 0x93e   : > { %9581 = vmatpush3.bf16.xpose.msk.msra.mxu1 %vm12406_vm2, %v9576_v25  ;;  %v3780_v25 = vsel %vm2377_vm5, %v13429_v54, 0.0 }
 0x940   : > { %v4580_v18 = vpop.permute.xlu1 %4579 }
 0x944   : > { %v4582_v17 = vpop.permute.xlu1 %4581 }
 0x945   : > { %v2652_v56 = vpop.xlane.xlu0 %2651  ;;  %9099 = vmatmul.mubr.msk.f32.vlgmr.msra.gmra.mrb[64].mxu1 %vm2054_vm1, %v4576_v34  ;;  %v15649_v34 = vld [vmem:[#allocation134_spill] sm:$0xff] }
 0x946   : > { %v2698_v1 = vadd.f32 %v2652_v56, %v2634_v49  ;;  %9101 = vmatprep.mubr.msk.f32.mxu1 %vm2054_vm1, %v4578_v3  ;;  %v15650_v3 = vsub.f32 %v15648_v14, %v15649_v34 }
 0x948   : > { %2715 = vst.msk [vmem:[#allocation5] sm:$0xff] %vm2714_vm12, %v2698_v1  ;;  %v4584_v21 = vpop.permute.xlu1 %4583 }
 0x949   : > { %v2658_v7 = vpop.xlane.xlu0 %2657  ;;  %9102 = vmatmul.mubr.msk.f32.gmra.mrb[66].mxu1 %vm2054_vm1, %v4580_v18  ;;  %v3588_v18 = vmul.f32 1.442695, %v15650_v3 }
 0x94a   : > { %v2700_v35 = vadd.f32 %v2658_v7, %v2636_v53  ;;  %9104 = vmatprep.mubr.msk.f32.mxu1 %vm2054_vm1, %v4582_v17  ;;  %v2633_v17 = vld [vmem:[#allocation5 + $0x78] sm:$0xff]  ;;  %v3745_v53 = vld [vmem:[#allocation5 + $0x80] sm:$0xff]  ;;  %v13625_v7 = vpop.eup %10319 }
 0x94b   : > { %10321 = vpow2.f32 %v3588_v18  ;;  %v2649_v54 = vmul.f32 %v13613_v28, %v2633_v17  ;;  %v3761_v0 = vmul.f32 %v13619_v36, %v3745_v53  ;;  %v15668_v18 = vld [vmem:[#allocation98_spill] sm:$0xff] }
 0x94c   : > { %2717 = vst.msk [vmem:[#allocation5 + $0x10] sm:$0xff] %vm2714_vm12, %v2700_v35  ;;  %v4586_v22 = vpop.permute.xlu1 %4585  ;;  %v3801_v35 = vsel %vm2377_vm5, %v13447_v4, 0.0  ;;  %v15654_v4 = vld [vmem:[#allocation89_spill] sm:$0xff]  ;;  %v15672_v53 = vld [vmem:[#allocation106_spill] sm:$0xff] }
 0x94d   : > { %v2661_v61 = vpop.xlane.xlu0 %2660  ;;  %9105 = vmatmul.mubr.msk.f32.gmra.mrb[68].mxu1 %vm2054_vm1, %v4584_v21 }
 0x94e   : > { %v2701_v46 = vadd.f32 %v2661_v61, %v2637_v41  ;;  %9107 = vmatprep.mubr.msk.f32.mxu1 %vm2054_vm1, %v4586_v22  ;;  %v3748_v41 = vld [vmem:[#allocation5 + $0x98] sm:$0xff]  ;;  %v15651_v61 = vld [vmem:[#allocation141_spill] sm:$0xff] }
 0x950   : > { %2718 = vst.msk [vmem:[#allocation5 + $0x18] sm:$0xff] %vm2714_vm12, %v2701_v46  ;;  %v4588_v52 = vpop.permute.xlu1 %4587  ;;  %v15653_v46 = vsub.f32 %v15651_v61, %v15652_v27  ;;  %v2622_v61 = vld [vmem:[#allocation5 + $0x20] sm:$0xff]  ;;  %v3752_v27 = vld [vmem:[#allocation5 + $0xb8] sm:$0xff] }
 0x951   : > { %v2667_v32 = vpop.xlane.xlu0 %2666  ;;  %9108 = vmatmul.mubr.msk.f32.gmra.mrb[70].mxu1 %vm2054_vm1, %v4588_v52 }
 0x952   : > { %v2703_v42 = vadd.f32 %v2667_v32, %v2639_v11  ;;  %v3594_v62 = vmul.f32 1.442695, %v15653_v46  ;;  %v3764_v11 = vmul.f32 %v13625_v7, %v3748_v41 }
 0x954   : > { %2720 = vst.msk [vmem:[#allocation5 + $0x28] sm:$0xff] %vm2714_vm12, %v2703_v42  ;;  %v3747_v42 = vld [vmem:[#allocation5 + $0x90] sm:$0xff]  ;;  %10323 = vpow2.f32 %v3594_v62  ;;  %v15674_v62 = vld [vmem:[#allocation110_spill] sm:$0xff] }
 0x955   : > { %v2673_v15 = vpop.xlane.xlu0 %2672  ;;  %v13634_v52 = vpop.eup %10321 }
 0x956   : > { %v2705_v16 = vadd.f32 %v2673_v15, %v2641_v33  ;;  %v15656_v33 = vsub.f32 %v15654_v4, %v15655_v8  ;;  %v3763_v38 = vmul.f32 %v13634_v52, %v3747_v42 }
 0x958   : > { %2722 = vst.msk [vmem:[#allocation5 + $0x38] sm:$0xff] %vm2714_vm12, %v2705_v16  ;;  %v2460_v15 = vmul.f32 1.442695, %v15656_v33 }
 0x959   : > { %v2679_v58 = vpop.xlane.xlu0 %2678 }
 0x95a   : > { %v2707_v31 = vadd.f32 %v2679_v58, %v2643_v20  ;;  %v15657_v20 = vld [vmem:[#allocation102_spill] sm:$0xff]  ;;  %10325 = vpow2.f32 %v2460_v15 }
 0x95b   : > { %v15659_v58 = vsub.f32 %v15657_v20, %v15658_v6  ;;  %v15677_v20 = vld [vmem:[#allocation112_spill] sm:$0xff]  ;;  %v15678_v6 = vld [vmem:[#allocation113_spill] sm:$0xff] }
 0x95c   : > { %2724 = vst.msk [vmem:[#allocation5 + $0x48] sm:$0xff] %vm2714_vm12, %v2707_v31  ;;  %v15660_v31 = vld [vmem:[#allocation145_spill] sm:$0xff] }
 0x95d   : > { %v2685_v24 = vpop.xlane.xlu0 %2684  ;;  %v2466_v5 = vmul.f32 1.442695, %v15659_v58  ;;  %v15661_v43 = vsub.f32 %v15660_v31, %v13302_v9  ;;  %v3750_v9 = vld [vmem:[#allocation5 + $0xa8] sm:$0xff]  ;;  %v15679_v58 = vsub.f32 %v15677_v20, %v15678_v6  ;;  %v15685_v6 = vld [vmem:[#allocation118_spill] sm:$0xff] }
 0x95e   : > { %v2709_v29 = vadd.f32 %v2685_v24, %v2645_v51  ;;  %3781 = vadd.xlane.f32.xlu1 %v3780_v25  ;;  %v15662_v51 = vld [vmem:[#allocation108_spill] sm:$0xff]  ;;  %v13660_v3 = vpop.eup %10323 }
 0x95f   : > { %v3598_v23 = vmul.f32 1.442695, %v15661_v43  ;;  %10327 = vpow2.f32 %v2466_v5  ;;  %v15664_v24 = vsub.f32 %v15662_v51, %v15663_v44  ;;  %v3766_v47 = vmul.f32 %v13660_v3, %v3750_v9  ;;  %v2626_v44 = vld [vmem:[#allocation5 + $0x40] sm:$0xff]  ;;  %v2752_v20 = vld [vmem:[#allocation3 + $0x28] sm:$0xff] }
 0x960   : > { %2726 = vst.msk [vmem:[#allocation5 + $0x58] sm:$0xff] %vm2714_vm12, %v2709_v29  ;;  %v15666_v29 = vld [vmem:[#allocation139_spill] sm:$0xff]  ;;  %v2486_v5 = vmul.f32 1.442695, %v15679_v58 }
 0x961   : > { %v2691_v49 = vpop.xlane.xlu0 %2690  ;;  %v2470_v25 = vmul.f32 1.442695, %v15664_v24  ;;  %v15667_v14 = vsub.f32 %v15665_v50, %v15666_v29  ;;  %10329 = vpow2.f32 %v3598_v23 }
 0x962   : > { %v2711_v56 = vadd.f32 %v2691_v49, %v2647_v13  ;;  %3790 = vadd.xlane.f32.xlu1 %v3789_v63  ;;  %v15669_v13 = vld [vmem:[#allocation100_spill] sm:$0xff] }
 0x963   : > { %v3602_v34 = vmul.f32 1.442695, %v15667_v14  ;;  %10331 = vpow2.f32 %v2470_v25  ;;  %v15670_v49 = vsub.f32 %v15668_v18, %v15669_v13 }
 0x964   : > { %2728 = vst.msk [vmem:[#allocation5 + $0x68] sm:$0xff] %vm2714_vm12, %v2711_v56  ;;  %v13666_v17 = vpop.eup %10325 }
 0x965   : > { %v2697_v1 = vpop.xlane.xlu0 %2696  ;;  %v2474_v63 = vmul.f32 1.442695, %v15670_v49  ;;  %10333 = vpow2.f32 %v3602_v34  ;;  %v2628_v34 = vld [vmem:[#allocation5 + $0x50] sm:$0xff] }
 0x966   : > { %v2713_v21 = vadd.f32 %v2697_v1, %v2649_v54  ;;  %3796 = vadd.xlane.f32.xlu1 %v3795_v19  ;;  %v2619_v54 = vld [vmem:[#allocation5 + $0x8] sm:$0xff] }
 0x967   : > { %10335 = vpow2.f32 %v2474_v63  ;;  %v15671_v19 = vld [vmem:[#allocation104_spill] sm:$0xff]  ;;  %v2630_v63 = vld [vmem:[#allocation5 + $0x60] sm:$0xff] }
 0x968   : > { %2730 = vst.msk [vmem:[#allocation5 + $0x78] sm:$0xff] %vm2714_vm12, %v2713_v21  ;;  %v15673_v21 = vsub.f32 %v15671_v19, %v15672_v53  ;;  %v2632_v19 = vld [vmem:[#allocation5 + $0x70] sm:$0xff] }
 0x969   : > { %v3779_v57 = vpop.xlane.xlu0 %3778 }
 0x96a   : > { %v3825_v22 = vadd.f32 %v3779_v57, %v3761_v0  ;;  %3802 = vadd.xlane.f32.xlu1 %v3801_v35  ;;  %v2478_v0 = vmul.f32 1.442695, %v15673_v21  ;;  %v13671_v57 = vpop.eup %10327  ;;  %v2635_v35 = vmul.f32 %v13666_v17, %v2619_v54 }
 0x96b   : > { %v13675_v41 = vpop.eup %10329 }
 0x96c   : > { %3841 = vst.msk [vmem:[#allocation5 + $0x80] sm:$0xff] %vm2714_vm12, %v3825_v22  ;;  %10337 = vpow2.f32 %v2478_v0  ;;  %v3768_v4 = vmul.f32 %v13675_v41, %v3752_v27  ;;  %v2747_v27 = vld [vmem:[#allocation3] sm:$0xff] }
 0x96d   : > { %v3788_v32 = vpop.xlane.xlu0 %3787  ;;  %v13680_v42 = vpop.eup %10331 }
 0x96e   : > { %v3828_v55 = vadd.f32 %v3788_v32, %v3764_v11  ;;  %3808 = vadd.xlane.f32.xlu1 %v3807_v40  ;;  %v15675_v11 = vld [vmem:[#allocation111_spill] sm:$0xff] }
 0x96f   : > { %v15676_v32 = vsub.f32 %v15674_v62, %v15675_v11  ;;  %v13685_v8 = vpop.eup %10333  ;;  %v2749_v11 = vld [vmem:[#allocation3 + $0x10] sm:$0xff] }
 0x970   : > { %3844 = vst.msk [vmem:[#allocation5 + $0x98] sm:$0xff] %vm2714_vm12, %v3828_v55  ;;  %v2638_v55 = vmul.f32 %v13671_v57, %v2622_v61 }
 0x971   : > { %v3785_v16 = vpop.xlane.xlu0 %3784  ;;  %v2482_v40 = vmul.f32 1.442695, %v15676_v32  ;;  %v13694_v23 = vpop.eup %10335  ;;  %v15681_v32 = vld [vmem:[#allocation115_spill] sm:$0xff] }
 0x972   : > { %v3827_v2 = vadd.f32 %v3785_v16, %v3763_v38  ;;  %3814 = vadd.xlane.f32.xlu1 %v3813_v59  ;;  %v2624_v38 = vld [vmem:[#allocation5 + $0x30] sm:$0xff]  ;;  %v3754_v16 = vld [vmem:[#allocation5 + $0xc8] sm:$0xff]  ;;  %v2642_v50 = vmul.f32 %v13694_v23, %v2626_v44 }
 0x973   : > { %10339 = vpow2.f32 %v2482_v40  ;;  %v2640_v31 = vmul.f32 %v13680_v42, %v2624_v38  ;;  %v3770_v43 = vmul.f32 %v13685_v8, %v3754_v16  ;;  %v2750_v16 = vld [vmem:[#allocation3 + $0x18] sm:$0xff]  ;;  %v15686_v44 = vld [vmem:[#allocation120_spill] sm:$0xff] }
 0x974   : > { %3843 = vst.msk [vmem:[#allocation5 + $0x90] sm:$0xff] %vm2714_vm12, %v3827_v2  ;;  %10341 = vpow2.f32 %v2486_v5 }
 0x976   : > { %3820 = vadd.xlane.f32.xlu1 %v3819_v60  ;;  %v13699_v29 = vpop.eup %10337 }
 0x977   : > { %v2644_v18 = vmul.f32 %v13699_v29, %v2628_v34 }
 0x97d   : > { %v13703_v13 = vpop.eup %10339 }
 0x97e   : > { %v3794_v56 = vpop.xlane.xlu0 %3793  ;;  %v13707_v54 = vpop.eup %10341 }
 0x97f   : > { %v3830_v1 = vadd.f32 %v3794_v56, %v3766_v47  ;;  %v2646_v56 = vmul.f32 %v13703_v13, %v2630_v63  ;;  %v2648_v21 = vmul.f32 %v13707_v54, %v2632_v19  ;;  %v2756_v63 = vld [vmem:[#allocation3 + $0x48] sm:$0xff] }
 0x981   : > { %3846 = vst.msk [vmem:[#allocation5 + $0xa8] sm:$0xff] %vm2714_vm12, %v3830_v1 }
 0x982   : > { %v2655_v22 = vpop.xlane.xlu1 %2654 }
 0x983   : > { %v2699_v46 = vadd.f32 %v2655_v22, %v2635_v35  ;;  %v15680_v22 = vsub.f32 %v13326_v45, %v13330_v48  ;;  %v15684_v45 = vld [vmem:[#allocation119_spill] sm:$0xff] }
 0x985   : > { %2716 = vst.msk [vmem:[#allocation5 + $0x8] sm:$0xff] %vm2714_vm12, %v2699_v46  ;;  %v3606_v61 = vmul.f32 1.442695, %v15680_v22  ;;  %v15688_v22 = vld [vmem:[#allocation116_spill] sm:$0xff] }
 0x986   : > { %v2664_v33 = vpop.xlane.xlu1 %2663  ;;  %v3800_v15 = vpop.xlane.xlu0 %3799 }
 0x987   : > { %v2702_v59 = vadd.f32 %v2664_v33, %v2638_v55  ;;  %v3832_v2 = vadd.f32 %v3800_v15, %v3768_v4  ;;  %10343 = vpow2.f32 %v3606_v61  ;;  %v15682_v33 = vld [vmem:[#allocation148_spill] sm:$0xff] }
 0x988   : > { %v15683_v15 = vsub.f32 %v13343_v39, %v15682_v33 }
 0x989   : > { %2719 = vst.msk [vmem:[#allocation5 + $0x20] sm:$0xff] %vm2714_vm12, %v2702_v59  ;;  %3848 = vst.msk [vmem:[#allocation5 + $0xb8] sm:$0xff] %vm2714_vm12, %v3832_v2 }
 0x98a   : > { %v2670_v60 = vpop.xlane.xlu1 %2669  ;;  %v3806_v51 = vpop.xlane.xlu0 %3805  ;;  %v3610_v38 = vmul.f32 1.442695, %v15683_v15 }
 0x98b   : > { %v2704_v24 = vadd.f32 %v2670_v60, %v2640_v31  ;;  %v3834_v25 = vadd.f32 %v3806_v51, %v3770_v43  ;;  %v3756_v43 = vld [vmem:[#allocation5 + $0xd8] sm:$0xff] }
 0x98c   : > { %10345 = vpow2.f32 %v3610_v38  ;;  %v2754_v51 = vld [vmem:[#allocation3 + $0x38] sm:$0xff] }
 0x98d   : > { %2721 = vst.msk [vmem:[#allocation5 + $0x30] sm:$0xff] %vm2714_vm12, %v2704_v24  ;;  %3850 = vst.msk [vmem:[#allocation5 + $0xc8] sm:$0xff] %vm2714_vm12, %v3834_v25  ;;  %v15690_v38 = vld [vmem:[#allocation126_spill] sm:$0xff] }
 0x98e   : > { %v2676_v14 = vpop.xlane.xlu1 %2675 }
 0x98f   : > { %v2706_v9 = vadd.f32 %v2676_v14, %v2642_v50 }
 0x991   : > { %2723 = vst.msk [vmem:[#allocation5 + $0x40] sm:$0xff] %vm2714_vm12, %v2706_v9  ;;  %v13723_v5 = vpop.eup %10343 }
 0x992   : > { %v2682_v49 = vpop.xlane.xlu1 %2681  ;;  %v3772_v50 = vmul.f32 %v13723_v5, %v3756_v43 }
 0x993   : > { %v2708_v47 = vadd.f32 %v2682_v49, %v2644_v18 }
 0x995   : > { %2725 = vst.msk [vmem:[#allocation5 + $0x50] sm:$0xff] %vm2714_vm12, %v2708_v47  ;;  %v15687_v47 = vld [vmem:[#allocation122_spill] sm:$0xff] }
 0x996   : > { %v2688_v1 = vpop.xlane.xlu1 %2687  ;;  %v13739_v19 = vpop.eup %10345 }
 0x997   : > { %v2710_v53 = vadd.f32 %v2688_v1, %v2646_v56 }
 0x999   : > { %2727 = vst.msk [vmem:[#allocation5 + $0x60] sm:$0xff] %vm2714_vm12, %v2710_v53 }
 0x99a   : > { %v2694_v0 = vpop.xlane.xlu1 %2693 }
 0x99b   : > { %v2712_v35 = vadd.f32 %v2694_v0, %v2648_v21  ;;  %v3758_v21 = vld [vmem:[#allocation5 + $0xe8] sm:$0xff] }
 0x99d   : > { %2729 = vst.msk [vmem:[#allocation5 + $0x70] sm:$0xff] %vm2714_vm12, %v2712_v35  ;;  %v2758_v35 = vld [vmem:[#allocation3 + $0x58] sm:$0xff] }
 0x99e   : > { %v2766_v46 = vpop.permute.xlu1 %2765 }
 0x99f   : > { %v2843_v62 = vmul.f32 %v2766_v46, %v2747_v27  ;;  %v3774_v27 = vmul.f32 %v13739_v19, %v3758_v21 }
 0x9a1   : > { %v3117_v40 = vadd.f32 %v15681_v32, %v2843_v62 }
 0x9a2   : > { %v2776_v55 = vpop.permute.xlu1 %2775 }
 0x9a3   : > { %3133 = vst.msk [vmem:[#allocation3] sm:$0xff] %vm2054_vm1, %v3117_v40  ;;  %v2845_v4 = vmul.f32 %v2776_v55, %v2749_v11  ;;  %v2760_v40 = vld [vmem:[#allocation3 + $0x68] sm:$0xff] }
 0x9a4   : > { %v15689_v55 = vld [vmem:[#allocation124_spill] sm:$0xff] }
 0x9a5   : > { %v3119_v48 = vadd.f32 %v15684_v45, %v2845_v4 }
 0x9a6   : > { %v2781_v59 = vpop.permute.xlu1 %2780 }
 0x9a7   : > { %3135 = vst.msk [vmem:[#allocation3 + $0x10] sm:$0xff] %vm2054_vm1, %v3119_v48  ;;  %v2846_v2 = vmul.f32 %v2781_v59, %v2750_v16 }
 0x9a9   : > { %v3120_v58 = vadd.f32 %v15685_v6, %v2846_v2 }
 0x9aa   : > { %v2791_v31 = vpop.permute.xlu1 %2790 }
 0x9ab   : > { %3136 = vst.msk [vmem:[#allocation3 + $0x18] sm:$0xff] %vm2054_vm1, %v3120_v58  ;;  %v2848_v60 = vmul.f32 %v2791_v31, %v2752_v20  ;;  %v15692_v58 = vld [vmem:[#allocation130_spill] sm:$0xff]  ;;  %v15693_v31 = vld [vmem:[#allocation131_spill] sm:$0xff] }
 0x9ac   : > { %v13726_v39 = vpop.f32.mrb[56].mxu0  ;;  %v15694_v43 = vsub.f32 %v15692_v58, %v15693_v31  ;;  %v15708_v58 = vld [vmem:[#allocation146_spill] sm:$0xff]  ;;  %v15709_v31 = vld [vmem:[#allocation147_spill] sm:$0xff] }
 0x9ad   : > { %v3122_v24 = vadd.f32 %v15686_v44, %v2848_v60  ;;  %v13729_v25 = vpop.f32.mrb[57].mxu0  ;;  %v15696_v44 = vld [vmem:[#allocation136_spill] sm:$0xff] }
 0x9ae   : > { %v2801_v14 = vpop.permute.xlu1 %2800  ;;  %v3812_v34 = vpop.xlane.xlu0 %3811  ;;  %v3586_v60 = vmul.f32 1.442695, %v15694_v43  ;;  %v15710_v43 = vsub.f32 %v15708_v58, %v15709_v31 }
 0x9af   : > { %3138 = vst.msk [vmem:[#allocation3 + $0x28] sm:$0xff] %vm2054_vm1, %v3122_v24  ;;  %v2850_v9 = vmul.f32 %v2801_v14, %v2754_v51  ;;  %v3836_v18 = vadd.f32 %v3812_v34, %v3772_v50  ;;  %v15695_v51 = vld [vmem:[#allocation135_spill] sm:$0xff]  ;;  %v15699_v34 = vld [vmem:[#allocation144_spill] sm:$0xff] }
 0x9b0   : > { %v13733_v49 = vpop.f32.mrb[58].mxu0  ;;  %10347 = vpow2.f32 %v3586_v60  ;;  %v15697_v24 = vsub.f32 %v15695_v51, %v15696_v44  ;;  %v15698_v14 = vld [vmem:[#allocation143_spill] sm:$0xff]  ;;  %v3604_v60 = vmul.f32 1.442695, %v15710_v43  ;;  %v3751_v43 = vld [vmem:[#allocation5 + $0xb0] sm:$0xff] }
 0x9b1   : > { %v3124_v56 = vadd.f32 %v15687_v47, %v2850_v9  ;;  %3852 = vst.msk [vmem:[#allocation5 + $0xd8] sm:$0xff] %vm2714_vm12, %v3836_v18  ;;  %v13737_v1 = vpop.f32.mrb[59].mxu0  ;;  %v15700_v9 = vsub.f32 %v15698_v14, %v15699_v34  ;;  %v15701_v47 = vld [vmem:[#allocation81_spill] sm:$0xff] }
 0x9b2   : > { %v2811_v53 = vpop.permute.xlu1 %2810  ;;  %v3592_v50 = vmul.f32 1.442695, %v15697_v24  ;;  %v15711_v24 = vld [vmem:[#allocation86_spill] sm:$0xff] }
 0x9b3   : > { %3140 = vst.msk [vmem:[#allocation3 + $0x38] sm:$0xff] %vm2054_vm1, %v3124_v56  ;;  %v2852_v0 = vmul.f32 %v2811_v53, %v2756_v63  ;;  %v3596_v18 = vmul.f32 1.442695, %v15700_v9 }
 0x9b4   : > { %10349 = vpow2.f32 %v3592_v50 }
 0x9b5   : > { %v3126_v61 = vadd.f32 %v15688_v22, %v2852_v0  ;;  %v15702_v0 = vld [vmem:[#allocation82_spill] sm:$0xff]  ;;  %10351 = vpow2.f32 %v3596_v18 }
 0x9b6   : > { %v2821_v46 = vpop.permute.xlu1 %2820  ;;  %v3818_v62 = vpop.xlane.xlu0 %3817  ;;  %v15703_v22 = vld [vmem:[#allocation138_spill] sm:$0xff] }
 0x9b7   : > { %3142 = vst.msk [vmem:[#allocation3 + $0x48] sm:$0xff] %vm2054_vm1, %v3126_v61  ;;  %v2854_v11 = vmul.f32 %v2821_v46, %v2758_v35  ;;  %v3838_v32 = vadd.f32 %v3818_v62, %v3774_v27  ;;  %v15704_v61 = vld [vmem:[#allocation140_spill] sm:$0xff] }
 0x9b8   : > { %v15705_v27 = vsub.f32 %v15703_v22, %v15704_v61  ;;  %v15712_v22 = vld [vmem:[#allocation149_spill] sm:$0xff]  ;;  %v15713_v61 = vld [vmem:[#allocation150_spill] sm:$0xff] }
 0x9b9   : > { %v3128_v4 = vadd.f32 %v15689_v55, %v2854_v11  ;;  %3854 = vst.msk [vmem:[#allocation5 + $0xe8] sm:$0xff] %vm2714_vm12, %v3838_v32  ;;  %v15706_v11 = vld [vmem:[#allocation83_spill] sm:$0xff] }
 0x9ba   : > { %v2831_v33 = vpop.permute.xlu1 %2830  ;;  %v3600_v46 = vmul.f32 1.442695, %v15705_v27  ;;  %v13785_v55 = vpop.eup %10347  ;;  %v15714_v27 = vsub.f32 %v15712_v22, %v15713_v61  ;;  %v3753_v61 = vld [vmem:[#allocation5 + $0xc0] sm:$0xff] }
 0x9bb   : > { %3144 = vst.msk [vmem:[#allocation3 + $0x58] sm:$0xff] %vm2054_vm1, %v3128_v4  ;;  %v2856_v15 = vmul.f32 %v2831_v33, %v2760_v40  ;;  %v3746_v4 = vld [vmem:[#allocation5 + $0x88] sm:$0xff] }
 0x9bc   : > { %v15707_v33 = vld [vmem:[#allocation84_spill] sm:$0xff]  ;;  %10353 = vpow2.f32 %v3600_v46  ;;  %v3762_v44 = vmul.f32 %v13785_v55, %v3746_v4  ;;  %v3608_v46 = vmul.f32 1.442695, %v15714_v27  ;;  %v15715_v4 = vld [vmem:[#allocation85_spill] sm:$0xff] }
 0x9bd   : > { %v3130_v16 = vadd.f32 %v15690_v38, %v2856_v15  ;;  %10355 = vpow2.f32 %v3604_v60 }
 0x9be   : > { %v13803_v9 = vpop.eup %10349  ;;  %10357 = vpow2.f32 %v3608_v46  ;;  %v15719_v46 = vld [vmem:[#allocation87_spill] sm:$0xff] }
 0x9bf   : > { %3146 = vst.msk [vmem:[#allocation3 + $0x68] sm:$0xff] %vm2054_vm1, %v3130_v16 }
 0x9c3   : > { %v13750_v45 = vpop.f32.mrb[56].mxu1 }
 0x9c4   : > { %15691 = vst [vmem:[#allocation91_spill] sm:$0xff] %v13750_v45  ;;  %v13752_v48 = vpop.f32.mrb[57].mxu1 }
 0x9c8   : > { %v13754_v59 = vpop.f32.mrb[60].mxu0 }
 0x9c9   : > { %v13756_v2 = vpop.f32.mrb[61].mxu0 }
 0x9d1   : > { %v13758_v20 = vpop.f32.mrb[62].mxu0 }
 0x9d2   : > { %v13760_v6 = vpop.f32.mrb[63].mxu0 }
 0x9e1   : > { %v9072_v63 = vpop.f32.mrb[64].mxu0 }
 0x9e2   : > { %v13772_v56 = vadd.f32 %v9072_v63, %v15701_v47  ;;  %v4534_v53 = vpop.f32.mrb[65].mxu0  ;;  %v3749_v63 = vld [vmem:[#allocation5 + $0xa0] sm:$0xff] }
 0x9e3   : > { %v13777_v35 = vadd.f32 %v4534_v53, %v15702_v0 }
 0x9e4   : > { %v4762_v21 = vsel %vm2377_vm5, %v13772_v56, -inf }
 0x9e5   : > { %4763 = vmax.xlane.f32.xlu0 %v4762_v21  ;;  %v9075_v62 = vpop.f32.mrb[66].mxu0  ;;  %v4759_v38 = vsel %vm2377_vm5, %v13777_v35, -inf  ;;  %v3822_v21 = vsel %vm2377_vm5, %v13567_v26, 0.0  ;;  %v13817_v26 = vpop.eup %10351 }
 0x9e6   : > { %v13783_v32 = vadd.f32 %v9075_v62, %v15706_v11  ;;  %v4544_v40 = vpop.f32.mrb[67].mxu0 }
 0x9e7   : > { %v13788_v15 = vadd.f32 %v4544_v40, %v15707_v33  ;;  %v3765_v40 = vmul.f32 %v13803_v9, %v3749_v63 }
 0x9e8   : > { %v4768_v16 = vsel %vm2377_vm5, %v13783_v32, -inf }
 0x9e9   : > { %4760 = vmax.xlane.f32.xlu0 %v4759_v38  ;;  %4769 = vmax.xlane.f32.xlu1 %v4768_v16  ;;  %v9078_v51 = vpop.f32.mrb[68].mxu0  ;;  %v4765_v14 = vsel %vm2377_vm5, %v13788_v15, -inf }
 0x9ea   : > { %v13799_v50 = vadd.f32 %v9078_v51, %v15711_v24  ;;  %v4554_v34 = vpop.f32.mrb[69].mxu0  ;;  %v15716_v51 = vld [vmem:[#allocation153_spill] sm:$0xff] }
 0x9eb   : > { %v3782_v18 = vpop.xlane.xlu1 %3781  ;;  %v13813_v38 = vadd.f32 %v4554_v34, %v15715_v4  ;;  %v3767_v34 = vmul.f32 %v13817_v26, %v3751_v43  ;;  %v3755_v43 = vld [vmem:[#allocation5 + $0xd0] sm:$0xff] }
 0x9ec   : > { %v3826_v53 = vadd.f32 %v3782_v18, %v3762_v44  ;;  %v4774_v16 = vsel %vm2377_vm5, %v13799_v50, -inf  ;;  %v15717_v44 = vsub.f32 %v15716_v51, %v13383_v30  ;;  %v15718_v18 = vld [vmem:[#allocation88_spill] sm:$0xff] }
 0x9ed   : > { %3823 = vadd.xlane.f32.xlu0 %v3822_v21  ;;  %4766 = vmax.xlane.f32.xlu1 %v4765_v14  ;;  %v9081_v62 = vpop.f32.mrb[70].mxu0  ;;  %v13829_v21 = vpop.eup %10353 }
 0x9ee   : > { %3842 = vst.msk [vmem:[#allocation5 + $0x88] sm:$0xff] %vm2714_vm12, %v3826_v53  ;;  %v4564_v58 = vpop.f32.mrb[71].mxu0  ;;  %v3612_v14 = vmul.f32 1.442695, %v15717_v44  ;;  %v13825_v63 = vadd.f32 %v9081_v62, %v15718_v18  ;;  %v4771_v53 = vsel %vm2377_vm5, %v13813_v38, -inf  ;;  %v3769_v30 = vmul.f32 %v13829_v21, %v3753_v61 }
 0x9ef   : > { %v3791_v31 = vpop.xlane.xlu1 %3790 }
 0x9f0   : > { %v3829_v60 = vadd.f32 %v3791_v31, %v3765_v40  ;;  %10359 = vpow2.f32 %v3612_v14  ;;  %v13834_v40 = vadd.f32 %v4564_v58, %v15719_v46  ;;  %v4780_v62 = vsel %vm2377_vm5, %v13825_v63, -inf }
 0x9f1   : > { %4775 = vmax.xlane.f32.xlu1 %v4774_v16  ;;  %v13838_v16 = vpop.eup %10355 }
 0x9f2   : > { %3845 = vst.msk [vmem:[#allocation5 + $0xa0] sm:$0xff] %vm2714_vm12, %v3829_v60  ;;  %v3771_v14 = vmul.f32 %v13838_v16, %v3755_v43  ;;  %v4777_v58 = vsel %vm2377_vm5, %v13834_v40, -inf }
 0x9f3   : > { %v3797_v22 = vpop.xlane.xlu1 %3796 }
 0x9f4   : > { %v3831_v27 = vadd.f32 %v3797_v22, %v3767_v34  ;;  %v13848_v34 = vpop.eup %10357  ;;  %v3757_v22 = vld [vmem:[#allocation5 + $0xe0] sm:$0xff] }
 0x9f5   : > { %4772 = vmax.xlane.f32.xlu1 %v4771_v53 }
 0x9f6   : > { %3847 = vst.msk [vmem:[#allocation5 + $0xb0] sm:$0xff] %vm2714_vm12, %v3831_v27  ;;  %v3773_v27 = vmul.f32 %v13848_v34, %v3757_v22 }
 0x9f7   : > { %v3803_v31 = vpop.xlane.xlu1 %3802 }
 0x9f8   : > { %v3833_v60 = vadd.f32 %v3803_v31, %v3769_v30  ;;  %v13840_v51 = vpop.f32.mrb[58].mxu1  ;;  %v3759_v31 = vld [vmem:[#allocation5 + $0xf0] sm:$0xff] }
 0x9f9   : > { %15720 = vst [vmem:[#allocation93_spill] sm:$0xff] %v13840_v51  ;;  %v13842_v44 = vpop.f32.mrb[59].mxu1  ;;  %4781 = vmax.xlane.f32.xlu1 %v4780_v62 }
 0x9fa   : > { %3849 = vst.msk [vmem:[#allocation5 + $0xc0] sm:$0xff] %vm2714_vm12, %v3833_v60  ;;  %v13852_v30 = vpop.eup %10359 }
 0x9fb   : > { %v3809_v53 = vpop.xlane.xlu1 %3808  ;;  %15721 = vst [vmem:[#allocation92_spill] sm:$0xff] %v13852_v30  ;;  %v3775_v45 = vmul.f32 %v13852_v30, %v3759_v31  ;;  %v15722_v31 = vld [vmem:[#allocation74_spill] sm:$0xff]  ;;  %v15741_v30 = vld [vmem:[#allocation67_spill] sm:$0xff] }
 0x9fc   : > { %v3835_v61 = vadd.f32 %v3809_v53, %v3771_v14 }
 0x9fd   : > { %4778 = vmax.xlane.f32.xlu1 %v4777_v58 }
 0x9fe   : > { %3851 = vst.msk [vmem:[#allocation5 + $0xd0] sm:$0xff] %vm2714_vm12, %v3835_v61 }
 0x9ff   : > { %v3815_v62 = vpop.xlane.xlu1 %3814 }
 0xa00   : > { %v3837_v60 = vadd.f32 %v3815_v62, %v3773_v27  ;;  %v13854_v51 = vpop.f32.mrb[60].mxu1 }
 0xa01   : > { %v13856_v43 = vpop.f32.mrb[61].mxu1 }
 0xa02   : > { %3853 = vst.msk [vmem:[#allocation5 + $0xe0] sm:$0xff] %vm2714_vm12, %v3837_v60 }
 0xa03   : > { %2770 = vperm.xlu0 %9994, %v13666_v17   ;;  %v3821_v14 = vpop.xlane.xlu1 %3820 }
 0xa04   : > { %v3839_v58 = vadd.f32 %v3821_v14, %v3775_v45 }
 0xa06   : > { %3855 = vst.msk [vmem:[#allocation5 + $0xf0] sm:$0xff] %vm2714_vm12, %v3839_v58 }
 0xa07   : > { %2785 = vperm.xlu0 %9994, %v13671_v57  }
 0xa08   : > { %v13863_v53 = vpop.f32.mrb[62].mxu1 }
 0xa09   : > { %v13865_v22 = vpop.f32.mrb[63].mxu1 }
 0xa0b   : > { %2795 = vperm.xlu0 %9994, %v13680_v42  }
 0xa0f   : > { %2805 = vperm.xlu0 %9994, %v13694_v23  }
 0xa13   : > { %2815 = vperm.xlu0 %9994, %v13699_v29  }
 0xa17   : > { %2825 = vperm.xlu0 %9994, %v13703_v13  }
 0xa18   : > { %v9100_v61 = vpop.f32.mrb[64].mxu1 }
 0xa19   : > { %v13872_v17 = vadd.f32 %v9100_v61, %v15701_v47  ;;  %v4703_v45 = vpop.f32.mrb[65].mxu1 }
 0xa1a   : > { %v13875_v27 = vadd.f32 %v4703_v45, %v15702_v0 }
 0xa1b   : > { %2835 = vperm.xlu0 %9994, %v13707_v54   ;;  %v4786_v57 = vsel %vm2377_vm5, %v13872_v17, -inf  ;;  %v15723_v54 = vld [vmem:[#allocation73_spill] sm:$0xff] }
 0xa1c   : > { %4787 = vmax.xlane.f32.xlu1 %v4786_v57  ;;  %v9103_v42 = vpop.f32.mrb[66].mxu1  ;;  %v4783_v23 = vsel %vm2377_vm5, %v13875_v27, -inf  ;;  %v15726_v57 = vld [vmem:[#allocation78_spill] sm:$0xff] }
 0xa1d   : > { %v4713_v29 = vpop.f32.mrb[67].mxu1  ;;  %v13890_v58 = vadd.f32 %v9103_v42, %v15706_v11  ;;  %v15728_v42 = vld [vmem:[#allocation79_spill] sm:$0xff] }
 0xa1e   : > { %v13897_v45 = vadd.f32 %v4713_v29, %v15707_v33 }
 0xa1f   : > { %3896 = vperm.xlu0 %9994, %v13785_v55   ;;  %v15724_v55 = vld [vmem:[#allocation77_spill] sm:$0xff]  ;;  %v4792_v61 = vsel %vm2377_vm5, %v13890_v58, -inf }
 0xa20   : > { %4784 = vmax.xlane.f32.xlu1 %v4783_v23  ;;  %v9106_v13 = vpop.f32.mrb[68].mxu1  ;;  %15725 = vst [vmem:[#allocation94_spill] sm:$0xff] %v13897_v45 }
 0xa21   : > { %v4723_v62 = vpop.f32.mrb[69].mxu1 }
 0xa22   : > { %v13911_v29 = vadd.f32 %v4723_v62, %v15715_v4 }
 0xa23   : > { %10126 = vrot.lane.b32.xlu0 %v15722_v31, %s10964_s6  ;;  %v15730_v31 = vld [vmem:[#allocation80_spill] sm:$0xff] }
 0xa24   : > { %v9109_v60 = vpop.f32.mrb[70].mxu1  ;;  %15729 = vst [vmem:[#allocation96_spill] sm:$0xff] %v13911_v29 }
 0xa25   : > { %v4733_v14 = vpop.f32.mrb[71].mxu1 }
 0xa26   : > { %v13925_v62 = vadd.f32 %v4733_v14, %v15719_v46  ;;  %v13960_v46 = vld [vmem:[#allocation4 + $0x110] sm:$0xff] }
 0xa28   : > { %15733 = vst [vmem:[#allocation107_spill] sm:$0xff] %v13925_v62 }
 0xa31   : > { %2840 = vperm.xlu1 %9993, %v13613_v28   ;;  %v13902_v28 = vadd.f32 %v9106_v13, %v15711_v24  ;;  %v13916_v13 = vadd.f32 %v9109_v60, %v15718_v18  ;;  %v15734_v60 = vld [vmem:[#allocation151_spill] sm:$0xff] }
 0xa33   : > { %15727 = vst [vmem:[#allocation95_spill] sm:$0xff] %v13902_v28  ;;  %v4798_v23 = vsel %vm2377_vm5, %v13902_v28, -inf  ;;  %15731 = vst [vmem:[#allocation105_spill] sm:$0xff] %v13916_v13 }
 0xa35   : > { %3891 = vperm.xlu1 %9993, %v13619_v36   ;;  %v4789_v36 = vsel %vm2377_vm5, %v13897_v45, -inf }
 0xa39   : > { %10116 = vrot.lane.b32.xlu1 %v15723_v54, %s10964_s6 }
 0xa3d   : > { %10121 = vrot.lane.b32.xlu1 %v15724_v55, %s10964_s6  ;;  %v15737_v55 = vld [vmem:[#allocation75_spill] sm:$0xff] }
 0xa41   : > { %10131 = vrot.lane.b32.xlu1 %v15726_v57, %s10964_s6 }
 0xa42   : > { %4793 = vmax.xlane.f32.xlu0 %v4792_v61  ;;  %v4795_v61 = vsel %vm2377_vm5, %v13911_v29, -inf  ;;  %v14009_v29 = vld [vmem:[#allocation4 + $0x130] sm:$0xff] }
 0xa43   : > { %15750 = vst [vmem:[#allocation89_spill] sm:$0xff] %v14009_v29 }
 0xa45   : > { %10141 = vrot.lane.b32.xlu1 %v15728_v42, %s10964_s6  ;;  %v15732_v42 = vld [vmem:[#allocation71_spill] sm:$0xff] }
 0xa46   : > { %4790 = vmax.xlane.f32.xlu0 %v4789_v36  ;;  %v4804_v36 = vsel %vm2377_vm5, %v13916_v13, -inf }
 0xa49   : > { %10151 = vrot.lane.b32.xlu1 %v15730_v31, %s10964_s6  ;;  %v15735_v31 = vld [vmem:[#allocation152_spill] sm:$0xff] }
 0xa4a   : > { %4799 = vmax.xlane.f32.xlu0 %v4798_v23  ;;  %v4801_v23 = vsel %vm2377_vm5, %v13925_v62, -inf  ;;  %v15736_v54 = vsub.f32 %v15734_v60, %v15735_v31  ;;  %v13945_v31 = vld [vmem:[#allocation4 + $0x118] sm:$0xff] }
 0xa4c   : > { %v3614_v57 = vmul.f32 1.442695, %v15736_v54  ;;  %v13975_v54 = vld [vmem:[#allocation4 + $0x128] sm:$0xff] }
 0xa4d   : > { %10161 = vrot.lane.b32.xlu1 %v15732_v42, %s10965_s24  ;;  %v15738_v42 = vld [vmem:[#allocation76_spill] sm:$0xff]  ;;  %15742 = vst [vmem:[#allocation101_spill] sm:$0xff] %v13975_v54 }
 0xa4e   : > { %4796 = vmax.xlane.f32.xlu0 %v4795_v61  ;;  %10361 = vpow2.f32 %v3614_v57  ;;  %v13936_v61 = vld [vmem:[#allocation4 + $0x108] sm:$0xff] }
 0xa4f   : > { %15739 = vst [vmem:[#allocation97_spill] sm:$0xff] %v13936_v61 }
 0xa52   : > { %4805 = vmax.xlane.f32.xlu0 %v4804_v36 }
 0xa56   : > { %4802 = vmax.xlane.f32.xlu0 %v4801_v23  ;;  %v13943_v23 = vld [vmem:[#allocation4 + $0x100] sm:$0xff] }
 0xa58   : > { %v13951_v57 = vpop.eup %10361 }
 0xa6c   : > { %10136 = vrot.lane.b32.xlu0 %v15737_v55, %s10964_s6 }
 0xa70   : > { %10146 = vrot.lane.b32.xlu0 %v15738_v42, %s10964_s6  ;;  %v3760_v42 = vld [vmem:[#allocation5 + $0xf8] sm:$0xff] }
 0xa71   : > { %v3776_v18 = vmul.f32 %v13951_v57, %v3760_v42 }
 0xa72   : > { %v4764_v14 = vpop.xlane.xlu0 %4763 }
 0xa73   : > { %v13939_v36 = vmax.f32 %v13936_v61, %v4764_v14  ;;  %v13997_v61 = vld [vmem:[#allocation4 + $0x138] sm:$0xff] }
 0xa74   : > { %10156 = vrot.lane.b32.xlu0 %v15741_v30, %s10965_s24  ;;  %15747 = vst [vmem:[#allocation141_spill] sm:$0xff] %v13997_v61 }
 0xa75   : > { %15740 = vst [vmem:[#allocation99_spill] sm:$0xff] %v13939_v36  ;;  %5113 = vst.msk [vmem:[#allocation4 + $0x108] sm:$0xff] %vm2714_vm12, %v13939_v36 }
 0xa76   : > { %v4761_v60 = vpop.xlane.xlu0 %4760  ;;  %v4770_v55 = vpop.xlane.xlu1 %4769 }
 0xa77   : > { %v13954_v14 = vmax.f32 %v13943_v23, %v4761_v60  ;;  %v13957_v30 = vmax.f32 %v13945_v31, %v4770_v55 }
 0xa78   : > { %4878 = vperm.xlu0 %9994, %v13939_v36  }
 0xa79   : > { %5112 = vst.msk [vmem:[#allocation4 + $0x100] sm:$0xff] %vm2714_vm12, %v13954_v14  ;;  %5115 = vst.msk [vmem:[#allocation4 + $0x118] sm:$0xff] %vm2714_vm12, %v13957_v30 }
 0xa7a   : > { %v3824_v55 = vpop.xlane.xlu0 %3823  ;;  %v4767_v60 = vpop.xlane.xlu1 %4766 }
 0xa7b   : > { %v3840_v24 = vadd.f32 %v3824_v55, %v3776_v18  ;;  %v13972_v33 = vmax.f32 %v13960_v46, %v4767_v60  ;;  %v15744_v18 = vld [vmem:[#allocation68_spill] sm:$0xff]  ;;  %v13987_v60 = vld [vmem:[#allocation4 + $0x120] sm:$0xff] }
 0xa7c   : > { %4873 = vperm.xlu0 %9994, %v13954_v14   ;;  %v2748_v55 = vld [vmem:[#allocation3 + $0x8] sm:$0xff]  ;;  %15745 = vst [vmem:[#allocation133_spill] sm:$0xff] %v13987_v60 }
 0xa7d   : > { %3856 = vst.msk [vmem:[#allocation5 + $0xf8] sm:$0xff] %vm2714_vm12, %v3840_v24  ;;  %5114 = vst.msk [vmem:[#allocation4 + $0x110] sm:$0xff] %vm2714_vm12, %v13972_v33 }
 0xa7e   : > { %v4776_v4 = vpop.xlane.xlu1 %4775 }
 0xa7f   : > { %v13983_v11 = vmax.f32 %v13975_v54, %v4776_v4  ;;  %v2751_v4 = vld [vmem:[#allocation3 + $0x20] sm:$0xff] }
 0xa80   : > { %10166 = vrot.lane.b32.xlu0 %v15744_v18, %s10965_s24  ;;  %v15748_v18 = vld [vmem:[#allocation114_spill] sm:$0xff] }
 0xa81   : > { %15743 = vst [vmem:[#allocation132_spill] sm:$0xff] %v13983_v11  ;;  %5117 = vst.msk [vmem:[#allocation4 + $0x128] sm:$0xff] %vm2714_vm12, %v13983_v11 }
 0xa82   : > { %v2771_v24 = vpop.permute.xlu0 %2770  ;;  %v4773_v42 = vpop.xlane.xlu1 %4772 }
 0xa83   : > { %v2844_v47 = vmul.f32 %v2771_v24, %v2748_v55  ;;  %v13994_v36 = vmax.f32 %v13987_v60, %v4773_v42  ;;  %v2753_v24 = vld [vmem:[#allocation3 + $0x30] sm:$0xff] }
 0xa84   : > { %4888 = vperm.xlu0 %9994, %v13957_v30  }
 0xa85   : > { %15746 = vst [vmem:[#allocation134_spill] sm:$0xff] %v13994_v36  ;;  %v3118_v62 = vadd.f32 %v15748_v18, %v2844_v47  ;;  %5116 = vst.msk [vmem:[#allocation4 + $0x120] sm:$0xff] %vm2714_vm12, %v13994_v36  ;;  %v15751_v47 = vld [vmem:[#allocation121_spill] sm:$0xff] }
 0xa86   : > { %v2786_v0 = vpop.permute.xlu0 %2785  ;;  %v4782_v54 = vpop.xlane.xlu1 %4781 }
 0xa87   : > { %3134 = vst.msk [vmem:[#allocation3 + $0x8] sm:$0xff] %vm2054_vm1, %v3118_v62  ;;  %v2847_v55 = vmul.f32 %v2786_v0, %v2751_v4  ;;  %v14006_v42 = vmax.f32 %v13997_v61, %v4782_v54  ;;  %v2755_v54 = vld [vmem:[#allocation3 + $0x40] sm:$0xff] }
 0xa88   : > { %4883 = vperm.xlu0 %9994, %v13972_v33   ;;  %v15753_v4 = vld [vmem:[#allocation123_spill] sm:$0xff] }
 0xa89   : > { %15749 = vst [vmem:[#allocation142_spill] sm:$0xff] %v14006_v42  ;;  %v3121_v18 = vadd.f32 %v15751_v47, %v2847_v55  ;;  %5119 = vst.msk [vmem:[#allocation4 + $0x138] sm:$0xff] %vm2714_vm12, %v14006_v42 }
 0xa8a   : > { %v2796_v60 = vpop.permute.xlu0 %2795  ;;  %v4779_v28 = vpop.xlane.xlu1 %4778 }
 0xa8b   : > { %3137 = vst.msk [vmem:[#allocation3 + $0x20] sm:$0xff] %vm2054_vm1, %v3121_v18  ;;  %v2849_v0 = vmul.f32 %v2796_v60, %v2753_v24  ;;  %v14018_v62 = vmax.f32 %v14009_v29, %v4779_v28  ;;  %v2757_v60 = vld [vmem:[#allocation3 + $0x50] sm:$0xff] }
 0xa8c   : > { %4898 = vperm.xlu0 %9994, %v13983_v11   ;;  %v15754_v28 = vld [vmem:[#allocation117_spill] sm:$0xff] }
 0xa8d   : > { %15752 = vst [vmem:[#allocation90_spill] sm:$0xff] %v14018_v62  ;;  %v3123_v45 = vadd.f32 %v15753_v4, %v2849_v0  ;;  %5118 = vst.msk [vmem:[#allocation4 + $0x130] sm:$0xff] %vm2714_vm12, %v14018_v62  ;;  %v2759_v0 = vld [vmem:[#allocation3 + $0x60] sm:$0xff]  ;;  %v15755_v4 = vld [vmem:[#allocation125_spill] sm:$0xff] }
 0xa8e   : > { %v2806_v47 = vpop.permute.xlu0 %2805 }
 0xa8f   : > { %3139 = vst.msk [vmem:[#allocation3 + $0x30] sm:$0xff] %vm2054_vm1, %v3123_v45  ;;  %v2851_v13 = vmul.f32 %v2806_v47, %v2755_v54  ;;  %v2761_v45 = vld [vmem:[#allocation3 + $0x70] sm:$0xff]  ;;  %v15756_v54 = vld [vmem:[#allocation127_spill] sm:$0xff] }
 0xa90   : > { %4893 = vperm.xlu0 %9994, %v13994_v36  }
 0xa91   : > { %v3125_v24 = vadd.f32 %v15754_v28, %v2851_v13  ;;  %v15758_v28 = vld [vmem:[#allocation129_spill] sm:$0xff] }
 0xa92   : > { %v2816_v18 = vpop.permute.xlu0 %2815 }
 0xa93   : > { %3141 = vst.msk [vmem:[#allocation3 + $0x40] sm:$0xff] %vm2054_vm1, %v3125_v24  ;;  %v2853_v61 = vmul.f32 %v2816_v18, %v2757_v60  ;;  %v15757_v60 = vld [vmem:[#allocation69_spill] sm:$0xff] }
 0xa94   : > { %4908 = vperm.xlu0 %9994, %v14006_v42  }
 0xa95   : > { %v3127_v55 = vadd.f32 %v15755_v4, %v2853_v61  ;;  %v15759_v61 = vld [vmem:[#allocation70_spill] sm:$0xff] }
 0xa96   : > { %v2826_v29 = vpop.permute.xlu0 %2825 }
 0xa97   : > { %3143 = vst.msk [vmem:[#allocation3 + $0x50] sm:$0xff] %vm2054_vm1, %v3127_v55  ;;  %v2855_v11 = vmul.f32 %v2826_v29, %v2759_v0  ;;  %v10507_v29 = vld [vmem:[#allocation2] sm:$0xff]  ;;  %v14043_v55 = vld [vmem:[#allocation4 + $0x148] sm:$0xff] }
 0xa98   : > { %4903 = vperm.xlu0 %9994, %v14018_v62   ;;  %15760 = vst [vmem:[#allocation102_spill] sm:$0xff] %v14043_v55  ;;  %v14049_v0 = vld [vmem:[#allocation4 + $0x140] sm:$0xff] }
 0xa99   : > { %v3129_v47 = vadd.f32 %v15756_v54, %v2855_v11  ;;  %v10508_v11 = vld [vmem:[#allocation2 + $0x8] sm:$0xff]  ;;  %15762 = vst [vmem:[#allocation145_spill] sm:$0xff] %v14049_v0 }
 0xa9a   : > { %v2836_v36 = vpop.permute.xlu0 %2835 }
 0xa9b   : > { %3145 = vst.msk [vmem:[#allocation3 + $0x60] sm:$0xff] %vm2054_vm1, %v3129_v47  ;;  %v2857_v13 = vmul.f32 %v2836_v36, %v2761_v45  ;;  %v10509_v45 = vld [vmem:[#allocation2 + $0x10] sm:$0xff] }
 0xa9c   : > { %10176 = vrot.lane.b32.xlu0 %v15757_v60, %s10965_s24 }
 0xa9d   : > { %v3131_v24 = vadd.f32 %v15758_v28, %v2857_v13  ;;  %v2762_v13 = vld [vmem:[#allocation3 + $0x78] sm:$0xff] }
 0xa9e   : > { %v10510_v28 = vld [vmem:[#allocation2 + $0x18] sm:$0xff] }
 0xa9f   : > { %3147 = vst.msk [vmem:[#allocation3 + $0x70] sm:$0xff] %vm2054_vm1, %v3131_v24  ;;  %v14066_v24 = vpop.permute.xlu0 %3896 }
 0xaa0   : > { %10186 = vrot.lane.b32.xlu0 %v15759_v61, %s10965_s24  ;;  %15764 = vst [vmem:[#allocation109_spill] sm:$0xff] %v14066_v24 }
 0xaa3   : > { %v10127_v4 = vpop.permute.xlu0 %10126 }
 0xaa4   : > { %5643 = vrot.lane.b32.xlu0 %v10507_v29, %s10965_s24  ;;  %v10128_v62 = vunpack.i.l.bf16 %v10127_v4 }
 0xaa8   : > { %5645 = vrot.lane.b32.xlu0 %v10508_v11, %s10965_s24  ;;  %v15765_v11 = vld [vmem:[#allocation128_spill] sm:$0xff] }
 0xaa9   : > { %v4788_v18 = vpop.xlane.xlu1 %4787 }
 0xaaa   : > { %v14047_v36 = vmax.f32 %v14043_v55, %v4788_v18 }
 0xaac   : > { %15761 = vst [vmem:[#allocation103_spill] sm:$0xff] %v14047_v36  ;;  %5121 = vst.msk [vmem:[#allocation4 + $0x148] sm:$0xff] %vm2714_vm12, %v14047_v36  ;;  %5647 = vrot.lane.b32.xlu0 %v10509_v45, %s10965_s24  ;;  %4918 = vperm.xlu1 %9993, %v14047_v36   ;;  %v10511_v45 = vld [vmem:[#allocation2 + $0x20] sm:$0xff] }
 0xaad   : > { %v4785_v54 = vpop.xlane.xlu1 %4784 }
 0xaae   : > { %v14058_v47 = vmax.f32 %v14049_v0, %v4785_v54  ;;  %v15766_v54 = vld [vmem:[#allocation72_spill] sm:$0xff]  ;;  %v10129_v0 = vunpack.i.h.bf16 %v10127_v4 }
 0xab0   : > { %15763 = vst [vmem:[#allocation108_spill] sm:$0xff] %v14058_v47  ;;  %5120 = vst.msk [vmem:[#allocation4 + $0x140] sm:$0xff] %vm2714_vm12, %v14058_v47  ;;  %5649 = vrot.lane.b32.xlu0 %v10510_v28, %s10965_s24  ;;  %4913 = vperm.xlu1 %9993, %v14058_v47   ;;  %v10512_v28 = vld [vmem:[#allocation2 + $0x28] sm:$0xff]  ;;  %v9586_v55 = vpack.c.bf16 %v10129_v0, %v10128_v62 }
 0xab1   : > { %v2841_v61 = vpop.permute.xlu1 %2840 }
 0xab2   : > { %v2858_v29 = vmul.f32 %v2841_v61, %v2762_v13 }
 0xab4   : > { %v3132_v18 = vadd.f32 %v15765_v11, %v2858_v29  ;;  %5651 = vrot.lane.b32.xlu0 %v10511_v45, %s10965_s24  ;;  %10171 = vrot.lane.b32.xlu1 %v15766_v54, %s10965_s24  ;;  %v10513_v29 = vld [vmem:[#allocation2 + $0x30] sm:$0xff] }
 0xab5   : > { %v14072_v60 = vpop.permute.xlu1 %3891 }
 0xab6   : > { %3148 = vst.msk [vmem:[#allocation3 + $0x78] sm:$0xff] %vm2054_vm1, %v3132_v18  ;;  %v10514_v18 = vld [vmem:[#allocation2 + $0x38] sm:$0xff] }
 0xab8   : > { %5653 = vrot.lane.b32.xlu0 %v10512_v28, %s10965_s24 }
 0xab9   : > { %v10117_v47 = vpop.permute.xlu1 %10116 }
 0xaba   : > { %v10119_v13 = vunpack.i.h.bf16 %v10117_v47  ;;  %v10118_v61 = vunpack.i.l.bf16 %v10117_v47 }
 0xabc   : > { %5655 = vrot.lane.b32.xlu0 %v10513_v29, %s10965_s24  ;;  %v9582_v11 = vpack.c.bf16 %v10119_v13, %v10118_v61 }
 0xabd   : > { %v10122_v45 = vpop.permute.xlu1 %10121 }
 0xabe   : > { %v10124_v36 = vunpack.i.h.bf16 %v10122_v45  ;;  %v10123_v54 = vunpack.i.l.bf16 %v10122_v45  ;;  %9583 = vmatprep.subr.bf16.mxu0 %v9582_v11  ;;  %v14081_v45 = vld [vmem:[#allocation4 + $0x158] sm:$0xff] }
 0xabf   : > { %9585 = vmatpush3.bf16.msra.mxu0 %v9582_v11 }
 0xac0   : > { %5657 = vrot.lane.b32.xlu0 %v10514_v18, %s10965_s24  ;;  %9587 = vmatprep.subr.bf16.mxu0 %v9586_v55  ;;  %v9598_v28 = vpack.c.bf16 %v10124_v36, %v10123_v54 }
 0xac1   : > { %v10132_v24 = vpop.permute.xlu1 %10131 }
 0xac2   : > { %v10134_v42 = vunpack.i.h.bf16 %v10132_v24  ;;  %v10133_v4 = vunpack.i.l.bf16 %v10132_v24  ;;  %9599 = vmatprep.subr.bf16.mxu1 %v9598_v28 }
 0xac3   : > { %9589 = vmatpush3.bf16.msra.mxu0 %v9586_v55  ;;  %9601 = vmatpush3.bf16.msra.mxu1 %v9598_v28  ;;  %v14089_v28 = vld [vmem:[#allocation4 + $0x150] sm:$0xff] }
 0xac4   : > { %3901 = vperm.xlu0 %9994, %v13634_v52   ;;  %v9602_v47 = vpack.c.bf16 %v10134_v42, %v10133_v4 }
 0xac5   : > { %v10142_v13 = vpop.permute.xlu1 %10141 }
 0xac6   : > { %v10144_v61 = vunpack.i.h.bf16 %v10142_v13  ;;  %v10143_v29 = vunpack.i.l.bf16 %v10142_v13  ;;  %9603 = vmatprep.subr.bf16.mxu1 %v9602_v47 }
 0xac7   : > { %9605 = vmatpush3.bf16.msra.mxu1 %v9602_v47 }
 0xac8   : > { %3911 = vperm.xlu0 %9994, %v13803_v9   ;;  %v9606_v62 = vpack.c.bf16 %v10144_v61, %v10143_v29 }
 0xac9   : > { %v10152_v0 = vpop.permute.xlu1 %10151 }
 0xaca   : > { %v10154_v11 = vunpack.i.h.bf16 %v10152_v0  ;;  %v10153_v36 = vunpack.i.l.bf16 %v10152_v0  ;;  %9607 = vmatprep.subr.bf16.mxu1 %v9606_v62 }
 0xacb   : > { %9609 = vmatpush3.bf16.msra.mxu1 %v9606_v62  ;;  %v14114_v62 = vld [vmem:[#allocation4 + $0x160] sm:$0xff] }
 0xacc   : > { %3921 = vperm.xlu0 %9994, %v13817_v26   ;;  %v9610_v55 = vpack.c.bf16 %v10154_v11, %v10153_v36  ;;  %v14126_v36 = vld [vmem:[#allocation4 + $0x178] sm:$0xff] }
 0xacd   : > { %v10162_v24 = vpop.permute.xlu1 %10161 }
 0xace   : > { %v10164_v52 = vunpack.i.h.bf16 %v10162_v24  ;;  %v10163_v42 = vunpack.i.l.bf16 %v10162_v24  ;;  %9611 = vmatprep.subr.bf16.mxu1 %v9610_v55 }
 0xacf   : > { %v4794_v54 = vpop.xlane.xlu0 %4793  ;;  %9613 = vmatpush3.bf16.msra.mxu1 %v9610_v55 }
 0xad0   : > { %v14083_v18 = vpack.c.bf16 %v10164_v52, %v10163_v42  ;;  %v14086_v9 = vmax.f32 %v14081_v45, %v4794_v54  ;;  %3931 = vperm.xlu0 %9994, %v13829_v21   ;;  %v14103_v21 = vld [vmem:[#allocation4 + $0x168] sm:$0xff]  ;;  %v14138_v52 = vld [vmem:[#allocation4 + $0x170] sm:$0xff] }
 0xad2   : > { %v4834_v26 = vsub.f32 %v14081_v45, %v14086_v9  ;;  %5123 = vst.msk [vmem:[#allocation4 + $0x158] sm:$0xff] %vm2714_vm12, %v14086_v9  ;;  %4928 = vperm.xlu1 %9993, %v14086_v9   ;;  %9640 = vmatprep.subr.msk.bf16.mxu1 %vm12406_vm2, %v14083_v18 }
 0xad3   : > { %v4791_v4 = vpop.xlane.xlu0 %4790 }
 0xad4   : > { %v14100_v47 = vmax.f32 %v14089_v28, %v4791_v4  ;;  %3941 = vperm.xlu0 %9994, %v13838_v16  }
 0xad6   : > { %5122 = vst.msk [vmem:[#allocation4 + $0x150] sm:$0xff] %vm2714_vm12, %v14100_v47  ;;  %4923 = vperm.xlu1 %9993, %v14100_v47  }
 0xad7   : > { %v4800_v61 = vpop.xlane.xlu0 %4799 }
 0xad8   : > { %v14111_v29 = vmax.f32 %v14103_v21, %v4800_v61  ;;  %3951 = vperm.xlu0 %9994, %v13848_v34  }
 0xada   : > { %v4836_v16 = vsub.f32 %v14103_v21, %v14111_v29  ;;  %5125 = vst.msk [vmem:[#allocation4 + $0x168] sm:$0xff] %vm2714_vm12, %v14111_v29  ;;  %4938 = vperm.xlu1 %9993, %v14111_v29  }
 0xadb   : > { %v4797_v0 = vpop.xlane.xlu0 %4796 }
 0xadc   : > { %v14122_v11 = vmax.f32 %v14114_v62, %v4797_v0  ;;  %4323 = vrot.lane.b32.xlu0 %v13729_v25, %s10965_s24 }
 0xade   : > { %5124 = vst.msk [vmem:[#allocation4 + $0x160] sm:$0xff] %vm2714_vm12, %v14122_v11  ;;  %4933 = vperm.xlu1 %9993, %v14122_v11  }
 0xadf   : > { %v4806_v55 = vpop.xlane.xlu0 %4805 }
 0xae0   : > { %v14134_v24 = vmax.f32 %v14126_v36, %v4806_v55  ;;  %4327 = vrot.lane.b32.xlu0 %v13737_v1, %s10965_s24 }
 0xae2   : > { %5127 = vst.msk [vmem:[#allocation4 + $0x178] sm:$0xff] %vm2714_vm12, %v14134_v24  ;;  %4948 = vperm.xlu1 %9993, %v14134_v24   ;;  %v15787_v45 = vsub.f32 %v14126_v36, %v14134_v24 }
 0xae3   : > { %v4803_v42 = vpop.xlane.xlu0 %4802 }
 0xae4   : > { %v14146_v54 = vmax.f32 %v14138_v52, %v4803_v42  ;;  %4331 = vrot.lane.b32.xlu0 %v13756_v2, %s10965_s24  ;;  %v4869_v9 = vmul.f32 1.442695, %v15787_v45 }
 0xae6   : > { %5126 = vst.msk [vmem:[#allocation4 + $0x170] sm:$0xff] %vm2714_vm12, %v14146_v54  ;;  %4943 = vperm.xlu1 %9993, %v14146_v54  }
 0xae7   : > { %v10137_v4 = vpop.permute.xlu0 %10136 }
 0xae8   : > { %v10139_v61 = vunpack.i.h.bf16 %v10137_v4  ;;  %v10138_v0 = vunpack.i.l.bf16 %v10137_v4  ;;  %4335 = vrot.lane.b32.xlu0 %v13760_v6, %s10965_s24  ;;  %v10515_v6 = vld [vmem:[#allocation2 + $0x40] sm:$0xff] }
 0xaea   : > { %10181 = vrot.lane.b32.xlu1 %v12558_v10, %s10965_s24  ;;  %v9590_v55 = vpack.c.bf16 %v10139_v61, %v10138_v0  ;;  %v10518_v61 = vld [vmem:[#allocation2 + $0x58] sm:$0xff] }
 0xaeb   : > { %v10147_v42 = vpop.permute.xlu0 %10146 }
 0xaec   : > { %v10149_v2 = vunpack.i.h.bf16 %v10147_v42  ;;  %v10148_v34 = vunpack.i.l.bf16 %v10147_v42  ;;  %4339 = vrot.lane.b32.xlu0 %v13752_v48, %s10965_s24  ;;  %9591 = vmatprep.subr.bf16.mxu0 %v9590_v55  ;;  %v10520_v42 = vld [vmem:[#allocation2 + $0x68] sm:$0xff] }
 0xaed   : > { %9593 = vmatpush3.bf16.msra.mxu0 %v9590_v55  ;;  %v10519_v55 = vld [vmem:[#allocation2 + $0x60] sm:$0xff] }
 0xaee   : > { %10191 = vrot.lane.b32.xlu1 %v12570_v37, %s10965_s24  ;;  %v9594_v1 = vpack.c.bf16 %v10149_v2, %v10148_v34  ;;  %v10516_v37 = vld [vmem:[#allocation2 + $0x48] sm:$0xff]  ;;  %v10517_v34 = vld [vmem:[#allocation2 + $0x50] sm:$0xff] }
 0xaef   : > { %v10157_v4 = vpop.permute.xlu0 %10156 }
 0xaf0   : > { %v10159_v13 = vunpack.i.h.bf16 %v10157_v4  ;;  %v10158_v25 = vunpack.i.l.bf16 %v10157_v4  ;;  %4343 = vrot.lane.b32.xlu0 %v13842_v44, %s10965_s24  ;;  %9595 = vmatprep.subr.bf16.mxu0 %v9594_v1 }
 0xaf1   : > { %9597 = vmatpush3.bf16.msra.mxu0 %v9594_v1 }
 0xaf2   : > { %v9614_v10 = vpack.c.bf16 %v10159_v13, %v10158_v25  ;;  %5812 = vrot.lane.b32.xlu1 %v10515_v6, %s10965_s24 }
 0xaf4   : > { %4347 = vrot.lane.b32.xlu0 %v13856_v43, %s10965_s24  ;;  %9616 = vmatprep.subr.msk.bf16.mxu0 %vm12406_vm2, %v9614_v10 }
 0xaf6   : > { %5814 = vrot.lane.b32.xlu1 %v10516_v37, %s10965_s24 }
 0xaf7   : > { %v4879_v48 = vpop.permute.xlu0 %4878 }
 0xaf8   : > { %4351 = vrot.lane.b32.xlu0 %v13865_v22, %s10965_s24  ;;  %v4952_v44 = vsub.f32 %v13772_v56, %v4879_v48 }
 0xafa   : > { %5816 = vrot.lane.b32.xlu1 %v10517_v34, %s10965_s24  ;;  %v4969_v1 = vmul.f32 1.442695, %v4952_v44  ;;  %v10521_v34 = vld [vmem:[#allocation2 + $0x70] sm:$0xff] }
 0xafb   : > { %v4874_v13 = vpop.permute.xlu0 %4873 }
 0xafc   : > { %v4951_v25 = vsub.f32 %v13777_v35, %v4874_v13 }
 0xafe   : > { %v4967_v43 = vmul.f32 1.442695, %v4951_v25  ;;  %5818 = vrot.lane.b32.xlu1 %v10518_v61, %s10965_s24 }
 0xaff   : > { %v10167_v0 = vpop.permute.xlu0 %10166 }
 0xb00   : > { %10363 = vpow2.f32 %v4967_v43  ;;  %v10169_v4 = vunpack.i.h.bf16 %v10167_v0  ;;  %v10168_v35 = vunpack.i.l.bf16 %v10167_v0 }
 0xb01   : > { %10365 = vpow2.f32 %v4969_v1 }
 0xb02   : > { %5820 = vrot.lane.b32.xlu1 %v10519_v55, %s10965_s24 }
 0xb03   : > { %v4889_v22 = vpop.permute.xlu0 %4888 }
 0xb04   : > { %v4954_v56 = vsub.f32 %v13783_v32, %v4889_v22  ;;  %v9620_v32 = vpack.c.bf16 %v10169_v4, %v10168_v35 }
 0xb06   : > { %5822 = vrot.lane.b32.xlu1 %v10520_v42, %s10965_s24  ;;  %v4973_v37 = vmul.f32 1.442695, %v4954_v56 }
 0xb07   : > { %v4884_v2 = vpop.permute.xlu0 %4883 }
 0xb08   : > { %v4953_v6 = vsub.f32 %v13788_v15, %v4884_v2  ;;  %v10522_v15 = vld [vmem:[#allocation2 + $0x78] sm:$0xff] }
 0xb0a   : > { %v10364_v48 = vpop.eup %10363  ;;  %v4971_v44 = vmul.f32 1.442695, %v4953_v6  ;;  %5824 = vrot.lane.b32.xlu1 %v10521_v34, %s10965_s24 }
 0xb0b   : > { %v14182_v13 = vpop.eup %10365  ;;  %9126 = vmatprep.mubr.msk.f32.mxu0 %vm2377_vm5, %v10364_v48  ;;  %v4899_v25 = vpop.permute.xlu0 %4898  ;;  %v5032_v42 = vsel %vm2377_vm5, %v10364_v48, 0.0 }
 0xb0c   : > { %10367 = vpow2.f32 %v4971_v44  ;;  %9127 = vmatmul.mubr.msk.f32.vlgmr.msra.gmra.mrb[72].mxu0 %vm2377_vm5, %v14182_v13  ;;  %v4956_v1 = vsub.f32 %v13799_v50, %v4899_v25 }
 0xb0d   : > { %10369 = vpow2.f32 %v4973_v37  ;;  %9619 = vmatpush3.bf16.xpose.msk.msra.mxu0 %vm12406_vm2, %v9614_v10 }
 0xb0e   : > { %9622 = vmatprep.subr.msk.bf16.mxu0 %vm12406_vm2, %v9620_v32  ;;  %5826 = vrot.lane.b32.xlu1 %v10522_v15, %s10965_s24  ;;  %v4977_v0 = vmul.f32 1.442695, %v4956_v1 }
 0xb0f   : > { %v4894_v43 = vpop.permute.xlu0 %4893 }
 0xb10   : > { %v4955_v61 = vsub.f32 %v13813_v38, %v4894_v43 }
 0xb12   : > { %v4975_v55 = vmul.f32 1.442695, %v4955_v61  ;;  %3906 = vperm.xlu1 %9993, %v13625_v7  }
 0xb13   : > { %v4909_v22 = vpop.permute.xlu0 %4908 }
 0xb14   : > { %10371 = vpow2.f32 %v4975_v55  ;;  %v4958_v50 = vsub.f32 %v13825_v63, %v4909_v22 }
 0xb15   : > { %10373 = vpow2.f32 %v4977_v0  ;;  %9625 = vmatpush3.bf16.xpose.msk.msra.mxu0 %vm12406_vm2, %v9620_v32 }
 0xb16   : > { %v10368_v10 = vpop.eup %10367  ;;  %v4981_v56 = vmul.f32 1.442695, %v4958_v50  ;;  %3916 = vperm.xlu1 %9993, %v13660_v3  }
 0xb17   : > { %v10370_v2 = vpop.eup %10369  ;;  %5033 = vadd.xlane.f32.xlu0 %v5032_v42  ;;  %v4904_v38 = vpop.permute.xlu0 %4903  ;;  %9129 = vmatprep.mubr.msk.f32.mxu0 %vm2377_vm5, %v10368_v10 }
 0xb18   : > { %v4957_v7 = vsub.f32 %v13834_v40, %v4904_v38  ;;  %9130 = vmatmul.mubr.msk.f32.gmra.mrb[74].mxu0 %vm2377_vm5, %v10370_v2  ;;  %10375 = vpow2.f32 %v4981_v56  ;;  %v5041_v4 = vsel %vm2377_vm5, %v10370_v2, 0.0  ;;  %v5038_v40 = vsel %vm2377_vm5, %v10368_v10, 0.0 }
 0xb1a   : > { %v4979_v63 = vmul.f32 1.442695, %v4957_v7  ;;  %3926 = vperm.xlu1 %9993, %v13675_v41  }
 0xb1b   : > { %5042 = vadd.xlane.f32.xlu0 %v5041_v4  ;;  %v10177_v35 = vpop.permute.xlu0 %10176  ;;  %v15768_v4 = vsub.f32 %v13943_v23, %v13954_v14  ;;  %v15770_v23 = vsub.f32 %v13960_v46, %v13972_v33 }
 0xb1c   : > { %10377 = vpow2.f32 %v4979_v63  ;;  %v10179_v3 = vunpack.i.h.bf16 %v10177_v35  ;;  %v10178_v6 = vunpack.i.l.bf16 %v10177_v35 }
 0xb1d   : > { %v4839_v35 = vmul.f32 1.442695, %v15768_v4  ;;  %v4843_v14 = vmul.f32 1.442695, %v15770_v23 }
 0xb1e   : > { %v14205_v37 = vpop.eup %10371  ;;  %v9626_v48 = vpack.c.bf16 %v10179_v3, %v10178_v6  ;;  %3936 = vperm.xlu1 %9993, %v13685_v8   ;;  %v15769_v6 = vld [vmem:[#allocation93_spill] sm:$0xff] }
 0xb1f   : > { %v10374_v44 = vpop.eup %10373  ;;  %5039 = vadd.xlane.f32.xlu0 %v5038_v40  ;;  %v10187_v34 = vpop.permute.xlu0 %10186  ;;  %9132 = vmatprep.mubr.msk.f32.mxu0 %vm2377_vm5, %v14205_v37  ;;  %v15771_v40 = vsub.f32 %v13945_v31, %v13957_v30 }
 0xb20   : > { %v10189_v41 = vunpack.i.h.bf16 %v10187_v34  ;;  %v10188_v25 = vunpack.i.l.bf16 %v10187_v34  ;;  %9133 = vmatmul.mubr.msk.f32.gmra.mrb[76].mxu0 %vm2377_vm5, %v10374_v44  ;;  %9628 = vmatprep.subr.msk.bf16.mxu0 %vm12406_vm2, %v9626_v48  ;;  %v5047_v8 = vsel %vm2377_vm5, %v10374_v44, 0.0 }
 0xb21   : > { %9631 = vmatpush3.bf16.xpose.msk.msra.mxu0 %vm12406_vm2, %v9626_v48  ;;  %v4845_v44 = vmul.f32 1.442695, %v15771_v40 }
 0xb22   : > { %v9632_v32 = vpack.c.bf16 %v10189_v41, %v10188_v25  ;;  %3946 = vperm.xlu1 %9993, %v13723_v5   ;;  %v10376_v1 = vpop.eup %10375 }
 0xb23   : > { %5048 = vadd.xlane.f32.xlu0 %v5047_v8  ;;  %v5644_v15 = vpop.permute.xlu0 %5643  ;;  %v5053_v61 = vsel %vm2377_vm5, %v10376_v1, 0.0  ;;  %v15772_v8 = vld [vmem:[#allocation94_spill] sm:$0xff] }
 0xb24   : > { %9634 = vmatprep.subr.msk.bf16.mxu0 %vm12406_vm2, %v9632_v32 }
 0xb26   : > { %v14220_v43 = vpop.eup %10377  ;;  %3956 = vperm.xlu1 %9993, %v13739_v19  }
 0xb27   : > { %5054 = vadd.xlane.f32.xlu0 %v5053_v61  ;;  %v5646_v0 = vpop.permute.xlu0 %5645  ;;  %9135 = vmatprep.mubr.msk.f32.mxu0 %vm2377_vm5, %v14220_v43  ;;  %v5050_v12 = vsel %vm2377_vm5, %v14220_v43, 0.0 }
 0xb28   : > { %9136 = vmatmul.mubr.msk.f32.gmra.mrb[78].mxu0 %vm2377_vm5, %v10376_v1 }
 0xb29   : > { %9637 = vmatpush3.bf16.xpose.msk.msra.mxu0 %vm12406_vm2, %v9632_v32  ;;  %9182 = vmatprep.mubr.msk.f32.mxu0 %vm2054_vm1, %v5644_v15 }
 0xb2a   : > { %3966 = vperm.xlu1 %9993, %v13951_v57  }
 0xb2b   : > { %v5648_v5 = vpop.permute.xlu0 %5647  ;;  %v4919_v55 = vpop.permute.xlu1 %4918 }
 0xb2c   : > { %v4960_v19 = vsub.f32 %v13872_v17, %v4919_v55  ;;  %v15773_v55 = vld [vmem:[#allocation95_spill] sm:$0xff] }
 0xb2e   : > { %v4985_v22 = vmul.f32 1.442695, %v4960_v19  ;;  %4325 = vrot.lane.b32.xlu1 %v13726_v39, %s10965_s24 }
 0xb2f   : > { %v5650_v50 = vpop.permute.xlu0 %5649  ;;  %v4914_v10 = vpop.permute.xlu1 %4913 }
 0xb30   : > { %10379 = vpow2.f32 %v4985_v22  ;;  %v4959_v56 = vsub.f32 %v13875_v27, %v4914_v10  ;;  %9183 = vmatmul.mubr.msk.f32.vlgmr.msra.gmra.mrb[80].mxu0 %vm2054_vm1, %v5646_v0  ;;  %v3873_v0 = vld [vmem:[#allocation3] sm:$0xff] }
 0xb31   : > { %9185 = vmatprep.mubr.msk.f32.mxu0 %vm2054_vm1, %v5648_v5 }
 0xb32   : > { %v4983_v42 = vmul.f32 1.442695, %v4959_v56  ;;  %4329 = vrot.lane.b32.xlu1 %v13733_v49, %s10965_s24  ;;  %v3875_v56 = vld [vmem:[#allocation3 + $0x10] sm:$0xff] }
 0xb33   : > { %v5652_v57 = vpop.permute.xlu0 %5651  ;;  %v10172_v17 = vpop.permute.xlu1 %10171 }
 0xb34   : > { %10381 = vpow2.f32 %v4983_v42  ;;  %9186 = vmatmul.mubr.msk.f32.gmra.mrb[82].mxu0 %vm2054_vm1, %v5650_v50  ;;  %v10174_v38 = vunpack.i.h.bf16 %v10172_v17  ;;  %v10173_v7 = vunpack.i.l.bf16 %v10172_v17 }
 0xb35   : > { %9188 = vmatprep.mubr.msk.f32.mxu0 %vm2054_vm1, %v5652_v57  ;;  %10383 = vpow2.f32 %v4839_v35  ;;  %v15775_v35 = vld [vmem:[#allocation105_spill] sm:$0xff] }
 0xb36   : > { %4333 = vrot.lane.b32.xlu1 %v13754_v59, %s10965_s24  ;;  %v15767_v59 = vld [vmem:[#allocation91_spill] sm:$0xff]  ;;  %10385 = vpow2.f32 %v4843_v14 }
 0xb37   : > { %v5654_v39 = vpop.permute.xlu0 %5653  ;;  %10387 = vpow2.f32 %v4845_v44 }
 0xb38   : > { %9189 = vmatmul.mubr.msk.f32.gmra.mrb[84].mxu0 %vm2054_vm1, %v5654_v39  ;;  %v15774_v39 = vld [vmem:[#allocation96_spill] sm:$0xff] }
 0xb3a   : > { %v10380_v27 = vpop.eup %10379  ;;  %4337 = vrot.lane.b32.xlu1 %v13758_v20, %s10965_s24  ;;  %v9644_v20 = vpack.c.bf16 %v10174_v38, %v10173_v7 }
 0xb3b   : > { %v5656_v2 = vpop.permute.xlu0 %5655  ;;  %v5059_v49 = vsel %vm2377_vm5, %v10380_v27, 0.0 }
 0xb3c   : > { %5060 = vadd.xlane.f32.xlu0 %v5059_v49  ;;  %9191 = vmatprep.mubr.msk.f32.mxu0 %vm2054_vm1, %v5656_v2 }
 0xb3e   : > { %v14248_v63 = vpop.eup %10381  ;;  %4341 = vrot.lane.b32.xlu1 %v15767_v59, %s10965_s24 }
 0xb3f   : > { %v5658_v3 = vpop.permute.xlu0 %5657  ;;  %9154 = vmatprep.mubr.msk.f32.mxu1 %vm2377_vm5, %v14248_v63  ;;  %v14278_v33 = vpop.eup %10383 }
 0xb40   : > { %9155 = vmatmul.mubr.msk.f32.vlgmr.msra.gmra.mrb[72].mxu1 %vm2377_vm5, %v10380_v27  ;;  %9192 = vmatmul.mubr.msk.f32.gmra.mrb[86].mxu0 %vm2054_vm1, %v5658_v3 }
 0xb41   : > { %9643 = vmatpush3.bf16.xpose.msk.msra.mxu1 %vm12406_vm2, %v14083_v18 }
 0xb42   : > { %4345 = vrot.lane.b32.xlu1 %v15769_v6, %s10965_s24  ;;  %9646 = vmatprep.subr.msk.bf16.mxu1 %vm12406_vm2, %v9644_v20 }
 0xb43   : > { %v3902_v48 = vpop.permute.xlu0 %3901 }
 0xb44   : > { %v3971_v57 = vmul.f32 %v3902_v48, %v3875_v56  ;;  %v3879_v48 = vld [vmem:[#allocation3 + $0x30] sm:$0xff] }
 0xb46   : > { %4349 = vrot.lane.b32.xlu1 %v13854_v51, %s10965_s24  ;;  %v14281_v51 = vpop.eup %10385 }
 0xb47   : > { %v3912_v18 = vpop.permute.xlu0 %3911  ;;  %v14287_v32 = vpop.eup %10387 }
 0xb49   : > { %9649 = vmatpush3.bf16.xpose.msk.msra.mxu1 %vm12406_vm2, %v9644_v20 }
 0xb4a   : > { %4353 = vrot.lane.b32.xlu1 %v13863_v53, %s10965_s24 }
 0xb4b   : > { %v3922_v34 = vpop.permute.xlu0 %3921 }
 0xb4c   : > { %v3975_v44 = vmul.f32 %v3922_v34, %v3879_v48  ;;  %v5056_v48 = vsel %vm2377_vm5, %v14248_v63, 0.0 }
 0xb4e   : > { %5146 = vperm.xlu1 %9993, %v14278_v33  }
 0xb4f   : > { %v3932_v46 = vpop.permute.xlu0 %3931 }
 0xb51   : > { %v4929_v41 = vpop.permute.xlu1 %4928 }
 0xb52   : > { %v4962_v31 = vsub.f32 %v13890_v58, %v4929_v41  ;;  %5156 = vperm.xlu1 %9993, %v14281_v51   ;;  %v3969_v58 = vmul.f32 %v14072_v60, %v3873_v0  ;;  %v3877_v60 = vld [vmem:[#allocation3 + $0x20] sm:$0xff] }
 0xb53   : > { %v14285_v30 = vpop.permute.xlu0 %3941  ;;  %v3973_v4 = vmul.f32 %v3912_v18, %v3877_v60  ;;  %v15776_v18 = vld [vmem:[#allocation107_spill] sm:$0xff] }
 0xb54   : > { %v4989_v25 = vmul.f32 1.442695, %v4962_v31 }
 0xb55   : > { %v4924_v53 = vpop.permute.xlu1 %4923 }
 0xb56   : > { %10389 = vpow2.f32 %v4989_v25  ;;  %v4961_v1 = vsub.f32 %v15772_v8, %v4924_v53  ;;  %5161 = vperm.xlu1 %9993, %v14287_v32  }
 0xb57   : > { %v14291_v15 = vpop.permute.xlu0 %3951 }
 0xb58   : > { %v4987_v61 = vmul.f32 1.442695, %v4961_v1  ;;  %v3881_v1 = vld [vmem:[#allocation3 + $0x40] sm:$0xff] }
 0xb59   : > { %v4939_v5 = vpop.permute.xlu1 %4938 }
 0xb5a   : > { %10391 = vpow2.f32 %v4987_v61  ;;  %v4964_v19 = vsub.f32 %v15773_v55, %v4939_v5  ;;  %v3977_v5 = vmul.f32 %v3932_v46, %v3881_v1 }
 0xb5b   : > { %v4324_v22 = vpop.permute.xlu0 %4323 }
 0xb5c   : > { %v4993_v50 = vmul.f32 1.442695, %v4964_v19  ;;  %v4371_v10 = vadd.f32 %v4324_v22, %v3969_v58 }
 0xb5d   : > { %v4934_v42 = vpop.permute.xlu1 %4933 }
 0xb5e   : > { %10393 = vpow2.f32 %v4993_v50  ;;  %4388 = vst.msk [vmem:[#allocation3] sm:$0xff] %vm4387_vm13, %v4371_v10  ;;  %v4963_v17 = vsub.f32 %v15774_v39, %v4934_v42  ;;  %v3883_v10 = vld [vmem:[#allocation3 + $0x50] sm:$0xff] }
 0xb5f   : > { %v4328_v27 = vpop.permute.xlu0 %4327  ;;  %v3979_v42 = vmul.f32 %v14285_v30, %v3883_v10  ;;  %v5003_v10 = vld [vmem:[#allocation5 + $0x118] sm:$0xff] }
 0xb60   : > { %v10390_v2 = vpop.eup %10389  ;;  %v4991_v49 = vmul.f32 1.442695, %v4963_v17  ;;  %v4373_v38 = vadd.f32 %v4328_v27, %v3971_v57 }
 0xb61   : > { %v4949_v7 = vpop.permute.xlu1 %4948  ;;  %v5065_v59 = vsel %vm2377_vm5, %v10390_v2, 0.0 }
 0xb62   : > { %10395 = vpow2.f32 %v4991_v49  ;;  %4390 = vst.msk [vmem:[#allocation3 + $0x10] sm:$0xff] %vm4387_vm13, %v4373_v38  ;;  %v4966_v3 = vsub.f32 %v15775_v35, %v4949_v7  ;;  %5066 = vadd.xlane.f32.xlu0 %v5065_v59  ;;  %v3885_v49 = vld [vmem:[#allocation3 + $0x60] sm:$0xff] }
 0xb63   : > { %v4332_v20 = vpop.permute.xlu0 %4331  ;;  %v3981_v60 = vmul.f32 %v14291_v15, %v3885_v49 }
 0xb64   : > { %v14300_v6 = vpop.eup %10391  ;;  %v4997_v23 = vmul.f32 1.442695, %v4966_v3  ;;  %v4375_v14 = vadd.f32 %v4332_v20, %v3973_v4  ;;  %v5035_v3 = vsel %vm2377_vm5, %v14182_v13, 0.0 }
 0xb65   : > { %v4944_v40 = vpop.permute.xlu1 %4943  ;;  %9157 = vmatprep.mubr.msk.f32.mxu1 %vm2377_vm5, %v14300_v6 }
 0xb66   : > { %10397 = vpow2.f32 %v4997_v23  ;;  %4392 = vst.msk [vmem:[#allocation3 + $0x20] sm:$0xff] %vm4387_vm13, %v4375_v14  ;;  %v4965_v41 = vsub.f32 %v15776_v18, %v4944_v40  ;;  %9158 = vmatmul.mubr.msk.f32.gmra.mrb[74].mxu1 %vm2377_vm5, %v10390_v2  ;;  %v5044_v23 = vsel %vm2377_vm5, %v14205_v37, 0.0  ;;  %v5062_v40 = vsel %vm2377_vm5, %v14300_v6, 0.0 }
 0xb67   : > { %v4336_v31 = vpop.permute.xlu0 %4335 }
 0xb68   : > { %v10394_v25 = vpop.eup %10393  ;;  %v4995_v53 = vmul.f32 1.442695, %v4965_v41  ;;  %v4377_v8 = vadd.f32 %v4336_v31, %v3975_v44 }
 0xb69   : > { %v10182_v61 = vpop.permute.xlu1 %10181  ;;  %v5071_v0 = vsel %vm2377_vm5, %v10394_v25, 0.0 }
 0xb6a   : > { %10399 = vpow2.f32 %v4995_v53  ;;  %4394 = vst.msk [vmem:[#allocation3 + $0x30] sm:$0xff] %vm4387_vm13, %v4377_v8  ;;  %v10184_v34 = vunpack.i.h.bf16 %v10182_v61  ;;  %v10183_v58 = vunpack.i.l.bf16 %v10182_v61  ;;  %5072 = vadd.xlane.f32.xlu0 %v5071_v0  ;;  %v15777_v53 = vld [vmem:[#allocation101_spill] sm:$0xff]  ;;  %v15778_v8 = vld [vmem:[#allocation132_spill] sm:$0xff]  ;;  %v5000_v0 = vld [vmem:[#allocation5 + $0x100] sm:$0xff] }
 0xb6b   : > { %v4340_v55 = vpop.permute.xlu0 %4339  ;;  %v15779_v1 = vsub.f32 %v15777_v53, %v15778_v8  ;;  %v15785_v8 = vld [vmem:[#allocation103_spill] sm:$0xff] }
 0xb6c   : > { %v10396_v19 = vpop.eup %10395  ;;  %v9650_v22 = vpack.c.bf16 %v10184_v34, %v10183_v58  ;;  %v4379_v50 = vadd.f32 %v4340_v55, %v3977_v5  ;;  %v15780_v34 = vld [vmem:[#allocation141_spill] sm:$0xff]  ;;  %v15781_v58 = vld [vmem:[#allocation142_spill] sm:$0xff] }
 0xb6d   : > { %v10192_v56 = vpop.permute.xlu1 %10191  ;;  %9160 = vmatprep.mubr.msk.f32.mxu1 %vm2377_vm5, %v10396_v19  ;;  %v5068_v44 = vsel %vm2377_vm5, %v10396_v19, 0.0  ;;  %v4849_v6 = vmul.f32 1.442695, %v15779_v1  ;;  %v15782_v55 = vsub.f32 %v15780_v34, %v15781_v58 }
 0xb6e   : > { %4396 = vst.msk [vmem:[#allocation3 + $0x40] sm:$0xff] %vm4387_vm13, %v4379_v50  ;;  %v10194_v57 = vunpack.i.h.bf16 %v10192_v56  ;;  %v10193_v46 = vunpack.i.l.bf16 %v10192_v56  ;;  %9161 = vmatmul.mubr.msk.f32.gmra.mrb[76].mxu1 %vm2377_vm5, %v10394_v25  ;;  %9652 = vmatprep.subr.msk.bf16.mxu1 %vm12406_vm2, %v9650_v22 }
 0xb6f   : > { %v4344_v39 = vpop.permute.xlu0 %4343  ;;  %9655 = vmatpush3.bf16.xpose.msk.msra.mxu1 %vm12406_vm2, %v9650_v22  ;;  %10401 = vpow2.f32 %v4849_v6  ;;  %v4853_v19 = vmul.f32 1.442695, %v15782_v55  ;;  %v5016_v22 = vmul.f32 %v14278_v33, %v5000_v0  ;;  %v15783_v33 = vld [vmem:[#allocation109_spill] sm:$0xff]  ;;  %v3880_v0 = vld [vmem:[#allocation3 + $0x38] sm:$0xff] }
 0xb70   : > { %v10398_v17 = vpop.eup %10397  ;;  %v9656_v27 = vpack.c.bf16 %v10194_v57, %v10193_v46  ;;  %v4381_v2 = vadd.f32 %v4344_v39, %v3979_v42  ;;  %v5019_v57 = vmul.f32 %v14287_v32, %v5003_v10  ;;  %v5002_v39 = vld [vmem:[#allocation5 + $0x110] sm:$0xff]  ;;  %v3884_v10 = vld [vmem:[#allocation3 + $0x58] sm:$0xff] }
 0xb71   : > { %v5813_v38 = vpop.permute.xlu1 %5812  ;;  %v5077_v30 = vsel %vm2377_vm5, %v10398_v17, 0.0  ;;  %10403 = vpow2.f32 %v4853_v19  ;;  %v5018_v49 = vmul.f32 %v14281_v51, %v5002_v39  ;;  %v3886_v39 = vld [vmem:[#allocation3 + $0x68] sm:$0xff] }
 0xb72   : > { %4398 = vst.msk [vmem:[#allocation3 + $0x50] sm:$0xff] %vm4387_vm13, %v4381_v2  ;;  %5078 = vadd.xlane.f32.xlu0 %v5077_v30  ;;  %9658 = vmatprep.subr.msk.bf16.mxu1 %vm12406_vm2, %v9656_v27  ;;  %v3874_v2 = vld [vmem:[#allocation3 + $0x8] sm:$0xff] }
 0xb73   : > { %v4348_v7 = vpop.permute.xlu0 %4347  ;;  %v3970_v30 = vmul.f32 %v15783_v33, %v3874_v2 }
 0xb74   : > { %v10400_v59 = vpop.eup %10399  ;;  %v4383_v4 = vadd.f32 %v4348_v7, %v3981_v60  ;;  %v5005_v7 = vld [vmem:[#allocation5 + $0x128] sm:$0xff] }
 0xb75   : > { %v5815_v35 = vpop.permute.xlu1 %5814  ;;  %9163 = vmatprep.mubr.msk.f32.mxu1 %vm2377_vm5, %v10400_v59  ;;  %v5074_v41 = vsel %vm2377_vm5, %v10400_v59, 0.0 }
 0xb76   : > { %4400 = vst.msk [vmem:[#allocation3 + $0x60] sm:$0xff] %vm4387_vm13, %v4383_v4  ;;  %9164 = vmatmul.mubr.msk.f32.gmra.mrb[78].mxu1 %vm2377_vm5, %v10398_v17 }
 0xb77   : > { %9661 = vmatpush3.bf16.xpose.msk.msra.mxu1 %vm12406_vm2, %v9656_v27  ;;  %9210 = vmatprep.mubr.msk.f32.mxu1 %vm2054_vm1, %v5813_v38  ;;  %v14350_v61 = vpop.permute.xlu0 %4351 }
 0xb79   : > { %v5817_v15 = vpop.permute.xlu1 %5816  ;;  %v14360_v38 = vpop.eup %10401 }
 0xb7a   : > { %5036 = vadd.xlane.f32.xlu1 %v5035_v3  ;;  %v5021_v32 = vmul.f32 %v14360_v38, %v5005_v7 }
 0xb7b   : > { %v14365_v3 = vpop.eup %10403 }
 0xb7d   : > { %v5819_v20 = vpop.permute.xlu1 %5818 }
 0xb7e   : > { %5045 = vadd.xlane.f32.xlu1 %v5044_v23  ;;  %9211 = vmatmul.mubr.msk.f32.vlgmr.msra.gmra.mrb[80].mxu1 %vm2054_vm1, %v5815_v35  ;;  %v5007_v23 = vld [vmem:[#allocation5 + $0x138] sm:$0xff] }
 0xb7f   : > { %9213 = vmatprep.mubr.msk.f32.mxu1 %vm2054_vm1, %v5817_v15  ;;  %v3876_v15 = vld [vmem:[#allocation3 + $0x18] sm:$0xff] }
 0xb81   : > { %v5821_v14 = vpop.permute.xlu1 %5820 }
 0xb82   : > { %5051 = vadd.xlane.f32.xlu1 %v5050_v12  ;;  %9214 = vmatmul.mubr.msk.f32.gmra.mrb[82].mxu1 %vm2054_vm1, %v5819_v20 }
 0xb83   : > { %9216 = vmatprep.mubr.msk.f32.mxu1 %vm2054_vm1, %v5821_v14 }
 0xb85   : > { %v5823_v13 = vpop.permute.xlu1 %5822 }
 0xb86   : > { %5057 = vadd.xlane.f32.xlu1 %v5056_v48  ;;  %9217 = vmatmul.mubr.msk.f32.gmra.mrb[84].mxu1 %vm2054_vm1, %v5823_v13  ;;  %v3878_v48 = vld [vmem:[#allocation3 + $0x28] sm:$0xff] }
 0xb89   : > { %v5825_v37 = vpop.permute.xlu1 %5824 }
 0xb8a   : > { %5063 = vadd.xlane.f32.xlu1 %v5062_v40  ;;  %9219 = vmatprep.mubr.msk.f32.mxu1 %vm2054_vm1, %v5825_v37  ;;  %v5023_v37 = vmul.f32 %v14365_v3, %v5007_v23 }
 0xb8d   : > { %v5827_v43 = vpop.permute.xlu1 %5826 }
 0xb8e   : > { %5069 = vadd.xlane.f32.xlu1 %v5068_v44  ;;  %9220 = vmatmul.mubr.msk.f32.gmra.mrb[86].mxu1 %vm2054_vm1, %v5827_v43 }
 0xb91   : > { %v3907_v18 = vpop.permute.xlu1 %3906 }
 0xb92   : > { %5075 = vadd.xlane.f32.xlu1 %v5074_v41  ;;  %v3972_v20 = vmul.f32 %v3907_v18, %v3876_v15  ;;  %v15784_v18 = vld [vmem:[#allocation102_spill] sm:$0xff] }
 0xb93   : > { %v15786_v1 = vsub.f32 %v15784_v18, %v15785_v8  ;;  %v15793_v18 = vld [vmem:[#allocation134_spill] sm:$0xff] }
 0xb95   : > { %v3917_v63 = vpop.permute.xlu1 %3916  ;;  %v4857_v6 = vmul.f32 1.442695, %v15786_v1 }
 0xb96   : > { %v3974_v40 = vmul.f32 %v3917_v63, %v3878_v48  ;;  %v3882_v63 = vld [vmem:[#allocation3 + $0x48] sm:$0xff]  ;;  %v15788_v48 = vld [vmem:[#allocation97_spill] sm:$0xff] }
 0xb97   : > { %10405 = vpow2.f32 %v4857_v6 }
 0xb99   : > { %v3927_v31 = vpop.permute.xlu1 %3926 }
 0xb9a   : > { %v3976_v34 = vmul.f32 %v3927_v31, %v3880_v0 }
 0xb9d   : > { %v3937_v25 = vpop.permute.xlu1 %3936 }
 0xb9e   : > { %v3978_v19 = vmul.f32 %v3937_v25, %v3882_v63  ;;  %v3888_v25 = vld [vmem:[#allocation3 + $0x78] sm:$0xff] }
 0xb9f   : > { %v15796_v63 = vld [vmem:[#allocation90_spill] sm:$0xff] }
 0xba1   : > { %v3947_v5 = vpop.permute.xlu1 %3946  ;;  %v14379_v31 = vpop.eup %10405 }
 0xba4   : > { %v5034_v50 = vpop.xlane.xlu0 %5033 }
 0xba5   : > { %v5080_v56 = vadd.f32 %v5034_v50, %v5016_v22  ;;  %v3957_v42 = vpop.permute.xlu1 %3956 }
 0xba7   : > { %5096 = vst.msk [vmem:[#allocation5 + $0x100] sm:$0xff] %vm2714_vm12, %v5080_v56  ;;  %v3980_v56 = vmul.f32 %v3947_v5, %v3884_v10 }
 0xba8   : > { %v5043_v46 = vpop.xlane.xlu0 %5042 }
 0xba9   : > { %v5083_v17 = vadd.f32 %v5043_v46, %v5019_v57  ;;  %v3967_v27 = vpop.permute.xlu1 %3966 }
 0xbab   : > { %5099 = vst.msk [vmem:[#allocation5 + $0x118] sm:$0xff] %vm2714_vm12, %v5083_v17  ;;  %v3982_v17 = vmul.f32 %v3957_v42, %v3886_v39  ;;  %v4861_v42 = vmul.f32 1.442695, %v4834_v26  ;;  %v15800_v39 = vld [vmem:[#allocation108_spill] sm:$0xff] }
 0xbac   : > { %v5040_v60 = vpop.xlane.xlu0 %5039 }
 0xbad   : > { %v5082_v59 = vadd.f32 %v5040_v60, %v5018_v49  ;;  %v4326_v4 = vpop.permute.xlu1 %4325  ;;  %v5009_v49 = vld [vmem:[#allocation5 + $0x148] sm:$0xff]  ;;  %10407 = vpow2.f32 %v4861_v42  ;;  %v15804_v42 = vld [vmem:[#allocation82_spill] sm:$0xff] }
 0xbae   : > { %v4372_v35 = vadd.f32 %v4326_v4, %v3970_v30  ;;  %v3984_v30 = vmul.f32 %v3967_v27, %v3888_v25  ;;  %v5025_v60 = vmul.f32 %v14379_v31, %v5009_v49  ;;  %v4865_v27 = vmul.f32 1.442695, %v4836_v16  ;;  %v5013_v16 = vld [vmem:[#allocation5 + $0x168] sm:$0xff] }
 0xbaf   : > { %5098 = vst.msk [vmem:[#allocation5 + $0x110] sm:$0xff] %vm2714_vm12, %v5082_v59  ;;  %v5001_v25 = vld [vmem:[#allocation5 + $0x108] sm:$0xff] }
 0xbb0   : > { %4389 = vst.msk [vmem:[#allocation3 + $0x8] sm:$0xff] %vm4387_vm13, %v4372_v35  ;;  %v5049_v51 = vpop.xlane.xlu0 %5048  ;;  %10409 = vpow2.f32 %v4865_v27 }
 0xbb1   : > { %v5085_v14 = vadd.f32 %v5049_v51, %v5021_v32  ;;  %v4330_v12 = vpop.permute.xlu1 %4329  ;;  %v5011_v51 = vld [vmem:[#allocation5 + $0x158] sm:$0xff]  ;;  %10411 = vpow2.f32 %v4869_v9 }
 0xbb2   : > { %v4374_v13 = vadd.f32 %v4330_v12, %v3972_v20 }
 0xbb3   : > { %5101 = vst.msk [vmem:[#allocation5 + $0x128] sm:$0xff] %vm2714_vm12, %v5085_v14 }
 0xbb4   : > { %4391 = vst.msk [vmem:[#allocation3 + $0x18] sm:$0xff] %vm4387_vm13, %v4374_v13  ;;  %v5055_v43 = vpop.xlane.xlu0 %5054 }
 0xbb5   : > { %v5087_v44 = vadd.f32 %v5055_v43, %v5023_v37  ;;  %v4334_v41 = vpop.permute.xlu1 %4333  ;;  %v15789_v37 = vld [vmem:[#allocation99_spill] sm:$0xff] }
 0xbb6   : > { %v4376_v53 = vadd.f32 %v4334_v41, %v3974_v40  ;;  %v15790_v40 = vsub.f32 %v15788_v48, %v15789_v37 }
 0xbb7   : > { %5103 = vst.msk [vmem:[#allocation5 + $0x138] sm:$0xff] %vm2714_vm12, %v5087_v44  ;;  %v14395_v32 = vpop.eup %10407 }
 0xbb8   : > { %4393 = vst.msk [vmem:[#allocation3 + $0x28] sm:$0xff] %vm4387_vm13, %v4376_v53  ;;  %v5027_v26 = vmul.f32 %v14395_v32, %v5011_v51  ;;  %v4841_v43 = vmul.f32 1.442695, %v15790_v40  ;;  %v15792_v53 = vld [vmem:[#allocation133_spill] sm:$0xff]  ;;  %v15806_v40 = vsub.f32 %v14114_v62, %v14122_v11 }
 0xbb9   : > { %v4338_v58 = vpop.permute.xlu1 %4337  ;;  %v15794_v8 = vsub.f32 %v15792_v53, %v15793_v18 }
 0xbba   : > { %v4378_v55 = vadd.f32 %v4338_v58, %v3976_v34  ;;  %v14406_v21 = vpop.eup %10409  ;;  %10413 = vpow2.f32 %v4841_v43  ;;  %v5015_v34 = vld [vmem:[#allocation5 + $0x178] sm:$0xff]  ;;  %v4863_v43 = vmul.f32 1.442695, %v15806_v40 }
 0xbbb   : > { %v5029_v36 = vmul.f32 %v14406_v21, %v5013_v16  ;;  %v4847_v1 = vmul.f32 1.442695, %v15794_v8  ;;  %v14422_v6 = vpop.eup %10411 }
 0xbbc   : > { %4395 = vst.msk [vmem:[#allocation3 + $0x38] sm:$0xff] %vm4387_vm13, %v4378_v55  ;;  %v15795_v55 = vld [vmem:[#allocation89_spill] sm:$0xff]  ;;  %v5031_v10 = vmul.f32 %v14422_v6, %v5015_v34 }
 0xbbd   : > { %v4342_v22 = vpop.permute.xlu1 %4341  ;;  %10415 = vpow2.f32 %v4847_v1  ;;  %v5006_v1 = vld [vmem:[#allocation5 + $0x130] sm:$0xff] }
 0xbbe   : > { %v4380_v50 = vadd.f32 %v4342_v22, %v3978_v19  ;;  %v15797_v19 = vsub.f32 %v15795_v55, %v15796_v63  ;;  %v15808_v63 = vld [vmem:[#allocation86_spill] sm:$0xff] }
 0xbc0   : > { %4397 = vst.msk [vmem:[#allocation3 + $0x48] sm:$0xff] %vm4387_vm13, %v4380_v50  ;;  %v4851_v22 = vmul.f32 1.442695, %v15797_v19 }
 0xbc1   : > { %v4346_v57 = vpop.permute.xlu1 %4345 }
 0xbc2   : > { %v4382_v46 = vadd.f32 %v4346_v57, %v3980_v56  ;;  %10417 = vpow2.f32 %v4851_v22  ;;  %v15809_v22 = vsub.f32 %v14138_v52, %v14146_v54 }
 0xbc4   : > { %4399 = vst.msk [vmem:[#allocation3 + $0x58] sm:$0xff] %vm4387_vm13, %v4382_v46  ;;  %v15799_v46 = vld [vmem:[#allocation145_spill] sm:$0xff]  ;;  %v14438_v49 = vpop.eup %10413 }
 0xbc5   : > { %v4350_v2 = vpop.permute.xlu1 %4349  ;;  %v5017_v51 = vmul.f32 %v14438_v49, %v5001_v25 }
 0xbc6   : > { %v4384_v33 = vadd.f32 %v4350_v2, %v3982_v17  ;;  %v15801_v17 = vsub.f32 %v15799_v46, %v15800_v39  ;;  %v5008_v39 = vld [vmem:[#allocation5 + $0x140] sm:$0xff] }
 0xbc7   : > { %v14454_v9 = vpop.eup %10415 }
 0xbc8   : > { %4401 = vst.msk [vmem:[#allocation3 + $0x68] sm:$0xff] %vm4387_vm13, %v4384_v33  ;;  %v4855_v2 = vmul.f32 1.442695, %v15801_v17 }
 0xbc9   : > { %v4354_v5 = vpop.permute.xlu1 %4353  ;;  %v5061_v7 = vpop.xlane.xlu0 %5060 }
 0xbca   : > { %v4386_v59 = vadd.f32 %v4354_v5, %v3984_v30  ;;  %v5089_v4 = vadd.f32 %v5061_v7, %v5025_v60  ;;  %v15802_v60 = vld [vmem:[#allocation81_spill] sm:$0xff]  ;;  %10419 = vpow2.f32 %v4855_v2 }
 0xbcb   : > { %v15810_v2 = vld [vmem:[#allocation85_spill] sm:$0xff] }
 0xbcc   : > { %4403 = vst.msk [vmem:[#allocation3 + $0x78] sm:$0xff] %vm4387_vm13, %v4386_v59  ;;  %v15803_v59 = vsub.f32 %v14089_v28, %v14100_v47  ;;  %v15805_v28 = vld [vmem:[#allocation83_spill] sm:$0xff]  ;;  %v14471_v18 = vpop.eup %10417 }
 0xbcd   : > { %5105 = vst.msk [vmem:[#allocation5 + $0x148] sm:$0xff] %vm2714_vm12, %v5089_v4  ;;  %v14416_v24 = vpop.permute.xlu1 %5146 }
 0xbce   : > { %15791 = vst [vmem:[#allocation137_spill] sm:$0xff] %v14416_v24  ;;  %v4859_v4 = vmul.f32 1.442695, %v15803_v59  ;;  %v14671_v24 = vld [vmem:[#allocation4 + $0x1c0] sm:$0xff] }
 0xbd0   : > { %10421 = vpow2.f32 %v4859_v4  ;;  %v5010_v4 = vld [vmem:[#allocation5 + $0x150] sm:$0xff] }
 0xbd1   : > { %v14431_v50 = vpop.permute.xlu1 %5156  ;;  %10423 = vpow2.f32 %v4863_v43 }
 0xbd2   : > { %15798 = vst [vmem:[#allocation139_spill] sm:$0xff] %v14431_v50 }
 0xbd5   : > { %v14440_v33 = vpop.permute.xlu1 %5161 }
 0xbdf   : > { %v14388_v35 = vpop.f32.mrb[72].mxu0 }
 0xbe0   : > { %v14390_v15 = vpop.f32.mrb[73].mxu0 }
 0xbeb   : > { %v14397_v20 = vpop.f32.mrb[74].mxu0 }
 0xbec   : > { %v14399_v23 = vpop.f32.mrb[75].mxu0 }
 0xbef   : > { %v5067_v14 = vpop.xlane.xlu0 %5066 }
 0xbf0   : > { %v5091_v12 = vadd.f32 %v5067_v14, %v5027_v26  ;;  %v5004_v14 = vld [vmem:[#allocation5 + $0x120] sm:$0xff] }
 0xbf2   : > { %5107 = vst.msk [vmem:[#allocation5 + $0x158] sm:$0xff] %vm2714_vm12, %v5091_v12 }
 0xbf3   : > { %v14408_v29 = vpop.f32.mrb[76].mxu0 }
 0xbf4   : > { %v14410_v13 = vpop.f32.mrb[77].mxu0 }
 0xbf7   : > { %v5073_v44 = vpop.xlane.xlu0 %5072 }
 0xbf8   : > { %v5093_v41 = vadd.f32 %v5073_v44, %v5029_v36  ;;  %v15807_v36 = vld [vmem:[#allocation84_spill] sm:$0xff] }
 0xbfa   : > { %5109 = vst.msk [vmem:[#allocation5 + $0x168] sm:$0xff] %vm2714_vm12, %v5093_v41  ;;  %v5020_v41 = vmul.f32 %v14454_v9, %v5004_v14 }
 0xbfb   : > { %v14424_v0 = vpop.f32.mrb[78].mxu0 }
 0xbfc   : > { %v14426_v58 = vpop.f32.mrb[79].mxu0 }
 0xbff   : > { %v5079_v56 = vpop.xlane.xlu0 %5078 }
 0xc00   : > { %v5095_v57 = vadd.f32 %v5079_v56, %v5031_v10  ;;  %v4867_v10 = vmul.f32 1.442695, %v15809_v22  ;;  %v5022_v56 = vmul.f32 %v14471_v18, %v5006_v1  ;;  %v5014_v22 = vld [vmem:[#allocation5 + $0x170] sm:$0xff] }
 0xc02   : > { %5111 = vst.msk [vmem:[#allocation5 + $0x178] sm:$0xff] %vm2714_vm12, %v5095_v57  ;;  %v14483_v57 = vpop.eup %10419  ;;  %10425 = vpow2.f32 %v4867_v10 }
 0xc03   : > { %v9184_v30 = vpop.f32.mrb[80].mxu0  ;;  %v5024_v52 = vmul.f32 %v14483_v57, %v5008_v39  ;;  %v14492_v54 = vpop.eup %10421 }
 0xc04   : > { %v14443_v5 = vadd.f32 %v9184_v30, %v15802_v60  ;;  %v5773_v7 = vpop.f32.mrb[81].mxu0  ;;  %v14505_v40 = vpop.eup %10423 }
 0xc05   : > { %v14449_v27 = vadd.f32 %v5773_v7, %v15804_v42 }
 0xc06   : > { %v6001_v45 = vsel %vm2377_vm5, %v14443_v5, -inf }
 0xc07   : > { %v5037_v26 = vpop.xlane.xlu1 %5036  ;;  %6002 = vmax.xlane.f32.xlu0 %v6001_v45  ;;  %v9187_v12 = vpop.f32.mrb[82].mxu0  ;;  %v5998_v16 = vsel %vm2377_vm5, %v14449_v27, -inf }
 0xc08   : > { %v5081_v48 = vadd.f32 %v5037_v26, %v5017_v51  ;;  %v14459_v47 = vadd.f32 %v9187_v12, %v15805_v28  ;;  %5999 = vmax.xlane.f32.xlu1 %v5998_v16  ;;  %v5783_v37 = vpop.f32.mrb[83].mxu0  ;;  %v15811_v12 = vld [vmem:[#allocation88_spill] sm:$0xff] }
 0xc09   : > { %v14465_v44 = vadd.f32 %v5783_v37, %v15807_v36  ;;  %v5026_v37 = vmul.f32 %v14492_v54, %v5010_v4 }
 0xc0a   : > { %5097 = vst.msk [vmem:[#allocation5 + $0x108] sm:$0xff] %vm2714_vm12, %v5081_v48  ;;  %v6007_v53 = vsel %vm2377_vm5, %v14459_v47, -inf }
 0xc0b   : > { %v5046_v8 = vpop.xlane.xlu1 %5045  ;;  %6008 = vmax.xlane.f32.xlu0 %v6007_v53  ;;  %v9190_v34 = vpop.f32.mrb[84].mxu0  ;;  %v6004_v11 = vsel %vm2377_vm5, %v14465_v44, -inf }
 0xc0c   : > { %v5084_v55 = vadd.f32 %v5046_v8, %v5020_v41  ;;  %v14474_v62 = vadd.f32 %v9190_v34, %v15808_v63  ;;  %v5793_v19 = vpop.f32.mrb[85].mxu0  ;;  %v5012_v41 = vld [vmem:[#allocation5 + $0x160] sm:$0xff] }
 0xc0d   : > { %v14486_v25 = vadd.f32 %v5793_v19, %v15810_v2  ;;  %v15812_v8 = vld [vmem:[#allocation87_spill] sm:$0xff] }
 0xc0e   : > { %5100 = vst.msk [vmem:[#allocation5 + $0x120] sm:$0xff] %vm2714_vm12, %v5084_v55  ;;  %v6013_v30 = vsel %vm2377_vm5, %v14474_v62, -inf  ;;  %v5028_v55 = vmul.f32 %v14505_v40, %v5012_v41 }
 0xc0f   : > { %v5052_v46 = vpop.xlane.xlu1 %5051  ;;  %6005 = vmax.xlane.f32.xlu0 %v6004_v11  ;;  %v6010_v14 = vsel %vm2377_vm5, %v14486_v25, -inf  ;;  %v14514_v11 = vpop.eup %10425 }
 0xc10   : > { %v5086_v17 = vadd.f32 %v5052_v46, %v5022_v56  ;;  %v5030_v46 = vmul.f32 %v14514_v11, %v5014_v22 }
 0xc12   : > { %5102 = vst.msk [vmem:[#allocation5 + $0x130] sm:$0xff] %vm2714_vm12, %v5086_v17 }
 0xc13   : > { %v5058_v7 = vpop.xlane.xlu1 %5057  ;;  %v14494_v59 = vpop.f32.mrb[72].mxu1  ;;  %6014 = vmax.xlane.f32.xlu0 %v6013_v30 }
 0xc14   : > { %v5088_v51 = vadd.f32 %v5058_v7, %v5024_v52  ;;  %v14496_v45 = vpop.f32.mrb[73].mxu1  ;;  %v9193_v26 = vpop.f32.mrb[86].mxu0 }
 0xc15   : > { %v14501_v16 = vadd.f32 %v9193_v26, %v15811_v12  ;;  %v5803_v48 = vpop.f32.mrb[87].mxu0 }
 0xc16   : > { %5104 = vst.msk [vmem:[#allocation5 + $0x140] sm:$0xff] %vm2714_vm12, %v5088_v51  ;;  %v14508_v1 = vadd.f32 %v5803_v48, %v15812_v8 }
 0xc17   : > { %v5064_v43 = vpop.xlane.xlu1 %5063  ;;  %6011 = vmax.xlane.f32.xlu0 %v6010_v14  ;;  %v6019_v34 = vsel %vm2377_vm5, %v14501_v16, -inf }
 0xc18   : > { %v5090_v53 = vadd.f32 %v5064_v43, %v5026_v37  ;;  %v6016_v56 = vsel %vm2377_vm5, %v14508_v1, -inf }
 0xc1a   : > { %5106 = vst.msk [vmem:[#allocation5 + $0x150] sm:$0xff] %vm2714_vm12, %v5090_v53 }
 0xc1b   : > { %v5070_v19 = vpop.xlane.xlu1 %5069  ;;  %6020 = vmax.xlane.f32.xlu0 %v6019_v34 }
 0xc1c   : > { %v5092_v10 = vadd.f32 %v5070_v19, %v5028_v55 }
 0xc1e   : > { %5108 = vst.msk [vmem:[#allocation5 + $0x160] sm:$0xff] %vm2714_vm12, %v5092_v10 }
 0xc1f   : > { %v5076_v39 = vpop.xlane.xlu1 %5075  ;;  %6017 = vmax.xlane.f32.xlu0 %v6016_v56 }
 0xc20   : > { %v5094_v17 = vadd.f32 %v5076_v39, %v5030_v46  ;;  %v15815_v46 = vld [vmem:[#allocation78_spill] sm:$0xff] }
 0xc22   : > { %5110 = vst.msk [vmem:[#allocation5 + $0x170] sm:$0xff] %vm2714_vm12, %v5094_v17 }
 0xc39   : > { %v14521_v30 = vpop.f32.mrb[74].mxu1 }
 0xc3a   : > { %v14523_v52 = vpop.f32.mrb[75].mxu1 }
 0xc41   : > { %v14525_v7 = vpop.f32.mrb[76].mxu1 }
 0xc42   : > { %v14527_v4 = vpop.f32.mrb[77].mxu1 }
 0xc49   : > { %v14529_v51 = vpop.f32.mrb[78].mxu1 }
 0xc4a   : > { %v14531_v26 = vpop.f32.mrb[79].mxu1 }
 0xc51   : > { %v9212_v14 = vpop.f32.mrb[80].mxu1 }
 0xc52   : > { %v14534_v48 = vadd.f32 %v9212_v14, %v15802_v60  ;;  %v5942_v37 = vpop.f32.mrb[81].mxu1  ;;  %v15813_v60 = vld [vmem:[#allocation92_spill] sm:$0xff] }
 0xc53   : > { %v14537_v43 = vadd.f32 %v5942_v37, %v15804_v42  ;;  %v15814_v42 = vld [vmem:[#allocation77_spill] sm:$0xff]  ;;  %v14570_v14 = vld [vmem:[#allocation4 + $0x188] sm:$0xff]  ;;  %v14575_v37 = vld [vmem:[#allocation4 + $0x180] sm:$0xff] }
 0xc54   : > { %v6025_v41 = vsel %vm2377_vm5, %v14534_v48, -inf }
 0xc55   : > { %6026 = vmax.xlane.f32.xlu1 %v6025_v41  ;;  %v6022_v53 = vsel %vm2377_vm5, %v14537_v43, -inf  ;;  %v9215_v34 = vpop.f32.mrb[82].mxu1 }
 0xc56   : > { %6023 = vmax.xlane.f32.xlu0 %v6022_v53  ;;  %v5952_v55 = vpop.f32.mrb[83].mxu1  ;;  %v14553_v39 = vadd.f32 %v9215_v34, %v15805_v28 }
 0xc57   : > { %v14558_v17 = vadd.f32 %v5952_v55, %v15807_v36  ;;  %v14585_v55 = vld [vmem:[#allocation4 + $0x198] sm:$0xff] }
 0xc59   : > { %v9218_v19 = vpop.f32.mrb[84].mxu1 }
 0xc5a   : > { %v5962_v22 = vpop.f32.mrb[85].mxu1 }
 0xc5b   : > { %v14568_v28 = vadd.f32 %v5962_v22, %v15810_v2 }
 0xc5d   : > { %v6034_v41 = vsel %vm2377_vm5, %v14568_v28, -inf }
 0xc61   : > { %v9221_v10 = vpop.f32.mrb[86].mxu1 }
 0xc62   : > { %v5972_v56 = vpop.f32.mrb[87].mxu1  ;;  %v14573_v36 = vadd.f32 %v9221_v10, %v15811_v12 }
 0xc64   : > { %15817 = vst [vmem:[#allocation100_spill] sm:$0xff] %v14573_v36  ;;  %v6043_v12 = vsel %vm2377_vm5, %v14573_v36, -inf }
 0xc66   : > { %5176 = vperm.xlu1 %9993, %v14471_v18   ;;  %v6031_v18 = vsel %vm2377_vm5, %v14553_v39, -inf }
 0xc6c   : > { %3961 = vperm.xlu0 %9994, %v15813_v60   ;;  %v14598_v60 = vadd.f32 %v5972_v56, %v15812_v8  ;;  %v14614_v8 = vld [vmem:[#allocation4 + $0x1a8] sm:$0xff] }
 0xc6e   : > { %15818 = vst [vmem:[#allocation104_spill] sm:$0xff] %v14598_v60 }
 0xc70   : > { %5151 = vperm.xlu0 %9994, %v14438_v49   ;;  %v14561_v49 = vadd.f32 %v9218_v19, %v15808_v63  ;;  %v14632_v19 = vld [vmem:[#allocation4 + $0x1b8] sm:$0xff] }
 0xc72   : > { %15816 = vst [vmem:[#allocation98_spill] sm:$0xff] %v14561_v49 }
 0xc74   : > { %5166 = vperm.xlu0 %9994, %v14454_v9   ;;  %v6037_v9 = vsel %vm2377_vm5, %v14561_v49, -inf }
 0xc78   : > { %5171 = vperm.xlu0 %9994, %v14360_v38   ;;  %v6028_v38 = vsel %vm2377_vm5, %v14558_v17, -inf }
 0xc7c   : > { %10201 = vrot.lane.b32.xlu0 %v15814_v42, %s10965_s24 }
 0xc80   : > { %10211 = vrot.lane.b32.xlu0 %v15815_v46, %s10965_s24  ;;  %v14603_v46 = vld [vmem:[#allocation4 + $0x190] sm:$0xff] }
 0xc8a   : > { %6032 = vmax.xlane.f32.xlu1 %v6031_v18  ;;  %v15819_v18 = vld [vmem:[#allocation73_spill] sm:$0xff] }
 0xc8e   : > { %6029 = vmax.xlane.f32.xlu1 %v6028_v38 }
 0xc92   : > { %6038 = vmax.xlane.f32.xlu1 %v6037_v9  ;;  %v6040_v9 = vsel %vm2377_vm5, %v14598_v60, -inf }
 0xc94   : > { %v6003_v63 = vpop.xlane.xlu0 %6002 }
 0xc95   : > { %v14580_v53 = vmax.f32 %v14570_v14, %v6003_v63  ;;  %v6000_v34 = vpop.xlane.xlu1 %5999 }
 0xc96   : > { %6035 = vmax.xlane.f32.xlu1 %v6034_v41  ;;  %v14583_v2 = vmax.f32 %v14575_v37, %v6000_v34 }
 0xc97   : > { %6352 = vst.msk [vmem:[#allocation4 + $0x188] sm:$0xff] %vm2714_vm12, %v14580_v53 }
 0xc98   : > { %6351 = vst.msk [vmem:[#allocation4 + $0x180] sm:$0xff] %vm2714_vm12, %v14583_v2  ;;  %v6009_v10 = vpop.xlane.xlu0 %6008 }
 0xc99   : > { %v14601_v42 = vmax.f32 %v14585_v55, %v6009_v10  ;;  %v14641_v10 = vld [vmem:[#allocation4 + $0x1b0] sm:$0xff] }
 0xc9a   : > { %6044 = vmax.xlane.f32.xlu1 %v6043_v12  ;;  %v14623_v12 = vld [vmem:[#allocation4 + $0x1a0] sm:$0xff] }
 0xc9b   : > { %6354 = vst.msk [vmem:[#allocation4 + $0x198] sm:$0xff] %vm2714_vm12, %v14601_v42 }
 0xc9c   : > { %v6006_v38 = vpop.xlane.xlu0 %6005 }
 0xc9d   : > { %v14612_v63 = vmax.f32 %v14603_v46, %v6006_v38 }
 0xc9e   : > { %6041 = vmax.xlane.f32.xlu1 %v6040_v9 }
 0xc9f   : > { %6353 = vst.msk [vmem:[#allocation4 + $0x190] sm:$0xff] %vm2714_vm12, %v14612_v63 }
 0xca0   : > { %v6015_v41 = vpop.xlane.xlu0 %6014 }
 0xca1   : > { %v14621_v34 = vmax.f32 %v14614_v8, %v6015_v41 }
 0xca3   : > { %6356 = vst.msk [vmem:[#allocation4 + $0x1a8] sm:$0xff] %vm2714_vm12, %v14621_v34 }
 0xca4   : > { %v6012_v38 = vpop.xlane.xlu0 %6011 }
 0xca5   : > { %v14630_v9 = vmax.f32 %v14623_v12, %v6012_v38 }
 0xca7   : > { %6355 = vst.msk [vmem:[#allocation4 + $0x1a0] sm:$0xff] %vm2714_vm12, %v14630_v9 }
 0xca8   : > { %v6021_v41 = vpop.xlane.xlu0 %6020 }
 0xca9   : > { %v14639_v56 = vmax.f32 %v14632_v19, %v6021_v41  ;;  %v15820_v41 = vld [vmem:[#allocation74_spill] sm:$0xff] }
 0xcab   : > { %6358 = vst.msk [vmem:[#allocation4 + $0x1b8] sm:$0xff] %vm2714_vm12, %v14639_v56 }
 0xcac   : > { %v6018_v38 = vpop.xlane.xlu0 %6017 }
 0xcad   : > { %v14648_v50 = vmax.f32 %v14641_v10, %v6018_v38  ;;  %v15822_v38 = vld [vmem:[#allocation76_spill] sm:$0xff] }
 0xcaf   : > { %10196 = vrot.lane.b32.xlu1 %v15819_v18, %s10965_s24  ;;  %6357 = vst.msk [vmem:[#allocation4 + $0x1b0] sm:$0xff] %vm2714_vm12, %v14648_v50  ;;  %v15821_v18 = vld [vmem:[#allocation75_spill] sm:$0xff] }
 0xcb3   : > { %10206 = vrot.lane.b32.xlu1 %v15820_v41, %s10965_s24  ;;  %v5991_v41 = vld [vmem:[#allocation4 + $0x1c8] sm:$0xff] }
 0xcb7   : > { %6117 = vperm.xlu1 %9993, %v14580_v53  }
 0xcbb   : > { %6112 = vperm.xlu1 %9993, %v14583_v2  }
 0xcbf   : > { %6127 = vperm.xlu1 %9993, %v14601_v42  }
 0xcc3   : > { %6122 = vperm.xlu1 %9993, %v14612_v63  }
 0xcc7   : > { %6137 = vperm.xlu1 %9993, %v14621_v34  }
 0xccb   : > { %6132 = vperm.xlu1 %9993, %v14630_v9  }
 0xccf   : > { %6147 = vperm.xlu1 %9993, %v14639_v56  }
 0xcd3   : > { %6142 = vperm.xlu1 %9993, %v14648_v50  }
 0xcd7   : > { %10216 = vrot.lane.b32.xlu1 %v15821_v18, %s10965_s24 }
 0xcdb   : > { %10226 = vrot.lane.b32.xlu1 %v15822_v38, %s10965_s24 }
 0xcdf   : > { %5181 = vperm.xlu1 %9993, %v14365_v3   ;;  %v3887_v3 = vld [vmem:[#allocation3 + $0x70] sm:$0xff] }
 0xce2   : > { %v6027_v22 = vpop.xlane.xlu1 %6026 }
 0xce3   : > { %v6055_v60 = vmax.f32 %v5991_v41, %v6027_v22  ;;  %5191 = vperm.xlu1 %9993, %v14379_v31   ;;  %v6024_v36 = vpop.xlane.xlu0 %6023 }
 0xce4   : > { %v14675_v49 = vmax.f32 %v14671_v24, %v6024_v36 }
 0xce5   : > { %6360 = vst.msk [vmem:[#allocation4 + $0x1c8] sm:$0xff] %vm2714_vm12, %v6055_v60  ;;  %6157 = vperm.xlu0 %9994, %v6055_v60  }
 0xce6   : > { %6359 = vst.msk [vmem:[#allocation4 + $0x1c0] sm:$0xff] %vm2714_vm12, %v14675_v49 }
 0xce7   : > { %5201 = vperm.xlu1 %9993, %v14395_v32  }
 0xce9   : > { %6152 = vperm.xlu0 %9994, %v14675_v49  }
 0xceb   : > { %v3962_v22 = vpop.permute.xlu0 %3961  ;;  %5211 = vperm.xlu1 %9993, %v14406_v21  }
 0xcec   : > { %v3983_v31 = vmul.f32 %v3962_v22, %v3887_v3 }
 0xcee   : > { %v4385_v36 = vadd.f32 %v14350_v61, %v3983_v31 }
 0xcef   : > { %v14686_v38 = vpop.permute.xlu0 %5151  ;;  %5221 = vperm.xlu1 %9993, %v14422_v6  }
 0xcf0   : > { %4402 = vst.msk [vmem:[#allocation3 + $0x70] sm:$0xff] %vm4387_vm13, %v4385_v36 }
 0xcf3   : > { %v14690_v18 = vpop.permute.xlu0 %5166  ;;  %5564 = vrot.lane.b32.xlu1 %v14388_v35, %s10964_s6 }
 0xcf4   : > { %15823 = vst [vmem:[#allocation106_spill] sm:$0xff] %v14690_v18 }
 0xcf7   : > { %v14694_v32 = vpop.permute.xlu0 %5171  ;;  %5568 = vrot.lane.b32.xlu1 %v14397_v20, %s10964_s6  ;;  %v15824_v20 = vsub.f32 %v14575_v37, %v14583_v2 }
 0xcf9   : > { %v6078_v18 = vmul.f32 1.442695, %v15824_v20  ;;  %v14750_v20 = vld [vmem:[#allocation4 + $0x1e0] sm:$0xff] }
 0xcfb   : > { %v10202_v21 = vpop.permute.xlu0 %10201  ;;  %5572 = vrot.lane.b32.xlu1 %v14408_v29, %s10964_s6  ;;  %10427 = vpow2.f32 %v6078_v18  ;;  %v15825_v29 = vsub.f32 %v14603_v46, %v14612_v63  ;;  %v14724_v46 = vpop.permute.xlu1 %5176  ;;  %v5993_v63 = vld [vmem:[#allocation4 + $0x1d8] sm:$0xff] }
 0xcfc   : > { %v10204_v61 = vunpack.i.h.bf16 %v10202_v21  ;;  %v10203_v3 = vunpack.i.l.bf16 %v10202_v21 }
 0xcfe   : > { %v9678_v22 = vpack.c.bf16 %v10204_v61, %v10203_v3  ;;  %v14733_v61 = vld [vmem:[#allocation4 + $0x1d0] sm:$0xff] }
 0xcff   : > { %v10212_v6 = vpop.permute.xlu0 %10211  ;;  %5576 = vrot.lane.b32.xlu1 %v14424_v0, %s10964_s6  ;;  %v6082_v0 = vmul.f32 1.442695, %v15825_v29 }
 0xd00   : > { %v10214_v31 = vunpack.i.h.bf16 %v10212_v6  ;;  %v10213_v36 = vunpack.i.l.bf16 %v10212_v6  ;;  %9679 = vmatprep.subr.bf16.mxu1 %v9678_v22 }
 0xd01   : > { %9681 = vmatpush3.bf16.msra.mxu1 %v9678_v22  ;;  %10429 = vpow2.f32 %v6082_v0 }
 0xd02   : > { %v9682_v35 = vpack.c.bf16 %v10214_v31, %v10213_v36 }
 0xd03   : > { %5580 = vrot.lane.b32.xlu1 %v14494_v59, %s10964_s6  ;;  %v15826_v59 = vsub.f32 %v14585_v55, %v14601_v42  ;;  %v6071_v42 = vsub.f32 %v5991_v41, %v6055_v60  ;;  %v5995_v41 = vld [vmem:[#allocation4 + $0x1e8] sm:$0xff] }
 0xd04   : > { %9683 = vmatprep.subr.bf16.mxu1 %v9682_v35 }
 0xd05   : > { %9685 = vmatpush3.bf16.msra.mxu1 %v9682_v35  ;;  %v6084_v21 = vmul.f32 1.442695, %v15826_v59  ;;  %v14722_v2 = vpop.eup %10427 }
 0xd07   : > { %5584 = vrot.lane.b32.xlu1 %v14521_v30, %s10964_s6  ;;  %10431 = vpow2.f32 %v6084_v21  ;;  %v15827_v30 = vsub.f32 %v14614_v8, %v14621_v34  ;;  %v6096_v8 = vmul.f32 1.442695, %v6071_v42 }
 0xd09   : > { %v6088_v37 = vmul.f32 1.442695, %v15827_v30 }
 0xd0b   : > { %5588 = vrot.lane.b32.xlu1 %v14525_v7, %s10964_s6  ;;  %10433 = vpow2.f32 %v6088_v37  ;;  %v15828_v7 = vsub.f32 %v14632_v19, %v14639_v56  ;;  %v14730_v18 = vpop.eup %10429  ;;  %v5997_v37 = vld [vmem:[#allocation4 + $0x1f8] sm:$0xff] }
 0xd0d   : > { %v6092_v55 = vmul.f32 1.442695, %v15828_v7 }
 0xd0f   : > { %5592 = vrot.lane.b32.xlu1 %v14529_v51, %s10964_s6  ;;  %10435 = vpow2.f32 %v6092_v55 }
 0xd10   : > { %10437 = vpow2.f32 %v6096_v8 }
 0xd11   : > { %v14735_v3 = vpop.eup %10431 }
 0xd13   : > { %6385 = vperm.xlu1 %9993, %v14722_v2  }
 0xd15   : > { %v14742_v6 = vpop.eup %10433 }
 0xd17   : > { %6395 = vperm.xlu1 %9993, %v14730_v18   ;;  %v6033_v51 = vpop.xlane.xlu1 %6032 }
 0xd18   : > { %v6057_v34 = vmax.f32 %v5993_v63, %v6033_v51  ;;  %v14767_v51 = vld [vmem:[#allocation4 + $0x1f0] sm:$0xff] }
 0xd19   : > { %v14752_v29 = vpop.eup %10435 }
 0xd1a   : > { %v6073_v22 = vsub.f32 %v5993_v63, %v6057_v34  ;;  %6362 = vst.msk [vmem:[#allocation4 + $0x1d8] sm:$0xff] %vm2714_vm12, %v6057_v34  ;;  %6167 = vperm.xlu0 %9994, %v6057_v34   ;;  %v14759_v7 = vpop.eup %10437 }
 0xd1b   : > { %6400 = vperm.xlu1 %9993, %v14735_v3   ;;  %v6030_v19 = vpop.xlane.xlu1 %6029 }
 0xd1c   : > { %v6100_v60 = vmul.f32 1.442695, %v6073_v22  ;;  %v14740_v56 = vmax.f32 %v14733_v61, %v6030_v19 }
 0xd1e   : > { %v6072_v31 = vsub.f32 %v14733_v61, %v14740_v56  ;;  %6361 = vst.msk [vmem:[#allocation4 + $0x1d0] sm:$0xff] %vm2714_vm12, %v14740_v56  ;;  %6162 = vperm.xlu0 %9994, %v14740_v56   ;;  %10439 = vpow2.f32 %v6100_v60 }
 0xd1f   : > { %6410 = vperm.xlu1 %9993, %v14742_v6   ;;  %v6039_v36 = vpop.xlane.xlu1 %6038 }
 0xd20   : > { %v6059_v35 = vmax.f32 %v5995_v41, %v6039_v36 }
 0xd22   : > { %v6075_v0 = vsub.f32 %v5995_v41, %v6059_v35  ;;  %6364 = vst.msk [vmem:[#allocation4 + $0x1e8] sm:$0xff] %vm2714_vm12, %v6059_v35  ;;  %6177 = vperm.xlu0 %9994, %v6059_v35  }
 0xd23   : > { %6420 = vperm.xlu1 %9993, %v14752_v29   ;;  %v6036_v59 = vpop.xlane.xlu1 %6035 }
 0xd24   : > { %v6104_v21 = vmul.f32 1.442695, %v6075_v0  ;;  %v14757_v30 = vmax.f32 %v14750_v20, %v6036_v59 }
 0xd26   : > { %10441 = vpow2.f32 %v6104_v21  ;;  %6363 = vst.msk [vmem:[#allocation4 + $0x1e0] sm:$0xff] %vm2714_vm12, %v14757_v30  ;;  %6172 = vperm.xlu0 %9994, %v14757_v30  }
 0xd27   : > { %6430 = vperm.xlu1 %9993, %v14759_v7   ;;  %v6045_v42 = vpop.xlane.xlu1 %6044 }
 0xd28   : > { %v6061_v63 = vmax.f32 %v5997_v37, %v6045_v42  ;;  %v14769_v8 = vpop.eup %10439 }
 0xd2a   : > { %v6077_v34 = vsub.f32 %v5997_v37, %v6061_v63  ;;  %6366 = vst.msk [vmem:[#allocation4 + $0x1f8] sm:$0xff] %vm2714_vm12, %v6061_v63  ;;  %6187 = vperm.xlu0 %9994, %v6061_v63   ;;  %v15829_v37 = vld [vmem:[#allocation79_spill] sm:$0xff] }
 0xd2b   : > { %6440 = vperm.xlu1 %9993, %v14769_v8   ;;  %v6042_v22 = vpop.xlane.xlu1 %6041 }
 0xd2c   : > { %v6108_v19 = vmul.f32 1.442695, %v6077_v34  ;;  %v14774_v60 = vmax.f32 %v14767_v51, %v6042_v22 }
 0xd2e   : > { %10443 = vpow2.f32 %v6108_v19  ;;  %6365 = vst.msk [vmem:[#allocation4 + $0x1f0] sm:$0xff] %vm2714_vm12, %v14774_v60  ;;  %6182 = vperm.xlu0 %9994, %v14774_v60   ;;  %v15830_v19 = vld [vmem:[#allocation80_spill] sm:$0xff] }
 0xd2f   : > { %v10197_v36 = vpop.permute.xlu1 %10196 }
 0xd30   : > { %v14781_v35 = vpop.eup %10441  ;;  %v10199_v0 = vunpack.i.h.bf16 %v10197_v36  ;;  %v10198_v59 = vunpack.i.l.bf16 %v10197_v36 }
 0xd31   : > { %6450 = vperm.xlu1 %9993, %v14781_v35  }
 0xd32   : > { %v9662_v21 = vpack.c.bf16 %v10199_v0, %v10198_v59  ;;  %10221 = vrot.lane.b32.xlu0 %v15829_v37, %s10965_s24 }
 0xd33   : > { %v10207_v42 = vpop.permute.xlu1 %10206 }
 0xd34   : > { %v10209_v63 = vunpack.i.h.bf16 %v10207_v42  ;;  %v10208_v34 = vunpack.i.l.bf16 %v10207_v42  ;;  %9663 = vmatprep.subr.bf16.mxu0 %v9662_v21 }
 0xd35   : > { %9665 = vmatpush3.bf16.msra.mxu0 %v9662_v21 }
 0xd36   : > { %v9666_v22 = vpack.c.bf16 %v10209_v63, %v10208_v34  ;;  %10231 = vrot.lane.b32.xlu0 %v15830_v19, %s10965_s24 }
 0xd37   : > { %v6118_v41 = vpop.permute.xlu1 %6117 }
 0xd38   : > { %v14788_v55 = vpop.eup %10443  ;;  %9667 = vmatprep.subr.bf16.mxu0 %v9666_v22  ;;  %v6191_v42 = vsub.f32 %v14443_v5, %v6118_v41 }
 0xd39   : > { %6460 = vperm.xlu1 %9993, %v14788_v55   ;;  %9669 = vmatpush3.bf16.msra.mxu0 %v9666_v22 }
 0xd3a   : > { %5186 = vperm.xlu0 %9994, %v14483_v57   ;;  %v6208_v57 = vmul.f32 1.442695, %v6191_v42 }
 0xd3b   : > { %v6113_v36 = vpop.permute.xlu1 %6112 }
 0xd3c   : > { %v6190_v0 = vsub.f32 %v14449_v27, %v6113_v36 }
 0xd3e   : > { %v6206_v59 = vmul.f32 1.442695, %v6190_v0  ;;  %5196 = vperm.xlu0 %9994, %v14492_v54  }
 0xd3f   : > { %v6128_v21 = vpop.permute.xlu1 %6127 }
 0xd40   : > { %10445 = vpow2.f32 %v6206_v59  ;;  %v6193_v22 = vsub.f32 %v14459_v47, %v6128_v21  ;;  %v15831_v47 = vsub.f32 %v14570_v14, %v14580_v53 }
 0xd41   : > { %10447 = vpow2.f32 %v6208_v57 }
 0xd42   : > { %5206 = vperm.xlu0 %9994, %v14505_v40  }
 0xd43   : > { %v6123_v37 = vpop.permute.xlu1 %6122 }
 0xd44   : > { %v6192_v5 = vsub.f32 %v14465_v44, %v6123_v37  ;;  %v6212_v44 = vmul.f32 1.442695, %v6193_v22 }
 0xd46   : > { %5216 = vperm.xlu0 %9994, %v14514_v11   ;;  %v6210_v19 = vmul.f32 1.442695, %v6192_v5 }
 0xd47   : > { %v6138_v63 = vpop.permute.xlu1 %6137 }
 0xd48   : > { %v6195_v37 = vsub.f32 %v14474_v62, %v6138_v63 }
 0xd4a   : > { %v14797_v34 = vpop.eup %10445  ;;  %5562 = vrot.lane.b32.xlu0 %v14390_v15, %s10964_s6 }
 0xd4b   : > { %9238 = vmatprep.mubr.msk.f32.mxu0 %vm2377_vm5, %v14797_v34  ;;  %v6133_v27 = vpop.permute.xlu1 %6132  ;;  %v10448_v59 = vpop.eup %10447 }
 0xd4c   : > { %v6194_v54 = vsub.f32 %v14486_v25, %v6133_v27  ;;  %v6274_v57 = vsel %vm2377_vm5, %v10448_v59, 0.0 }
 0xd4e   : > { %5566 = vrot.lane.b32.xlu0 %v14399_v23, %s10964_s6  ;;  %v6214_v40 = vmul.f32 1.442695, %v6194_v54  ;;  %v6216_v54 = vmul.f32 1.442695, %v6195_v37 }
 0xd4f   : > { %v6148_v11 = vpop.permute.xlu1 %6147 }
 0xd50   : > { %10449 = vpow2.f32 %v6214_v40  ;;  %v6197_v62 = vsub.f32 %v14501_v16, %v6148_v11 }
 0xd52   : > { %5570 = vrot.lane.b32.xlu0 %v14410_v13, %s10964_s6  ;;  %v6220_v5 = vmul.f32 1.442695, %v6197_v62 }
 0xd53   : > { %v6143_v15 = vpop.permute.xlu1 %6142 }
 0xd54   : > { %v6196_v41 = vsub.f32 %v14508_v1, %v6143_v15  ;;  %v6080_v1 = vmul.f32 1.442695, %v15831_v47 }
 0xd56   : > { %v6218_v36 = vmul.f32 1.442695, %v6196_v41  ;;  %5574 = vrot.lane.b32.xlu0 %v14426_v58, %s10964_s6 }
 0xd57   : > { %v10217_v23 = vpop.permute.xlu1 %10216 }
 0xd58   : > { %10451 = vpow2.f32 %v6218_v36  ;;  %v10219_v25 = vunpack.i.h.bf16 %v10217_v23  ;;  %v10218_v0 = vunpack.i.l.bf16 %v10217_v23 }
 0xd59   : > { %10453 = vpow2.f32 %v6210_v19 }
 0xd5a   : > { %v9670_v13 = vpack.c.bf16 %v10219_v25, %v10218_v0  ;;  %5578 = vrot.lane.b32.xlu0 %v14496_v45, %s10964_s6  ;;  %v10450_v27 = vpop.eup %10449  ;;  %10455 = vpow2.f32 %v6212_v44  ;;  %v15832_v45 = vsub.f32 %v14623_v12, %v14630_v9  ;;  %v5129_v44 = vld [vmem:[#allocation3 + $0x8] sm:$0xff] }
 0xd5b   : > { %v10227_v21 = vpop.permute.xlu1 %10226  ;;  %10457 = vpow2.f32 %v6080_v1  ;;  %v6283_v40 = vsel %vm2377_vm5, %v10450_v27, 0.0  ;;  %v5225_v37 = vmul.f32 %v14686_v38, %v5129_v44 }
 0xd5c   : > { %v10229_v42 = vunpack.i.h.bf16 %v10227_v21  ;;  %v10228_v58 = vunpack.i.l.bf16 %v10227_v21  ;;  %9671 = vmatprep.subr.bf16.mxu0 %v9670_v13  ;;  %v6086_v14 = vmul.f32 1.442695, %v15832_v45  ;;  %10459 = vpow2.f32 %v6216_v54  ;;  %v5131_v21 = vld [vmem:[#allocation3 + $0x18] sm:$0xff] }
 0xd5d   : > { %6275 = vadd.xlane.f32.xlu1 %v6274_v57  ;;  %9673 = vmatpush3.bf16.msra.mxu0 %v9670_v13  ;;  %v15836_v13 = vsub.f32 %v14767_v51, %v14774_v60  ;;  %v5135_v45 = vld [vmem:[#allocation3 + $0x38] sm:$0xff] }
 0xd5e   : > { %v9674_v63 = vpack.c.bf16 %v10229_v42, %v10228_v58  ;;  %5582 = vrot.lane.b32.xlu0 %v14523_v52, %s10964_s6  ;;  %10461 = vpow2.f32 %v6086_v14  ;;  %v15833_v52 = vsub.f32 %v14641_v10, %v14648_v50  ;;  %v5227_v42 = vmul.f32 %v14440_v33, %v5131_v21 }
 0xd5f   : > { %v14826_v53 = vpop.permute.xlu1 %5181  ;;  %10463 = vpow2.f32 %v6220_v5  ;;  %v6106_v47 = vmul.f32 1.442695, %v15836_v13 }
 0xd60   : > { %9675 = vmatprep.subr.bf16.mxu0 %v9674_v63  ;;  %v6090_v11 = vmul.f32 1.442695, %v15833_v52  ;;  %v5231_v14 = vmul.f32 %v14826_v53, %v5135_v45 }
 0xd61   : > { %6284 = vadd.xlane.f32.xlu1 %v6283_v40  ;;  %9677 = vmatpush3.bf16.msra.mxu0 %v9674_v63 }
 0xd62   : > { %v10452_v16 = vpop.eup %10451  ;;  %5586 = vrot.lane.b32.xlu0 %v14527_v4, %s10964_s6  ;;  %10465 = vpow2.f32 %v6090_v11  ;;  %v15834_v4 = vsub.f32 %v14671_v24, %v14675_v49  ;;  %v6098_v24 = vmul.f32 1.442695, %v6072_v31 }
 0xd63   : > { %v14834_v12 = vpop.permute.xlu1 %5191  ;;  %v6289_v9 = vsel %vm2377_vm5, %v10452_v16, 0.0  ;;  %v14837_v15 = vpop.eup %10453 }
 0xd64   : > { %v14839_v41 = vpop.permute.xlu0 %6157  ;;  %9239 = vmatmul.mubr.msk.f32.vlgmr.msra.gmra.mrb[88].mxu0 %vm2377_vm5, %v10448_v59  ;;  %v14846_v50 = vpop.eup %10455  ;;  %v6094_v10 = vmul.f32 1.442695, %v15834_v4  ;;  %v15835_v59 = vsub.f32 %v14750_v20, %v14757_v30  ;;  %v5139_v4 = vld [vmem:[#allocation3 + $0x58] sm:$0xff] }
 0xd65   : > { %6290 = vadd.xlane.f32.xlu1 %v6289_v9  ;;  %9241 = vmatprep.mubr.msk.f32.mxu0 %vm2377_vm5, %v14837_v15  ;;  %v14855_v36 = vpop.eup %10457 }
 0xd66   : > { %5590 = vrot.lane.b32.xlu0 %v14531_v26, %s10964_s6  ;;  %v14860_v26 = vpop.eup %10459  ;;  %10467 = vpow2.f32 %v6094_v10  ;;  %v6102_v61 = vmul.f32 1.442695, %v15835_v59 }
 0xd67   : > { %v14851_v22 = vpop.permute.xlu1 %5201 }
 0xd68   : > { %v6153_v19 = vpop.permute.xlu0 %6152  ;;  %9242 = vmatmul.mubr.msk.f32.gmra.mrb[90].mxu0 %vm2377_vm5, %v14846_v50  ;;  %v14867_v0 = vpop.eup %10461  ;;  %v5235_v53 = vmul.f32 %v14851_v22, %v5139_v4 }
 0xd69   : > { %v6198_v23 = vsub.f32 %v14537_v43, %v6153_v19  ;;  %9244 = vmatprep.mubr.msk.f32.mxu0 %vm2377_vm5, %v10450_v27  ;;  %v14871_v43 = vpop.eup %10463  ;;  %v5133_v27 = vld [vmem:[#allocation3 + $0x28] sm:$0xff] }
 0xd6a   : > { %6390 = vperm.xlu0 %9994, %v14855_v36   ;;  %v5229_v54 = vmul.f32 %v14694_v32, %v5133_v27  ;;  %v5137_v32 = vld [vmem:[#allocation3 + $0x48] sm:$0xff] }
 0xd6b   : > { %v6222_v49 = vmul.f32 1.442695, %v6198_v23  ;;  %v5212_v25 = vpop.permute.xlu1 %5211  ;;  %v5233_v52 = vmul.f32 %v14834_v12, %v5137_v32  ;;  %v5141_v23 = vld [vmem:[#allocation3 + $0x68] sm:$0xff]  ;;  %v5143_v12 = vld [vmem:[#allocation3 + $0x78] sm:$0xff]  ;;  %v6292_v32 = vsel %vm2377_vm5, %v14871_v43, 0.0 }
 0xd6c   : > { %9245 = vmatmul.mubr.msk.f32.gmra.mrb[92].mxu0 %vm2377_vm5, %v14860_v26  ;;  %v14878_v31 = vpop.eup %10465 }
 0xd6d   : > { %10469 = vpow2.f32 %v6222_v49  ;;  %9247 = vmatprep.mubr.msk.f32.mxu0 %vm2377_vm5, %v10452_v16 }
 0xd6e   : > { %6405 = vperm.xlu0 %9994, %v14867_v0   ;;  %10471 = vpow2.f32 %v6098_v24  ;;  %v5237_v24 = vmul.f32 %v5212_v25, %v5141_v23 }
 0xd6f   : > { %v5222_v56 = vpop.permute.xlu1 %5221  ;;  %10473 = vpow2.f32 %v6102_v61 }
 0xd70   : > { %9248 = vmatmul.mubr.msk.f32.gmra.mrb[94].mxu0 %vm2377_vm5, %v14871_v43  ;;  %v14885_v30 = vpop.eup %10467  ;;  %10475 = vpow2.f32 %v6106_v47  ;;  %v5239_v61 = vmul.f32 %v5222_v56, %v5143_v12 }
 0xd72   : > { %6415 = vperm.xlu0 %9994, %v14878_v31  }
 0xd73   : > { %v5565_v1 = vpop.permute.xlu1 %5564 }
 0xd74   : > { %v5611_v20 = vadd.f32 %v5565_v1, %v5225_v37  ;;  %v6199_v1 = vsub.f32 %v14534_v48, %v14839_v41  ;;  %v15837_v48 = vld [vmem:[#allocation98_spill] sm:$0xff] }
 0xd76   : > { %5628 = vst.msk [vmem:[#allocation3 + $0x8] sm:$0xff] %vm5626_vm14, %v5611_v20  ;;  %6425 = vperm.xlu0 %9994, %v14885_v30   ;;  %v6271_v20 = vsel %vm2377_vm5, %v14797_v34, 0.0  ;;  %v6224_v56 = vmul.f32 1.442695, %v6199_v1  ;;  %v6277_v34 = vsel %vm2377_vm5, %v14837_v15, 0.0 }
 0xd77   : > { %v10470_v38 = vpop.eup %10469  ;;  %v5569_v58 = vpop.permute.xlu1 %5568 }
 0xd78   : > { %v5613_v57 = vadd.f32 %v5569_v58, %v5227_v42  ;;  %9266 = vmatprep.mubr.msk.f32.mxu1 %vm2377_vm5, %v10470_v38  ;;  %v6295_v51 = vsel %vm2377_vm5, %v10470_v38, 0.0  ;;  %v14892_v60 = vpop.eup %10471  ;;  %v6280_v38 = vsel %vm2377_vm5, %v14846_v50, 0.0 }
 0xd79   : > { %6296 = vadd.xlane.f32.xlu1 %v6295_v51  ;;  %v14897_v63 = vpop.eup %10473 }
 0xd7a   : > { %5630 = vst.msk [vmem:[#allocation3 + $0x18] sm:$0xff] %vm5626_vm14, %v5613_v57  ;;  %6435 = vperm.xlu0 %9994, %v14892_v60   ;;  %v14902_v16 = vpop.eup %10475 }
 0xd7b   : > { %v5573_v33 = vpop.permute.xlu1 %5572 }
 0xd7c   : > { %v5615_v62 = vadd.f32 %v5573_v33, %v5229_v54  ;;  %v15838_v54 = vld [vmem:[#allocation100_spill] sm:$0xff] }
 0xd7e   : > { %5632 = vst.msk [vmem:[#allocation3 + $0x28] sm:$0xff] %vm5626_vm14, %v5615_v62  ;;  %6445 = vperm.xlu0 %9994, %v14897_v63   ;;  %v6286_v62 = vsel %vm2377_vm5, %v14860_v26, 0.0 }
 0xd7f   : > { %v5577_v40 = vpop.permute.xlu1 %5576 }
 0xd80   : > { %v5617_v5 = vadd.f32 %v5577_v40, %v5231_v14  ;;  %v15839_v14 = vld [vmem:[#allocation104_spill] sm:$0xff] }
 0xd82   : > { %5634 = vst.msk [vmem:[#allocation3 + $0x38] sm:$0xff] %vm5626_vm14, %v5617_v5  ;;  %6455 = vperm.xlu0 %9994, %v14902_v16  }
 0xd83   : > { %v5581_v11 = vpop.permute.xlu1 %5580 }
 0xd84   : > { %v5619_v9 = vadd.f32 %v5581_v11, %v5233_v52 }
 0xd86   : > { %5636 = vst.msk [vmem:[#allocation3 + $0x48] sm:$0xff] %vm5626_vm14, %v5619_v9 }
 0xd87   : > { %v5585_v10 = vpop.permute.xlu1 %5584 }
 0xd88   : > { %v5621_v19 = vadd.f32 %v5585_v10, %v5235_v53 }
 0xd8a   : > { %5638 = vst.msk [vmem:[#allocation3 + $0x58] sm:$0xff] %vm5626_vm14, %v5621_v19 }
 0xd8b   : > { %v5589_v49 = vpop.permute.xlu1 %5588 }
 0xd8c   : > { %v5623_v59 = vadd.f32 %v5589_v49, %v5237_v24 }
 0xd8e   : > { %5640 = vst.msk [vmem:[#allocation3 + $0x68] sm:$0xff] %vm5626_vm14, %v5623_v59 }
 0xd8f   : > { %v5593_v44 = vpop.permute.xlu1 %5592 }
 0xd90   : > { %v5625_v37 = vadd.f32 %v5593_v44, %v5239_v61 }
 0xd92   : > { %5642 = vst.msk [vmem:[#allocation3 + $0x78] sm:$0xff] %vm5626_vm14, %v5625_v37 }
 0xd93   : > { %v14933_v43 = vpop.permute.xlu1 %6385 }
 0xd99   : > { %v6168_v13 = vpop.permute.xlu0 %6167 }
 0xd9a   : > { %v6201_v42 = vsub.f32 %v14553_v39, %v6168_v13 }
 0xd9c   : > { %v6228_v57 = vmul.f32 1.442695, %v6201_v42 }
 0xd9d   : > { %v6163_v22 = vpop.permute.xlu0 %6162 }
 0xd9e   : > { %v6200_v47 = vsub.f32 %v14558_v17, %v6163_v22 }
 0xda0   : > { %v6226_v25 = vmul.f32 1.442695, %v6200_v47 }
 0xda1   : > { %v6178_v21 = vpop.permute.xlu0 %6177  ;;  %6272 = vadd.xlane.f32.xlu0 %v6271_v20  ;;  %v14938_v20 = vpop.permute.xlu1 %6395 }
 0xda2   : > { %10477 = vpow2.f32 %v6226_v25  ;;  %v6203_v41 = vsub.f32 %v15837_v48, %v6178_v21 }
 0xda3   : > { %10479 = vpow2.f32 %v6224_v56 }
 0xda4   : > { %v6232_v39 = vmul.f32 1.442695, %v6203_v41 }
 0xda5   : > { %v6173_v58 = vpop.permute.xlu0 %6172  ;;  %6281 = vadd.xlane.f32.xlu0 %v6280_v38  ;;  %v14945_v42 = vpop.permute.xlu1 %6400 }
 0xda6   : > { %v6202_v17 = vsub.f32 %v14568_v28, %v6173_v58  ;;  %v5128_v58 = vld [vmem:[#allocation3] sm:$0xff] }
 0xda8   : > { %v6230_v51 = vmul.f32 1.442695, %v6202_v17  ;;  %v15840_v17 = vld [vmem:[#allocation137_spill] sm:$0xff] }
 0xda9   : > { %v6188_v27 = vpop.permute.xlu0 %6187  ;;  %6278 = vadd.xlane.f32.xlu0 %v6277_v34  ;;  %v14950_v41 = vpop.permute.xlu1 %6410  ;;  %v5130_v34 = vld [vmem:[#allocation3 + $0x10] sm:$0xff] }
 0xdaa   : > { %10481 = vpow2.f32 %v6230_v51  ;;  %v6205_v33 = vsub.f32 %v15838_v54, %v6188_v27  ;;  %v15841_v27 = vld [vmem:[#allocation139_spill] sm:$0xff] }
 0xdab   : > { %10483 = vpow2.f32 %v6228_v57  ;;  %v5224_v57 = vmul.f32 %v15840_v17, %v5128_v58  ;;  %v6243_v58 = vld [vmem:[#allocation5 + $0x1a0] sm:$0xff] }
 0xdac   : > { %v10478_v50 = vpop.eup %10477  ;;  %10485 = vpow2.f32 %v6232_v39  ;;  %v6236_v15 = vmul.f32 1.442695, %v6205_v33  ;;  %v5226_v39 = vmul.f32 %v15841_v27, %v5130_v34 }
 0xdad   : > { %v6183_v28 = vpop.permute.xlu0 %6182  ;;  %6287 = vadd.xlane.f32.xlu0 %v6286_v62  ;;  %v6301_v45 = vsel %vm2377_vm5, %v10478_v50, 0.0  ;;  %v10480_v52 = vpop.eup %10479  ;;  %v15842_v62 = vld [vmem:[#allocation106_spill] sm:$0xff] }
 0xdae   : > { %v6204_v40 = vsub.f32 %v15839_v14, %v6183_v28  ;;  %6302 = vadd.xlane.f32.xlu1 %v6301_v45  ;;  %v6298_v10 = vsel %vm2377_vm5, %v10480_v52, 0.0  ;;  %v14956_v45 = vpop.permute.xlu1 %6420 }
 0xdb0   : > { %v6234_v5 = vmul.f32 1.442695, %v6204_v40 }
 0xdb1   : > { %v10222_v11 = vpop.permute.xlu0 %10221  ;;  %6293 = vadd.xlane.f32.xlu0 %v6292_v32 }
 0xdb2   : > { %10487 = vpow2.f32 %v6234_v5  ;;  %v10224_v9 = vunpack.i.h.bf16 %v10222_v11  ;;  %v10223_v4 = vunpack.i.l.bf16 %v10222_v11 }
 0xdb3   : > { %10489 = vpow2.f32 %v6236_v15  ;;  %v5134_v15 = vld [vmem:[#allocation3 + $0x30] sm:$0xff] }
 0xdb4   : > { %v10482_v26 = vpop.eup %10481  ;;  %v9686_v53 = vpack.c.bf16 %v10224_v9, %v10223_v4  ;;  %v5230_v5 = vmul.f32 %v14724_v46, %v5134_v15  ;;  %v5136_v9 = vld [vmem:[#allocation3 + $0x40] sm:$0xff] }
 0xdb5   : > { %v10484_v19 = vpop.eup %10483  ;;  %v10232_v23 = vpop.permute.xlu0 %10231  ;;  %6299 = vadd.xlane.f32.xlu0 %v6298_v10  ;;  %v6307_v24 = vsel %vm2377_vm5, %v10482_v26, 0.0  ;;  %v5138_v10 = vld [vmem:[#allocation3 + $0x50] sm:$0xff] }
 0xdb6   : > { %v10234_v49 = vunpack.i.h.bf16 %v10232_v23  ;;  %v10233_v59 = vunpack.i.l.bf16 %v10232_v23  ;;  %9687 = vmatprep.subr.bf16.mxu1 %v9686_v53  ;;  %6308 = vadd.xlane.f32.xlu1 %v6307_v24  ;;  %v6304_v61 = vsel %vm2377_vm5, %v10484_v19, 0.0  ;;  %v10486_v44 = vpop.eup %10485 }
 0xdb7   : > { %9689 = vmatpush3.bf16.msra.mxu1 %v9686_v53  ;;  %v6310_v22 = vsel %vm2377_vm5, %v10486_v44, 0.0 }
 0xdb8   : > { %v9690_v12 = vpack.c.bf16 %v10234_v49, %v10233_v59  ;;  %v5140_v49 = vld [vmem:[#allocation3 + $0x60] sm:$0xff] }
 0xdb9   : > { %v5187_v37 = vpop.permute.xlu0 %5186  ;;  %6305 = vadd.xlane.f32.xlu0 %v6304_v61 }
 0xdba   : > { %9691 = vmatprep.subr.bf16.mxu1 %v9690_v12  ;;  %v5232_v4 = vmul.f32 %v5187_v37, %v5136_v9  ;;  %v5142_v37 = vld [vmem:[#allocation3 + $0x70] sm:$0xff] }
 0xdbb   : > { %9693 = vmatpush3.bf16.msra.mxu1 %v9690_v12 }
 0xdbc   : > { %v10488_v13 = vpop.eup %10487 }
 0xdbd   : > { %v10490_v47 = vpop.eup %10489  ;;  %v5197_v1 = vpop.permute.xlu0 %5196  ;;  %6311 = vadd.xlane.f32.xlu0 %v6310_v22  ;;  %v6313_v25 = vsel %vm2377_vm5, %v10488_v13, 0.0 }
 0xdbe   : > { %9267 = vmatmul.mubr.msk.f32.vlgmr.msra.gmra.mrb[88].mxu1 %vm2377_vm5, %v10480_v52  ;;  %6314 = vadd.xlane.f32.xlu1 %v6313_v25  ;;  %v6316_v21 = vsel %vm2377_vm5, %v10490_v47, 0.0  ;;  %v14961_v52 = vpop.permute.xlu1 %6430  ;;  %v5234_v23 = vmul.f32 %v5197_v1, %v5138_v10  ;;  %v6240_v25 = vld [vmem:[#allocation5 + $0x188] sm:$0xff] }
 0xdbf   : > { %9269 = vmatprep.mubr.msk.f32.mxu1 %vm2377_vm5, %v10478_v50  ;;  %v5132_v50 = vld [vmem:[#allocation3 + $0x20] sm:$0xff] }
 0xdc0   : > { %v5228_v28 = vmul.f32 %v15842_v62, %v5132_v50 }
 0xdc1   : > { %v5207_v56 = vpop.permute.xlu0 %5206  ;;  %6317 = vadd.xlane.f32.xlu0 %v6316_v21  ;;  %v6256_v21 = vmul.f32 %v14855_v36, %v6240_v25 }
 0xdc2   : > { %9270 = vmatmul.mubr.msk.f32.gmra.mrb[90].mxu1 %vm2377_vm5, %v10484_v19  ;;  %v14964_v19 = vpop.permute.xlu1 %6440  ;;  %v5236_v59 = vmul.f32 %v5207_v56, %v5140_v49 }
 0xdc3   : > { %9272 = vmatprep.mubr.msk.f32.mxu1 %vm2377_vm5, %v10482_v26 }
 0xdc5   : > { %v5217_v38 = vpop.permute.xlu0 %5216 }
 0xdc6   : > { %9273 = vmatmul.mubr.msk.f32.gmra.mrb[92].mxu1 %vm2377_vm5, %v10486_v44  ;;  %v14968_v61 = vpop.permute.xlu1 %6450 }
 0xdc7   : > { %9275 = vmatprep.mubr.msk.f32.mxu1 %vm2377_vm5, %v10488_v13  ;;  %v5238_v13 = vmul.f32 %v5217_v38, %v5142_v37  ;;  %v6245_v38 = vld [vmem:[#allocation5 + $0x1b0] sm:$0xff] }
 0xdc8   : > { %v6261_v34 = vmul.f32 %v14878_v31, %v6245_v38 }
 0xdc9   : > { %v5563_v48 = vpop.permute.xlu0 %5562 }
 0xdca   : > { %v5610_v51 = vadd.f32 %v5563_v48, %v5224_v57  ;;  %9276 = vmatmul.mubr.msk.f32.gmra.mrb[94].mxu1 %vm2377_vm5, %v10490_v47  ;;  %v14971_v47 = vpop.permute.xlu1 %6460  ;;  %v6259_v57 = vmul.f32 %v14867_v0, %v6243_v58  ;;  %v6248_v58 = vld [vmem:[#allocation5 + $0x1c8] sm:$0xff] }
 0xdcb   : > { %v6264_v38 = vmul.f32 %v14759_v7, %v6248_v58 }
 0xdcc   : > { %5627 = vst.msk [vmem:[#allocation3] sm:$0xff] %vm5626_vm14, %v5610_v51 }
 0xdcd   : > { %v5567_v54 = vpop.permute.xlu0 %5566 }
 0xdce   : > { %v5612_v33 = vadd.f32 %v5567_v54, %v5226_v39  ;;  %v6247_v54 = vld [vmem:[#allocation5 + $0x1c0] sm:$0xff] }
 0xdcf   : > { %v6263_v36 = vmul.f32 %v14885_v30, %v6247_v54 }
 0xdd0   : > { %5629 = vst.msk [vmem:[#allocation3 + $0x10] sm:$0xff] %vm5626_vm14, %v5612_v33 }
 0xdd1   : > { %v5571_v14 = vpop.permute.xlu0 %5570 }
 0xdd2   : > { %v5614_v40 = vadd.f32 %v5571_v14, %v5228_v28 }
 0xdd4   : > { %5631 = vst.msk [vmem:[#allocation3 + $0x20] sm:$0xff] %vm5626_vm14, %v5614_v40 }
 0xdd5   : > { %v5575_v32 = vpop.permute.xlu0 %5574 }
 0xdd6   : > { %v5616_v11 = vadd.f32 %v5575_v32, %v5230_v5  ;;  %v6239_v5 = vld [vmem:[#allocation5 + $0x180] sm:$0xff] }
 0xdd7   : > { %v6255_v30 = vmul.f32 %v14722_v2, %v6239_v5  ;;  %v6252_v5 = vld [vmem:[#allocation5 + $0x1e8] sm:$0xff] }
 0xdd8   : > { %5633 = vst.msk [vmem:[#allocation3 + $0x30] sm:$0xff] %vm5626_vm14, %v5616_v11  ;;  %v6242_v11 = vld [vmem:[#allocation5 + $0x198] sm:$0xff] }
 0xdd9   : > { %v5579_v26 = vpop.permute.xlu0 %5578 }
 0xdda   : > { %v5618_v53 = vadd.f32 %v5579_v26, %v5232_v4  ;;  %v6258_v4 = vmul.f32 %v14735_v3, %v6242_v11 }
 0xddc   : > { %5635 = vst.msk [vmem:[#allocation3 + $0x40] sm:$0xff] %vm5626_vm14, %v5618_v53  ;;  %v6241_v53 = vld [vmem:[#allocation5 + $0x190] sm:$0xff] }
 0xddd   : > { %v5583_v24 = vpop.permute.xlu0 %5582 }
 0xdde   : > { %v5620_v46 = vadd.f32 %v5583_v24, %v5234_v23  ;;  %v6257_v23 = vmul.f32 %v14730_v18, %v6241_v53 }
 0xde0   : > { %5637 = vst.msk [vmem:[#allocation3 + $0x50] sm:$0xff] %vm5626_vm14, %v5620_v46  ;;  %v6244_v46 = vld [vmem:[#allocation5 + $0x1a8] sm:$0xff] }
 0xde1   : > { %v5587_v12 = vpop.permute.xlu0 %5586  ;;  %v6260_v3 = vmul.f32 %v14742_v6, %v6244_v46 }
 0xde2   : > { %v5622_v44 = vadd.f32 %v5587_v12, %v5236_v59  ;;  %v6249_v12 = vld [vmem:[#allocation5 + $0x1d0] sm:$0xff] }
 0xde3   : > { %v6265_v37 = vmul.f32 %v14892_v60, %v6249_v12 }
 0xde4   : > { %5639 = vst.msk [vmem:[#allocation3 + $0x60] sm:$0xff] %vm5626_vm14, %v5622_v44 }
 0xde5   : > { %v5591_v22 = vpop.permute.xlu0 %5590 }
 0xde6   : > { %v5624_v1 = vadd.f32 %v5591_v22, %v5238_v13  ;;  %v6246_v13 = vld [vmem:[#allocation5 + $0x1b8] sm:$0xff] }
 0xde8   : > { %5641 = vst.msk [vmem:[#allocation3 + $0x70] sm:$0xff] %vm5626_vm14, %v5624_v1 }
 0xde9   : > { %v14981_v33 = vpop.permute.xlu0 %6390 }
 0xdea   : > { %v6276_v56 = vpop.xlane.xlu1 %6275 }
 0xdeb   : > { %v6320_v17 = vadd.f32 %v6276_v56, %v6256_v21  ;;  %v6262_v56 = vmul.f32 %v14752_v29, %v6246_v13  ;;  %v6250_v29 = vld [vmem:[#allocation5 + $0x1d8] sm:$0xff] }
 0xded   : > { %6336 = vst.msk [vmem:[#allocation5 + $0x188] sm:$0xff] %vm2714_vm12, %v6320_v17  ;;  %v14984_v0 = vpop.permute.xlu0 %6405 }
 0xdee   : > { %v6285_v48 = vpop.xlane.xlu1 %6284 }
 0xdef   : > { %v6323_v51 = vadd.f32 %v6285_v48, %v6259_v57  ;;  %v6251_v57 = vld [vmem:[#allocation5 + $0x1e0] sm:$0xff] }
 0xdf1   : > { %6339 = vst.msk [vmem:[#allocation5 + $0x1a0] sm:$0xff] %vm2714_vm12, %v6323_v51  ;;  %v14986_v28 = vpop.permute.xlu0 %6415 }
 0xdf2   : > { %v6291_v27 = vpop.xlane.xlu1 %6290 }
 0xdf3   : > { %v6325_v39 = vadd.f32 %v6291_v27, %v6261_v34  ;;  %v6267_v34 = vmul.f32 %v14897_v63, %v6251_v57  ;;  %v6253_v63 = vld [vmem:[#allocation5 + $0x1f0] sm:$0xff]  ;;  %v6372_v57 = vld [vmem:[#allocation3 + $0x28] sm:$0xff] }
 0xdf5   : > { %6341 = vst.msk [vmem:[#allocation5 + $0x1b0] sm:$0xff] %vm2714_vm12, %v6325_v39  ;;  %v14988_v14 = vpop.permute.xlu0 %6425 }
 0xdf9   : > { %v14990_v31 = vpop.permute.xlu0 %6435 }
 0xdfd   : > { %v14992_v40 = vpop.permute.xlu0 %6445 }
 0xe01   : > { %v14994_v15 = vpop.permute.xlu0 %6455 }
 0xe06   : > { %v6297_v50 = vpop.xlane.xlu1 %6296 }
 0xe07   : > { %v6327_v62 = vadd.f32 %v6297_v50, %v6263_v36 }
 0xe09   : > { %6343 = vst.msk [vmem:[#allocation5 + $0x1c0] sm:$0xff] %vm2714_vm12, %v6327_v62  ;;  %v6266_v62 = vmul.f32 %v14769_v8, %v6250_v29 }
 0xe2e   : > { %v6273_v32 = vpop.xlane.xlu0 %6272 }
 0xe2f   : > { %v6319_v9 = vadd.f32 %v6273_v32, %v6255_v30  ;;  %v6268_v32 = vmul.f32 %v14781_v35, %v6252_v5 }
 0xe31   : > { %6335 = vst.msk [vmem:[#allocation5 + $0x180] sm:$0xff] %vm2714_vm12, %v6319_v9  ;;  %v6269_v9 = vmul.f32 %v14902_v16, %v6253_v63 }
 0xe32   : > { %v6282_v26 = vpop.xlane.xlu0 %6281 }
 0xe33   : > { %v6322_v10 = vadd.f32 %v6282_v26, %v6258_v4  ;;  %v6254_v4 = vld [vmem:[#allocation5 + $0x1f8] sm:$0xff] }
 0xe34   : > { %v6270_v8 = vmul.f32 %v14788_v55, %v6254_v4 }
 0xe35   : > { %6338 = vst.msk [vmem:[#allocation5 + $0x198] sm:$0xff] %vm2714_vm12, %v6322_v10 }
 0xe36   : > { %v6279_v24 = vpop.xlane.xlu0 %6278 }
 0xe37   : > { %v6321_v49 = vadd.f32 %v6279_v24, %v6257_v23  ;;  %v9240_v59 = vpop.f32.mrb[88].mxu0 }
 0xe38   : > { %6803 = vrot.lane.b32.xlu1 %v9240_v59, %s10963_s28  ;;  %v6593_v2 = vpop.f32.mrb[89].mxu0 }
 0xe39   : > { %6337 = vst.msk [vmem:[#allocation5 + $0x190] sm:$0xff] %vm2714_vm12, %v6321_v49  ;;  %6801 = vrot.lane.b32.xlu0 %v6593_v2, %s10963_s28 }
 0xe3a   : > { %v6288_v44 = vpop.xlane.xlu0 %6287 }
 0xe3b   : > { %v6324_v22 = vadd.f32 %v6288_v44, %v6260_v3  ;;  %v6303_v18 = vpop.xlane.xlu1 %6302  ;;  %v9243_v1 = vpop.f32.mrb[90].mxu0  ;;  %v6367_v3 = vld [vmem:[#allocation3] sm:$0xff]  ;;  %v6368_v44 = vld [vmem:[#allocation3 + $0x8] sm:$0xff] }
 0xe3c   : > { %v6329_v25 = vadd.f32 %v6303_v18, %v6265_v37  ;;  %6807 = vrot.lane.b32.xlu1 %v9243_v1, %s10963_s28  ;;  %v6603_v21 = vpop.f32.mrb[91].mxu0  ;;  %v6464_v37 = vmul.f32 %v14981_v33, %v6368_v44 }
 0xe3d   : > { %6340 = vst.msk [vmem:[#allocation5 + $0x1a8] sm:$0xff] %vm2714_vm12, %v6324_v22  ;;  %6805 = vrot.lane.b32.xlu0 %v6603_v21, %s10963_s28  ;;  %v6463_v22 = vmul.f32 %v14933_v43, %v6367_v3  ;;  %v6370_v21 = vld [vmem:[#allocation3 + $0x18] sm:$0xff]  ;;  %v6468_v43 = vmul.f32 %v14950_v41, %v6372_v57 }
 0xe3e   : > { %6345 = vst.msk [vmem:[#allocation5 + $0x1d0] sm:$0xff] %vm2714_vm12, %v6329_v25  ;;  %v6294_v6 = vpop.xlane.xlu0 %6293  ;;  %v6369_v25 = vld [vmem:[#allocation3 + $0x10] sm:$0xff] }
 0xe3f   : > { %v6326_v17 = vadd.f32 %v6294_v6, %v6262_v56  ;;  %v9246_v60 = vpop.f32.mrb[92].mxu0  ;;  %v6466_v6 = vmul.f32 %v14945_v42, %v6370_v21 }
 0xe40   : > { %6811 = vrot.lane.b32.xlu1 %v9246_v60, %s10963_s28  ;;  %v6613_v48 = vpop.f32.mrb[93].mxu0 }
 0xe41   : > { %6342 = vst.msk [vmem:[#allocation5 + $0x1b8] sm:$0xff] %vm2714_vm12, %v6326_v17  ;;  %6809 = vrot.lane.b32.xlu0 %v6613_v48, %s10963_s28  ;;  %v6465_v17 = vmul.f32 %v14938_v20, %v6369_v25 }
 0xe42   : > { %v6300_v51 = vpop.xlane.xlu0 %6299 }
 0xe43   : > { %v6328_v27 = vadd.f32 %v6300_v51, %v6264_v38  ;;  %v6309_v39 = vpop.xlane.xlu1 %6308  ;;  %v9249_v54 = vpop.f32.mrb[94].mxu0  ;;  %v6371_v38 = vld [vmem:[#allocation3 + $0x20] sm:$0xff] }
 0xe44   : > { %v6331_v36 = vadd.f32 %v6309_v39, %v6267_v34  ;;  %6815 = vrot.lane.b32.xlu1 %v9249_v54, %s10963_s28  ;;  %v6623_v50 = vpop.f32.mrb[95].mxu0  ;;  %v6467_v51 = vmul.f32 %v14984_v0, %v6371_v38  ;;  %v6373_v54 = vld [vmem:[#allocation3 + $0x30] sm:$0xff] }
 0xe45   : > { %6344 = vst.msk [vmem:[#allocation5 + $0x1c8] sm:$0xff] %vm2714_vm12, %v6328_v27  ;;  %6813 = vrot.lane.b32.xlu0 %v6623_v50, %s10963_s28  ;;  %v6374_v27 = vld [vmem:[#allocation3 + $0x38] sm:$0xff] }
 0xe46   : > { %6347 = vst.msk [vmem:[#allocation5 + $0x1e0] sm:$0xff] %vm2714_vm12, %v6331_v36  ;;  %v6306_v7 = vpop.xlane.xlu0 %6305  ;;  %v6470_v20 = vmul.f32 %v14956_v45, %v6374_v27  ;;  %v6469_v36 = vmul.f32 %v14986_v28, %v6373_v54  ;;  %v6378_v28 = vld [vmem:[#allocation3 + $0x58] sm:$0xff] }
 0xe47   : > { %v6330_v30 = vadd.f32 %v6306_v7, %v6266_v62  ;;  %v6376_v7 = vld [vmem:[#allocation3 + $0x48] sm:$0xff]  ;;  %v6474_v4 = vmul.f32 %v14964_v19, %v6378_v28 }
 0xe48   : > { %v6472_v5 = vmul.f32 %v14961_v52, %v6376_v7 }
 0xe49   : > { %6346 = vst.msk [vmem:[#allocation5 + $0x1d8] sm:$0xff] %vm2714_vm12, %v6330_v30  ;;  %v6375_v30 = vld [vmem:[#allocation3 + $0x40] sm:$0xff] }
 0xe4a   : > { %v6312_v11 = vpop.xlane.xlu0 %6311  ;;  %v6471_v45 = vmul.f32 %v14988_v14, %v6375_v30 }
 0xe4b   : > { %v6332_v26 = vadd.f32 %v6312_v11, %v6268_v32  ;;  %v6315_v53 = vpop.xlane.xlu1 %6314 }
 0xe4c   : > { %v6333_v10 = vadd.f32 %v6315_v53, %v6269_v9 }
 0xe4d   : > { %6348 = vst.msk [vmem:[#allocation5 + $0x1e8] sm:$0xff] %vm2714_vm12, %v6332_v26  ;;  %v6377_v26 = vld [vmem:[#allocation3 + $0x50] sm:$0xff] }
 0xe4e   : > { %6349 = vst.msk [vmem:[#allocation5 + $0x1f0] sm:$0xff] %vm2714_vm12, %v6333_v10  ;;  %v6318_v23 = vpop.xlane.xlu0 %6317  ;;  %v6473_v53 = vmul.f32 %v14990_v31, %v6377_v26  ;;  %v6382_v31 = vld [vmem:[#allocation3 + $0x78] sm:$0xff] }
 0xe4f   : > { %v6334_v24 = vadd.f32 %v6318_v23, %v6270_v8  ;;  %v6380_v23 = vld [vmem:[#allocation3 + $0x68] sm:$0xff] }
 0xe50   : > { %v6476_v14 = vmul.f32 %v14968_v61, %v6380_v23 }
 0xe51   : > { %6350 = vst.msk [vmem:[#allocation5 + $0x1f8] sm:$0xff] %vm2714_vm12, %v6334_v24 }
 0xe91   : > { %v9268_v46 = vpop.f32.mrb[88].mxu1 }
 0xe92   : > { %v6746_v49 = vpop.f32.mrb[89].mxu1  ;;  %6819 = vrot.lane.b32.xlu1 %v9268_v46, %s10963_s28  ;;  %v6379_v46 = vld [vmem:[#allocation3 + $0x60] sm:$0xff] }
 0xe93   : > { %6817 = vrot.lane.b32.xlu0 %v6746_v49, %s10963_s28  ;;  %v6475_v49 = vmul.f32 %v14992_v40, %v6379_v46 }
 0xe95   : > { %v9271_v35 = vpop.f32.mrb[90].mxu1 }
 0xe96   : > { %v6756_v16 = vpop.f32.mrb[91].mxu1  ;;  %6823 = vrot.lane.b32.xlu1 %v9271_v35, %s10963_s28 }
 0xe97   : > { %6821 = vrot.lane.b32.xlu0 %v6756_v16, %s10963_s28 }
 0xe99   : > { %v9274_v59 = vpop.f32.mrb[92].mxu1 }
 0xe9a   : > { %v6766_v55 = vpop.f32.mrb[93].mxu1  ;;  %6827 = vrot.lane.b32.xlu1 %v9274_v59, %s10963_s28 }
 0xe9b   : > { %6825 = vrot.lane.b32.xlu0 %v6766_v55, %s10963_s28  ;;  %v6478_v55 = vmul.f32 %v14971_v47, %v6382_v31 }
 0xe9d   : > { %v9277_v12 = vpop.f32.mrb[94].mxu1 }
 0xe9e   : > { %v6776_v2 = vpop.f32.mrb[95].mxu1  ;;  %6831 = vrot.lane.b32.xlu1 %v9277_v12, %s10963_s28  ;;  %v6381_v12 = vld [vmem:[#allocation3 + $0x70] sm:$0xff] }
 0xe9f   : > { %6829 = vrot.lane.b32.xlu0 %v6776_v2, %s10963_s28  ;;  %v6477_v2 = vmul.f32 %v14994_v15, %v6381_v12 }
 0xeaa   : > { %v6804_v13 = vpop.permute.xlu1 %6803 }
 0xeab   : > { %v6850_v18 = vadd.f32 %v6804_v13, %v6464_v37  ;;  %v6802_v1 = vpop.permute.xlu0 %6801 }
 0xeac   : > { %v6849_v56 = vadd.f32 %v6802_v1, %v6463_v22 }
 0xead   : > { %6867 = vst.msk [vmem:[#allocation3 + $0x8] sm:$0xff] %vm6865_vm15, %v6850_v18 }
 0xeae   : > { %6866 = vst.msk [vmem:[#allocation3] sm:$0xff] %vm6865_vm15, %v6849_v56  ;;  %v6808_v58 = vpop.permute.xlu1 %6807 }
 0xeaf   : > { %v6852_v60 = vadd.f32 %v6808_v58, %v6466_v6  ;;  %v6806_v33 = vpop.permute.xlu0 %6805 }
 0xeb0   : > { %v6851_v48 = vadd.f32 %v6806_v33, %v6465_v17 }
 0xeb1   : > { %6869 = vst.msk [vmem:[#allocation3 + $0x18] sm:$0xff] %vm6865_vm15, %v6852_v60 }
 0xeb2   : > { %6868 = vst.msk [vmem:[#allocation3 + $0x10] sm:$0xff] %vm6865_vm15, %v6851_v48  ;;  %v6812_v42 = vpop.permute.xlu1 %6811 }
 0xeb3   : > { %v6854_v34 = vadd.f32 %v6812_v42, %v6468_v43  ;;  %v6810_v29 = vpop.permute.xlu0 %6809 }
 0xeb4   : > { %v6853_v39 = vadd.f32 %v6810_v29, %v6467_v51 }
 0xeb5   : > { %6871 = vst.msk [vmem:[#allocation3 + $0x28] sm:$0xff] %vm6865_vm15, %v6854_v34 }
 0xeb6   : > { %6870 = vst.msk [vmem:[#allocation3 + $0x20] sm:$0xff] %vm6865_vm15, %v6853_v39  ;;  %v6816_v41 = vpop.permute.xlu1 %6815 }
 0xeb7   : > { %v6856_v50 = vadd.f32 %v6816_v41, %v6470_v20  ;;  %v6814_v62 = vpop.permute.xlu0 %6813 }
 0xeb8   : > { %v6855_v0 = vadd.f32 %v6814_v62, %v6469_v36 }
 0xeb9   : > { %6873 = vst.msk [vmem:[#allocation3 + $0x38] sm:$0xff] %vm6865_vm15, %v6856_v50 }
 0xeba   : > { %6872 = vst.msk [vmem:[#allocation3 + $0x30] sm:$0xff] %vm6865_vm15, %v6855_v0 }
 0xf04   : > { %v6820_v63 = vpop.permute.xlu1 %6819 }
 0xf05   : > { %v6858_v32 = vadd.f32 %v6820_v63, %v6472_v5  ;;  %v6818_v11 = vpop.permute.xlu0 %6817 }
 0xf06   : > { %v6857_v9 = vadd.f32 %v6818_v11, %v6471_v45 }
 0xf07   : > { %6875 = vst.msk [vmem:[#allocation3 + $0x48] sm:$0xff] %vm6865_vm15, %v6858_v32 }
 0xf08   : > { %6874 = vst.msk [vmem:[#allocation3 + $0x40] sm:$0xff] %vm6865_vm15, %v6857_v9  ;;  %v6824_v10 = vpop.permute.xlu1 %6823 }
 0xf09   : > { %v6860_v8 = vadd.f32 %v6824_v10, %v6474_v4  ;;  %v6822_v52 = vpop.permute.xlu0 %6821 }
 0xf0a   : > { %v6859_v24 = vadd.f32 %v6822_v52, %v6473_v53 }
 0xf0b   : > { %6877 = vst.msk [vmem:[#allocation3 + $0x58] sm:$0xff] %vm6865_vm15, %v6860_v8 }
 0xf0c   : > { %6876 = vst.msk [vmem:[#allocation3 + $0x50] sm:$0xff] %vm6865_vm15, %v6859_v24  ;;  %v6828_v19 = vpop.permute.xlu1 %6827 }
 0xf0d   : > { %v6862_v35 = vadd.f32 %v6828_v19, %v6476_v14  ;;  %v6826_v16 = vpop.permute.xlu0 %6825 }
 0xf0e   : > { %v6861_v59 = vadd.f32 %v6826_v16, %v6475_v49 }
 0xf0f   : > { %6879 = vst.msk [vmem:[#allocation3 + $0x68] sm:$0xff] %vm6865_vm15, %v6862_v35 }
 0xf10   : > { %6878 = vst.msk [vmem:[#allocation3 + $0x60] sm:$0xff] %vm6865_vm15, %v6861_v59  ;;  %v6832_v61 = vpop.permute.xlu1 %6831 }
 0xf11   : > { %v6864_v3 = vadd.f32 %v6832_v61, %v6478_v55  ;;  %v6830_v44 = vpop.permute.xlu0 %6829 }
 0xf12   : > { %v6863_v40 = vadd.f32 %v6830_v44, %v6477_v2 }
 0xf13   : > { %6881 = vst.msk [vmem:[#allocation3 + $0x78] sm:$0xff] %vm6865_vm15, %v6864_v3 }
 0xf14   : > { %6880 = vst.msk [vmem:[#allocation3 + $0x70] sm:$0xff] %vm6865_vm15, %v6863_v40 }
 0xf15 PF: > { %s15843_s18 = sld [smem:[#allocation50_spill]] }
 0xf1b   : > { %p8315_p10 = scmp.ne.s32.totalorder %s15843_s18, 1 }
 0xf1c   : > { %v7031_v47 = vld [vmem:[#allocation5 + $0x80] sm:$0xff] (!%p8315_p10)  ;;  %v10966_v22 = vmov (!%p8315_p10), 0   ;;  %v6911_v58 = vld [vmem:[#allocation5 + $0x48] sm:$0xff] (!%p8315_p10)  ;;  %v7503_v42 = vld [vmem:[%s11495_s14 + $0x18] sm:$0xff] (!%p8315_p10)  ;;  %v10967_v52 = vmov (!%p8315_p10), 0.0   ;;  %vm7417_vm0 = vcmask (!%p8315_p10), 261120  }
 0xf1d   : > { %6885 = sbr.rel (%p8315_p10) target bundleno = 4352 (0x1100), region = 104  ;;  %v6902_v37 = vld [vmem:[#allocation5] sm:$0xff] (!%p8315_p10)  ;;  %10524 = vset.pattern.permute.xlu1 (!%p8315_p10), %v10966_v22  ;;  %10523 = vset.pattern.permute.xlu0 (!%p8315_p10), %v10966_v22  ;;  %10525 = vrcp.f32 (!%p8315_p10), %v7031_v47  ;;  %v6903_v60 = vld [vmem:[#allocation5 + $0x8] sm:$0xff] (!%p8315_p10)  ;;  %v7502_v29 = vld [vmem:[%s11495_s14 + $0x10] sm:$0xff] (!%p8315_p10)  ;;  %vm7434_vm1 = vcmask (!%p8315_p10), 523264   ;;  %vm7451_vm2 = vcmask (!%p8315_p10), 785408  }
 0xf1e   : > { %v7039_v13 = vld [vmem:[#allocation5 + $0xc0] sm:$0xff] (!%p8315_p10)  ;;  %10527 = vrcp.f32 (!%p8315_p10), %v6902_v37  ;;  %v7040_v57 = vld [vmem:[#allocation5 + $0xc8] sm:$0xff] (!%p8315_p10)  ;;  %v7507_v50 = vld [vmem:[%s11495_s14 + $0x38] sm:$0xff] (!%p8315_p10)  ;;  %7596 = vmatprep.mubr.f32.mxu0 (!%p8315_p10), %v10967_v52  ;;  %7644 = vmatprep.mubr.f32.mxu1 (!%p8315_p10), %v10967_v52 }
 0xf1f   : > { %v6910_v15 = vld [vmem:[#allocation5 + $0x40] sm:$0xff] (!%p8315_p10)  ;;  %10529 = vrcp.f32 (!%p8315_p10), %v7039_v13  ;;  %v7032_v43 = vld [vmem:[#allocation5 + $0x88] sm:$0xff] (!%p8315_p10)  ;;  %v7506_v0 = vld [vmem:[%s11495_s14 + $0x30] sm:$0xff] (!%p8315_p10) }
 0xf20   : > { %10531 = vrcp.f32 (!%p8315_p10), %v6910_v15  ;;  %v7168_v18 = vld [vmem:[#allocation5 + $0x140] sm:$0xff] (!%p8315_p10)  ;;  %v7501_v51 = vld [vmem:[%s11495_s14 + $0x8] sm:$0xff] (!%p8315_p10)  ;;  %v7511_v63 = vld [vmem:[%s11495_s14 + $0x58] sm:$0xff] (!%p8315_p10) }
 0xf21   : > { %v7160_v1 = vld [vmem:[#allocation5 + $0x100] sm:$0xff] (!%p8315_p10)  ;;  %10533 = vrcp.f32 (!%p8315_p10), %v7168_v18  ;;  %v7169_v27 = vld [vmem:[#allocation5 + $0x148] sm:$0xff] (!%p8315_p10)  ;;  %v9694_v20 = vpack.c.bf16 (!%p8315_p10), %v7503_v42, %v7501_v51  ;;  %v7510_v9 = vld [vmem:[%s11495_s14 + $0x50] sm:$0xff] (!%p8315_p10) }
 0xf22   : > { %10535 = vrcp.f32 (!%p8315_p10), %v7160_v1  ;;  %v7297_v25 = vld [vmem:[#allocation5 + $0x1c0] sm:$0xff] (!%p8315_p10)  ;;  %v7161_v39 = vld [vmem:[#allocation5 + $0x108] sm:$0xff] (!%p8315_p10)  ;;  %v7515_v10 = vld [vmem:[%s11495_s14 + $0x78] sm:$0xff] (!%p8315_p10) }
 0xf23   : > { %v7289_v21 = vld [vmem:[#allocation5 + $0x180] sm:$0xff] (!%p8315_p10)  ;;  %10537 = vrcp.f32 (!%p8315_p10), %v7297_v25  ;;  %v7505_v36 = vld [vmem:[%s11495_s14 + $0x28] sm:$0xff] (!%p8315_p10)  ;;  %9695 = vmatprep.subr.bf16.mxu0 (!%p8315_p10), %v9694_v20  ;;  %9742 = vmatprep.subr.bf16.mxu1 (!%p8315_p10), %v9694_v20  ;;  %v6912_v24 = vld [vmem:[#allocation5 + $0x50] sm:$0xff] (!%p8315_p10) }
 0xf24   : > { %10539 = vrcp.f32 %v7289_v21  ;;  %v7500_v34 = vld [vmem:[%s11495_s14] sm:$0xff]  ;;  %v9698_v5 = vpack.c.bf16 %v7507_v50, %v7505_v36  ;;  %v7509_v30 = vld [vmem:[%s11495_s14 + $0x48] sm:$0xff]  ;;  %v7514_v49 = vld [vmem:[%s11495_s14 + $0x70] sm:$0xff] }
 0xf25   : > { %10541 = vrcp.f32 %v6911_v58  ;;  %v9696_v54 = vpack.c.bf16 %v7502_v29, %v7500_v34  ;;  %v7504_v62 = vld [vmem:[%s11495_s14 + $0x20] sm:$0xff]  ;;  %v7298_v32 = vld [vmem:[#allocation5 + $0x1c8] sm:$0xff]  ;;  %v9702_v11 = vpack.c.bf16 %v7511_v63, %v7509_v30  ;;  %v6904_v35 = vld [vmem:[#allocation5 + $0x10] sm:$0xff] }
 0xf26   : > { %10543 = vrcp.f32 %v6903_v60  ;;  %v9700_v45 = vpack.c.bf16 %v7506_v0, %v7504_v62  ;;  %v7508_v28 = vld [vmem:[%s11495_s14 + $0x40] sm:$0xff]  ;;  %v7290_v26 = vld [vmem:[#allocation5 + $0x188] sm:$0xff]  ;;  %v7519_v31 = vld [vmem:[%s11495_s14 + $0x98] sm:$0xff] }
 0xf27   : > { %v10526_v56 = vpop.eup %10525  ;;  %10545 = vrcp.f32 %v7040_v57  ;;  %9697 = vmatpush1.bf16.msra.mxu0 %v9696_v54  ;;  %9750 = vmatpush1.bf16.msra.mxu1 %v9696_v54  ;;  %v7513_v53 = vld [vmem:[%s11495_s14 + $0x68] sm:$0xff]  ;;  %v9704_v23 = vpack.c.bf16 %v7510_v9, %v7508_v28  ;;  %v7512_v46 = vld [vmem:[%s11495_s14 + $0x60] sm:$0xff]  ;;  %v7041_v12 = vld [vmem:[#allocation5 + $0xd0] sm:$0xff] }
 0xf28   : > { %v10528_v6 = vpop.eup %10527  ;;  %7065 = vperm.xlu1 %10524, %v10526_v56   ;;  %10547 = vrcp.f32 %v7032_v43  ;;  %9699 = vmatprep.subr.bf16.mxu0 %v9698_v5  ;;  %v9706_v14 = vpack.c.bf16 %v7515_v10, %v7513_v53  ;;  %v7517_v16 = vld [vmem:[%s11495_s14 + $0x88] sm:$0xff]  ;;  %v9708_v55 = vpack.c.bf16 %v7514_v49, %v7512_v46  ;;  %v7516_v61 = vld [vmem:[%s11495_s14 + $0x80] sm:$0xff]  ;;  %v7518_v3 = vld [vmem:[%s11495_s14 + $0x90] sm:$0xff] }
 0xf29   : > { %v10530_v17 = vpop.eup %10529  ;;  %6936 = vperm.xlu0 %10523, %v10528_v6   ;;  %10549 = vrcp.f32 %v7169_v27  ;;  %9743 = vmatprep.subr.bf16.mxu1 %v9698_v5  ;;  %v9710_v2 = vpack.c.bf16 %v7519_v31, %v7517_v16  ;;  %v7033_v40 = vld [vmem:[#allocation5 + $0x90] sm:$0xff]  ;;  %v7521_v47 = vld [vmem:[%s11495_s14 + $0xa8] sm:$0xff]  ;;  %v7523_v37 = vld [vmem:[%s11495_s14 + $0xb8] sm:$0xff]  ;;  %v9712_v22 = vpack.c.bf16 %v7518_v3, %v7516_v61 }
 0xf2a   : > { %v10532_v33 = vpop.eup %10531  ;;  %10551 = vrcp.f32 %v7161_v39  ;;  %v7170_v15 = vld [vmem:[#allocation5 + $0x150] sm:$0xff]  ;;  %v9714_v18 = vpack.c.bf16 %v7523_v37, %v7521_v47  ;;  %v7520_v1 = vld [vmem:[%s11495_s14 + $0xa0] sm:$0xff]  ;;  %v7525_v6 = vld [vmem:[%s11495_s14 + $0xc8] sm:$0xff] }
 0xf2b   : > { %v10534_v48 = vpop.eup %10533  ;;  %10553 = vrcp.f32 %v7298_v32  ;;  %9701 = vmatpush1.bf16.msra.mxu0 %v9700_v45  ;;  %9751 = vmatpush1.bf16.msra.mxu1 %v9700_v45  ;;  %v7522_v25 = vld [vmem:[%s11495_s14 + $0xb0] sm:$0xff]  ;;  %v7527_v58 = vld [vmem:[%s11495_s14 + $0xd8] sm:$0xff]  ;;  %v7529_v42 = vld [vmem:[%s11495_s14 + $0xe8] sm:$0xff] }
 0xf2c   : > { %7105 = vperm.xlu1 %10524, %v10530_v17   ;;  %v10536_v38 = vpop.eup %10535  ;;  %10555 = vrcp.f32 %v7290_v26  ;;  %9703 = vmatprep.subr.bf16.mxu0 %v9702_v11  ;;  %v7162_v56 = vld [vmem:[#allocation5 + $0x110] sm:$0xff]  ;;  %v9716_v60 = vpack.c.bf16 %v7522_v25, %v7520_v1  ;;  %v9718_v57 = vpack.c.bf16 %v7527_v58, %v7525_v6  ;;  %v7531_v34 = vld [vmem:[%s11495_s14 + $0xf8] sm:$0xff]  ;;  %v7528_v54 = vld [vmem:[%s11495_s14 + $0xe0] sm:$0xff] }
 0xf2d   : > { %6976 = vperm.xlu0 %10523, %v10532_v33   ;;  %v10538_v41 = vpop.eup %10537  ;;  %9744 = vmatprep.subr.bf16.mxu1 %v9702_v11  ;;  %10557 = vrcp.f32 %v6912_v24  ;;  %v7299_v33 = vld [vmem:[#allocation5 + $0x1d0] sm:$0xff]  ;;  %v6913_v39 = vld [vmem:[#allocation5 + $0x58] sm:$0xff]  ;;  %v9722_v20 = vpack.c.bf16 %v7531_v34, %v7529_v42  ;;  %v6914_v10 = vld [vmem:[#allocation5 + $0x60] sm:$0xff] }
 0xf2e   : > { %v10540_v7 = vpop.eup %10539  ;;  %10559 = vrcp.f32 %v6904_v35  ;;  %v7526_v43 = vld [vmem:[%s11495_s14 + $0xd0] sm:$0xff]  ;;  %v6905_v50 = vld [vmem:[#allocation5 + $0x18] sm:$0xff]  ;;  %v7035_v49 = vld [vmem:[#allocation5 + $0xa0] sm:$0xff] }
 0xf2f   : > { %v10542_v4 = vpop.eup %10541  ;;  %9705 = vmatpush1.bf16.msra.mxu0 %v9704_v23  ;;  %9752 = vmatpush1.bf16.msra.mxu1 %v9704_v23  ;;  %10561 = vrcp.f32 %v7041_v12  ;;  %v7291_v51 = vld [vmem:[#allocation5 + $0x190] sm:$0xff]  ;;  %v7034_v30 = vld [vmem:[#allocation5 + $0x98] sm:$0xff]  ;;  %v6906_v23 = vld [vmem:[#allocation5 + $0x20] sm:$0xff] }
 0xf30   : > { %7234 = vperm.xlu1 %10524, %v10534_v48   ;;  %v10544_v8 = vpop.eup %10543  ;;  %9707 = vmatprep.subr.bf16.mxu0 %v9706_v14  ;;  %10563 = vrcp.f32 %v7033_v40  ;;  %v7524_v48 = vld [vmem:[%s11495_s14 + $0xc0] sm:$0xff]  ;;  %v7530_v36 = vld [vmem:[%s11495_s14 + $0xf0] sm:$0xff]  ;;  %v7171_v63 = vld [vmem:[#allocation5 + $0x158] sm:$0xff] }
 0xf31   : > { %7194 = vperm.xlu0 %10523, %v10536_v38   ;;  %v10546_v19 = vpop.eup %10545  ;;  %9745 = vmatprep.subr.bf16.mxu1 %v9706_v14  ;;  %10565 = vrcp.f32 %v7170_v15  ;;  %v9720_v27 = vpack.c.bf16 %v7526_v43, %v7524_v48  ;;  %v9724_v0 = vpack.c.bf16 %v7530_v36, %v7528_v54  ;;  %v7163_v11 = vld [vmem:[#allocation5 + $0x118] sm:$0xff]  ;;  %v7043_v14 = vld [vmem:[#allocation5 + $0xe0] sm:$0xff]  ;;  %v6915_v3 = vld [vmem:[#allocation5 + $0x68] sm:$0xff] }
 0xf32   : > { %v10548_v59 = vpop.eup %10547  ;;  %10567 = vrcp.f32 %v7162_v56  ;;  %v7300_v9 = vld [vmem:[#allocation5 + $0x1d8] sm:$0xff]  ;;  %v7172_v35 = vld [vmem:[#allocation5 + $0x160] sm:$0xff]  ;;  %v6907_v40 = vld [vmem:[#allocation5 + $0x28] sm:$0xff] }
 0xf33   : > { %v10550_v44 = vpop.eup %10549  ;;  %9709 = vmatpush1.bf16.msra.mxu0 %v9708_v55  ;;  %9753 = vmatpush1.bf16.msra.mxu1 %v9708_v55  ;;  %10569 = vrcp.f32 %v7299_v33  ;;  %v7292_v26 = vld [vmem:[#allocation5 + $0x198] sm:$0xff]  ;;  %v7164_v31 = vld [vmem:[#allocation5 + $0x120] sm:$0xff]  ;;  %v7044_v37 = vld [vmem:[#allocation5 + $0xe8] sm:$0xff] }
 0xf34   : > { %7363 = vperm.xlu1 %10524, %v10538_v41   ;;  %v10552_v13 = vpop.eup %10551  ;;  %9711 = vmatprep.subr.bf16.mxu0 %v9710_v2  ;;  %10571 = vrcp.f32 %v7291_v51  ;;  %v7301_v55 = vld [vmem:[#allocation5 + $0x1e0] sm:$0xff]  ;;  %v7165_v25 = vld [vmem:[#allocation5 + $0x128] sm:$0xff]  ;;  %v7045_v43 = vld [vmem:[#allocation5 + $0xf0] sm:$0xff] }
 0xf35   : > { %7323 = vperm.xlu0 %10523, %v10540_v7   ;;  %v10554_v21 = vpop.eup %10553  ;;  %9746 = vmatprep.subr.bf16.mxu1 %v9710_v2  ;;  %10573 = vrcp.f32 %v6913_v39  ;;  %v7042_v7 = vld [vmem:[#allocation5 + $0xd8] sm:$0xff]  ;;  %v7293_v2 = vld [vmem:[#allocation5 + $0x1a0] sm:$0xff]  ;;  %v7302_v56 = vld [vmem:[#allocation5 + $0x1e8] sm:$0xff] }
 0xf36   : > { %v10556_v17 = vpop.eup %10555  ;;  %10575 = vrcp.f32 %v6905_v50  ;;  %v7294_v58 = vld [vmem:[#allocation5 + $0x1a8] sm:$0xff]  ;;  %v7037_v51 = vld [vmem:[#allocation5 + $0xb0] sm:$0xff]  ;;  %v6917_v50 = vld [vmem:[#allocation5 + $0x78] sm:$0xff] }
 0xf37   : > { %9713 = vmatpush1.bf16.msra.mxu0 %v9712_v22  ;;  %9754 = vmatpush1.bf16.msra.mxu1 %v9712_v22  ;;  %v10558_v38 = vpop.eup %10557  ;;  %10577 = vrcp.f32 %v7042_v7  ;;  %v7036_v22 = vld [vmem:[#allocation5 + $0xa8] sm:$0xff]  ;;  %v7174_v34 = vld [vmem:[#allocation5 + $0x170] sm:$0xff] }
 0xf38   : > { %6981 = vperm.xlu1 %10524, %v10542_v4   ;;  %9715 = vmatprep.subr.bf16.mxu0 %v9714_v18  ;;  %v10560_v29 = vpop.eup %10559  ;;  %10579 = vrcp.f32 %v7034_v30  ;;  %v7295_v36 = vld [vmem:[#allocation5 + $0x1b0] sm:$0xff] }
 0xf39   : > { %6941 = vperm.xlu0 %10523, %v10544_v8   ;;  %9747 = vmatprep.subr.bf16.mxu1 %v9714_v18  ;;  %v10562_v41 = vpop.eup %10561  ;;  %10581 = vrcp.f32 %v7171_v63  ;;  %v7173_v18 = vld [vmem:[#allocation5 + $0x168] sm:$0xff] }
 0xf3a   : > { %v10564_v62 = vpop.eup %10563  ;;  %10583 = vrcp.f32 %v7163_v11 }
 0xf3b   : > { %9717 = vmatpush1.bf16.msra.mxu0 %v9716_v60  ;;  %9755 = vmatpush1.bf16.msra.mxu1 %v9716_v60  ;;  %v10566_v5 = vpop.eup %10565  ;;  %10585 = vrcp.f32 %v7300_v9  ;;  %v6916_v60 = vld [vmem:[#allocation5 + $0x70] sm:$0xff] }
 0xf3c   : > { %7110 = vperm.xlu1 %10524, %v10546_v19   ;;  %9719 = vmatprep.subr.bf16.mxu0 %v9718_v57  ;;  %v10568_v45 = vpop.eup %10567  ;;  %10587 = vrcp.f32 %v7292_v26 }
 0xf3d   : > { %7070 = vperm.xlu0 %10523, %v10548_v59   ;;  %9748 = vmatprep.subr.bf16.mxu1 %v9718_v57  ;;  %v10570_v32 = vpop.eup %10569  ;;  %10589 = vrcp.f32 %v6914_v10  ;;  %v6908_v57 = vld [vmem:[#allocation5 + $0x30] sm:$0xff] }
 0xf3e   : > { %v10572_v28 = vpop.eup %10571  ;;  %10591 = vrcp.f32 %v6906_v23 }
 0xf3f   : > { %9721 = vmatpush1.bf16.msra.mxu0 %v9720_v27  ;;  %9756 = vmatpush1.bf16.msra.mxu1 %v9720_v27  ;;  %v10574_v4 = vpop.eup %10573  ;;  %10593 = vrcp.f32 %v7043_v14  ;;  %v7166_v27 = vld [vmem:[#allocation5 + $0x130] sm:$0xff] }
 0xf40   : > { %7239 = vperm.xlu1 %10524, %v10550_v44   ;;  %9723 = vmatprep.subr.bf16.mxu0 %v9722_v20  ;;  %v10576_v53 = vpop.eup %10575  ;;  %10595 = vrcp.f32 %v7035_v49 }
 0xf41   : > { %7199 = vperm.xlu0 %10523, %v10552_v13   ;;  %9749 = vmatprep.subr.bf16.mxu1 %v9722_v20  ;;  %v10578_v8 = vpop.eup %10577  ;;  %10597 = vrcp.f32 %v7172_v35  ;;  %v7303_v20 = vld [vmem:[#allocation5 + $0x1f0] sm:$0xff] }
 0xf42   : > { %v10580_v24 = vpop.eup %10579  ;;  %10599 = vrcp.f32 %v7164_v31 }
 0xf43   : > { %9725 = vmatpush1.bf16.msra.mxu0 %v9724_v0  ;;  %9757 = vmatpush1.bf16.msra.mxu1 %v9724_v0  ;;  %v10582_v46 = vpop.eup %10581  ;;  %10601 = vrcp.f32 %v7301_v55  ;;  %v6909_v0 = vld [vmem:[#allocation5 + $0x38] sm:$0xff]  ;;  %v6886_v55 = vld [vmem:[#allocation3] sm:$0xff] }
 0xf44   : > { %7368 = vperm.xlu1 %10524, %v10554_v21   ;;  %v10584_v19 = vpop.eup %10583  ;;  %10603 = vrcp.f32 %v7293_v2 }
 0xf45   : > { %7328 = vperm.xlu0 %10523, %v10556_v17   ;;  %v10586_v16 = vpop.eup %10585  ;;  %10605 = vrcp.f32 %v6915_v3 }
 0xf46   : > { %v10588_v59 = vpop.eup %10587  ;;  %10607 = vrcp.f32 %v6907_v40 }
 0xf47   : > { %v10590_v12 = vpop.eup %10589  ;;  %10609 = vrcp.f32 %v7044_v37 }
 0xf48   : > { %6986 = vperm.xlu1 %10524, %v10558_v38   ;;  %v10592_v61 = vpop.eup %10591  ;;  %10611 = vrcp.f32 %v7036_v22 }
 0xf49   : > { %6946 = vperm.xlu0 %10523, %v10560_v29   ;;  %v10594_v44 = vpop.eup %10593  ;;  %10613 = vrcp.f32 %v7173_v18 }
 0xf4a   : > { %v10596_v47 = vpop.eup %10595  ;;  %10615 = vrcp.f32 %v7165_v25 }
 0xf4b   : > { %v10598_v13 = vpop.eup %10597  ;;  %10617 = vrcp.f32 %v7302_v56 }
 0xf4c   : > { %7115 = vperm.xlu1 %10524, %v10562_v41   ;;  %v10600_v15 = vpop.eup %10599  ;;  %10619 = vrcp.f32 %v7294_v58 }
 0xf4d   : > { %7075 = vperm.xlu0 %10523, %v10564_v62   ;;  %v10602_v1 = vpop.eup %10601  ;;  %10621 = vrcp.f32 %v6916_v60 }
 0xf4e   : > { %v10604_v21 = vpop.eup %10603  ;;  %10623 = vrcp.f32 %v6908_v57 }
 0xf4f   : > { %v10606_v6 = vpop.eup %10605  ;;  %10625 = vrcp.f32 %v7045_v43 }
 0xf50   : > { %7244 = vperm.xlu1 %10524, %v10566_v5   ;;  %v10608_v17 = vpop.eup %10607  ;;  %10627 = vrcp.f32 %v7037_v51  ;;  %v7046_v5 = vld [vmem:[#allocation5 + $0xf8] sm:$0xff] }
 0xf51   : > { %7204 = vperm.xlu0 %10523, %v10568_v45   ;;  %v10610_v33 = vpop.eup %10609  ;;  %10629 = vrcp.f32 %v7174_v34  ;;  %v7038_v45 = vld [vmem:[#allocation5 + $0xb8] sm:$0xff] }
 0xf52   : > { %v10612_v48 = vpop.eup %10611  ;;  %10631 = vrcp.f32 %v7166_v27 }
 0xf53   : > { %v10614_v38 = vpop.eup %10613  ;;  %10633 = vrcp.f32 %v7303_v20 }
 0xf54   : > { %7373 = vperm.xlu1 %10524, %v10570_v32   ;;  %v10616_v42 = vpop.eup %10615  ;;  %10635 = vrcp.f32 %v7295_v36  ;;  %v7175_v32 = vld [vmem:[#allocation5 + $0x178] sm:$0xff] }
 0xf55   : > { %7333 = vperm.xlu0 %10523, %v10572_v28   ;;  %v10618_v29 = vpop.eup %10617  ;;  %10637 = vrcp.f32 %v6917_v50  ;;  %v7167_v28 = vld [vmem:[#allocation5 + $0x138] sm:$0xff] }
 0xf56   : > { %v10620_v39 = vpop.eup %10619  ;;  %10639 = vrcp.f32 %v6909_v0 }
 0xf57   : > { %v10622_v54 = vpop.eup %10621  ;;  %10641 = vrcp.f32 %v7046_v5 }
 0xf58   : > { %6991 = vperm.xlu1 %10524, %v10574_v4   ;;  %v10624_v41 = vpop.eup %10623  ;;  %10643 = vrcp.f32 %v7038_v45  ;;  %v7304_v4 = vld [vmem:[#allocation5 + $0x1f8] sm:$0xff] }
 0xf59   : > { %6951 = vperm.xlu0 %10523, %v10576_v53   ;;  %v10626_v62 = vpop.eup %10625  ;;  %10645 = vrcp.f32 %v7175_v32  ;;  %v7296_v53 = vld [vmem:[#allocation5 + $0x1b8] sm:$0xff] }
 0xf5a   : > { %v10628_v7 = vpop.eup %10627  ;;  %10647 = vrcp.f32 %v7167_v28 }
 0xf5b   : > { %v10630_v30 = vpop.eup %10629  ;;  %10649 = vrcp.f32 %v7304_v4 }
 0xf5c   : > { %7120 = vperm.xlu1 %10524, %v10578_v8   ;;  %v10632_v63 = vpop.eup %10631  ;;  %10651 = vrcp.f32 %v7296_v53 }
 0xf5d   : > { %7080 = vperm.xlu0 %10523, %v10580_v24   ;;  %v10634_v11 = vpop.eup %10633 }
 0xf5e   : > { %v10636_v9 = vpop.eup %10635 }
 0xf5f   : > { %v10638_v26 = vpop.eup %10637 }
 0xf60   : > { %7249 = vperm.xlu1 %10524, %v10582_v46   ;;  %v10640_v10 = vpop.eup %10639 }
 0xf61   : > { %7209 = vperm.xlu0 %10523, %v10584_v19   ;;  %v10642_v8 = vpop.eup %10641 }
 0xf62   : > { %v10644_v23 = vpop.eup %10643 }
 0xf63   : > { %v10646_v24 = vpop.eup %10645 }
 0xf64   : > { %7378 = vperm.xlu1 %10524, %v10586_v16   ;;  %v10648_v14 = vpop.eup %10647 }
 0xf65   : > { %7338 = vperm.xlu0 %10523, %v10588_v59   ;;  %v10650_v46 = vpop.eup %10649  ;;  %v6894_v59 = vld [vmem:[#allocation3 + $0x40] sm:$0xff] }
 0xf66   : > { %v10652_v49 = vpop.eup %10651 }
 0xf68   : > { %6996 = vperm.xlu1 %10524, %v10590_v12  }
 0xf69   : > { %6956 = vperm.xlu0 %10523, %v10592_v61  }
 0xf6c   : > { %7125 = vperm.xlu1 %10524, %v10594_v44  }
 0xf6d   : > { %7085 = vperm.xlu0 %10523, %v10596_v47  }
 0xf70   : > { %7254 = vperm.xlu1 %10524, %v10598_v13  }
 0xf71   : > { %7214 = vperm.xlu0 %10523, %v10600_v15  }
 0xf74   : > { %7383 = vperm.xlu1 %10524, %v10602_v1  }
 0xf75   : > { %7343 = vperm.xlu0 %10523, %v10604_v21  }
 0xf78   : > { %7001 = vperm.xlu1 %10524, %v10606_v6  }
 0xf79   : > { %6961 = vperm.xlu0 %10523, %v10608_v17  }
 0xf7c   : > { %7130 = vperm.xlu1 %10524, %v10610_v33  }
 0xf7d   : > { %7090 = vperm.xlu0 %10523, %v10612_v48   ;;  %v6895_v48 = vld [vmem:[#allocation3 + $0x48] sm:$0xff] }
 0xf80   : > { %7259 = vperm.xlu1 %10524, %v10614_v38   ;;  %v6887_v38 = vld [vmem:[#allocation3 + $0x8] sm:$0xff] }
 0xf81   : > { %7219 = vperm.xlu0 %10523, %v10616_v42  }
 0xf84   : > { %7388 = vperm.xlu1 %10524, %v10618_v29  }
 0xf85   : > { %7348 = vperm.xlu0 %10523, %v10620_v39  }
 0xf88   : > { %7006 = vperm.xlu1 %10524, %v10622_v54  }
 0xf89   : > { %6966 = vperm.xlu0 %10523, %v10624_v41  }
 0xf8c   : > { %7135 = vperm.xlu1 %10524, %v10626_v62  }
 0xf8d   : > { %7095 = vperm.xlu0 %10523, %v10628_v7  }
 0xf90   : > { %7264 = vperm.xlu1 %10524, %v10630_v30  }
 0xf91   : > { %7224 = vperm.xlu0 %10523, %v10632_v63  }
 0xf94   : > { %7393 = vperm.xlu1 %10524, %v10634_v11  }
 0xf95   : > { %7353 = vperm.xlu0 %10523, %v10636_v9   ;;  %v6896_v9 = vld [vmem:[#allocation3 + $0x50] sm:$0xff] }
 0xf98   : > { %7011 = vperm.xlu1 %10524, %v10638_v26   ;;  %v6888_v26 = vld [vmem:[#allocation3 + $0x10] sm:$0xff] }
 0xf99   : > { %6971 = vperm.xlu0 %10523, %v10640_v10  }
 0xf9c   : > { %7140 = vperm.xlu1 %10524, %v10642_v8  }
 0xf9d   : > { %7100 = vperm.xlu0 %10523, %v10644_v23  }
 0xfa0   : > { %7269 = vperm.xlu1 %10524, %v10646_v24  }
 0xfa1   : > { %7229 = vperm.xlu0 %10523, %v10648_v14  }
 0xfa4   : > { %7398 = vperm.xlu1 %10524, %v10650_v46  }
 0xfa5   : > { %7358 = vperm.xlu0 %10523, %v10652_v49  }
 0xfa7   : > { %v7066_v19 = vpop.permute.xlu1 %7065 }
 0xfa8   : > { %v6937_v35 = vpop.permute.xlu0 %6936  ;;  %v7143_v44 = vmul.f32 %v7066_v19, %v6886_v55 }
 0xfa9   : > { %v7014_v40 = vmul.f32 %v6937_v35, %v6886_v55 }
 0xfab   : > { %v7106_v16 = vpop.permute.xlu1 %7105  ;;  %v7418_v1 = vsel %vm7417_vm0, %v7014_v40, %v7143_v44 }
 0xfac   : > { %v6977_v31 = vpop.permute.xlu0 %6976  ;;  %v7151_v2 = vmul.f32 %v7106_v16, %v6894_v59 }
 0xfad   : > { %v7022_v61 = vmul.f32 %v6977_v31, %v6894_v59 }
 0xfaf   : > { %v7235_v12 = vpop.permute.xlu1 %7234  ;;  %v7426_v22 = vsel %vm7417_vm0, %v7022_v61, %v7151_v2 }
 0xfb0   : > { %v7195_v3 = vpop.permute.xlu0 %7194  ;;  %v7280_v47 = vmul.f32 %v7235_v12, %v6894_v59 }
 0xfb1   : > { %v7272_v37 = vmul.f32 %v7195_v3, %v6886_v55 }
 0xfb2   : > { %v7443_v21 = vsel %vm7434_vm1, %v7426_v22, %v7280_v47  ;;  %v6889_v22 = vld [vmem:[#allocation3 + $0x18] sm:$0xff] }
 0xfb3   : > { %v7364_v13 = vpop.permute.xlu1 %7363  ;;  %v7435_v56 = vsel %vm7434_vm1, %v7418_v1, %v7272_v37  ;;  %v6897_v37 = vld [vmem:[#allocation3 + $0x58] sm:$0xff] }
 0xfb4   : > { %v7409_v15 = vmul.f32 %v7364_v13, %v6894_v59  ;;  %v7324_v18 = vpop.permute.xlu0 %7323 }
 0xfb5   : > { %v7401_v25 = vmul.f32 %v7324_v18, %v6886_v55 }
 0xfb6   : > { %v7460_v6 = vsel %vm7451_vm2, %v7443_v21, %v7409_v15 }
 0xfb7   : > { %v6982_v58 = vpop.permute.xlu1 %6981  ;;  %v7452_v17 = vsel %vm7451_vm2, %v7435_v56, %v7401_v25  ;;  %7645 = vmatmul.mubr.f32.vlgmr.msra.gmra.mrb[0].mxu1 %v7460_v6 }
 0xfb8   : > { %v6942_v60 = vpop.permute.xlu0 %6941  ;;  %7597 = vmatmul.mubr.f32.vlgmr.msra.gmra.mrb[0].mxu0 %v7452_v17  ;;  %7650 = vmatprep.mubr.f32.mxu1 %v10967_v52  ;;  %v7023_v27 = vmul.f32 %v6982_v58, %v6895_v48 }
 0xfb9   : > { %7602 = vmatprep.mubr.f32.mxu0 %v10967_v52  ;;  %v7015_v20 = vmul.f32 %v6942_v60, %v6887_v38 }
 0xfbb   : > { %v7111_v33 = vpop.permute.xlu1 %7110 }
 0xfbc   : > { %v7071_v57 = vpop.permute.xlu0 %7070  ;;  %v7152_v51 = vmul.f32 %v7111_v33, %v6895_v48 }
 0xfbd   : > { %v7144_v34 = vmul.f32 %v7071_v57, %v6887_v38 }
 0xfbe   : > { %v7427_v36 = vsel %vm7417_vm0, %v7023_v27, %v7152_v51 }
 0xfbf   : > { %v7240_v43 = vpop.permute.xlu1 %7239  ;;  %v7419_v62 = vsel %vm7417_vm0, %v7015_v20, %v7144_v34  ;;  %v6898_v20 = vld [vmem:[#allocation3 + $0x60] sm:$0xff] }
 0xfc0   : > { %v7200_v42 = vpop.permute.xlu0 %7199  ;;  %v7281_v29 = vmul.f32 %v7240_v43, %v6895_v48 }
 0xfc1   : > { %v7273_v39 = vmul.f32 %v7200_v42, %v6887_v38 }
 0xfc2   : > { %v7444_v7 = vsel %vm7434_vm1, %v7427_v36, %v7281_v29  ;;  %v6890_v36 = vld [vmem:[#allocation3 + $0x20] sm:$0xff] }
 0xfc3   : > { %v7369_v54 = vpop.permute.xlu1 %7368  ;;  %v7436_v5 = vsel %vm7434_vm1, %v7419_v62, %v7273_v39 }
 0xfc4   : > { %v7410_v41 = vmul.f32 %v7369_v54, %v6895_v48  ;;  %v7329_v50 = vpop.permute.xlu0 %7328 }
 0xfc5   : > { %v7402_v0 = vmul.f32 %v7329_v50, %v6887_v38 }
 0xfc6   : > { %v7461_v30 = vsel %vm7451_vm2, %v7444_v7, %v7410_v41 }
 0xfc7   : > { %v6987_v45 = vpop.permute.xlu1 %6986  ;;  %v7453_v63 = vsel %vm7451_vm2, %v7436_v5, %v7402_v0  ;;  %7651 = vmatmul.mubr.f32.gmra.mrb[2].mxu1 %v7461_v30 }
 0xfc8   : > { %v6947_v32 = vpop.permute.xlu0 %6946  ;;  %7603 = vmatmul.mubr.f32.gmra.mrb[2].mxu0 %v7453_v63  ;;  %7656 = vmatprep.mubr.f32.mxu1 %v10967_v52  ;;  %v7024_v24 = vmul.f32 %v6987_v45, %v6896_v9 }
 0xfc9   : > { %7608 = vmatprep.mubr.f32.mxu0 %v10967_v52  ;;  %v7016_v46 = vmul.f32 %v6947_v32, %v6888_v26 }
 0xfcb   : > { %v7116_v11 = vpop.permute.xlu1 %7115 }
 0xfcc   : > { %v7076_v28 = vpop.permute.xlu0 %7075  ;;  %v7153_v53 = vmul.f32 %v7116_v11, %v6896_v9 }
 0xfcd   : > { %v7145_v8 = vmul.f32 %v7076_v28, %v6888_v26 }
 0xfce   : > { %v7428_v19 = vsel %vm7417_vm0, %v7024_v24, %v7153_v53 }
 0xfcf   : > { %v7245_v4 = vpop.permute.xlu1 %7244  ;;  %v7420_v31 = vsel %vm7417_vm0, %v7016_v46, %v7145_v8  ;;  %v6899_v46 = vld [vmem:[#allocation3 + $0x68] sm:$0xff] }
 0xfd0   : > { %v7205_v10 = vpop.permute.xlu0 %7204  ;;  %v7282_v23 = vmul.f32 %v7245_v4, %v6896_v9 }
 0xfd1   : > { %v7274_v14 = vmul.f32 %v7205_v10, %v6888_v26 }
 0xfd2   : > { %v7445_v55 = vsel %vm7434_vm1, %v7428_v19, %v7282_v23  ;;  %v6891_v19 = vld [vmem:[#allocation3 + $0x28] sm:$0xff] }
 0xfd3   : > { %v7374_v49 = vpop.permute.xlu1 %7373  ;;  %v7437_v12 = vsel %vm7434_vm1, %v7420_v31, %v7274_v14 }
 0xfd4   : > { %v7411_v35 = vmul.f32 %v7374_v49, %v6896_v9  ;;  %v7334_v16 = vpop.permute.xlu0 %7333 }
 0xfd5   : > { %v7403_v59 = vmul.f32 %v7334_v16, %v6888_v26 }
 0xfd6   : > { %v7462_v2 = vsel %vm7451_vm2, %v7445_v55, %v7411_v35 }
 0xfd7   : > { %v6992_v61 = vpop.permute.xlu1 %6991  ;;  %v7454_v3 = vsel %vm7451_vm2, %v7437_v12, %v7403_v59  ;;  %7657 = vmatmul.mubr.f32.gmra.mrb[4].mxu1 %v7462_v2 }
 0xfd8   : > { %v6952_v44 = vpop.permute.xlu0 %6951  ;;  %7609 = vmatmul.mubr.f32.gmra.mrb[4].mxu0 %v7454_v3  ;;  %7662 = vmatprep.mubr.f32.mxu1 %v10967_v52  ;;  %v7025_v21 = vmul.f32 %v6992_v61, %v6897_v37 }
 0xfd9   : > { %7614 = vmatprep.mubr.f32.mxu0 %v10967_v52  ;;  %v7017_v6 = vmul.f32 %v6952_v44, %v6889_v22 }
 0xfdb   : > { %v7121_v40 = vpop.permute.xlu1 %7120 }
 0xfdc   : > { %v7081_v47 = vpop.permute.xlu0 %7080  ;;  %v7154_v15 = vmul.f32 %v7121_v40, %v6897_v37 }
 0xfdd   : > { %v7146_v1 = vmul.f32 %v7081_v47, %v6889_v22 }
 0xfde   : > { %v7429_v17 = vsel %vm7417_vm0, %v7025_v21, %v7154_v15 }
 0xfdf   : > { %v7250_v13 = vpop.permute.xlu1 %7249  ;;  %v7421_v57 = vsel %vm7417_vm0, %v7017_v6, %v7146_v1  ;;  %v6900_v6 = vld [vmem:[#allocation3 + $0x70] sm:$0xff] }
 0xfe0   : > { %v7210_v18 = vpop.permute.xlu0 %7209  ;;  %v7283_v25 = vmul.f32 %v7250_v13, %v6897_v37 }
 0xfe1   : > { %v7275_v56 = vmul.f32 %v7210_v18, %v6889_v22 }
 0xfe2   : > { %v7446_v43 = vsel %vm7434_vm1, %v7429_v17, %v7283_v25  ;;  %v6892_v17 = vld [vmem:[#allocation3 + $0x30] sm:$0xff] }
 0xfe3   : > { %v7379_v58 = vpop.permute.xlu1 %7378  ;;  %v7438_v38 = vsel %vm7434_vm1, %v7421_v57, %v7275_v56 }
 0xfe4   : > { %v7412_v60 = vmul.f32 %v7379_v58, %v6897_v37  ;;  %v7339_v33 = vpop.permute.xlu0 %7338 }
 0xfe5   : > { %v7404_v48 = vmul.f32 %v7339_v33, %v6889_v22 }
 0xfe6   : > { %v7463_v51 = vsel %vm7451_vm2, %v7446_v43, %v7412_v60 }
 0xfe7   : > { %v6997_v42 = vpop.permute.xlu1 %6996  ;;  %v7455_v34 = vsel %vm7451_vm2, %v7438_v38, %v7404_v48  ;;  %7663 = vmatmul.mubr.f32.gmra.mrb[6].mxu1 %v7463_v51 }
 0xfe8   : > { %v6957_v29 = vpop.permute.xlu0 %6956  ;;  %7615 = vmatmul.mubr.f32.gmra.mrb[6].mxu0 %v7455_v34  ;;  %7668 = vmatprep.mubr.f32.mxu1 %v10967_v52  ;;  %v7026_v7 = vmul.f32 %v6997_v42, %v6898_v20 }
 0xfe9   : > { %7620 = vmatprep.mubr.f32.mxu0 %v10967_v52  ;;  %v7018_v30 = vmul.f32 %v6957_v29, %v6890_v36 }
 0xfeb   : > { %v7126_v27 = vpop.permute.xlu1 %7125 }
 0xfec   : > { %v7086_v39 = vpop.permute.xlu0 %7085  ;;  %v7155_v41 = vmul.f32 %v7126_v27, %v6898_v20 }
 0xfed   : > { %v7147_v62 = vmul.f32 %v7086_v39, %v6890_v36 }
 0xfee   : > { %v7430_v63 = vsel %vm7417_vm0, %v7026_v7, %v7155_v41 }
 0xfef   : > { %v7255_v54 = vpop.permute.xlu1 %7254  ;;  %v7422_v28 = vsel %vm7417_vm0, %v7018_v30, %v7147_v62  ;;  %v6901_v30 = vld [vmem:[#allocation3 + $0x78] sm:$0xff] }
 0xff0   : > { %v7215_v50 = vpop.permute.xlu0 %7214  ;;  %v7284_v0 = vmul.f32 %v7255_v54, %v6898_v20 }
 0xff1   : > { %v7276_v5 = vmul.f32 %v7215_v50, %v6890_v36 }
 0xff2   : > { %v7447_v4 = vsel %vm7434_vm1, %v7430_v63, %v7284_v0  ;;  %v6893_v63 = vld [vmem:[#allocation3 + $0x38] sm:$0xff] }
 0xff3   : > { %v7384_v45 = vpop.permute.xlu1 %7383  ;;  %v7439_v26 = vsel %vm7434_vm1, %v7422_v28, %v7276_v5 }
 0xff4   : > { %v7413_v32 = vmul.f32 %v7384_v45, %v6898_v20  ;;  %v7344_v11 = vpop.permute.xlu0 %7343 }
 0xff5   : > { %v7405_v9 = vmul.f32 %v7344_v11, %v6890_v36 }
 0xff6   : > { %v7464_v53 = vsel %vm7451_vm2, %v7447_v4, %v7413_v32 }
 0xff7   : > { %v7002_v10 = vpop.permute.xlu1 %7001  ;;  %v7456_v8 = vsel %vm7451_vm2, %v7439_v26, %v7405_v9  ;;  %7669 = vmatmul.mubr.f32.gmra.mrb[8].mxu1 %v7464_v53 }
 0xff8   : > { %v6962_v23 = vpop.permute.xlu0 %6961  ;;  %7621 = vmatmul.mubr.f32.gmra.mrb[8].mxu0 %v7456_v8  ;;  %7674 = vmatprep.mubr.f32.mxu1 %v10967_v52  ;;  %v7027_v55 = vmul.f32 %v7002_v10, %v6899_v46 }
 0xff9   : > { %7626 = vmatprep.mubr.f32.mxu0 %v10967_v52  ;;  %v7019_v2 = vmul.f32 %v6962_v23, %v6891_v19 }
 0xffb   : > { %v7131_v24 = vpop.permute.xlu1 %7130 }
 0xffc   : > { %v7091_v14 = vpop.permute.xlu0 %7090  ;;  %v7156_v35 = vmul.f32 %v7131_v24, %v6899_v46 }
 0xffd   : > { %v7148_v31 = vmul.f32 %v7091_v14, %v6891_v19 }
 0xffe   : > { %v7431_v3 = vsel %vm7417_vm0, %v7027_v55, %v7156_v35 }
 0xfff   : > { %v7260_v49 = vpop.permute.xlu1 %7259  ;;  %v7423_v47 = vsel %vm7417_vm0, %v7019_v2, %v7148_v31  ;;  %v7468_v31 = vld [vmem:[%s11518_s10] sm:$0xff] }
0x1000   : > { %v7220_v16 = vpop.permute.xlu0 %7219  ;;  %v7285_v59 = vmul.f32 %v7260_v49, %v6899_v46 }
0x1001   : > { %v7277_v12 = vmul.f32 %v7220_v16, %v6891_v19  ;;  %v7484_v16 = vld [vmem:[%s11518_s10 + $0x80] sm:$0xff] }
0x1002   : > { %v7448_v13 = vsel %vm7434_vm1, %v7431_v3, %v7285_v59  ;;  %v7485_v59 = vld [vmem:[%s11518_s10 + $0x88] sm:$0xff] }
0x1003   : > { %v7389_v61 = vpop.permute.xlu1 %7388  ;;  %v7440_v22 = vsel %vm7434_vm1, %v7423_v47, %v7277_v12  ;;  %v7469_v12 = vld [vmem:[%s11518_s10 + $0x8] sm:$0xff] }
0x1004   : > { %v7414_v44 = vmul.f32 %v7389_v61, %v6899_v46  ;;  %v7349_v40 = vpop.permute.xlu0 %7348 }
0x1005   : > { %v7406_v37 = vmul.f32 %v7349_v40, %v6891_v19 }
0x1006   : > { %v7465_v15 = vsel %vm7451_vm2, %v7448_v13, %v7414_v44  ;;  %v7486_v13 = vld [vmem:[%s11518_s10 + $0x90] sm:$0xff] }
0x1007   : > { %v7007_v18 = vpop.permute.xlu1 %7006  ;;  %v7457_v1 = vsel %vm7451_vm2, %v7440_v22, %v7406_v37  ;;  %7675 = vmatmul.mubr.f32.gmra.mrb[10].mxu1 %v7465_v15  ;;  %v7470_v22 = vld [vmem:[%s11518_s10 + $0x10] sm:$0xff]  ;;  %v7487_v15 = vld [vmem:[%s11518_s10 + $0x98] sm:$0xff] }
0x1008   : > { %v6967_v25 = vpop.permute.xlu0 %6966  ;;  %7627 = vmatmul.mubr.f32.gmra.mrb[10].mxu0 %v7457_v1  ;;  %7680 = vmatprep.mubr.f32.mxu1 %v10967_v52  ;;  %v7028_v43 = vmul.f32 %v7007_v18, %v6900_v6  ;;  %v7471_v1 = vld [vmem:[%s11518_s10 + $0x18] sm:$0xff] }
0x1009   : > { %7632 = vmatprep.mubr.f32.mxu0 %v10967_v52  ;;  %v7020_v51 = vmul.f32 %v6967_v25, %v6892_v17 }
0x100b   : > { %v7136_v21 = vpop.permute.xlu1 %7135 }
0x100c   : > { %v7096_v56 = vpop.permute.xlu0 %7095  ;;  %v7157_v60 = vmul.f32 %v7136_v21, %v6900_v6 }
0x100d   : > { %v7149_v57 = vmul.f32 %v7096_v56, %v6892_v17 }
0x100e   : > { %v7432_v34 = vsel %vm7417_vm0, %v7028_v43, %v7157_v60 }
0x100f   : > { %v7265_v58 = vpop.permute.xlu1 %7264  ;;  %v7424_v39 = vsel %vm7417_vm0, %v7020_v51, %v7149_v57  ;;  %v7472_v57 = vld [vmem:[%s11518_s10 + $0x20] sm:$0xff] }
0x1010   : > { %v7225_v33 = vpop.permute.xlu0 %7224  ;;  %v7286_v48 = vmul.f32 %v7265_v58, %v6900_v6 }
0x1011   : > { %v7278_v38 = vmul.f32 %v7225_v33, %v6892_v17  ;;  %v7488_v33 = vld [vmem:[%s11518_s10 + $0xa0] sm:$0xff] }
0x1012   : > { %v7449_v54 = vsel %vm7434_vm1, %v7432_v34, %v7286_v48  ;;  %v7489_v48 = vld [vmem:[%s11518_s10 + $0xa8] sm:$0xff] }
0x1013   : > { %v7394_v42 = vpop.permute.xlu1 %7393  ;;  %v7441_v36 = vsel %vm7434_vm1, %v7424_v39, %v7278_v38  ;;  %v7473_v38 = vld [vmem:[%s11518_s10 + $0x28] sm:$0xff] }
0x1014   : > { %v7415_v29 = vmul.f32 %v7394_v42, %v6900_v6  ;;  %v7354_v27 = vpop.permute.xlu0 %7353 }
0x1015   : > { %v7407_v20 = vmul.f32 %v7354_v27, %v6892_v17 }
0x1016   : > { %v7466_v41 = vsel %vm7451_vm2, %v7449_v54, %v7415_v29  ;;  %v7490_v54 = vld [vmem:[%s11518_s10 + $0xb0] sm:$0xff] }
0x1017   : > { %v7012_v50 = vpop.permute.xlu1 %7011  ;;  %v7458_v62 = vsel %vm7451_vm2, %v7441_v36, %v7407_v20  ;;  %7681 = vmatmul.mubr.f32.gmra.mrb[12].mxu1 %v7466_v41  ;;  %v7474_v36 = vld [vmem:[%s11518_s10 + $0x30] sm:$0xff]  ;;  %v7491_v41 = vld [vmem:[%s11518_s10 + $0xb8] sm:$0xff] }
0x1018   : > { %v6972_v0 = vpop.permute.xlu0 %6971  ;;  %7633 = vmatmul.mubr.f32.gmra.mrb[12].mxu0 %v7458_v62  ;;  %7686 = vmatprep.mubr.f32.mxu1 %v10967_v52  ;;  %v7029_v4 = vmul.f32 %v7012_v50, %v6901_v30  ;;  %v7475_v62 = vld [vmem:[%s11518_s10 + $0x38] sm:$0xff] }
0x1019   : > { %7638 = vmatprep.mubr.f32.mxu0 %v10967_v52  ;;  %v7021_v53 = vmul.f32 %v6972_v0, %v6893_v63 }
0x101b   : > { %v7141_v7 = vpop.permute.xlu1 %7140 }
0x101c   : > { %v7101_v5 = vpop.permute.xlu0 %7100  ;;  %v7158_v32 = vmul.f32 %v7141_v7, %v6901_v30 }
0x101d   : > { %v7150_v28 = vmul.f32 %v7101_v5, %v6893_v63 }
0x101e   : > { %v7433_v8 = vsel %vm7417_vm0, %v7029_v4, %v7158_v32 }
0x101f   : > { %v7270_v45 = vpop.permute.xlu1 %7269  ;;  %v7425_v24 = vsel %vm7417_vm0, %v7021_v53, %v7150_v28  ;;  %v7476_v28 = vld [vmem:[%s11518_s10 + $0x40] sm:$0xff] }
0x1020   : > { %v7230_v11 = vpop.permute.xlu0 %7229  ;;  %v7287_v9 = vmul.f32 %v7270_v45, %v6901_v30 }
0x1021   : > { %v7279_v26 = vmul.f32 %v7230_v11, %v6893_v63  ;;  %v7492_v11 = vld [vmem:[%s11518_s10 + $0xc0] sm:$0xff] }
0x1022   : > { %v7450_v46 = vsel %vm7434_vm1, %v7433_v8, %v7287_v9  ;;  %v7493_v9 = vld [vmem:[%s11518_s10 + $0xc8] sm:$0xff] }
0x1023   : > { %v7399_v10 = vpop.permute.xlu1 %7398  ;;  %v7442_v49 = vsel %vm7434_vm1, %v7425_v24, %v7279_v26  ;;  %v7477_v26 = vld [vmem:[%s11518_s10 + $0x48] sm:$0xff] }
0x1024   : > { %v7416_v52 = vmul.f32 %v7399_v10, %v6901_v30  ;;  %v7359_v23 = vpop.permute.xlu0 %7358 }
0x1025   : > { %v7408_v14 = vmul.f32 %v7359_v23, %v6893_v63 }
0x1026   : > { %v7467_v19 = vsel %vm7451_vm2, %v7450_v46, %v7416_v52  ;;  %v7494_v46 = vld [vmem:[%s11518_s10 + $0xd0] sm:$0xff] }
0x1027   : > { %v7459_v35 = vsel %vm7451_vm2, %v7442_v49, %v7408_v14  ;;  %7687 = vmatmul.mubr.f32.gmra.mrb[14].mxu1 %v7467_v19  ;;  %v7478_v49 = vld [vmem:[%s11518_s10 + $0x50] sm:$0xff]  ;;  %v7495_v19 = vld [vmem:[%s11518_s10 + $0xd8] sm:$0xff] }
0x1028   : > { %7639 = vmatmul.mubr.f32.gmra.mrb[14].mxu0 %v7459_v35 }
0x108a   : > { %v7646_v55 = vpop.f32.mrb[0].mxu1 }
0x108b   : > { %v7598_v2 = vpop.f32.mrb[0].mxu0  ;;  %v7709_v61 = vadd.f32 %v7646_v55, %v7484_v16  ;;  %v7648_v3 = vpop.f32.mrb[1].mxu1  ;;  %v7479_v16 = vld [vmem:[%s11518_s10 + $0x58] sm:$0xff] }
0x108c   : > { %v7693_v44 = vadd.f32 %v7598_v2, %v7468_v31  ;;  %v7600_v40 = vpop.f32.mrb[1].mxu0  ;;  %v7710_v47 = vadd.f32 %v7648_v3, %v7485_v59 }
0x108d   : > { %7741 = vst [vmem:[%s11518_s10 + $0x80] sm:$0xff] %v7709_v61  ;;  %v7694_v37 = vadd.f32 %v7600_v40, %v7469_v12  ;;  %v7480_v40 = vld [vmem:[%s11518_s10 + $0x60] sm:$0xff] }
0x108e   : > { %7725 = vst [vmem:[%s11518_s10] sm:$0xff] %v7693_v44  ;;  %7742 = vst [vmem:[%s11518_s10 + $0x88] sm:$0xff] %v7710_v47  ;;  %v7496_v44 = vld [vmem:[%s11518_s10 + $0xe0] sm:$0xff]  ;;  %v7497_v47 = vld [vmem:[%s11518_s10 + $0xe8] sm:$0xff] }
0x108f   : > { %7726 = vst [vmem:[%s11518_s10 + $0x8] sm:$0xff] %v7694_v37 }
0x109a   : > { %v7652_v18 = vpop.f32.mrb[2].mxu1 }
0x109b   : > { %v7604_v25 = vpop.f32.mrb[2].mxu0  ;;  %v7711_v21 = vadd.f32 %v7652_v18, %v7486_v13  ;;  %v7654_v56 = vpop.f32.mrb[3].mxu1  ;;  %v7481_v13 = vld [vmem:[%s11518_s10 + $0x68] sm:$0xff] }
0x109c   : > { %v7695_v6 = vadd.f32 %v7604_v25, %v7470_v22  ;;  %v7606_v58 = vpop.f32.mrb[3].mxu0  ;;  %v7712_v17 = vadd.f32 %v7654_v56, %v7487_v15 }
0x109d   : > { %7743 = vst [vmem:[%s11518_s10 + $0x90] sm:$0xff] %v7711_v21  ;;  %v7696_v60 = vadd.f32 %v7606_v58, %v7471_v1  ;;  %v7482_v58 = vld [vmem:[%s11518_s10 + $0x70] sm:$0xff] }
0x109e   : > { %7727 = vst [vmem:[%s11518_s10 + $0x10] sm:$0xff] %v7695_v6  ;;  %7744 = vst [vmem:[%s11518_s10 + $0x98] sm:$0xff] %v7712_v17  ;;  %v7498_v6 = vld [vmem:[%s11518_s10 + $0xf0] sm:$0xff]  ;;  %v7499_v17 = vld [vmem:[%s11518_s10 + $0xf8] sm:$0xff] }
0x109f   : > { %7728 = vst [vmem:[%s11518_s10 + $0x18] sm:$0xff] %v7696_v60 }
0x10aa   : > { %v7658_v43 = vpop.f32.mrb[4].mxu1 }
0x10ab   : > { %v7610_v51 = vpop.f32.mrb[4].mxu0  ;;  %v7713_v42 = vadd.f32 %v7658_v43, %v7488_v33  ;;  %v7660_v34 = vpop.f32.mrb[5].mxu1  ;;  %v7483_v33 = vld [vmem:[%s11518_s10 + $0x78] sm:$0xff] }
0x10ac   : > { %v7697_v29 = vadd.f32 %v7610_v51, %v7472_v57  ;;  %v7612_v27 = vpop.f32.mrb[5].mxu0  ;;  %v7714_v39 = vadd.f32 %v7660_v34, %v7489_v48 }
0x10ad   : > { %7745 = vst [vmem:[%s11518_s10 + $0xa0] sm:$0xff] %v7713_v42  ;;  %v7698_v20 = vadd.f32 %v7612_v27, %v7473_v38 }
0x10ae   : > { %7729 = vst [vmem:[%s11518_s10 + $0x20] sm:$0xff] %v7697_v29  ;;  %7746 = vst [vmem:[%s11518_s10 + $0xa8] sm:$0xff] %v7714_v39 }
0x10af   : > { %7730 = vst [vmem:[%s11518_s10 + $0x28] sm:$0xff] %v7698_v20 }
0x10ba   : > { %v7664_v50 = vpop.f32.mrb[6].mxu1 }
0x10bb   : > { %v7616_v0 = vpop.f32.mrb[6].mxu0  ;;  %v7715_v7 = vadd.f32 %v7664_v50, %v7490_v54  ;;  %v7666_v5 = vpop.f32.mrb[7].mxu1 }
0x10bc   : > { %v7699_v30 = vadd.f32 %v7616_v0, %v7474_v36  ;;  %v7618_v45 = vpop.f32.mrb[7].mxu0  ;;  %v7716_v63 = vadd.f32 %v7666_v5, %v7491_v41 }
0x10bd   : > { %7747 = vst [vmem:[%s11518_s10 + $0xb0] sm:$0xff] %v7715_v7  ;;  %v7700_v32 = vadd.f32 %v7618_v45, %v7475_v62 }
0x10be   : > { %7731 = vst [vmem:[%s11518_s10 + $0x30] sm:$0xff] %v7699_v30  ;;  %7748 = vst [vmem:[%s11518_s10 + $0xb8] sm:$0xff] %v7716_v63 }
0x10bf   : > { %7732 = vst [vmem:[%s11518_s10 + $0x38] sm:$0xff] %v7700_v32 }
0x10ca   : > { %v7670_v4 = vpop.f32.mrb[8].mxu1 }
0x10cb   : > { %v7622_v53 = vpop.f32.mrb[8].mxu0  ;;  %v7717_v10 = vadd.f32 %v7670_v4, %v7492_v11  ;;  %v7672_v8 = vpop.f32.mrb[9].mxu1 }
0x10cc   : > { %v7701_v52 = vadd.f32 %v7622_v53, %v7476_v28  ;;  %v7624_v23 = vpop.f32.mrb[9].mxu0  ;;  %v7718_v24 = vadd.f32 %v7672_v8, %v7493_v9 }
0x10cd   : > { %7749 = vst [vmem:[%s11518_s10 + $0xc0] sm:$0xff] %v7717_v10  ;;  %v7702_v14 = vadd.f32 %v7624_v23, %v7477_v26 }
0x10ce   : > { %7733 = vst [vmem:[%s11518_s10 + $0x40] sm:$0xff] %v7701_v52  ;;  %7750 = vst [vmem:[%s11518_s10 + $0xc8] sm:$0xff] %v7718_v24 }
0x10cf   : > { %7734 = vst [vmem:[%s11518_s10 + $0x48] sm:$0xff] %v7702_v14 }
0x10da   : > { %v7676_v35 = vpop.f32.mrb[10].mxu1 }
0x10db   : > { %v7628_v31 = vpop.f32.mrb[10].mxu0  ;;  %v7719_v59 = vadd.f32 %v7676_v35, %v7494_v46  ;;  %v7678_v55 = vpop.f32.mrb[11].mxu1 }
0x10dc   : > { %v7703_v12 = vadd.f32 %v7628_v31, %v7478_v49  ;;  %v7630_v2 = vpop.f32.mrb[11].mxu0  ;;  %v7720_v61 = vadd.f32 %v7678_v55, %v7495_v19 }
0x10dd   : > { %7751 = vst [vmem:[%s11518_s10 + $0xd0] sm:$0xff] %v7719_v59  ;;  %v7704_v3 = vadd.f32 %v7630_v2, %v7479_v16 }
0x10de   : > { %7735 = vst [vmem:[%s11518_s10 + $0x50] sm:$0xff] %v7703_v12  ;;  %7752 = vst [vmem:[%s11518_s10 + $0xd8] sm:$0xff] %v7720_v61 }
0x10df   : > { %7736 = vst [vmem:[%s11518_s10 + $0x58] sm:$0xff] %v7704_v3 }
0x10ea   : > { %v7682_v37 = vpop.f32.mrb[12].mxu1 }
0x10eb   : > { %v7634_v22 = vpop.f32.mrb[12].mxu0  ;;  %v7721_v15 = vadd.f32 %v7682_v37, %v7496_v44  ;;  %v7684_v18 = vpop.f32.mrb[13].mxu1 }
0x10ec   : > { %v7705_v1 = vadd.f32 %v7634_v22, %v7480_v40  ;;  %v7636_v25 = vpop.f32.mrb[13].mxu0  ;;  %v7722_v21 = vadd.f32 %v7684_v18, %v7497_v47 }
0x10ed   : > { %7753 = vst [vmem:[%s11518_s10 + $0xe0] sm:$0xff] %v7721_v15  ;;  %v7706_v56 = vadd.f32 %v7636_v25, %v7481_v13 }
0x10ee   : > { %7737 = vst [vmem:[%s11518_s10 + $0x60] sm:$0xff] %v7705_v1  ;;  %7754 = vst [vmem:[%s11518_s10 + $0xe8] sm:$0xff] %v7722_v21 }
0x10ef   : > { %7738 = vst [vmem:[%s11518_s10 + $0x68] sm:$0xff] %v7706_v56 }
0x10fa   : > { %v7688_v60 = vpop.f32.mrb[14].mxu1 }
0x10fb   : > { %v7640_v57 = vpop.f32.mrb[14].mxu0  ;;  %v7723_v48 = vadd.f32 %v7688_v60, %v7498_v6  ;;  %v7690_v43 = vpop.f32.mrb[15].mxu1 }
0x10fc   : > { %v7707_v38 = vadd.f32 %v7640_v57, %v7482_v58  ;;  %v7642_v51 = vpop.f32.mrb[15].mxu0  ;;  %v7724_v42 = vadd.f32 %v7690_v43, %v7499_v17 }
0x10fd   : > { %7755 = vst [vmem:[%s11518_s10 + $0xf0] sm:$0xff] %v7723_v48  ;;  %v7708_v34 = vadd.f32 %v7642_v51, %v7483_v33 }
0x10fe   : > { %7739 = vst [vmem:[%s11518_s10 + $0x70] sm:$0xff] %v7707_v38  ;;  %7756 = vst [vmem:[%s11518_s10 + $0xf8] sm:$0xff] %v7724_v42 }
0x10ff   : > { %7740 = vst [vmem:[%s11518_s10 + $0x78] sm:$0xff] %v7708_v34 }
0x1100 PF: > { %s7758_s14 = scalar_lea.sflag [#allocation8], %s11460_s13 }
0x1101   : > { %s15844_s17 = sld [smem:[#allocation52_spill]]  ;;  %s15845_s3 = sld [smem:[#allocation65_spill]] }
0x1102   : > { %s7788_s16 = sshll.u32 %s11518_s10, 4  ;;  %s15846_s20 = sld [smem:[#allocation158_spill]]  ;;  %s7789_s16 = int_to_ptr.vmem [resolvable:$true] %s7788_s16 }
0x1103   : > { %s10968_s0 = smov 2048   ;;  %s10969_s13 = smov 4096  }
0x1104   : > { %s10970_s19 = smov 8   ;;  %s10971_s11 = smov 256  }
0x1105   : > { %s10972_s10 = smov 16   ;;  %s10973_s15 = smov [#allocation29]  }
0x1106   : > { %s10974_s22 = smov 0  }
0x1107   : > { %s8333_s12 = sshll.u32 %s15844_s17, 11  ;;  %p15847_p7 = scmp.ne.s32.totalorder %s15845_s3, 0 }
0x1108   : > { %s7771_s25 = scalar_lea.hbm %s15846_s20, %s8333_s12 }
0x1109   : > { %9806 = sst [smem:[#allocation30]] (%p15847_p7), %s10968_s0 }
0x110a   : > { %9807 = sst [smem:[#allocation30 + $0x1]] (%p15847_p7), %s10969_s13 }
0x110b   : > { %9808 = sst [smem:[#allocation30 + $0x2]] (%p15847_p7), %s10970_s19 }
0x110c   : > { %9809 = sst [smem:[#allocation30 + $0x3]] (%p15847_p7), %s10971_s11 }
0x110d   : > { %9810 = sst [smem:[#allocation30 + $0x4]] (%p15847_p7), %s10971_s11 }
0x110e   : > { %9811 = sst [smem:[#allocation30 + $0x5]] (%p15847_p7), %s10972_s10 }
0x110f   : > { %9812 = dma.general (%p15847_p7), %s7789_s16, 4096, %s7771_s25, %s7758_s14, %s10973_s15, [#allocation30], %s10974_s22, 0  }
0x1110 PF: > { %s15848_s29 = sld [smem:[#allocation54_spill]]  ;;  %s15849_s1 = sld [smem:[#allocation47_spill]] }
0x1111   : > { %s15850_s30 = sld [smem:[#allocation66_spill]] }
0x1116   : > { %p9818_p9 = scmp.ge.s32.totalorder %s15848_s29, 2  ;;  %s7816_s27 = sand.u32 1, %s15849_s1  }
0x1117   : > { %p15851_p6 = scmp.ne.s32.totalorder %s15850_s30, 0  ;;  %s7817_s28 = scalar_lea.sflag [#allocation8], %s7816_s27 }
0x1119   : > { %p9815_p8 = pnand %p9818_p9, %p15851_p6 }
0x111b   : > { %10858 = dma.done.wait (!%p9815_p8), %s7817_s28, 4096  }
0x111c   : > { %10860 = vsyncadd (!%p9815_p8), %s7817_s28, 4294963200  ;;  %s37_s24 = sadd.s32 1, %s15848_s29   ;;  %s15853_s30 = sld [smem:[#allocation43_spill]] }
0x111d   : > { %p15254_p13 = scmp.ge.s32.totalorder %s37_s24, 10   ;;  %s15854_s10 = sld [smem:[#allocation44_spill]] }
0x111e   : > { %s15855_s11 = sld [smem:[#allocation63_spill]]  ;;  %s15856_s12 = sld [smem:[#allocation45_spill]] }
0x111f   : > { %s15857_s13 = sld [smem:[#allocation46_spill]]  ;;  %s15858_s14 = sld [smem:[#allocation59_spill]] }
0x1120   : > { %s15859_s15 = sld [smem:[#allocation48_spill]]  ;;  %s15860_s16 = sld [smem:[#allocation49_spill]] }
0x1121   : > { %s15861_s17 = sld [smem:[#allocation62_spill]]  ;;  %s15862_s19 = sld [smem:[#allocation53_spill]] }
0x1122   : > { %s15863_s3 = sld [smem:[#allocation56_spill]]  ;;  %s15864_s22 = sld [smem:[#allocation57_spill]] }
0x1123   : > { %s15865_s26 = sld [smem:[#allocation60_spill]]  ;;  %s15866_s18 = smov %s10911_s21 }
0x1124   : > { %s15867_s20 = smov %s10919_s23  ;;  %36 = sbr.rel (!%p15254_p13) target bundleno = 25 (0x19), region = 240 }
0x1128   : > { %s15868_s21 = smov %s15863_s3 }
0x1129   : > { %s15869_s23 = smov %s15865_s26 }
0x112b   :  { %7822 = vsyncpa [#allocation7], 1 }
0x112c   :  { %7824 = vsyncpa [#allocation7 + $0x1], 1 }
0x112d   :  { %7825 = vsyncpa [#allocation10], 1 }
0x112e   :  { %7827 = vsyncpa [#allocation10 + $0x1], 1 }
0x112f   :  { %7828 = vsyncpa [#allocation13], 1 }
0x1130   :  { %7830 = vsyncpa [#allocation13 + $0x1], 1 }
0x1131   :  { %7831 = vsyncpa [#allocation16], 1 }
0x1132   :  { %7833 = vsyncpa [#allocation16 + $0x1], 1 }
0x1133   :  { %7834 = vsyncpa [#allocation19], 1 }
0x1134   :  { %7836 = vsyncpa [#allocation19 + $0x1], 1 }
0x1135   :  { %7837 = vsyncpa [#allocation8], 1 }
0x1136   :  { %7839 = vsyncpa [#allocation8 + $0x1], 1 }

</bundles_post_ra>
